<compile_context>
chip_gen: v7x
topology: tpu7x:2x2x1
jax: 0.10.0
libtpu: 0.0.40
codegen_flags: <defaults>
</compile_context>

<pallas_src>
import numpy as np
import jax
import jax.numpy as jnp
from jax import lax
from jax.experimental import pallas as pl
from jax.experimental.pallas import tpu as pltpu

_LANES = 128
_BN_EPS = 1e-5
_G = 8           # zero guard rows at both ends of the padded activation scratches


def _round_up(n, m):
    return ((n + m - 1) // m) * m


def _band_rows(nrows, pitch, target=128):
    """Largest divisor of `nrows` whose band (rows * pitch) stays <= `target` rows."""
    best = 1
    for r in range(1, nrows + 1):
        if nrows % r == 0 and r * pitch <= target:
            best = r
    return best


# ---------------------------------------------------------------------------
# Kernel
# ---------------------------------------------------------------------------
def _make_kernel(*, H, W, Ho, Wo, stride, Wp1, Wp2, equal):
    """Builds the per-config kernel.  Padded flat layouts:
         input  activation: row pitch Wp1, image at rows [1, H+1), cols [0, W)
         mid    activation: row pitch Wp2, image at rows [1, Ho+1), cols [0, Wo)
       plus _G zero guard rows at both ends of each scratch.  Pad/guard rows stay zero and
       double as the convolutions' zero padding, so a 3x3 tap is a constant flat shift."""
    taps = [(kh, kw) for kh in range(3) for kw in range(3)]
    RB1 = _band_rows(H, Wp1)      # conv1 band rows (stride-1 path)
    RB2 = _band_rows(Ho, Wp2)     # conv2 band rows
    G = _G

    def body(x_ref, s1_ref, b1_ref, w1_ref, b2_ref, w2_ref,
             wsc_ref, ssub_ref, o_ref, apad_ref, hpad_ref, shc_ref):
        cout_p = w1_ref.shape[2]

        # Zero the padded scratches: their pad/guard rows are the convs' zero padding.
        apad_ref[...] = jnp.zeros_like(apad_ref)
        hpad_ref[...] = jnp.zeros_like(hpad_ref)

        # ---- BN1 (pre-folded) + ReLU, restrided into the padded input layout ----
        s1 = s1_ref[...]
        b1 = b1_ref[...]
        for i in range(H):
            xr = x_ref[pl.ds(i * W, W), :]
            a = jnp.maximum(xr * s1 + b1, 0.0)
            apad_ref[pl.ds(G + (i + 1) * Wp1, W), :] = a.astype(jnp.bfloat16)

        b2 = b2_ref[...]

        # ---- conv1 (3x3, stride) + BN2 shift + ReLU -> hpad (padded mid layout) ----
        if stride == 1:
            T1 = RB1 * Wp1
            for band in range(H // RB1):
                base = (1 + band * RB1) * Wp1
                acc = jnp.zeros((T1, cout_p), jnp.float32)
                for k, (kh, kw) in enumerate(taps):
                    d = (kh - 1) * Wp1 + (kw - 1)
                    win = apad_ref[pl.ds(G + base + d, T1), :]
                    acc = acc + jnp.dot(win, w1_ref[k],
                                        preferred_element_type=jnp.float32)
                hband = jnp.maximum(acc + b2, 0.0)
                # Store only the image columns of each row; pad columns of hpad stay zero.
                for r in range(RB1):
                    i = band * RB1 + r
                    hrow = hband[r * Wp1:r * Wp1 + Wo, :]
                    hpad_ref[pl.ds(G + (i + 1) * Wp2, Wo), :] = hrow.astype(jnp.bfloat16)
        else:
            # stride == 2: run the stride-1 conv over the one needed full-res padded row,
            # then subsample its columns with a tiny exact one-hot matmul.
            ssub = ssub_ref[...]                       # (Wo, Wp1) f32, one-hot at (j, 2j)
            for i in range(Ho):
                base = (2 * i + 1) * Wp1
                acc = jnp.zeros((Wp1, cout_p), jnp.float32)
                for k, (kh, kw) in enumerate(taps):
                    d = (kh - 1) * Wp1 + (kw - 1)
                    win = apad_ref[pl.ds(G + base + d, Wp1), :]
                    acc = acc + jnp.dot(win, w1_ref[k],
                                        preferred_element_type=jnp.float32)
                sub = jnp.dot(ssub, acc, preferred_element_type=jnp.float32)
                hrow = jnp.maximum(sub + b2, 0.0)
                hpad_ref[pl.ds(G + (i + 1) * Wp2, Wo), :] = hrow.astype(jnp.bfloat16)

        # ---- projection shortcut (1x1 conv, stride) on relu(bn1(x)) ----
        if not equal:
            wsc = wsc_ref[...]
            for i in range(Ho):
                if stride == 1:
                    a_sub = apad_ref[pl.ds(G + (i + 1) * Wp1, Wo), :]          # bf16
                else:
                    row = apad_ref[pl.ds(G + (2 * i + 1) * Wp1, Wp1), :]
                    a_sub = jnp.dot(ssub_ref[...], row.astype(jnp.float32),
                                    preferred_element_type=jnp.float32
                                    ).astype(jnp.bfloat16)
                shc_ref[pl.ds(i * Wo, Wo), :] = jnp.dot(
                    a_sub, wsc, preferred_element_type=jnp.float32)

        # ---- conv2 (3x3, stride 1) + shortcut -> compact output ----
        T2 = RB2 * Wp2
        for band in range(Ho // RB2):
            base = (1 + band * RB2) * Wp2
            acc = jnp.zeros((T2, cout_p), jnp.float32)
            for k, (kh, kw) in enumerate(taps):
                d = (kh - 1) * Wp2 + (kw - 1)
                win = hpad_ref[pl.ds(G + base + d, T2), :]
                acc = acc + jnp.dot(win, w2_ref[k],
                                    preferred_element_type=jnp.float32)
            for r in range(RB2):
                i = band * RB2 + r
                rows = acc[r * Wp2:r * Wp2 + Wo, :]
                if equal:
                    sc = x_ref[pl.ds(i * W, W), :]       # identity shortcut (Wo == W)
                else:
                    sc = shc_ref[pl.ds(i * Wo, Wo), :]
                o_ref[pl.ds(i * Wo, Wo), :] = (rows + sc).astype(o_ref.dtype)

    # Exact-arity kernel variants (operand / scratch lists differ per config).
    if equal:
        def kernel(x_ref, s1_ref, b1_ref, w1_ref, b2_ref, w2_ref,
                   o_ref, apad_ref, hpad_ref):
            body(x_ref, s1_ref, b1_ref, w1_ref, b2_ref, w2_ref,
                 None, None, o_ref, apad_ref, hpad_ref, None)
    elif stride == 1:
        def kernel(x_ref, s1_ref, b1_ref, w1_ref, b2_ref, w2_ref, wsc_ref,
                   o_ref, apad_ref, hpad_ref, shc_ref):
            body(x_ref, s1_ref, b1_ref, w1_ref, b2_ref, w2_ref,
                 wsc_ref, None, o_ref, apad_ref, hpad_ref, shc_ref)
    else:
        def kernel(x_ref, s1_ref, b1_ref, w1_ref, b2_ref, w2_ref, wsc_ref, ssub_ref,
                   o_ref, apad_ref, hpad_ref, shc_ref):
            body(x_ref, s1_ref, b1_ref, w1_ref, b2_ref, w2_ref,
                 wsc_ref, ssub_ref, o_ref, apad_ref, hpad_ref, shc_ref)
    return kernel


# ---------------------------------------------------------------------------
# Parameter preparation (BN folding, weight layout, channel padding, bf16 cast)
# ---------------------------------------------------------------------------
def prepare_params(raw):
    g1, be1, rm1, rv1 = raw["bn1"]
    g2, be2, rm2, rv2 = raw["bn2"]
    w1 = raw["conv1_w"]
    w2 = raw["conv2_w"]
    wsc = raw.get("shortcut_w", None)

    cout, cin, _, _ = w1.shape
    cin_p = max(_LANES, _round_up(cin, _LANES))
    cout_p = max(_LANES, _round_up(cout, _LANES))

    s1 = g1 / jnp.sqrt(rv1 + _BN_EPS)
    sh1 = be1 - rm1 * s1
    s2 = g2 / jnp.sqrt(rv2 + _BN_EPS)
    sh2 = be2 - rm2 * s2

    # Fold the BN2 scale into conv1's output channels.
    w1_folded = w1 * s2[:, None, None, None]

    def conv_w_to_taps(w, ci_pad, co_pad):
        co, ci, kh, kw = w.shape
        taps = jnp.transpose(w, (2, 3, 1, 0)).reshape(kh * kw, ci, co)
        taps = jnp.pad(taps, ((0, 0), (0, ci_pad - ci), (0, co_pad - co)))
        return taps.astype(jnp.bfloat16)

    prep = {
        "cin": cin, "cout": cout, "cin_p": cin_p, "cout_p": cout_p,
        "equal_in_out": (cin == cout) and (wsc is None),
        "s1": jnp.pad(s1, (0, cin_p - cin)).reshape(1, cin_p).astype(jnp.float32),
        "b1": jnp.pad(sh1, (0, cin_p - cin)).reshape(1, cin_p).astype(jnp.float32),
        "w1": conv_w_to_taps(w1_folded, cin_p, cout_p),
        "b2": jnp.pad(sh2, (0, cout_p - cout)).reshape(1, cout_p).astype(jnp.float32),
        "w2": conv_w_to_taps(w2, cout_p, cout_p),
    }
    if wsc is not None:
        wsc2d = jnp.transpose(wsc[:, :, 0, 0], (1, 0))        # (Cin, Cout)
        wsc2d = jnp.pad(wsc2d, ((0, cin_p - cin), (0, cout_p - cout)))
        prep["wsc"] = wsc2d.astype(jnp.bfloat16)
    return prep


# ---------------------------------------------------------------------------
# Wrapper
# ---------------------------------------------------------------------------
def basic_block_forward(x, prep, *, stride):
    """x: (B, Cin, H, W) float32 NCHW. Returns (B, Cout, Ho, Wo) float32."""
    B, Cin, H, W = x.shape
    assert Cin == prep["cin"]
    assert stride in (1, 2)
    equal = prep["equal_in_out"]
    if equal:
        assert stride == 1, "identity shortcut requires stride == 1"
    cin_p, cout_p, cout = prep["cin_p"], prep["cout_p"], prep["cout"]

    Ho = (H - 1) // stride + 1
    Wo = (W - 1) // stride + 1
    HW, P = H * W, Ho * Wo

    Wp1 = _round_up(W + 2, 8)            # padded row pitch of the input-resolution layout
    Wp2 = _round_up(Wo + 2, 8)           # padded row pitch of the mid-resolution layout
    N1t = _G + (H + 2) * Wp1 + _G        # rows of the padded BN1 activation scratch
    N2t = _G + (Ho + 2) * Wp2 + _G       # rows of the padded conv2-input scratch

    # NCHW -> (B, H*W, Cin_p): channels on the 128-lane axis, zero-padded.
    x_flat = jnp.transpose(x, (0, 2, 3, 1)).reshape(B, HW, Cin).astype(jnp.float32)
    x_flat = jnp.pad(x_flat, ((0, 0), (0, 0), (0, cin_p - Cin)))

    operands = [x_flat, prep["s1"], prep["b1"], prep["w1"], prep["b2"], prep["w2"]]
    in_specs = [
        pl.BlockSpec((None, HW, cin_p), lambda b: (b, 0, 0)),     # per-image tile
        pl.BlockSpec((1, cin_p), lambda b: (0, 0)),               # resident params below
        pl.BlockSpec((1, cin_p), lambda b: (0, 0)),
        pl.BlockSpec((9, cin_p, cout_p), lambda b: (0, 0, 0)),
        pl.BlockSpec((1, cout_p), lambda b: (0, 0)),
        pl.BlockSpec((9, cout_p, cout_p), lambda b: (0, 0, 0)),
    ]
    scratch_shapes = [
        pltpu.VMEM((N1t, cin_p), jnp.bfloat16),                   # padded relu(bn1(x))
        pltpu.VMEM((N2t, cout_p), jnp.bfloat16),                  # padded relu(bn2(conv1))
    ]
    if not equal:
        operands.append(prep["wsc"])
        in_specs.append(pl.BlockSpec((cin_p, cout_p), lambda b: (0, 0)))
        if stride != 1:
            ssub = np.zeros((Wo, Wp1), np.float32)                # tiny one-hot column
            ssub[np.arange(Wo), 2 * np.arange(Wo)] = 1.0          # subsampler (exact)
            operands.append(jnp.asarray(ssub))
            in_specs.append(pl.BlockSpec((Wo, Wp1), lambda b: (0, 0)))
        scratch_shapes.append(pltpu.VMEM((P, cout_p), jnp.float32))   # shortcut rows

    kernel = _make_kernel(H=H, W=W, Ho=Ho, Wo=Wo, stride=stride,
                          Wp1=Wp1, Wp2=Wp2, equal=equal)

    out = pl.pallas_call(
        kernel,
        out_shape=jax.ShapeDtypeStruct((B, P, cout_p), jnp.float32),
        grid=(B,),
        in_specs=in_specs,
        out_specs=pl.BlockSpec((None, P, cout_p), lambda b: (b, 0, 0)),
        scratch_shapes=scratch_shapes,
        compiler_params=pltpu.CompilerParams(
            dimension_semantics=("parallel",)),
    )(*operands)

    out = out[:, :, :cout].reshape(B, Ho, Wo, cout)
    return jnp.transpose(out, (0, 3, 1, 2))                       # back to NCHW


# ---------------------------------------------------------------------------
# Deterministic parameter init matching the module's shapes
# ---------------------------------------------------------------------------
def make_raw_params(key, in_planes, out_planes, *, with_shortcut):
    ks = jax.random.split(key, 11)

    def conv_init(k, co, ci, kh, kw):
        bound = 1.0 / jnp.sqrt(ci * kh * kw)
        return jax.random.uniform(k, (co, ci, kh, kw), jnp.float32, -bound, bound)

    def bn_init(kg, kb, km, kv, c):
        gamma = 1.0 + 0.1 * jax.random.normal(kg, (c,), jnp.float32)
        beta = 0.1 * jax.random.normal(kb, (c,), jnp.float32)
        mean = 0.05 * jax.random.normal(km, (c,), jnp.float32)
        var = 1.0 + 0.1 * jax.random.uniform(kv, (c,), jnp.float32)
        return gamma, beta, mean, var

    raw = {
        "bn1": bn_init(ks[0], ks[1], ks[2], ks[3], in_planes),
        "conv1_w": conv_init(ks[4], out_planes, in_planes, 3, 3),
        "bn2": bn_init(ks[5], ks[6], ks[7], ks[8], out_planes),
        "conv2_w": conv_init(ks[9], out_planes, out_planes, 3, 3),
    }
    if with_shortcut:
        raw["shortcut_w"] = conv_init(ks[10], out_planes, in_planes, 1, 1)
    return raw


# ---------------------------------------------------------------------------
# Independent pure-JAX reference (same bf16 operand / f32 accumulate numerics)
# ---------------------------------------------------------------------------
def reference_forward(x, raw, *, stride):
    g1, be1, rm1, rv1 = raw["bn1"]
    g2, be2, rm2, rv2 = raw["bn2"]
    w1, w2 = raw["conv1_w"], raw["conv2_w"]
    wsc = raw.get("shortcut_w", None)
    dn = ("NCHW", "OIHW", "NCHW")

    s1 = g1 / jnp.sqrt(rv1 + _BN_EPS)
    sh1 = be1 - rm1 * s1
    s2 = g2 / jnp.sqrt(rv2 + _BN_EPS)
    sh2 = be2 - rm2 * s2

    a = jnp.maximum(x * s1[None, :, None, None] + sh1[None, :, None, None], 0.0)
    a_bf = a.astype(jnp.bfloat16)

    w1_f = (w1 * s2[:, None, None, None]).astype(jnp.bfloat16)
    c1 = lax.conv_general_dilated(a_bf, w1_f, (stride, stride), ((1, 1), (1, 1)),
                                  dimension_numbers=dn,
                                  preferred_element_type=jnp.float32)
    h = jnp.maximum(c1 + sh2[None, :, None, None], 0.0)
    c2 = lax.conv_general_dilated(h.astype(jnp.bfloat16), w2.astype(jnp.bfloat16),
                                  (1, 1), ((1, 1), (1, 1)), dimension_numbers=dn,
                                  preferred_element_type=jnp.float32)
    if wsc is None:
        shortcut = x
    else:
        shortcut = lax.conv_general_dilated(a_bf, wsc.astype(jnp.bfloat16),
                                            (stride, stride), ((0, 0), (0, 0)),
                                            dimension_numbers=dn,
                                            preferred_element_type=jnp.float32)
    return shortcut + c2


if __name__ == "__main__":
    key = jax.random.PRNGKey(0)
    kx1, kp1, kx2, kp2, kx3, kp3 = jax.random.split(key, 6)

    B, C, H, W = 2, 16, 16, 16

    # Case 1: identity block (16 -> 16 planes, stride 1).
    x1 = jax.random.normal(kx1, (B, C, H, W), jnp.float32)
    raw1 = make_raw_params(kp1, C, C, with_shortcut=False)
    y1 = jax.block_until_ready(basic_block_forward(x1, prepare_params(raw1), stride=1))
    ref1 = reference_forward(x1, raw1, stride=1)
    assert y1.shape == (B, C, H, W)
    assert jnp.allclose(y1, ref1, rtol=2e-2, atol=2e-2), \
        float(jnp.max(jnp.abs(y1 - ref1)))

    # Case 2: downsample block (16 -> 32 planes, stride 2, 1x1-conv shortcut).
    Cout = 32
    x2 = jax.random.normal(kx2, (B, C, H, W), jnp.float32)
    raw2 = make_raw_params(kp2, C, Cout, with_shortcut=True)
    y2 = jax.block_until_ready(basic_block_forward(x2, prepare_params(raw2), stride=2))
    ref2 = reference_forward(x2, raw2, stride=2)
    assert y2.shape == (B, Cout, H // 2, W // 2)
    assert jnp.allclose(y2, ref2, rtol=2e-2, atol=2e-2), \
        float(jnp.max(jnp.abs(y2 - ref2)))

    # Case 3: widening block (16 -> 32 planes, stride 1, 1x1-conv shortcut).
    x3 = jax.random.normal(kx3, (B, C, H, W), jnp.float32)
    raw3 = make_raw_params(kp3, C, Cout, with_shortcut=True)
    y3 = jax.block_until_ready(basic_block_forward(x3, prepare_params(raw3), stride=1))
    ref3 = reference_forward(x3, raw3, stride=1)
    assert y3.shape == (B, Cout, H, W)
    assert jnp.allclose(y3, ref3, rtol=2e-2, atol=2e-2), \
        float(jnp.max(jnp.abs(y3 - ref3)))

    print("KERNEL_OK")
</pallas_src>

<mosaic_0001>
module attributes {stable_mosaic.version = 11 : i64} {
  func.func @kernel(%arg0: i32, %arg1: memref<1x256x128xf32, #tpu.memory_space<vmem>>, %arg2: memref<1x128xf32, #tpu.memory_space<vmem>>, %arg3: memref<1x128xf32, #tpu.memory_space<vmem>>, %arg4: memref<9x128x128xbf16, #tpu.memory_space<vmem>>, %arg5: memref<1x128xf32, #tpu.memory_space<vmem>>, %arg6: memref<9x128x128xbf16, #tpu.memory_space<vmem>>, %arg7: memref<1x256x128xf32, #tpu.memory_space<vmem>>, %arg8: memref<448x128xbf16, #tpu.memory_space<vmem>>, %arg9: memref<448x128xbf16, #tpu.memory_space<vmem>>) attributes {dimension_semantics = [#tpu.dimension_semantics<parallel>], iteration_bounds = array<i64: 2>, scalar_prefetch = 0 : i64, scratch_operands = 2 : i64, tpu.core_type = #tpu.core_type<tc>, window_params = [{transform_indices = @transform_0, window_bounds = array<i64: 1, 256, 128>}, {pipeline_mode = #tpu.pipeline_mode<synchronous>, transform_indices = @transform_1, window_bounds = array<i64: 1, 128>}, {pipeline_mode = #tpu.pipeline_mode<synchronous>, transform_indices = @transform_2, window_bounds = array<i64: 1, 128>}, {pipeline_mode = #tpu.pipeline_mode<synchronous>, transform_indices = @transform_3, window_bounds = array<i64: 9, 128, 128>}, {pipeline_mode = #tpu.pipeline_mode<synchronous>, transform_indices = @transform_4, window_bounds = array<i64: 1, 128>}, {pipeline_mode = #tpu.pipeline_mode<synchronous>, transform_indices = @transform_5, window_bounds = array<i64: 9, 128, 128>}, {transform_indices = @transform_6, window_bounds = array<i64: 1, 256, 128>}]} {
    %cst = arith.constant 0.000000e+00 : bf16
    %0 = vector.broadcast %cst : bf16 to vector<448x128xbf16>
    %c0 = arith.constant 0 : index
    %c0_0 = arith.constant 0 : index
    %1 = vector.load %arg8[%c0, %c0_0] : memref<448x128xbf16, #tpu.memory_space<vmem>>, vector<448x128xbf16>
    tpu.vector_store %arg8[%c0, %c0_0], %0 {strides = array<i32>} : memref<448x128xbf16, #tpu.memory_space<vmem>>, vector<448x128xbf16>,
    %cst_1 = arith.constant 0.000000e+00 : bf16
    %2 = vector.broadcast %cst_1 : bf16 to vector<448x128xbf16>
    %c0_2 = arith.constant 0 : index
    %c0_3 = arith.constant 0 : index
    %3 = vector.load %arg9[%c0_2, %c0_3] : memref<448x128xbf16, #tpu.memory_space<vmem>>, vector<448x128xbf16>
    tpu.vector_store %arg9[%c0_2, %c0_3], %2 {strides = array<i32>} : memref<448x128xbf16, #tpu.memory_space<vmem>>, vector<448x128xbf16>,
    %c0_4 = arith.constant 0 : index
    %c0_5 = arith.constant 0 : index
    %4 = vector.load %arg2[%c0_4, %c0_5] : memref<1x128xf32, #tpu.memory_space<vmem>>, vector<1x128xf32>
    %c0_6 = arith.constant 0 : index
    %c0_7 = arith.constant 0 : index
    %5 = vector.load %arg3[%c0_6, %c0_7] : memref<1x128xf32, #tpu.memory_space<vmem>>, vector<1x128xf32>
    %c0_8 = arith.constant 0 : index
    %c0_9 = arith.constant 0 : index
    %c0_10 = arith.constant 0 : index
    %6 = vector.load %arg1[%c0_8, %c0_9, %c0_10] : memref<1x256x128xf32, #tpu.memory_space<vmem>>, vector<1x16x128xf32>
    %7 = vector.shape_cast %6 : vector<1x16x128xf32> to vector<16x128xf32>
    %8 = vector.broadcast %4 : vector<1x128xf32> to vector<16x128xf32>
    %9 = arith.mulf %7, %8 : vector<16x128xf32>
    %10 = vector.broadcast %5 : vector<1x128xf32> to vector<16x128xf32>
    %11 = arith.addf %9, %10 : vector<16x128xf32>
    %cst_11 = arith.constant 0.000000e+00 : f32
    %12 = vector.broadcast %cst_11 : f32 to vector<16x128xf32>
    %13 = arith.maximumf %11, %12 : vector<16x128xf32>
    %14 = arith.truncf %13 : vector<16x128xf32> to vector<16x128xbf16>
    %c32 = arith.constant 32 : index
    %c0_12 = arith.constant 0 : index
    %15 = vector.load %arg8[%c32, %c0_12] : memref<448x128xbf16, #tpu.memory_space<vmem>>, vector<16x128xbf16>
    tpu.vector_store %arg8[%c32, %c0_12], %14 {strides = array<i32>} : memref<448x128xbf16, #tpu.memory_space<vmem>>, vector<16x128xbf16>,
    %c0_13 = arith.constant 0 : index
    %c16 = arith.constant 16 : index
    %c0_14 = arith.constant 0 : index
    %16 = vector.load %arg1[%c0_13, %c16, %c0_14] : memref<1x256x128xf32, #tpu.memory_space<vmem>>, vector<1x16x128xf32>
    %17 = vector.shape_cast %16 : vector<1x16x128xf32> to vector<16x128xf32>
    %18 = vector.broadcast %4 : vector<1x128xf32> to vector<16x128xf32>
    %19 = arith.mulf %17, %18 : vector<16x128xf32>
    %20 = vector.broadcast %5 : vector<1x128xf32> to vector<16x128xf32>
    %21 = arith.addf %19, %20 : vector<16x128xf32>
    %cst_15 = arith.constant 0.000000e+00 : f32
    %22 = vector.broadcast %cst_15 : f32 to vector<16x128xf32>
    %23 = arith.maximumf %21, %22 : vector<16x128xf32>
    %24 = arith.truncf %23 : vector<16x128xf32> to vector<16x128xbf16>
    %c56 = arith.constant 56 : index
    %c0_16 = arith.constant 0 : index
    %25 = vector.load %arg8[%c56, %c0_16] : memref<448x128xbf16, #tpu.memory_space<vmem>>, vector<16x128xbf16>
    tpu.vector_store %arg8[%c56, %c0_16], %24 {strides = array<i32>} : memref<448x128xbf16, #tpu.memory_space<vmem>>, vector<16x128xbf16>,
    %c0_17 = arith.constant 0 : index
    %c32_18 = arith.constant 32 : index
    %c0_19 = arith.constant 0 : index
    %26 = vector.load %arg1[%c0_17, %c32_18, %c0_19] : memref<1x256x128xf32, #tpu.memory_space<vmem>>, vector<1x16x128xf32>
    %27 = vector.shape_cast %26 : vector<1x16x128xf32> to vector<16x128xf32>
    %28 = vector.broadcast %4 : vector<1x128xf32> to vector<16x128xf32>
    %29 = arith.mulf %27, %28 : vector<16x128xf32>
    %30 = vector.broadcast %5 : vector<1x128xf32> to vector<16x128xf32>
    %31 = arith.addf %29, %30 : vector<16x128xf32>
    %cst_20 = arith.constant 0.000000e+00 : f32
    %32 = vector.broadcast %cst_20 : f32 to vector<16x128xf32>
    %33 = arith.maximumf %31, %32 : vector<16x128xf32>
    %34 = arith.truncf %33 : vector<16x128xf32> to vector<16x128xbf16>
    %c80 = arith.constant 80 : index
    %c0_21 = arith.constant 0 : index
    %35 = vector.load %arg8[%c80, %c0_21] : memref<448x128xbf16, #tpu.memory_space<vmem>>, vector<16x128xbf16>
    tpu.vector_store %arg8[%c80, %c0_21], %34 {strides = array<i32>} : memref<448x128xbf16, #tpu.memory_space<vmem>>, vector<16x128xbf16>,
    %c0_22 = arith.constant 0 : index
    %c48 = arith.constant 48 : index
    %c0_23 = arith.constant 0 : index
    %36 = vector.load %arg1[%c0_22, %c48, %c0_23] : memref<1x256x128xf32, #tpu.memory_space<vmem>>, vector<1x16x128xf32>
    %37 = vector.shape_cast %36 : vector<1x16x128xf32> to vector<16x128xf32>
    %38 = vector.broadcast %4 : vector<1x128xf32> to vector<16x128xf32>
    %39 = arith.mulf %37, %38 : vector<16x128xf32>
    %40 = vector.broadcast %5 : vector<1x128xf32> to vector<16x128xf32>
    %41 = arith.addf %39, %40 : vector<16x128xf32>
    %cst_24 = arith.constant 0.000000e+00 : f32
    %42 = vector.broadcast %cst_24 : f32 to vector<16x128xf32>
    %43 = arith.maximumf %41, %42 : vector<16x128xf32>
    %44 = arith.truncf %43 : vector<16x128xf32> to vector<16x128xbf16>
    %c104 = arith.constant 104 : index
    %c0_25 = arith.constant 0 : index
    %45 = vector.load %arg8[%c104, %c0_25] : memref<448x128xbf16, #tpu.memory_space<vmem>>, vector<16x128xbf16>
    tpu.vector_store %arg8[%c104, %c0_25], %44 {strides = array<i32>} : memref<448x128xbf16, #tpu.memory_space<vmem>>, vector<16x128xbf16>,
    %c0_26 = arith.constant 0 : index
    %c64 = arith.constant 64 : index
    %c0_27 = arith.constant 0 : index
    %46 = vector.load %arg1[%c0_26, %c64, %c0_27] : memref<1x256x128xf32, #tpu.memory_space<vmem>>, vector<1x16x128xf32>
    %47 = vector.shape_cast %46 : vector<1x16x128xf32> to vector<16x128xf32>
    %48 = vector.broadcast %4 : vector<1x128xf32> to vector<16x128xf32>
    %49 = arith.mulf %47, %48 : vector<16x128xf32>
    %50 = vector.broadcast %5 : vector<1x128xf32> to vector<16x128xf32>
    %51 = arith.addf %49, %50 : vector<16x128xf32>
    %cst_28 = arith.constant 0.000000e+00 : f32
    %52 = vector.broadcast %cst_28 : f32 to vector<16x128xf32>
    %53 = arith.maximumf %51, %52 : vector<16x128xf32>
    %54 = arith.truncf %53 : vector<16x128xf32> to vector<16x128xbf16>
    %c128 = arith.constant 128 : index
    %c0_29 = arith.constant 0 : index
    %55 = vector.load %arg8[%c128, %c0_29] : memref<448x128xbf16, #tpu.memory_space<vmem>>, vector<16x128xbf16>
    tpu.vector_store %arg8[%c128, %c0_29], %54 {strides = array<i32>} : memref<448x128xbf16, #tpu.memory_space<vmem>>, vector<16x128xbf16>,
    %c0_30 = arith.constant 0 : index
    %c80_31 = arith.constant 80 : index
    %c0_32 = arith.constant 0 : index
    %56 = vector.load %arg1[%c0_30, %c80_31, %c0_32] : memref<1x256x128xf32, #tpu.memory_space<vmem>>, vector<1x16x128xf32>
    %57 = vector.shape_cast %56 : vector<1x16x128xf32> to vector<16x128xf32>
    %58 = vector.broadcast %4 : vector<1x128xf32> to vector<16x128xf32>
    %59 = arith.mulf %57, %58 : vector<16x128xf32>
    %60 = vector.broadcast %5 : vector<1x128xf32> to vector<16x128xf32>
    %61 = arith.addf %59, %60 : vector<16x128xf32>
    %cst_33 = arith.constant 0.000000e+00 : f32
    %62 = vector.broadcast %cst_33 : f32 to vector<16x128xf32>
    %63 = arith.maximumf %61, %62 : vector<16x128xf32>
    %64 = arith.truncf %63 : vector<16x128xf32> to vector<16x128xbf16>
    %c152 = arith.constant 152 : index
    %c0_34 = arith.constant 0 : index
    %65 = vector.load %arg8[%c152, %c0_34] : memref<448x128xbf16, #tpu.memory_space<vmem>>, vector<16x128xbf16>
    tpu.vector_store %arg8[%c152, %c0_34], %64 {strides = array<i32>} : memref<448x128xbf16, #tpu.memory_space<vmem>>, vector<16x128xbf16>,
    %c0_35 = arith.constant 0 : index
    %c96 = arith.constant 96 : index
    %c0_36 = arith.constant 0 : index
    %66 = vector.load %arg1[%c0_35, %c96, %c0_36] : memref<1x256x128xf32, #tpu.memory_space<vmem>>, vector<1x16x128xf32>
    %67 = vector.shape_cast %66 : vector<1x16x128xf32> to vector<16x128xf32>
    %68 = vector.broadcast %4 : vector<1x128xf32> to vector<16x128xf32>
    %69 = arith.mulf %67, %68 : vector<16x128xf32>
    %70 = vector.broadcast %5 : vector<1x128xf32> to vector<16x128xf32>
    %71 = arith.addf %69, %70 : vector<16x128xf32>
    %cst_37 = arith.constant 0.000000e+00 : f32
    %72 = vector.broadcast %cst_37 : f32 to vector<16x128xf32>
    %73 = arith.maximumf %71, %72 : vector<16x128xf32>
    %74 = arith.truncf %73 : vector<16x128xf32> to vector<16x128xbf16>
    %c176 = arith.constant 176 : index
    %c0_38 = arith.constant 0 : index
    %75 = vector.load %arg8[%c176, %c0_38] : memref<448x128xbf16, #tpu.memory_space<vmem>>, vector<16x128xbf16>
    tpu.vector_store %arg8[%c176, %c0_38], %74 {strides = array<i32>} : memref<448x128xbf16, #tpu.memory_space<vmem>>, vector<16x128xbf16>,
    %c0_39 = arith.constant 0 : index
    %c112 = arith.constant 112 : index
    %c0_40 = arith.constant 0 : index
    %76 = vector.load %arg1[%c0_39, %c112, %c0_40] : memref<1x256x128xf32, #tpu.memory_space<vmem>>, vector<1x16x128xf32>
    %77 = vector.shape_cast %76 : vector<1x16x128xf32> to vector<16x128xf32>
    %78 = vector.broadcast %4 : vector<1x128xf32> to vector<16x128xf32>
    %79 = arith.mulf %77, %78 : vector<16x128xf32>
    %80 = vector.broadcast %5 : vector<1x128xf32> to vector<16x128xf32>
    %81 = arith.addf %79, %80 : vector<16x128xf32>
    %cst_41 = arith.constant 0.000000e+00 : f32
    %82 = vector.broadcast %cst_41 : f32 to vector<16x128xf32>
    %83 = arith.maximumf %81, %82 : vector<16x128xf32>
    %84 = arith.truncf %83 : vector<16x128xf32> to vector<16x128xbf16>
    %c200 = arith.constant 200 : index
    %c0_42 = arith.constant 0 : index
    %85 = vector.load %arg8[%c200, %c0_42] : memref<448x128xbf16, #tpu.memory_space<vmem>>, vector<16x128xbf16>
    tpu.vector_store %arg8[%c200, %c0_42], %84 {strides = array<i32>} : memref<448x128xbf16, #tpu.memory_space<vmem>>, vector<16x128xbf16>,
    %c0_43 = arith.constant 0 : index
    %c128_44 = arith.constant 128 : index
    %c0_45 = arith.constant 0 : index
    %86 = vector.load %arg1[%c0_43, %c128_44, %c0_45] : memref<1x256x128xf32, #tpu.memory_space<vmem>>, vector<1x16x128xf32>
    %87 = vector.shape_cast %86 : vector<1x16x128xf32> to vector<16x128xf32>
    %88 = vector.broadcast %4 : vector<1x128xf32> to vector<16x128xf32>
    %89 = arith.mulf %87, %88 : vector<16x128xf32>
    %90 = vector.broadcast %5 : vector<1x128xf32> to vector<16x128xf32>
    %91 = arith.addf %89, %90 : vector<16x128xf32>
    %cst_46 = arith.constant 0.000000e+00 : f32
    %92 = vector.broadcast %cst_46 : f32 to vector<16x128xf32>
    %93 = arith.maximumf %91, %92 : vector<16x128xf32>
    %94 = arith.truncf %93 : vector<16x128xf32> to vector<16x128xbf16>
    %c224 = arith.constant 224 : index
    %c0_47 = arith.constant 0 : index
    %95 = vector.load %arg8[%c224, %c0_47] : memref<448x128xbf16, #tpu.memory_space<vmem>>, vector<16x128xbf16>
    tpu.vector_store %arg8[%c224, %c0_47], %94 {strides = array<i32>} : memref<448x128xbf16, #tpu.memory_space<vmem>>, vector<16x128xbf16>,
    %c0_48 = arith.constant 0 : index
    %c144 = arith.constant 144 : index
    %c0_49 = arith.constant 0 : index
    %96 = vector.load %arg1[%c0_48, %c144, %c0_49] : memref<1x256x128xf32, #tpu.memory_space<vmem>>, vector<1x16x128xf32>
    %97 = vector.shape_cast %96 : vector<1x16x128xf32> to vector<16x128xf32>
    %98 = vector.broadcast %4 : vector<1x128xf32> to vector<16x128xf32>
    %99 = arith.mulf %97, %98 : vector<16x128xf32>
    %100 = vector.broadcast %5 : vector<1x128xf32> to vector<16x128xf32>
    %101 = arith.addf %99, %100 : vector<16x128xf32>
    %cst_50 = arith.constant 0.000000e+00 : f32
    %102 = vector.broadcast %cst_50 : f32 to vector<16x128xf32>
    %103 = arith.maximumf %101, %102 : vector<16x128xf32>
    %104 = arith.truncf %103 : vector<16x128xf32> to vector<16x128xbf16>
    %c248 = arith.constant 248 : index
    %c0_51 = arith.constant 0 : index
    %105 = vector.load %arg8[%c248, %c0_51] : memref<448x128xbf16, #tpu.memory_space<vmem>>, vector<16x128xbf16>
    tpu.vector_store %arg8[%c248, %c0_51], %104 {strides = array<i32>} : memref<448x128xbf16, #tpu.memory_space<vmem>>, vector<16x128xbf16>,
    %c0_52 = arith.constant 0 : index
    %c160 = arith.constant 160 : index
    %c0_53 = arith.constant 0 : index
    %106 = vector.load %arg1[%c0_52, %c160, %c0_53] : memref<1x256x128xf32, #tpu.memory_space<vmem>>, vector<1x16x128xf32>
    %107 = vector.shape_cast %106 : vector<1x16x128xf32> to vector<16x128xf32>
    %108 = vector.broadcast %4 : vector<1x128xf32> to vector<16x128xf32>
    %109 = arith.mulf %107, %108 : vector<16x128xf32>
    %110 = vector.broadcast %5 : vector<1x128xf32> to vector<16x128xf32>
    %111 = arith.addf %109, %110 : vector<16x128xf32>
    %cst_54 = arith.constant 0.000000e+00 : f32
    %112 = vector.broadcast %cst_54 : f32 to vector<16x128xf32>
    %113 = arith.maximumf %111, %112 : vector<16x128xf32>
    %114 = arith.truncf %113 : vector<16x128xf32> to vector<16x128xbf16>
    %c272 = arith.constant 272 : index
    %c0_55 = arith.constant 0 : index
    %115 = vector.load %arg8[%c272, %c0_55] : memref<448x128xbf16, #tpu.memory_space<vmem>>, vector<16x128xbf16>
    tpu.vector_store %arg8[%c272, %c0_55], %114 {strides = array<i32>} : memref<448x128xbf16, #tpu.memory_space<vmem>>, vector<16x128xbf16>,
    %c0_56 = arith.constant 0 : index
    %c176_57 = arith.constant 176 : index
    %c0_58 = arith.constant 0 : index
    %116 = vector.load %arg1[%c0_56, %c176_57, %c0_58] : memref<1x256x128xf32, #tpu.memory_space<vmem>>, vector<1x16x128xf32>
    %117 = vector.shape_cast %116 : vector<1x16x128xf32> to vector<16x128xf32>
    %118 = vector.broadcast %4 : vector<1x128xf32> to vector<16x128xf32>
    %119 = arith.mulf %117, %118 : vector<16x128xf32>
    %120 = vector.broadcast %5 : vector<1x128xf32> to vector<16x128xf32>
    %121 = arith.addf %119, %120 : vector<16x128xf32>
    %cst_59 = arith.constant 0.000000e+00 : f32
    %122 = vector.broadcast %cst_59 : f32 to vector<16x128xf32>
    %123 = arith.maximumf %121, %122 : vector<16x128xf32>
    %124 = arith.truncf %123 : vector<16x128xf32> to vector<16x128xbf16>
    %c296 = arith.constant 296 : index
    %c0_60 = arith.constant 0 : index
    %125 = vector.load %arg8[%c296, %c0_60] : memref<448x128xbf16, #tpu.memory_space<vmem>>, vector<16x128xbf16>
    tpu.vector_store %arg8[%c296, %c0_60], %124 {strides = array<i32>} : memref<448x128xbf16, #tpu.memory_space<vmem>>, vector<16x128xbf16>,
    %c0_61 = arith.constant 0 : index
    %c192 = arith.constant 192 : index
    %c0_62 = arith.constant 0 : index
    %126 = vector.load %arg1[%c0_61, %c192, %c0_62] : memref<1x256x128xf32, #tpu.memory_space<vmem>>, vector<1x16x128xf32>
    %127 = vector.shape_cast %126 : vector<1x16x128xf32> to vector<16x128xf32>
    %128 = vector.broadcast %4 : vector<1x128xf32> to vector<16x128xf32>
    %129 = arith.mulf %127, %128 : vector<16x128xf32>
    %130 = vector.broadcast %5 : vector<1x128xf32> to vector<16x128xf32>
    %131 = arith.addf %129, %130 : vector<16x128xf32>
    %cst_63 = arith.constant 0.000000e+00 : f32
    %132 = vector.broadcast %cst_63 : f32 to vector<16x128xf32>
    %133 = arith.maximumf %131, %132 : vector<16x128xf32>
    %134 = arith.truncf %133 : vector<16x128xf32> to vector<16x128xbf16>
    %c320 = arith.constant 320 : index
    %c0_64 = arith.constant 0 : index
    %135 = vector.load %arg8[%c320, %c0_64] : memref<448x128xbf16, #tpu.memory_space<vmem>>, vector<16x128xbf16>
    tpu.vector_store %arg8[%c320, %c0_64], %134 {strides = array<i32>} : memref<448x128xbf16, #tpu.memory_space<vmem>>, vector<16x128xbf16>,
    %c0_65 = arith.constant 0 : index
    %c208 = arith.constant 208 : index
    %c0_66 = arith.constant 0 : index
    %136 = vector.load %arg1[%c0_65, %c208, %c0_66] : memref<1x256x128xf32, #tpu.memory_space<vmem>>, vector<1x16x128xf32>
    %137 = vector.shape_cast %136 : vector<1x16x128xf32> to vector<16x128xf32>
    %138 = vector.broadcast %4 : vector<1x128xf32> to vector<16x128xf32>
    %139 = arith.mulf %137, %138 : vector<16x128xf32>
    %140 = vector.broadcast %5 : vector<1x128xf32> to vector<16x128xf32>
    %141 = arith.addf %139, %140 : vector<16x128xf32>
    %cst_67 = arith.constant 0.000000e+00 : f32
    %142 = vector.broadcast %cst_67 : f32 to vector<16x128xf32>
    %143 = arith.maximumf %141, %142 : vector<16x128xf32>
    %144 = arith.truncf %143 : vector<16x128xf32> to vector<16x128xbf16>
    %c344 = arith.constant 344 : index
    %c0_68 = arith.constant 0 : index
    %145 = vector.load %arg8[%c344, %c0_68] : memref<448x128xbf16, #tpu.memory_space<vmem>>, vector<16x128xbf16>
    tpu.vector_store %arg8[%c344, %c0_68], %144 {strides = array<i32>} : memref<448x128xbf16, #tpu.memory_space<vmem>>, vector<16x128xbf16>,
    %c0_69 = arith.constant 0 : index
    %c224_70 = arith.constant 224 : index
    %c0_71 = arith.constant 0 : index
    %146 = vector.load %arg1[%c0_69, %c224_70, %c0_71] : memref<1x256x128xf32, #tpu.memory_space<vmem>>, vector<1x16x128xf32>
    %147 = vector.shape_cast %146 : vector<1x16x128xf32> to vector<16x128xf32>
    %148 = vector.broadcast %4 : vector<1x128xf32> to vector<16x128xf32>
    %149 = arith.mulf %147, %148 : vector<16x128xf32>
    %150 = vector.broadcast %5 : vector<1x128xf32> to vector<16x128xf32>
    %151 = arith.addf %149, %150 : vector<16x128xf32>
    %cst_72 = arith.constant 0.000000e+00 : f32
    %152 = vector.broadcast %cst_72 : f32 to vector<16x128xf32>
    %153 = arith.maximumf %151, %152 : vector<16x128xf32>
    %154 = arith.truncf %153 : vector<16x128xf32> to vector<16x128xbf16>
    %c368 = arith.constant 368 : index
    %c0_73 = arith.constant 0 : index
    %155 = vector.load %arg8[%c368, %c0_73] : memref<448x128xbf16, #tpu.memory_space<vmem>>, vector<16x128xbf16>
    tpu.vector_store %arg8[%c368, %c0_73], %154 {strides = array<i32>} : memref<448x128xbf16, #tpu.memory_space<vmem>>, vector<16x128xbf16>,
    %c0_74 = arith.constant 0 : index
    %c240 = arith.constant 240 : index
    %c0_75 = arith.constant 0 : index
    %156 = vector.load %arg1[%c0_74, %c240, %c0_75] : memref<1x256x128xf32, #tpu.memory_space<vmem>>, vector<1x16x128xf32>
    %157 = vector.shape_cast %156 : vector<1x16x128xf32> to vector<16x128xf32>
    %158 = vector.broadcast %4 : vector<1x128xf32> to vector<16x128xf32>
    %159 = arith.mulf %157, %158 : vector<16x128xf32>
    %160 = vector.broadcast %5 : vector<1x128xf32> to vector<16x128xf32>
    %161 = arith.addf %159, %160 : vector<16x128xf32>
    %cst_76 = arith.constant 0.000000e+00 : f32
    %162 = vector.broadcast %cst_76 : f32 to vector<16x128xf32>
    %163 = arith.maximumf %161, %162 : vector<16x128xf32>
    %164 = arith.truncf %163 : vector<16x128xf32> to vector<16x128xbf16>
    %c392 = arith.constant 392 : index
    %c0_77 = arith.constant 0 : index
    %165 = vector.load %arg8[%c392, %c0_77] : memref<448x128xbf16, #tpu.memory_space<vmem>>, vector<16x128xbf16>
    tpu.vector_store %arg8[%c392, %c0_77], %164 {strides = array<i32>} : memref<448x128xbf16, #tpu.memory_space<vmem>>, vector<16x128xbf16>,
    %c0_78 = arith.constant 0 : index
    %c0_79 = arith.constant 0 : index
    %166 = vector.load %arg5[%c0_78, %c0_79] : memref<1x128xf32, #tpu.memory_space<vmem>>, vector<1x128xf32>
    %cst_80 = arith.constant 0.000000e+00 : f32
    %167 = vector.broadcast %cst_80 : f32 to vector<96x128xf32>
    %c7 = arith.constant 7 : index
    %c0_81 = arith.constant 0 : index
    %168 = vector.load %arg8[%c7, %c0_81] : memref<448x128xbf16, #tpu.memory_space<vmem>>, vector<96x128xbf16>
    %c0_82 = arith.constant 0 : index
    %c0_83 = arith.constant 0 : index
    %c0_84 = arith.constant 0 : index
    %169 = vector.load %arg4[%c0_82, %c0_83, %c0_84] : memref<9x128x128xbf16, #tpu.memory_space<vmem>>, vector<1x128x128xbf16>
    %170 = vector.shape_cast %169 : vector<1x128x128xbf16> to vector<128x128xbf16>
    %cst_85 = arith.constant dense<0.000000e+00> : vector<96x128xf32>
    %171 = tpu.matmul %168, %170, %cst_85 {dimension_numbers = #tpu.dot_dimension_numbers<[1], [0], [0], [1], [0, 0, 1, 1], [], []>} : vector<96x128xbf16>, vector<128x128xbf16>, vector<96x128xf32> -> vector<96x128xf32>
    %172 = arith.addf %167, %171 : vector<96x128xf32>
    %c8 = arith.constant 8 : index
    %c0_86 = arith.constant 0 : index
    %173 = vector.load %arg8[%c8, %c0_86] : memref<448x128xbf16, #tpu.memory_space<vmem>>, vector<96x128xbf16>
    %c1 = arith.constant 1 : index
    %c0_87 = arith.constant 0 : index
    %c0_88 = arith.constant 0 : index
    %174 = vector.load %arg4[%c1, %c0_87, %c0_88] : memref<9x128x128xbf16, #tpu.memory_space<vmem>>, vector<1x128x128xbf16>
    %175 = vector.shape_cast %174 : vector<1x128x128xbf16> to vector<128x128xbf16>
    %cst_89 = arith.constant dense<0.000000e+00> : vector<96x128xf32>
    %176 = tpu.matmul %173, %175, %cst_89 {dimension_numbers = #tpu.dot_dimension_numbers<[1], [0], [0], [1], [0, 0, 1, 1], [], []>} : vector<96x128xbf16>, vector<128x128xbf16>, vector<96x128xf32> -> vector<96x128xf32>
    %177 = arith.addf %172, %176 : vector<96x128xf32>
    %c9 = arith.constant 9 : index
    %c0_90 = arith.constant 0 : index
    %178 = vector.load %arg8[%c9, %c0_90] : memref<448x128xbf16, #tpu.memory_space<vmem>>, vector<96x128xbf16>
    %c2 = arith.constant 2 : index
    %c0_91 = arith.constant 0 : index
    %c0_92 = arith.constant 0 : index
    %179 = vector.load %arg4[%c2, %c0_91, %c0_92] : memref<9x128x128xbf16, #tpu.memory_space<vmem>>, vector<1x128x128xbf16>
    %180 = vector.shape_cast %179 : vector<1x128x128xbf16> to vector<128x128xbf16>
    %cst_93 = arith.constant dense<0.000000e+00> : vector<96x128xf32>
    %181 = tpu.matmul %178, %180, %cst_93 {dimension_numbers = #tpu.dot_dimension_numbers<[1], [0], [0], [1], [0, 0, 1, 1], [], []>} : vector<96x128xbf16>, vector<128x128xbf16>, vector<96x128xf32> -> vector<96x128xf32>
    %182 = arith.addf %177, %181 : vector<96x128xf32>
    %c31 = arith.constant 31 : index
    %c0_94 = arith.constant 0 : index
    %183 = vector.load %arg8[%c31, %c0_94] : memref<448x128xbf16, #tpu.memory_space<vmem>>, vector<96x128xbf16>
    %c3 = arith.constant 3 : index
    %c0_95 = arith.constant 0 : index
    %c0_96 = arith.constant 0 : index
    %184 = vector.load %arg4[%c3, %c0_95, %c0_96] : memref<9x128x128xbf16, #tpu.memory_space<vmem>>, vector<1x128x128xbf16>
    %185 = vector.shape_cast %184 : vector<1x128x128xbf16> to vector<128x128xbf16>
    %cst_97 = arith.constant dense<0.000000e+00> : vector<96x128xf32>
    %186 = tpu.matmul %183, %185, %cst_97 {dimension_numbers = #tpu.dot_dimension_numbers<[1], [0], [0], [1], [0, 0, 1, 1], [], []>} : vector<96x128xbf16>, vector<128x128xbf16>, vector<96x128xf32> -> vector<96x128xf32>
    %187 = arith.addf %182, %186 : vector<96x128xf32>
    %c32_98 = arith.constant 32 : index
    %c0_99 = arith.constant 0 : index
    %188 = vector.load %arg8[%c32_98, %c0_99] : memref<448x128xbf16, #tpu.memory_space<vmem>>, vector<96x128xbf16>
    %c4 = arith.constant 4 : index
    %c0_100 = arith.constant 0 : index
    %c0_101 = arith.constant 0 : index
    %189 = vector.load %arg4[%c4, %c0_100, %c0_101] : memref<9x128x128xbf16, #tpu.memory_space<vmem>>, vector<1x128x128xbf16>
    %190 = vector.shape_cast %189 : vector<1x128x128xbf16> to vector<128x128xbf16>
    %cst_102 = arith.constant dense<0.000000e+00> : vector<96x128xf32>
    %191 = tpu.matmul %188, %190, %cst_102 {dimension_numbers = #tpu.dot_dimension_numbers<[1], [0], [0], [1], [0, 0, 1, 1], [], []>} : vector<96x128xbf16>, vector<128x128xbf16>, vector<96x128xf32> -> vector<96x128xf32>
    %192 = arith.addf %187, %191 : vector<96x128xf32>
    %c33 = arith.constant 33 : index
    %c0_103 = arith.constant 0 : index
    %193 = vector.load %arg8[%c33, %c0_103] : memref<448x128xbf16, #tpu.memory_space<vmem>>, vector<96x128xbf16>
    %c5 = arith.constant 5 : index
    %c0_104 = arith.constant 0 : index
    %c0_105 = arith.constant 0 : index
    %194 = vector.load %arg4[%c5, %c0_104, %c0_105] : memref<9x128x128xbf16, #tpu.memory_space<vmem>>, vector<1x128x128xbf16>
    %195 = vector.shape_cast %194 : vector<1x128x128xbf16> to vector<128x128xbf16>
    %cst_106 = arith.constant dense<0.000000e+00> : vector<96x128xf32>
    %196 = tpu.matmul %193, %195, %cst_106 {dimension_numbers = #tpu.dot_dimension_numbers<[1], [0], [0], [1], [0, 0, 1, 1], [], []>} : vector<96x128xbf16>, vector<128x128xbf16>, vector<96x128xf32> -> vector<96x128xf32>
    %197 = arith.addf %192, %196 : vector<96x128xf32>
    %c55 = arith.constant 55 : index
    %c0_107 = arith.constant 0 : index
    %198 = vector.load %arg8[%c55, %c0_107] : memref<448x128xbf16, #tpu.memory_space<vmem>>, vector<96x128xbf16>
    %c6 = arith.constant 6 : index
    %c0_108 = arith.constant 0 : index
    %c0_109 = arith.constant 0 : index
    %199 = vector.load %arg4[%c6, %c0_108, %c0_109] : memref<9x128x128xbf16, #tpu.memory_space<vmem>>, vector<1x128x128xbf16>
    %200 = vector.shape_cast %199 : vector<1x128x128xbf16> to vector<128x128xbf16>
    %cst_110 = arith.constant dense<0.000000e+00> : vector<96x128xf32>
    %201 = tpu.matmul %198, %200, %cst_110 {dimension_numbers = #tpu.dot_dimension_numbers<[1], [0], [0], [1], [0, 0, 1, 1], [], []>} : vector<96x128xbf16>, vector<128x128xbf16>, vector<96x128xf32> -> vector<96x128xf32>
    %202 = arith.addf %197, %201 : vector<96x128xf32>
    %c56_111 = arith.constant 56 : index
    %c0_112 = arith.constant 0 : index
    %203 = vector.load %arg8[%c56_111, %c0_112] : memref<448x128xbf16, #tpu.memory_space<vmem>>, vector<96x128xbf16>
    %c7_113 = arith.constant 7 : index
    %c0_114 = arith.constant 0 : index
    %c0_115 = arith.constant 0 : index
    %204 = vector.load %arg4[%c7_113, %c0_114, %c0_115] : memref<9x128x128xbf16, #tpu.memory_space<vmem>>, vector<1x128x128xbf16>
    %205 = vector.shape_cast %204 : vector<1x128x128xbf16> to vector<128x128xbf16>
    %cst_116 = arith.constant dense<0.000000e+00> : vector<96x128xf32>
    %206 = tpu.matmul %203, %205, %cst_116 {dimension_numbers = #tpu.dot_dimension_numbers<[1], [0], [0], [1], [0, 0, 1, 1], [], []>} : vector<96x128xbf16>, vector<128x128xbf16>, vector<96x128xf32> -> vector<96x128xf32>
    %207 = arith.addf %202, %206 : vector<96x128xf32>
    %c57 = arith.constant 57 : index
    %c0_117 = arith.constant 0 : index
    %208 = vector.load %arg8[%c57, %c0_117] : memref<448x128xbf16, #tpu.memory_space<vmem>>, vector<96x128xbf16>
    %c8_118 = arith.constant 8 : index
    %c0_119 = arith.constant 0 : index
    %c0_120 = arith.constant 0 : index
    %209 = vector.load %arg4[%c8_118, %c0_119, %c0_120] : memref<9x128x128xbf16, #tpu.memory_space<vmem>>, vector<1x128x128xbf16>
    %210 = vector.shape_cast %209 : vector<1x128x128xbf16> to vector<128x128xbf16>
    %cst_121 = arith.constant dense<0.000000e+00> : vector<96x128xf32>
    %211 = tpu.matmul %208, %210, %cst_121 {dimension_numbers = #tpu.dot_dimension_numbers<[1], [0], [0], [1], [0, 0, 1, 1], [], []>} : vector<96x128xbf16>, vector<128x128xbf16>, vector<96x128xf32> -> vector<96x128xf32>
    %212 = arith.addf %207, %211 : vector<96x128xf32>
    %213 = vector.broadcast %166 : vector<1x128xf32> to vector<96x128xf32>
    %214 = arith.addf %212, %213 : vector<96x128xf32>
    %cst_122 = arith.constant 0.000000e+00 : f32
    %215 = vector.broadcast %cst_122 : f32 to vector<96x128xf32>
    %216 = arith.maximumf %214, %215 : vector<96x128xf32>
    %217 = vector.extract_strided_slice %216 {offsets = [0, 0], sizes = [16, 128], strides = [1, 1]} : vector<96x128xf32> to vector<16x128xf32>
    %218 = arith.truncf %217 : vector<16x128xf32> to vector<16x128xbf16>
    %c32_123 = arith.constant 32 : index
    %c0_124 = arith.constant 0 : index
    %219 = vector.load %arg9[%c32_123, %c0_124] : memref<448x128xbf16, #tpu.memory_space<vmem>>, vector<16x128xbf16>
    tpu.vector_store %arg9[%c32_123, %c0_124], %218 {strides = array<i32>} : memref<448x128xbf16, #tpu.memory_space<vmem>>, vector<16x128xbf16>,
    %220 = vector.extract_strided_slice %216 {offsets = [24, 0], sizes = [16, 128], strides = [1, 1]} : vector<96x128xf32> to vector<16x128xf32>
    %221 = arith.truncf %220 : vector<16x128xf32> to vector<16x128xbf16>
    %c56_125 = arith.constant 56 : index
    %c0_126 = arith.constant 0 : index
    %222 = vector.load %arg9[%c56_125, %c0_126] : memref<448x128xbf16, #tpu.memory_space<vmem>>, vector<16x128xbf16>
    tpu.vector_store %arg9[%c56_125, %c0_126], %221 {strides = array<i32>} : memref<448x128xbf16, #tpu.memory_space<vmem>>, vector<16x128xbf16>,
    %223 = vector.extract_strided_slice %216 {offsets = [48, 0], sizes = [16, 128], strides = [1, 1]} : vector<96x128xf32> to vector<16x128xf32>
    %224 = arith.truncf %223 : vector<16x128xf32> to vector<16x128xbf16>
    %c80_127 = arith.constant 80 : index
    %c0_128 = arith.constant 0 : index
    %225 = vector.load %arg9[%c80_127, %c0_128] : memref<448x128xbf16, #tpu.memory_space<vmem>>, vector<16x128xbf16>
    tpu.vector_store %arg9[%c80_127, %c0_128], %224 {strides = array<i32>} : memref<448x128xbf16, #tpu.memory_space<vmem>>, vector<16x128xbf16>,
    %226 = vector.extract_strided_slice %216 {offsets = [72, 0], sizes = [16, 128], strides = [1, 1]} : vector<96x128xf32> to vector<16x128xf32>
    %227 = arith.truncf %226 : vector<16x128xf32> to vector<16x128xbf16>
    %c104_129 = arith.constant 104 : index
    %c0_130 = arith.constant 0 : index
    %228 = vector.load %arg9[%c104_129, %c0_130] : memref<448x128xbf16, #tpu.memory_space<vmem>>, vector<16x128xbf16>
    tpu.vector_store %arg9[%c104_129, %c0_130], %227 {strides = array<i32>} : memref<448x128xbf16, #tpu.memory_space<vmem>>, vector<16x128xbf16>,
    %cst_131 = arith.constant 0.000000e+00 : f32
    %229 = vector.broadcast %cst_131 : f32 to vector<96x128xf32>
    %c103 = arith.constant 103 : index
    %c0_132 = arith.constant 0 : index
    %230 = vector.load %arg8[%c103, %c0_132] : memref<448x128xbf16, #tpu.memory_space<vmem>>, vector<96x128xbf16>
    %c0_133 = arith.constant 0 : index
    %c0_134 = arith.constant 0 : index
    %c0_135 = arith.constant 0 : index
    %231 = vector.load %arg4[%c0_133, %c0_134, %c0_135] : memref<9x128x128xbf16, #tpu.memory_space<vmem>>, vector<1x128x128xbf16>
    %232 = vector.shape_cast %231 : vector<1x128x128xbf16> to vector<128x128xbf16>
    %cst_136 = arith.constant dense<0.000000e+00> : vector<96x128xf32>
    %233 = tpu.matmul %230, %232, %cst_136 {dimension_numbers = #tpu.dot_dimension_numbers<[1], [0], [0], [1], [0, 0, 1, 1], [], []>} : vector<96x128xbf16>, vector<128x128xbf16>, vector<96x128xf32> -> vector<96x128xf32>
    %234 = arith.addf %229, %233 : vector<96x128xf32>
    %c104_137 = arith.constant 104 : index
    %c0_138 = arith.constant 0 : index
    %235 = vector.load %arg8[%c104_137, %c0_138] : memref<448x128xbf16, #tpu.memory_space<vmem>>, vector<96x128xbf16>
    %c1_139 = arith.constant 1 : index
    %c0_140 = arith.constant 0 : index
    %c0_141 = arith.constant 0 : index
    %236 = vector.load %arg4[%c1_139, %c0_140, %c0_141] : memref<9x128x128xbf16, #tpu.memory_space<vmem>>, vector<1x128x128xbf16>
    %237 = vector.shape_cast %236 : vector<1x128x128xbf16> to vector<128x128xbf16>
    %cst_142 = arith.constant dense<0.000000e+00> : vector<96x128xf32>
    %238 = tpu.matmul %235, %237, %cst_142 {dimension_numbers = #tpu.dot_dimension_numbers<[1], [0], [0], [1], [0, 0, 1, 1], [], []>} : vector<96x128xbf16>, vector<128x128xbf16>, vector<96x128xf32> -> vector<96x128xf32>
    %239 = arith.addf %234, %238 : vector<96x128xf32>
    %c105 = arith.constant 105 : index
    %c0_143 = arith.constant 0 : index
    %240 = vector.load %arg8[%c105, %c0_143] : memref<448x128xbf16, #tpu.memory_space<vmem>>, vector<96x128xbf16>
    %c2_144 = arith.constant 2 : index
    %c0_145 = arith.constant 0 : index
    %c0_146 = arith.constant 0 : index
    %241 = vector.load %arg4[%c2_144, %c0_145, %c0_146] : memref<9x128x128xbf16, #tpu.memory_space<vmem>>, vector<1x128x128xbf16>
    %242 = vector.shape_cast %241 : vector<1x128x128xbf16> to vector<128x128xbf16>
    %cst_147 = arith.constant dense<0.000000e+00> : vector<96x128xf32>
    %243 = tpu.matmul %240, %242, %cst_147 {dimension_numbers = #tpu.dot_dimension_numbers<[1], [0], [0], [1], [0, 0, 1, 1], [], []>} : vector<96x128xbf16>, vector<128x128xbf16>, vector<96x128xf32> -> vector<96x128xf32>
    %244 = arith.addf %239, %243 : vector<96x128xf32>
    %c127 = arith.constant 127 : index
    %c0_148 = arith.constant 0 : index
    %245 = vector.load %arg8[%c127, %c0_148] : memref<448x128xbf16, #tpu.memory_space<vmem>>, vector<96x128xbf16>
    %c3_149 = arith.constant 3 : index
    %c0_150 = arith.constant 0 : index
    %c0_151 = arith.constant 0 : index
    %246 = vector.load %arg4[%c3_149, %c0_150, %c0_151] : memref<9x128x128xbf16, #tpu.memory_space<vmem>>, vector<1x128x128xbf16>
    %247 = vector.shape_cast %246 : vector<1x128x128xbf16> to vector<128x128xbf16>
    %cst_152 = arith.constant dense<0.000000e+00> : vector<96x128xf32>
    %248 = tpu.matmul %245, %247, %cst_152 {dimension_numbers = #tpu.dot_dimension_numbers<[1], [0], [0], [1], [0, 0, 1, 1], [], []>} : vector<96x128xbf16>, vector<128x128xbf16>, vector<96x128xf32> -> vector<96x128xf32>
    %249 = arith.addf %244, %248 : vector<96x128xf32>
    %c128_153 = arith.constant 128 : index
    %c0_154 = arith.constant 0 : index
    %250 = vector.load %arg8[%c128_153, %c0_154] : memref<448x128xbf16, #tpu.memory_space<vmem>>, vector<96x128xbf16>
    %c4_155 = arith.constant 4 : index
    %c0_156 = arith.constant 0 : index
    %c0_157 = arith.constant 0 : index
    %251 = vector.load %arg4[%c4_155, %c0_156, %c0_157] : memref<9x128x128xbf16, #tpu.memory_space<vmem>>, vector<1x128x128xbf16>
    %252 = vector.shape_cast %251 : vector<1x128x128xbf16> to vector<128x128xbf16>
    %cst_158 = arith.constant dense<0.000000e+00> : vector<96x128xf32>
    %253 = tpu.matmul %250, %252, %cst_158 {dimension_numbers = #tpu.dot_dimension_numbers<[1], [0], [0], [1], [0, 0, 1, 1], [], []>} : vector<96x128xbf16>, vector<128x128xbf16>, vector<96x128xf32> -> vector<96x128xf32>
    %254 = arith.addf %249, %253 : vector<96x128xf32>
    %c129 = arith.constant 129 : index
    %c0_159 = arith.constant 0 : index
    %255 = vector.load %arg8[%c129, %c0_159] : memref<448x128xbf16, #tpu.memory_space<vmem>>, vector<96x128xbf16>
    %c5_160 = arith.constant 5 : index
    %c0_161 = arith.constant 0 : index
    %c0_162 = arith.constant 0 : index
    %256 = vector.load %arg4[%c5_160, %c0_161, %c0_162] : memref<9x128x128xbf16, #tpu.memory_space<vmem>>, vector<1x128x128xbf16>
    %257 = vector.shape_cast %256 : vector<1x128x128xbf16> to vector<128x128xbf16>
    %cst_163 = arith.constant dense<0.000000e+00> : vector<96x128xf32>
    %258 = tpu.matmul %255, %257, %cst_163 {dimension_numbers = #tpu.dot_dimension_numbers<[1], [0], [0], [1], [0, 0, 1, 1], [], []>} : vector<96x128xbf16>, vector<128x128xbf16>, vector<96x128xf32> -> vector<96x128xf32>
    %259 = arith.addf %254, %258 : vector<96x128xf32>
    %c151 = arith.constant 151 : index
    %c0_164 = arith.constant 0 : index
    %260 = vector.load %arg8[%c151, %c0_164] : memref<448x128xbf16, #tpu.memory_space<vmem>>, vector<96x128xbf16>
    %c6_165 = arith.constant 6 : index
    %c0_166 = arith.constant 0 : index
    %c0_167 = arith.constant 0 : index
    %261 = vector.load %arg4[%c6_165, %c0_166, %c0_167] : memref<9x128x128xbf16, #tpu.memory_space<vmem>>, vector<1x128x128xbf16>
    %262 = vector.shape_cast %261 : vector<1x128x128xbf16> to vector<128x128xbf16>
    %cst_168 = arith.constant dense<0.000000e+00> : vector<96x128xf32>
    %263 = tpu.matmul %260, %262, %cst_168 {dimension_numbers = #tpu.dot_dimension_numbers<[1], [0], [0], [1], [0, 0, 1, 1], [], []>} : vector<96x128xbf16>, vector<128x128xbf16>, vector<96x128xf32> -> vector<96x128xf32>
    %264 = arith.addf %259, %263 : vector<96x128xf32>
    %c152_169 = arith.constant 152 : index
    %c0_170 = arith.constant 0 : index
    %265 = vector.load %arg8[%c152_169, %c0_170] : memref<448x128xbf16, #tpu.memory_space<vmem>>, vector<96x128xbf16>
    %c7_171 = arith.constant 7 : index
    %c0_172 = arith.constant 0 : index
    %c0_173 = arith.constant 0 : index
    %266 = vector.load %arg4[%c7_171, %c0_172, %c0_173] : memref<9x128x128xbf16, #tpu.memory_space<vmem>>, vector<1x128x128xbf16>
    %267 = vector.shape_cast %266 : vector<1x128x128xbf16> to vector<128x128xbf16>
    %cst_174 = arith.constant dense<0.000000e+00> : vector<96x128xf32>
    %268 = tpu.matmul %265, %267, %cst_174 {dimension_numbers = #tpu.dot_dimension_numbers<[1], [0], [0], [1], [0, 0, 1, 1], [], []>} : vector<96x128xbf16>, vector<128x128xbf16>, vector<96x128xf32> -> vector<96x128xf32>
    %269 = arith.addf %264, %268 : vector<96x128xf32>
    %c153 = arith.constant 153 : index
    %c0_175 = arith.constant 0 : index
    %270 = vector.load %arg8[%c153, %c0_175] : memref<448x128xbf16, #tpu.memory_space<vmem>>, vector<96x128xbf16>
    %c8_176 = arith.constant 8 : index
    %c0_177 = arith.constant 0 : index
    %c0_178 = arith.constant 0 : index
    %271 = vector.load %arg4[%c8_176, %c0_177, %c0_178] : memref<9x128x128xbf16, #tpu.memory_space<vmem>>, vector<1x128x128xbf16>
    %272 = vector.shape_cast %271 : vector<1x128x128xbf16> to vector<128x128xbf16>
    %cst_179 = arith.constant dense<0.000000e+00> : vector<96x128xf32>
    %273 = tpu.matmul %270, %272, %cst_179 {dimension_numbers = #tpu.dot_dimension_numbers<[1], [0], [0], [1], [0, 0, 1, 1], [], []>} : vector<96x128xbf16>, vector<128x128xbf16>, vector<96x128xf32> -> vector<96x128xf32>
    %274 = arith.addf %269, %273 : vector<96x128xf32>
    %275 = vector.broadcast %166 : vector<1x128xf32> to vector<96x128xf32>
    %276 = arith.addf %274, %275 : vector<96x128xf32>
    %cst_180 = arith.constant 0.000000e+00 : f32
    %277 = vector.broadcast %cst_180 : f32 to vector<96x128xf32>
    %278 = arith.maximumf %276, %277 : vector<96x128xf32>
    %279 = vector.extract_strided_slice %278 {offsets = [0, 0], sizes = [16, 128], strides = [1, 1]} : vector<96x128xf32> to vector<16x128xf32>
    %280 = arith.truncf %279 : vector<16x128xf32> to vector<16x128xbf16>
    %c128_181 = arith.constant 128 : index
    %c0_182 = arith.constant 0 : index
    %281 = vector.load %arg9[%c128_181, %c0_182] : memref<448x128xbf16, #tpu.memory_space<vmem>>, vector<16x128xbf16>
    tpu.vector_store %arg9[%c128_181, %c0_182], %280 {strides = array<i32>} : memref<448x128xbf16, #tpu.memory_space<vmem>>, vector<16x128xbf16>,
    %282 = vector.extract_strided_slice %278 {offsets = [24, 0], sizes = [16, 128], strides = [1, 1]} : vector<96x128xf32> to vector<16x128xf32>
    %283 = arith.truncf %282 : vector<16x128xf32> to vector<16x128xbf16>
    %c152_183 = arith.constant 152 : index
    %c0_184 = arith.constant 0 : index
    %284 = vector.load %arg9[%c152_183, %c0_184] : memref<448x128xbf16, #tpu.memory_space<vmem>>, vector<16x128xbf16>
    tpu.vector_store %arg9[%c152_183, %c0_184], %283 {strides = array<i32>} : memref<448x128xbf16, #tpu.memory_space<vmem>>, vector<16x128xbf16>,
    %285 = vector.extract_strided_slice %278 {offsets = [48, 0], sizes = [16, 128], strides = [1, 1]} : vector<96x128xf32> to vector<16x128xf32>
    %286 = arith.truncf %285 : vector<16x128xf32> to vector<16x128xbf16>
    %c176_185 = arith.constant 176 : index
    %c0_186 = arith.constant 0 : index
    %287 = vector.load %arg9[%c176_185, %c0_186] : memref<448x128xbf16, #tpu.memory_space<vmem>>, vector<16x128xbf16>
    tpu.vector_store %arg9[%c176_185, %c0_186], %286 {strides = array<i32>} : memref<448x128xbf16, #tpu.memory_space<vmem>>, vector<16x128xbf16>,
    %288 = vector.extract_strided_slice %278 {offsets = [72, 0], sizes = [16, 128], strides = [1, 1]} : vector<96x128xf32> to vector<16x128xf32>
    %289 = arith.truncf %288 : vector<16x128xf32> to vector<16x128xbf16>
    %c200_187 = arith.constant 200 : index
    %c0_188 = arith.constant 0 : index
    %290 = vector.load %arg9[%c200_187, %c0_188] : memref<448x128xbf16, #tpu.memory_space<vmem>>, vector<16x128xbf16>
    tpu.vector_store %arg9[%c200_187, %c0_188], %289 {strides = array<i32>} : memref<448x128xbf16, #tpu.memory_space<vmem>>, vector<16x128xbf16>,
    %cst_189 = arith.constant 0.000000e+00 : f32
    %291 = vector.broadcast %cst_189 : f32 to vector<96x128xf32>
    %c199 = arith.constant 199 : index
    %c0_190 = arith.constant 0 : index
    %292 = vector.load %arg8[%c199, %c0_190] : memref<448x128xbf16, #tpu.memory_space<vmem>>, vector<96x128xbf16>
    %c0_191 = arith.constant 0 : index
    %c0_192 = arith.constant 0 : index
    %c0_193 = arith.constant 0 : index
    %293 = vector.load %arg4[%c0_191, %c0_192, %c0_193] : memref<9x128x128xbf16, #tpu.memory_space<vmem>>, vector<1x128x128xbf16>
    %294 = vector.shape_cast %293 : vector<1x128x128xbf16> to vector<128x128xbf16>
    %cst_194 = arith.constant dense<0.000000e+00> : vector<96x128xf32>
    %295 = tpu.matmul %292, %294, %cst_194 {dimension_numbers = #tpu.dot_dimension_numbers<[1], [0], [0], [1], [0, 0, 1, 1], [], []>} : vector<96x128xbf16>, vector<128x128xbf16>, vector<96x128xf32> -> vector<96x128xf32>
    %296 = arith.addf %291, %295 : vector<96x128xf32>
    %c200_195 = arith.constant 200 : index
    %c0_196 = arith.constant 0 : index
    %297 = vector.load %arg8[%c200_195, %c0_196] : memref<448x128xbf16, #tpu.memory_space<vmem>>, vector<96x128xbf16>
    %c1_197 = arith.constant 1 : index
    %c0_198 = arith.constant 0 : index
    %c0_199 = arith.constant 0 : index
    %298 = vector.load %arg4[%c1_197, %c0_198, %c0_199] : memref<9x128x128xbf16, #tpu.memory_space<vmem>>, vector<1x128x128xbf16>
    %299 = vector.shape_cast %298 : vector<1x128x128xbf16> to vector<128x128xbf16>
    %cst_200 = arith.constant dense<0.000000e+00> : vector<96x128xf32>
    %300 = tpu.matmul %297, %299, %cst_200 {dimension_numbers = #tpu.dot_dimension_numbers<[1], [0], [0], [1], [0, 0, 1, 1], [], []>} : vector<96x128xbf16>, vector<128x128xbf16>, vector<96x128xf32> -> vector<96x128xf32>
    %301 = arith.addf %296, %300 : vector<96x128xf32>
    %c201 = arith.constant 201 : index
    %c0_201 = arith.constant 0 : index
    %302 = vector.load %arg8[%c201, %c0_201] : memref<448x128xbf16, #tpu.memory_space<vmem>>, vector<96x128xbf16>
    %c2_202 = arith.constant 2 : index
    %c0_203 = arith.constant 0 : index
    %c0_204 = arith.constant 0 : index
    %303 = vector.load %arg4[%c2_202, %c0_203, %c0_204] : memref<9x128x128xbf16, #tpu.memory_space<vmem>>, vector<1x128x128xbf16>
    %304 = vector.shape_cast %303 : vector<1x128x128xbf16> to vector<128x128xbf16>
    %cst_205 = arith.constant dense<0.000000e+00> : vector<96x128xf32>
    %305 = tpu.matmul %302, %304, %cst_205 {dimension_numbers = #tpu.dot_dimension_numbers<[1], [0], [0], [1], [0, 0, 1, 1], [], []>} : vector<96x128xbf16>, vector<128x128xbf16>, vector<96x128xf32> -> vector<96x128xf32>
    %306 = arith.addf %301, %305 : vector<96x128xf32>
    %c223 = arith.constant 223 : index
    %c0_206 = arith.constant 0 : index
    %307 = vector.load %arg8[%c223, %c0_206] : memref<448x128xbf16, #tpu.memory_space<vmem>>, vector<96x128xbf16>
    %c3_207 = arith.constant 3 : index
    %c0_208 = arith.constant 0 : index
    %c0_209 = arith.constant 0 : index
    %308 = vector.load %arg4[%c3_207, %c0_208, %c0_209] : memref<9x128x128xbf16, #tpu.memory_space<vmem>>, vector<1x128x128xbf16>
    %309 = vector.shape_cast %308 : vector<1x128x128xbf16> to vector<128x128xbf16>
    %cst_210 = arith.constant dense<0.000000e+00> : vector<96x128xf32>
    %310 = tpu.matmul %307, %309, %cst_210 {dimension_numbers = #tpu.dot_dimension_numbers<[1], [0], [0], [1], [0, 0, 1, 1], [], []>} : vector<96x128xbf16>, vector<128x128xbf16>, vector<96x128xf32> -> vector<96x128xf32>
    %311 = arith.addf %306, %310 : vector<96x128xf32>
    %c224_211 = arith.constant 224 : index
    %c0_212 = arith.constant 0 : index
    %312 = vector.load %arg8[%c224_211, %c0_212] : memref<448x128xbf16, #tpu.memory_space<vmem>>, vector<96x128xbf16>
    %c4_213 = arith.constant 4 : index
    %c0_214 = arith.constant 0 : index
    %c0_215 = arith.constant 0 : index
    %313 = vector.load %arg4[%c4_213, %c0_214, %c0_215] : memref<9x128x128xbf16, #tpu.memory_space<vmem>>, vector<1x128x128xbf16>
    %314 = vector.shape_cast %313 : vector<1x128x128xbf16> to vector<128x128xbf16>
    %cst_216 = arith.constant dense<0.000000e+00> : vector<96x128xf32>
    %315 = tpu.matmul %312, %314, %cst_216 {dimension_numbers = #tpu.dot_dimension_numbers<[1], [0], [0], [1], [0, 0, 1, 1], [], []>} : vector<96x128xbf16>, vector<128x128xbf16>, vector<96x128xf32> -> vector<96x128xf32>
    %316 = arith.addf %311, %315 : vector<96x128xf32>
    %c225 = arith.constant 225 : index
    %c0_217 = arith.constant 0 : index
    %317 = vector.load %arg8[%c225, %c0_217] : memref<448x128xbf16, #tpu.memory_space<vmem>>, vector<96x128xbf16>
    %c5_218 = arith.constant 5 : index
    %c0_219 = arith.constant 0 : index
    %c0_220 = arith.constant 0 : index
    %318 = vector.load %arg4[%c5_218, %c0_219, %c0_220] : memref<9x128x128xbf16, #tpu.memory_space<vmem>>, vector<1x128x128xbf16>
    %319 = vector.shape_cast %318 : vector<1x128x128xbf16> to vector<128x128xbf16>
    %cst_221 = arith.constant dense<0.000000e+00> : vector<96x128xf32>
    %320 = tpu.matmul %317, %319, %cst_221 {dimension_numbers = #tpu.dot_dimension_numbers<[1], [0], [0], [1], [0, 0, 1, 1], [], []>} : vector<96x128xbf16>, vector<128x128xbf16>, vector<96x128xf32> -> vector<96x128xf32>
    %321 = arith.addf %316, %320 : vector<96x128xf32>
    %c247 = arith.constant 247 : index
    %c0_222 = arith.constant 0 : index
    %322 = vector.load %arg8[%c247, %c0_222] : memref<448x128xbf16, #tpu.memory_space<vmem>>, vector<96x128xbf16>
    %c6_223 = arith.constant 6 : index
    %c0_224 = arith.constant 0 : index
    %c0_225 = arith.constant 0 : index
    %323 = vector.load %arg4[%c6_223, %c0_224, %c0_225] : memref<9x128x128xbf16, #tpu.memory_space<vmem>>, vector<1x128x128xbf16>
    %324 = vector.shape_cast %323 : vector<1x128x128xbf16> to vector<128x128xbf16>
    %cst_226 = arith.constant dense<0.000000e+00> : vector<96x128xf32>
    %325 = tpu.matmul %322, %324, %cst_226 {dimension_numbers = #tpu.dot_dimension_numbers<[1], [0], [0], [1], [0, 0, 1, 1], [], []>} : vector<96x128xbf16>, vector<128x128xbf16>, vector<96x128xf32> -> vector<96x128xf32>
    %326 = arith.addf %321, %325 : vector<96x128xf32>
    %c248_227 = arith.constant 248 : index
    %c0_228 = arith.constant 0 : index
    %327 = vector.load %arg8[%c248_227, %c0_228] : memref<448x128xbf16, #tpu.memory_space<vmem>>, vector<96x128xbf16>
    %c7_229 = arith.constant 7 : index
    %c0_230 = arith.constant 0 : index
    %c0_231 = arith.constant 0 : index
    %328 = vector.load %arg4[%c7_229, %c0_230, %c0_231] : memref<9x128x128xbf16, #tpu.memory_space<vmem>>, vector<1x128x128xbf16>
    %329 = vector.shape_cast %328 : vector<1x128x128xbf16> to vector<128x128xbf16>
    %cst_232 = arith.constant dense<0.000000e+00> : vector<96x128xf32>
    %330 = tpu.matmul %327, %329, %cst_232 {dimension_numbers = #tpu.dot_dimension_numbers<[1], [0], [0], [1], [0, 0, 1, 1], [], []>} : vector<96x128xbf16>, vector<128x128xbf16>, vector<96x128xf32> -> vector<96x128xf32>
    %331 = arith.addf %326, %330 : vector<96x128xf32>
    %c249 = arith.constant 249 : index
    %c0_233 = arith.constant 0 : index
    %332 = vector.load %arg8[%c249, %c0_233] : memref<448x128xbf16, #tpu.memory_space<vmem>>, vector<96x128xbf16>
    %c8_234 = arith.constant 8 : index
    %c0_235 = arith.constant 0 : index
    %c0_236 = arith.constant 0 : index
    %333 = vector.load %arg4[%c8_234, %c0_235, %c0_236] : memref<9x128x128xbf16, #tpu.memory_space<vmem>>, vector<1x128x128xbf16>
    %334 = vector.shape_cast %333 : vector<1x128x128xbf16> to vector<128x128xbf16>
    %cst_237 = arith.constant dense<0.000000e+00> : vector<96x128xf32>
    %335 = tpu.matmul %332, %334, %cst_237 {dimension_numbers = #tpu.dot_dimension_numbers<[1], [0], [0], [1], [0, 0, 1, 1], [], []>} : vector<96x128xbf16>, vector<128x128xbf16>, vector<96x128xf32> -> vector<96x128xf32>
    %336 = arith.addf %331, %335 : vector<96x128xf32>
    %337 = vector.broadcast %166 : vector<1x128xf32> to vector<96x128xf32>
    %338 = arith.addf %336, %337 : vector<96x128xf32>
    %cst_238 = arith.constant 0.000000e+00 : f32
    %339 = vector.broadcast %cst_238 : f32 to vector<96x128xf32>
    %340 = arith.maximumf %338, %339 : vector<96x128xf32>
    %341 = vector.extract_strided_slice %340 {offsets = [0, 0], sizes = [16, 128], strides = [1, 1]} : vector<96x128xf32> to vector<16x128xf32>
    %342 = arith.truncf %341 : vector<16x128xf32> to vector<16x128xbf16>
    %c224_239 = arith.constant 224 : index
    %c0_240 = arith.constant 0 : index
    %343 = vector.load %arg9[%c224_239, %c0_240] : memref<448x128xbf16, #tpu.memory_space<vmem>>, vector<16x128xbf16>
    tpu.vector_store %arg9[%c224_239, %c0_240], %342 {strides = array<i32>} : memref<448x128xbf16, #tpu.memory_space<vmem>>, vector<16x128xbf16>,
    %344 = vector.extract_strided_slice %340 {offsets = [24, 0], sizes = [16, 128], strides = [1, 1]} : vector<96x128xf32> to vector<16x128xf32>
    %345 = arith.truncf %344 : vector<16x128xf32> to vector<16x128xbf16>
    %c248_241 = arith.constant 248 : index
    %c0_242 = arith.constant 0 : index
    %346 = vector.load %arg9[%c248_241, %c0_242] : memref<448x128xbf16, #tpu.memory_space<vmem>>, vector<16x128xbf16>
    tpu.vector_store %arg9[%c248_241, %c0_242], %345 {strides = array<i32>} : memref<448x128xbf16, #tpu.memory_space<vmem>>, vector<16x128xbf16>,
    %347 = vector.extract_strided_slice %340 {offsets = [48, 0], sizes = [16, 128], strides = [1, 1]} : vector<96x128xf32> to vector<16x128xf32>
    %348 = arith.truncf %347 : vector<16x128xf32> to vector<16x128xbf16>
    %c272_243 = arith.constant 272 : index
    %c0_244 = arith.constant 0 : index
    %349 = vector.load %arg9[%c272_243, %c0_244] : memref<448x128xbf16, #tpu.memory_space<vmem>>, vector<16x128xbf16>
    tpu.vector_store %arg9[%c272_243, %c0_244], %348 {strides = array<i32>} : memref<448x128xbf16, #tpu.memory_space<vmem>>, vector<16x128xbf16>,
    %350 = vector.extract_strided_slice %340 {offsets = [72, 0], sizes = [16, 128], strides = [1, 1]} : vector<96x128xf32> to vector<16x128xf32>
    %351 = arith.truncf %350 : vector<16x128xf32> to vector<16x128xbf16>
    %c296_245 = arith.constant 296 : index
    %c0_246 = arith.constant 0 : index
    %352 = vector.load %arg9[%c296_245, %c0_246] : memref<448x128xbf16, #tpu.memory_space<vmem>>, vector<16x128xbf16>
    tpu.vector_store %arg9[%c296_245, %c0_246], %351 {strides = array<i32>} : memref<448x128xbf16, #tpu.memory_space<vmem>>, vector<16x128xbf16>,
    %cst_247 = arith.constant 0.000000e+00 : f32
    %353 = vector.broadcast %cst_247 : f32 to vector<96x128xf32>
    %c295 = arith.constant 295 : index
    %c0_248 = arith.constant 0 : index
    %354 = vector.load %arg8[%c295, %c0_248] : memref<448x128xbf16, #tpu.memory_space<vmem>>, vector<96x128xbf16>
    %c0_249 = arith.constant 0 : index
    %c0_250 = arith.constant 0 : index
    %c0_251 = arith.constant 0 : index
    %355 = vector.load %arg4[%c0_249, %c0_250, %c0_251] : memref<9x128x128xbf16, #tpu.memory_space<vmem>>, vector<1x128x128xbf16>
    %356 = vector.shape_cast %355 : vector<1x128x128xbf16> to vector<128x128xbf16>
    %cst_252 = arith.constant dense<0.000000e+00> : vector<96x128xf32>
    %357 = tpu.matmul %354, %356, %cst_252 {dimension_numbers = #tpu.dot_dimension_numbers<[1], [0], [0], [1], [0, 0, 1, 1], [], []>} : vector<96x128xbf16>, vector<128x128xbf16>, vector<96x128xf32> -> vector<96x128xf32>
    %358 = arith.addf %353, %357 : vector<96x128xf32>
    %c296_253 = arith.constant 296 : index
    %c0_254 = arith.constant 0 : index
    %359 = vector.load %arg8[%c296_253, %c0_254] : memref<448x128xbf16, #tpu.memory_space<vmem>>, vector<96x128xbf16>
    %c1_255 = arith.constant 1 : index
    %c0_256 = arith.constant 0 : index
    %c0_257 = arith.constant 0 : index
    %360 = vector.load %arg4[%c1_255, %c0_256, %c0_257] : memref<9x128x128xbf16, #tpu.memory_space<vmem>>, vector<1x128x128xbf16>
    %361 = vector.shape_cast %360 : vector<1x128x128xbf16> to vector<128x128xbf16>
    %cst_258 = arith.constant dense<0.000000e+00> : vector<96x128xf32>
    %362 = tpu.matmul %359, %361, %cst_258 {dimension_numbers = #tpu.dot_dimension_numbers<[1], [0], [0], [1], [0, 0, 1, 1], [], []>} : vector<96x128xbf16>, vector<128x128xbf16>, vector<96x128xf32> -> vector<96x128xf32>
    %363 = arith.addf %358, %362 : vector<96x128xf32>
    %c297 = arith.constant 297 : index
    %c0_259 = arith.constant 0 : index
    %364 = vector.load %arg8[%c297, %c0_259] : memref<448x128xbf16, #tpu.memory_space<vmem>>, vector<96x128xbf16>
    %c2_260 = arith.constant 2 : index
    %c0_261 = arith.constant 0 : index
    %c0_262 = arith.constant 0 : index
    %365 = vector.load %arg4[%c2_260, %c0_261, %c0_262] : memref<9x128x128xbf16, #tpu.memory_space<vmem>>, vector<1x128x128xbf16>
    %366 = vector.shape_cast %365 : vector<1x128x128xbf16> to vector<128x128xbf16>
    %cst_263 = arith.constant dense<0.000000e+00> : vector<96x128xf32>
    %367 = tpu.matmul %364, %366, %cst_263 {dimension_numbers = #tpu.dot_dimension_numbers<[1], [0], [0], [1], [0, 0, 1, 1], [], []>} : vector<96x128xbf16>, vector<128x128xbf16>, vector<96x128xf32> -> vector<96x128xf32>
    %368 = arith.addf %363, %367 : vector<96x128xf32>
    %c319 = arith.constant 319 : index
    %c0_264 = arith.constant 0 : index
    %369 = vector.load %arg8[%c319, %c0_264] : memref<448x128xbf16, #tpu.memory_space<vmem>>, vector<96x128xbf16>
    %c3_265 = arith.constant 3 : index
    %c0_266 = arith.constant 0 : index
    %c0_267 = arith.constant 0 : index
    %370 = vector.load %arg4[%c3_265, %c0_266, %c0_267] : memref<9x128x128xbf16, #tpu.memory_space<vmem>>, vector<1x128x128xbf16>
    %371 = vector.shape_cast %370 : vector<1x128x128xbf16> to vector<128x128xbf16>
    %cst_268 = arith.constant dense<0.000000e+00> : vector<96x128xf32>
    %372 = tpu.matmul %369, %371, %cst_268 {dimension_numbers = #tpu.dot_dimension_numbers<[1], [0], [0], [1], [0, 0, 1, 1], [], []>} : vector<96x128xbf16>, vector<128x128xbf16>, vector<96x128xf32> -> vector<96x128xf32>
    %373 = arith.addf %368, %372 : vector<96x128xf32>
    %c320_269 = arith.constant 320 : index
    %c0_270 = arith.constant 0 : index
    %374 = vector.load %arg8[%c320_269, %c0_270] : memref<448x128xbf16, #tpu.memory_space<vmem>>, vector<96x128xbf16>
    %c4_271 = arith.constant 4 : index
    %c0_272 = arith.constant 0 : index
    %c0_273 = arith.constant 0 : index
    %375 = vector.load %arg4[%c4_271, %c0_272, %c0_273] : memref<9x128x128xbf16, #tpu.memory_space<vmem>>, vector<1x128x128xbf16>
    %376 = vector.shape_cast %375 : vector<1x128x128xbf16> to vector<128x128xbf16>
    %cst_274 = arith.constant dense<0.000000e+00> : vector<96x128xf32>
    %377 = tpu.matmul %374, %376, %cst_274 {dimension_numbers = #tpu.dot_dimension_numbers<[1], [0], [0], [1], [0, 0, 1, 1], [], []>} : vector<96x128xbf16>, vector<128x128xbf16>, vector<96x128xf32> -> vector<96x128xf32>
    %378 = arith.addf %373, %377 : vector<96x128xf32>
    %c321 = arith.constant 321 : index
    %c0_275 = arith.constant 0 : index
    %379 = vector.load %arg8[%c321, %c0_275] : memref<448x128xbf16, #tpu.memory_space<vmem>>, vector<96x128xbf16>
    %c5_276 = arith.constant 5 : index
    %c0_277 = arith.constant 0 : index
    %c0_278 = arith.constant 0 : index
    %380 = vector.load %arg4[%c5_276, %c0_277, %c0_278] : memref<9x128x128xbf16, #tpu.memory_space<vmem>>, vector<1x128x128xbf16>
    %381 = vector.shape_cast %380 : vector<1x128x128xbf16> to vector<128x128xbf16>
    %cst_279 = arith.constant dense<0.000000e+00> : vector<96x128xf32>
    %382 = tpu.matmul %379, %381, %cst_279 {dimension_numbers = #tpu.dot_dimension_numbers<[1], [0], [0], [1], [0, 0, 1, 1], [], []>} : vector<96x128xbf16>, vector<128x128xbf16>, vector<96x128xf32> -> vector<96x128xf32>
    %383 = arith.addf %378, %382 : vector<96x128xf32>
    %c343 = arith.constant 343 : index
    %c0_280 = arith.constant 0 : index
    %384 = vector.load %arg8[%c343, %c0_280] : memref<448x128xbf16, #tpu.memory_space<vmem>>, vector<96x128xbf16>
    %c6_281 = arith.constant 6 : index
    %c0_282 = arith.constant 0 : index
    %c0_283 = arith.constant 0 : index
    %385 = vector.load %arg4[%c6_281, %c0_282, %c0_283] : memref<9x128x128xbf16, #tpu.memory_space<vmem>>, vector<1x128x128xbf16>
    %386 = vector.shape_cast %385 : vector<1x128x128xbf16> to vector<128x128xbf16>
    %cst_284 = arith.constant dense<0.000000e+00> : vector<96x128xf32>
    %387 = tpu.matmul %384, %386, %cst_284 {dimension_numbers = #tpu.dot_dimension_numbers<[1], [0], [0], [1], [0, 0, 1, 1], [], []>} : vector<96x128xbf16>, vector<128x128xbf16>, vector<96x128xf32> -> vector<96x128xf32>
    %388 = arith.addf %383, %387 : vector<96x128xf32>
    %c344_285 = arith.constant 344 : index
    %c0_286 = arith.constant 0 : index
    %389 = vector.load %arg8[%c344_285, %c0_286] : memref<448x128xbf16, #tpu.memory_space<vmem>>, vector<96x128xbf16>
    %c7_287 = arith.constant 7 : index
    %c0_288 = arith.constant 0 : index
    %c0_289 = arith.constant 0 : index
    %390 = vector.load %arg4[%c7_287, %c0_288, %c0_289] : memref<9x128x128xbf16, #tpu.memory_space<vmem>>, vector<1x128x128xbf16>
    %391 = vector.shape_cast %390 : vector<1x128x128xbf16> to vector<128x128xbf16>
    %cst_290 = arith.constant dense<0.000000e+00> : vector<96x128xf32>
    %392 = tpu.matmul %389, %391, %cst_290 {dimension_numbers = #tpu.dot_dimension_numbers<[1], [0], [0], [1], [0, 0, 1, 1], [], []>} : vector<96x128xbf16>, vector<128x128xbf16>, vector<96x128xf32> -> vector<96x128xf32>
    %393 = arith.addf %388, %392 : vector<96x128xf32>
    %c345 = arith.constant 345 : index
    %c0_291 = arith.constant 0 : index
    %394 = vector.load %arg8[%c345, %c0_291] : memref<448x128xbf16, #tpu.memory_space<vmem>>, vector<96x128xbf16>
    %c8_292 = arith.constant 8 : index
    %c0_293 = arith.constant 0 : index
    %c0_294 = arith.constant 0 : index
    %395 = vector.load %arg4[%c8_292, %c0_293, %c0_294] : memref<9x128x128xbf16, #tpu.memory_space<vmem>>, vector<1x128x128xbf16>
    %396 = vector.shape_cast %395 : vector<1x128x128xbf16> to vector<128x128xbf16>
    %cst_295 = arith.constant dense<0.000000e+00> : vector<96x128xf32>
    %397 = tpu.matmul %394, %396, %cst_295 {dimension_numbers = #tpu.dot_dimension_numbers<[1], [0], [0], [1], [0, 0, 1, 1], [], []>} : vector<96x128xbf16>, vector<128x128xbf16>, vector<96x128xf32> -> vector<96x128xf32>
    %398 = arith.addf %393, %397 : vector<96x128xf32>
    %399 = vector.broadcast %166 : vector<1x128xf32> to vector<96x128xf32>
    %400 = arith.addf %398, %399 : vector<96x128xf32>
    %cst_296 = arith.constant 0.000000e+00 : f32
    %401 = vector.broadcast %cst_296 : f32 to vector<96x128xf32>
    %402 = arith.maximumf %400, %401 : vector<96x128xf32>
    %403 = vector.extract_strided_slice %402 {offsets = [0, 0], sizes = [16, 128], strides = [1, 1]} : vector<96x128xf32> to vector<16x128xf32>
    %404 = arith.truncf %403 : vector<16x128xf32> to vector<16x128xbf16>
    %c320_297 = arith.constant 320 : index
    %c0_298 = arith.constant 0 : index
    %405 = vector.load %arg9[%c320_297, %c0_298] : memref<448x128xbf16, #tpu.memory_space<vmem>>, vector<16x128xbf16>
    tpu.vector_store %arg9[%c320_297, %c0_298], %404 {strides = array<i32>} : memref<448x128xbf16, #tpu.memory_space<vmem>>, vector<16x128xbf16>,
    %406 = vector.extract_strided_slice %402 {offsets = [24, 0], sizes = [16, 128], strides = [1, 1]} : vector<96x128xf32> to vector<16x128xf32>
    %407 = arith.truncf %406 : vector<16x128xf32> to vector<16x128xbf16>
    %c344_299 = arith.constant 344 : index
    %c0_300 = arith.constant 0 : index
    %408 = vector.load %arg9[%c344_299, %c0_300] : memref<448x128xbf16, #tpu.memory_space<vmem>>, vector<16x128xbf16>
    tpu.vector_store %arg9[%c344_299, %c0_300], %407 {strides = array<i32>} : memref<448x128xbf16, #tpu.memory_space<vmem>>, vector<16x128xbf16>,
    %409 = vector.extract_strided_slice %402 {offsets = [48, 0], sizes = [16, 128], strides = [1, 1]} : vector<96x128xf32> to vector<16x128xf32>
    %410 = arith.truncf %409 : vector<16x128xf32> to vector<16x128xbf16>
    %c368_301 = arith.constant 368 : index
    %c0_302 = arith.constant 0 : index
    %411 = vector.load %arg9[%c368_301, %c0_302] : memref<448x128xbf16, #tpu.memory_space<vmem>>, vector<16x128xbf16>
    tpu.vector_store %arg9[%c368_301, %c0_302], %410 {strides = array<i32>} : memref<448x128xbf16, #tpu.memory_space<vmem>>, vector<16x128xbf16>,
    %412 = vector.extract_strided_slice %402 {offsets = [72, 0], sizes = [16, 128], strides = [1, 1]} : vector<96x128xf32> to vector<16x128xf32>
    %413 = arith.truncf %412 : vector<16x128xf32> to vector<16x128xbf16>
    %c392_303 = arith.constant 392 : index
    %c0_304 = arith.constant 0 : index
    %414 = vector.load %arg9[%c392_303, %c0_304] : memref<448x128xbf16, #tpu.memory_space<vmem>>, vector<16x128xbf16>
    tpu.vector_store %arg9[%c392_303, %c0_304], %413 {strides = array<i32>} : memref<448x128xbf16, #tpu.memory_space<vmem>>, vector<16x128xbf16>,
    %cst_305 = arith.constant 0.000000e+00 : f32
    %415 = vector.broadcast %cst_305 : f32 to vector<96x128xf32>
    %c7_306 = arith.constant 7 : index
    %c0_307 = arith.constant 0 : index
    %416 = vector.load %arg9[%c7_306, %c0_307] : memref<448x128xbf16, #tpu.memory_space<vmem>>, vector<96x128xbf16>
    %c0_308 = arith.constant 0 : index
    %c0_309 = arith.constant 0 : index
    %c0_310 = arith.constant 0 : index
    %417 = vector.load %arg6[%c0_308, %c0_309, %c0_310] : memref<9x128x128xbf16, #tpu.memory_space<vmem>>, vector<1x128x128xbf16>
    %418 = vector.shape_cast %417 : vector<1x128x128xbf16> to vector<128x128xbf16>
    %cst_311 = arith.constant dense<0.000000e+00> : vector<96x128xf32>
    %419 = tpu.matmul %416, %418, %cst_311 {dimension_numbers = #tpu.dot_dimension_numbers<[1], [0], [0], [1], [0, 0, 1, 1], [], []>} : vector<96x128xbf16>, vector<128x128xbf16>, vector<96x128xf32> -> vector<96x128xf32>
    %420 = arith.addf %415, %419 : vector<96x128xf32>
    %c8_312 = arith.constant 8 : index
    %c0_313 = arith.constant 0 : index
    %421 = vector.load %arg9[%c8_312, %c0_313] : memref<448x128xbf16, #tpu.memory_space<vmem>>, vector<96x128xbf16>
    %c1_314 = arith.constant 1 : index
    %c0_315 = arith.constant 0 : index
    %c0_316 = arith.constant 0 : index
    %422 = vector.load %arg6[%c1_314, %c0_315, %c0_316] : memref<9x128x128xbf16, #tpu.memory_space<vmem>>, vector<1x128x128xbf16>
    %423 = vector.shape_cast %422 : vector<1x128x128xbf16> to vector<128x128xbf16>
    %cst_317 = arith.constant dense<0.000000e+00> : vector<96x128xf32>
    %424 = tpu.matmul %421, %423, %cst_317 {dimension_numbers = #tpu.dot_dimension_numbers<[1], [0], [0], [1], [0, 0, 1, 1], [], []>} : vector<96x128xbf16>, vector<128x128xbf16>, vector<96x128xf32> -> vector<96x128xf32>
    %425 = arith.addf %420, %424 : vector<96x128xf32>
    %c9_318 = arith.constant 9 : index
    %c0_319 = arith.constant 0 : index
    %426 = vector.load %arg9[%c9_318, %c0_319] : memref<448x128xbf16, #tpu.memory_space<vmem>>, vector<96x128xbf16>
    %c2_320 = arith.constant 2 : index
    %c0_321 = arith.constant 0 : index
    %c0_322 = arith.constant 0 : index
    %427 = vector.load %arg6[%c2_320, %c0_321, %c0_322] : memref<9x128x128xbf16, #tpu.memory_space<vmem>>, vector<1x128x128xbf16>
    %428 = vector.shape_cast %427 : vector<1x128x128xbf16> to vector<128x128xbf16>
    %cst_323 = arith.constant dense<0.000000e+00> : vector<96x128xf32>
    %429 = tpu.matmul %426, %428, %cst_323 {dimension_numbers = #tpu.dot_dimension_numbers<[1], [0], [0], [1], [0, 0, 1, 1], [], []>} : vector<96x128xbf16>, vector<128x128xbf16>, vector<96x128xf32> -> vector<96x128xf32>
    %430 = arith.addf %425, %429 : vector<96x128xf32>
    %c31_324 = arith.constant 31 : index
    %c0_325 = arith.constant 0 : index
    %431 = vector.load %arg9[%c31_324, %c0_325] : memref<448x128xbf16, #tpu.memory_space<vmem>>, vector<96x128xbf16>
    %c3_326 = arith.constant 3 : index
    %c0_327 = arith.constant 0 : index
    %c0_328 = arith.constant 0 : index
    %432 = vector.load %arg6[%c3_326, %c0_327, %c0_328] : memref<9x128x128xbf16, #tpu.memory_space<vmem>>, vector<1x128x128xbf16>
    %433 = vector.shape_cast %432 : vector<1x128x128xbf16> to vector<128x128xbf16>
    %cst_329 = arith.constant dense<0.000000e+00> : vector<96x128xf32>
    %434 = tpu.matmul %431, %433, %cst_329 {dimension_numbers = #tpu.dot_dimension_numbers<[1], [0], [0], [1], [0, 0, 1, 1], [], []>} : vector<96x128xbf16>, vector<128x128xbf16>, vector<96x128xf32> -> vector<96x128xf32>
    %435 = arith.addf %430, %434 : vector<96x128xf32>
    %c32_330 = arith.constant 32 : index
    %c0_331 = arith.constant 0 : index
    %436 = vector.load %arg9[%c32_330, %c0_331] : memref<448x128xbf16, #tpu.memory_space<vmem>>, vector<96x128xbf16>
    %c4_332 = arith.constant 4 : index
    %c0_333 = arith.constant 0 : index
    %c0_334 = arith.constant 0 : index
    %437 = vector.load %arg6[%c4_332, %c0_333, %c0_334] : memref<9x128x128xbf16, #tpu.memory_space<vmem>>, vector<1x128x128xbf16>
    %438 = vector.shape_cast %437 : vector<1x128x128xbf16> to vector<128x128xbf16>
    %cst_335 = arith.constant dense<0.000000e+00> : vector<96x128xf32>
    %439 = tpu.matmul %436, %438, %cst_335 {dimension_numbers = #tpu.dot_dimension_numbers<[1], [0], [0], [1], [0, 0, 1, 1], [], []>} : vector<96x128xbf16>, vector<128x128xbf16>, vector<96x128xf32> -> vector<96x128xf32>
    %440 = arith.addf %435, %439 : vector<96x128xf32>
    %c33_336 = arith.constant 33 : index
    %c0_337 = arith.constant 0 : index
    %441 = vector.load %arg9[%c33_336, %c0_337] : memref<448x128xbf16, #tpu.memory_space<vmem>>, vector<96x128xbf16>
    %c5_338 = arith.constant 5 : index
    %c0_339 = arith.constant 0 : index
    %c0_340 = arith.constant 0 : index
    %442 = vector.load %arg6[%c5_338, %c0_339, %c0_340] : memref<9x128x128xbf16, #tpu.memory_space<vmem>>, vector<1x128x128xbf16>
    %443 = vector.shape_cast %442 : vector<1x128x128xbf16> to vector<128x128xbf16>
    %cst_341 = arith.constant dense<0.000000e+00> : vector<96x128xf32>
    %444 = tpu.matmul %441, %443, %cst_341 {dimension_numbers = #tpu.dot_dimension_numbers<[1], [0], [0], [1], [0, 0, 1, 1], [], []>} : vector<96x128xbf16>, vector<128x128xbf16>, vector<96x128xf32> -> vector<96x128xf32>
    %445 = arith.addf %440, %444 : vector<96x128xf32>
    %c55_342 = arith.constant 55 : index
    %c0_343 = arith.constant 0 : index
    %446 = vector.load %arg9[%c55_342, %c0_343] : memref<448x128xbf16, #tpu.memory_space<vmem>>, vector<96x128xbf16>
    %c6_344 = arith.constant 6 : index
    %c0_345 = arith.constant 0 : index
    %c0_346 = arith.constant 0 : index
    %447 = vector.load %arg6[%c6_344, %c0_345, %c0_346] : memref<9x128x128xbf16, #tpu.memory_space<vmem>>, vector<1x128x128xbf16>
    %448 = vector.shape_cast %447 : vector<1x128x128xbf16> to vector<128x128xbf16>
    %cst_347 = arith.constant dense<0.000000e+00> : vector<96x128xf32>
    %449 = tpu.matmul %446, %448, %cst_347 {dimension_numbers = #tpu.dot_dimension_numbers<[1], [0], [0], [1], [0, 0, 1, 1], [], []>} : vector<96x128xbf16>, vector<128x128xbf16>, vector<96x128xf32> -> vector<96x128xf32>
    %450 = arith.addf %445, %449 : vector<96x128xf32>
    %c56_348 = arith.constant 56 : index
    %c0_349 = arith.constant 0 : index
    %451 = vector.load %arg9[%c56_348, %c0_349] : memref<448x128xbf16, #tpu.memory_space<vmem>>, vector<96x128xbf16>
    %c7_350 = arith.constant 7 : index
    %c0_351 = arith.constant 0 : index
    %c0_352 = arith.constant 0 : index
    %452 = vector.load %arg6[%c7_350, %c0_351, %c0_352] : memref<9x128x128xbf16, #tpu.memory_space<vmem>>, vector<1x128x128xbf16>
    %453 = vector.shape_cast %452 : vector<1x128x128xbf16> to vector<128x128xbf16>
    %cst_353 = arith.constant dense<0.000000e+00> : vector<96x128xf32>
    %454 = tpu.matmul %451, %453, %cst_353 {dimension_numbers = #tpu.dot_dimension_numbers<[1], [0], [0], [1], [0, 0, 1, 1], [], []>} : vector<96x128xbf16>, vector<128x128xbf16>, vector<96x128xf32> -> vector<96x128xf32>
    %455 = arith.addf %450, %454 : vector<96x128xf32>
    %c57_354 = arith.constant 57 : index
    %c0_355 = arith.constant 0 : index
    %456 = vector.load %arg9[%c57_354, %c0_355] : memref<448x128xbf16, #tpu.memory_space<vmem>>, vector<96x128xbf16>
    %c8_356 = arith.constant 8 : index
    %c0_357 = arith.constant 0 : index
    %c0_358 = arith.constant 0 : index
    %457 = vector.load %arg6[%c8_356, %c0_357, %c0_358] : memref<9x128x128xbf16, #tpu.memory_space<vmem>>, vector<1x128x128xbf16>
    %458 = vector.shape_cast %457 : vector<1x128x128xbf16> to vector<128x128xbf16>
    %cst_359 = arith.constant dense<0.000000e+00> : vector<96x128xf32>
    %459 = tpu.matmul %456, %458, %cst_359 {dimension_numbers = #tpu.dot_dimension_numbers<[1], [0], [0], [1], [0, 0, 1, 1], [], []>} : vector<96x128xbf16>, vector<128x128xbf16>, vector<96x128xf32> -> vector<96x128xf32>
    %460 = arith.addf %455, %459 : vector<96x128xf32>
    %461 = vector.extract_strided_slice %460 {offsets = [0, 0], sizes = [16, 128], strides = [1, 1]} : vector<96x128xf32> to vector<16x128xf32>
    %c0_360 = arith.constant 0 : index
    %c0_361 = arith.constant 0 : index
    %c0_362 = arith.constant 0 : index
    %462 = vector.load %arg1[%c0_360, %c0_361, %c0_362] : memref<1x256x128xf32, #tpu.memory_space<vmem>>, vector<1x16x128xf32>
    %463 = vector.shape_cast %462 : vector<1x16x128xf32> to vector<16x128xf32>
    %464 = arith.addf %461, %463 : vector<16x128xf32>
    %c0_363 = arith.constant 0 : index
    %c0_364 = arith.constant 0 : index
    %c0_365 = arith.constant 0 : index
    %465 = vector.load %arg7[%c0_363, %c0_364, %c0_365] : memref<1x256x128xf32, #tpu.memory_space<vmem>>, vector<1x16x128xf32>
    %466 = vector.shape_cast %465 : vector<1x16x128xf32> to vector<16x128xf32>
    %467 = vector.shape_cast %464 : vector<16x128xf32> to vector<1x16x128xf32>
    tpu.vector_store %arg7[%c0_363, %c0_364, %c0_365], %467 {strides = array<i32>} : memref<1x256x128xf32, #tpu.memory_space<vmem>>, vector<1x16x128xf32>,
    %468 = vector.extract_strided_slice %460 {offsets = [24, 0], sizes = [16, 128], strides = [1, 1]} : vector<96x128xf32> to vector<16x128xf32>
    %c0_366 = arith.constant 0 : index
    %c16_367 = arith.constant 16 : index
    %c0_368 = arith.constant 0 : index
    %469 = vector.load %arg1[%c0_366, %c16_367, %c0_368] : memref<1x256x128xf32, #tpu.memory_space<vmem>>, vector<1x16x128xf32>
    %470 = vector.shape_cast %469 : vector<1x16x128xf32> to vector<16x128xf32>
    %471 = arith.addf %468, %470 : vector<16x128xf32>
    %c0_369 = arith.constant 0 : index
    %c16_370 = arith.constant 16 : index
    %c0_371 = arith.constant 0 : index
    %472 = vector.load %arg7[%c0_369, %c16_370, %c0_371] : memref<1x256x128xf32, #tpu.memory_space<vmem>>, vector<1x16x128xf32>
    %473 = vector.shape_cast %472 : vector<1x16x128xf32> to vector<16x128xf32>
    %474 = vector.shape_cast %471 : vector<16x128xf32> to vector<1x16x128xf32>
    tpu.vector_store %arg7[%c0_369, %c16_370, %c0_371], %474 {strides = array<i32>} : memref<1x256x128xf32, #tpu.memory_space<vmem>>, vector<1x16x128xf32>,
    %475 = vector.extract_strided_slice %460 {offsets = [48, 0], sizes = [16, 128], strides = [1, 1]} : vector<96x128xf32> to vector<16x128xf32>
    %c0_372 = arith.constant 0 : index
    %c32_373 = arith.constant 32 : index
    %c0_374 = arith.constant 0 : index
    %476 = vector.load %arg1[%c0_372, %c32_373, %c0_374] : memref<1x256x128xf32, #tpu.memory_space<vmem>>, vector<1x16x128xf32>
    %477 = vector.shape_cast %476 : vector<1x16x128xf32> to vector<16x128xf32>
    %478 = arith.addf %475, %477 : vector<16x128xf32>
    %c0_375 = arith.constant 0 : index
    %c32_376 = arith.constant 32 : index
    %c0_377 = arith.constant 0 : index
    %479 = vector.load %arg7[%c0_375, %c32_376, %c0_377] : memref<1x256x128xf32, #tpu.memory_space<vmem>>, vector<1x16x128xf32>
    %480 = vector.shape_cast %479 : vector<1x16x128xf32> to vector<16x128xf32>
    %481 = vector.shape_cast %478 : vector<16x128xf32> to vector<1x16x128xf32>
    tpu.vector_store %arg7[%c0_375, %c32_376, %c0_377], %481 {strides = array<i32>} : memref<1x256x128xf32, #tpu.memory_space<vmem>>, vector<1x16x128xf32>,
    %482 = vector.extract_strided_slice %460 {offsets = [72, 0], sizes = [16, 128], strides = [1, 1]} : vector<96x128xf32> to vector<16x128xf32>
    %c0_378 = arith.constant 0 : index
    %c48_379 = arith.constant 48 : index
    %c0_380 = arith.constant 0 : index
    %483 = vector.load %arg1[%c0_378, %c48_379, %c0_380] : memref<1x256x128xf32, #tpu.memory_space<vmem>>, vector<1x16x128xf32>
    %484 = vector.shape_cast %483 : vector<1x16x128xf32> to vector<16x128xf32>
    %485 = arith.addf %482, %484 : vector<16x128xf32>
    %c0_381 = arith.constant 0 : index
    %c48_382 = arith.constant 48 : index
    %c0_383 = arith.constant 0 : index
    %486 = vector.load %arg7[%c0_381, %c48_382, %c0_383] : memref<1x256x128xf32, #tpu.memory_space<vmem>>, vector<1x16x128xf32>
    %487 = vector.shape_cast %486 : vector<1x16x128xf32> to vector<16x128xf32>
    %488 = vector.shape_cast %485 : vector<16x128xf32> to vector<1x16x128xf32>
    tpu.vector_store %arg7[%c0_381, %c48_382, %c0_383], %488 {strides = array<i32>} : memref<1x256x128xf32, #tpu.memory_space<vmem>>, vector<1x16x128xf32>,
    %cst_384 = arith.constant 0.000000e+00 : f32
    %489 = vector.broadcast %cst_384 : f32 to vector<96x128xf32>
    %c103_385 = arith.constant 103 : index
    %c0_386 = arith.constant 0 : index
    %490 = vector.load %arg9[%c103_385, %c0_386] : memref<448x128xbf16, #tpu.memory_space<vmem>>, vector<96x128xbf16>
    %c0_387 = arith.constant 0 : index
    %c0_388 = arith.constant 0 : index
    %c0_389 = arith.constant 0 : index
    %491 = vector.load %arg6[%c0_387, %c0_388, %c0_389] : memref<9x128x128xbf16, #tpu.memory_space<vmem>>, vector<1x128x128xbf16>
    %492 = vector.shape_cast %491 : vector<1x128x128xbf16> to vector<128x128xbf16>
    %cst_390 = arith.constant dense<0.000000e+00> : vector<96x128xf32>
    %493 = tpu.matmul %490, %492, %cst_390 {dimension_numbers = #tpu.dot_dimension_numbers<[1], [0], [0], [1], [0, 0, 1, 1], [], []>} : vector<96x128xbf16>, vector<128x128xbf16>, vector<96x128xf32> -> vector<96x128xf32>
    %494 = arith.addf %489, %493 : vector<96x128xf32>
    %c104_391 = arith.constant 104 : index
    %c0_392 = arith.constant 0 : index
    %495 = vector.load %arg9[%c104_391, %c0_392] : memref<448x128xbf16, #tpu.memory_space<vmem>>, vector<96x128xbf16>
    %c1_393 = arith.constant 1 : index
    %c0_394 = arith.constant 0 : index
    %c0_395 = arith.constant 0 : index
    %496 = vector.load %arg6[%c1_393, %c0_394, %c0_395] : memref<9x128x128xbf16, #tpu.memory_space<vmem>>, vector<1x128x128xbf16>
    %497 = vector.shape_cast %496 : vector<1x128x128xbf16> to vector<128x128xbf16>
    %cst_396 = arith.constant dense<0.000000e+00> : vector<96x128xf32>
    %498 = tpu.matmul %495, %497, %cst_396 {dimension_numbers = #tpu.dot_dimension_numbers<[1], [0], [0], [1], [0, 0, 1, 1], [], []>} : vector<96x128xbf16>, vector<128x128xbf16>, vector<96x128xf32> -> vector<96x128xf32>
    %499 = arith.addf %494, %498 : vector<96x128xf32>
    %c105_397 = arith.constant 105 : index
    %c0_398 = arith.constant 0 : index
    %500 = vector.load %arg9[%c105_397, %c0_398] : memref<448x128xbf16, #tpu.memory_space<vmem>>, vector<96x128xbf16>
    %c2_399 = arith.constant 2 : index
    %c0_400 = arith.constant 0 : index
    %c0_401 = arith.constant 0 : index
    %501 = vector.load %arg6[%c2_399, %c0_400, %c0_401] : memref<9x128x128xbf16, #tpu.memory_space<vmem>>, vector<1x128x128xbf16>
    %502 = vector.shape_cast %501 : vector<1x128x128xbf16> to vector<128x128xbf16>
    %cst_402 = arith.constant dense<0.000000e+00> : vector<96x128xf32>
    %503 = tpu.matmul %500, %502, %cst_402 {dimension_numbers = #tpu.dot_dimension_numbers<[1], [0], [0], [1], [0, 0, 1, 1], [], []>} : vector<96x128xbf16>, vector<128x128xbf16>, vector<96x128xf32> -> vector<96x128xf32>
    %504 = arith.addf %499, %503 : vector<96x128xf32>
    %c127_403 = arith.constant 127 : index
    %c0_404 = arith.constant 0 : index
    %505 = vector.load %arg9[%c127_403, %c0_404] : memref<448x128xbf16, #tpu.memory_space<vmem>>, vector<96x128xbf16>
    %c3_405 = arith.constant 3 : index
    %c0_406 = arith.constant 0 : index
    %c0_407 = arith.constant 0 : index
    %506 = vector.load %arg6[%c3_405, %c0_406, %c0_407] : memref<9x128x128xbf16, #tpu.memory_space<vmem>>, vector<1x128x128xbf16>
    %507 = vector.shape_cast %506 : vector<1x128x128xbf16> to vector<128x128xbf16>
    %cst_408 = arith.constant dense<0.000000e+00> : vector<96x128xf32>
    %508 = tpu.matmul %505, %507, %cst_408 {dimension_numbers = #tpu.dot_dimension_numbers<[1], [0], [0], [1], [0, 0, 1, 1], [], []>} : vector<96x128xbf16>, vector<128x128xbf16>, vector<96x128xf32> -> vector<96x128xf32>
    %509 = arith.addf %504, %508 : vector<96x128xf32>
    %c128_409 = arith.constant 128 : index
    %c0_410 = arith.constant 0 : index
    %510 = vector.load %arg9[%c128_409, %c0_410] : memref<448x128xbf16, #tpu.memory_space<vmem>>, vector<96x128xbf16>
    %c4_411 = arith.constant 4 : index
    %c0_412 = arith.constant 0 : index
    %c0_413 = arith.constant 0 : index
    %511 = vector.load %arg6[%c4_411, %c0_412, %c0_413] : memref<9x128x128xbf16, #tpu.memory_space<vmem>>, vector<1x128x128xbf16>
    %512 = vector.shape_cast %511 : vector<1x128x128xbf16> to vector<128x128xbf16>
    %cst_414 = arith.constant dense<0.000000e+00> : vector<96x128xf32>
    %513 = tpu.matmul %510, %512, %cst_414 {dimension_numbers = #tpu.dot_dimension_numbers<[1], [0], [0], [1], [0, 0, 1, 1], [], []>} : vector<96x128xbf16>, vector<128x128xbf16>, vector<96x128xf32> -> vector<96x128xf32>
    %514 = arith.addf %509, %513 : vector<96x128xf32>
    %c129_415 = arith.constant 129 : index
    %c0_416 = arith.constant 0 : index
    %515 = vector.load %arg9[%c129_415, %c0_416] : memref<448x128xbf16, #tpu.memory_space<vmem>>, vector<96x128xbf16>
    %c5_417 = arith.constant 5 : index
    %c0_418 = arith.constant 0 : index
    %c0_419 = arith.constant 0 : index
    %516 = vector.load %arg6[%c5_417, %c0_418, %c0_419] : memref<9x128x128xbf16, #tpu.memory_space<vmem>>, vector<1x128x128xbf16>
    %517 = vector.shape_cast %516 : vector<1x128x128xbf16> to vector<128x128xbf16>
    %cst_420 = arith.constant dense<0.000000e+00> : vector<96x128xf32>
    %518 = tpu.matmul %515, %517, %cst_420 {dimension_numbers = #tpu.dot_dimension_numbers<[1], [0], [0], [1], [0, 0, 1, 1], [], []>} : vector<96x128xbf16>, vector<128x128xbf16>, vector<96x128xf32> -> vector<96x128xf32>
    %519 = arith.addf %514, %518 : vector<96x128xf32>
    %c151_421 = arith.constant 151 : index
    %c0_422 = arith.constant 0 : index
    %520 = vector.load %arg9[%c151_421, %c0_422] : memref<448x128xbf16, #tpu.memory_space<vmem>>, vector<96x128xbf16>
    %c6_423 = arith.constant 6 : index
    %c0_424 = arith.constant 0 : index
    %c0_425 = arith.constant 0 : index
    %521 = vector.load %arg6[%c6_423, %c0_424, %c0_425] : memref<9x128x128xbf16, #tpu.memory_space<vmem>>, vector<1x128x128xbf16>
    %522 = vector.shape_cast %521 : vector<1x128x128xbf16> to vector<128x128xbf16>
    %cst_426 = arith.constant dense<0.000000e+00> : vector<96x128xf32>
    %523 = tpu.matmul %520, %522, %cst_426 {dimension_numbers = #tpu.dot_dimension_numbers<[1], [0], [0], [1], [0, 0, 1, 1], [], []>} : vector<96x128xbf16>, vector<128x128xbf16>, vector<96x128xf32> -> vector<96x128xf32>
    %524 = arith.addf %519, %523 : vector<96x128xf32>
    %c152_427 = arith.constant 152 : index
    %c0_428 = arith.constant 0 : index
    %525 = vector.load %arg9[%c152_427, %c0_428] : memref<448x128xbf16, #tpu.memory_space<vmem>>, vector<96x128xbf16>
    %c7_429 = arith.constant 7 : index
    %c0_430 = arith.constant 0 : index
    %c0_431 = arith.constant 0 : index
    %526 = vector.load %arg6[%c7_429, %c0_430, %c0_431] : memref<9x128x128xbf16, #tpu.memory_space<vmem>>, vector<1x128x128xbf16>
    %527 = vector.shape_cast %526 : vector<1x128x128xbf16> to vector<128x128xbf16>
    %cst_432 = arith.constant dense<0.000000e+00> : vector<96x128xf32>
    %528 = tpu.matmul %525, %527, %cst_432 {dimension_numbers = #tpu.dot_dimension_numbers<[1], [0], [0], [1], [0, 0, 1, 1], [], []>} : vector<96x128xbf16>, vector<128x128xbf16>, vector<96x128xf32> -> vector<96x128xf32>
    %529 = arith.addf %524, %528 : vector<96x128xf32>
    %c153_433 = arith.constant 153 : index
    %c0_434 = arith.constant 0 : index
    %530 = vector.load %arg9[%c153_433, %c0_434] : memref<448x128xbf16, #tpu.memory_space<vmem>>, vector<96x128xbf16>
    %c8_435 = arith.constant 8 : index
    %c0_436 = arith.constant 0 : index
    %c0_437 = arith.constant 0 : index
    %531 = vector.load %arg6[%c8_435, %c0_436, %c0_437] : memref<9x128x128xbf16, #tpu.memory_space<vmem>>, vector<1x128x128xbf16>
    %532 = vector.shape_cast %531 : vector<1x128x128xbf16> to vector<128x128xbf16>
    %cst_438 = arith.constant dense<0.000000e+00> : vector<96x128xf32>
    %533 = tpu.matmul %530, %532, %cst_438 {dimension_numbers = #tpu.dot_dimension_numbers<[1], [0], [0], [1], [0, 0, 1, 1], [], []>} : vector<96x128xbf16>, vector<128x128xbf16>, vector<96x128xf32> -> vector<96x128xf32>
    %534 = arith.addf %529, %533 : vector<96x128xf32>
    %535 = vector.extract_strided_slice %534 {offsets = [0, 0], sizes = [16, 128], strides = [1, 1]} : vector<96x128xf32> to vector<16x128xf32>
    %c0_439 = arith.constant 0 : index
    %c64_440 = arith.constant 64 : index
    %c0_441 = arith.constant 0 : index
    %536 = vector.load %arg1[%c0_439, %c64_440, %c0_441] : memref<1x256x128xf32, #tpu.memory_space<vmem>>, vector<1x16x128xf32>
    %537 = vector.shape_cast %536 : vector<1x16x128xf32> to vector<16x128xf32>
    %538 = arith.addf %535, %537 : vector<16x128xf32>
    %c0_442 = arith.constant 0 : index
    %c64_443 = arith.constant 64 : index
    %c0_444 = arith.constant 0 : index
    %539 = vector.load %arg7[%c0_442, %c64_443, %c0_444] : memref<1x256x128xf32, #tpu.memory_space<vmem>>, vector<1x16x128xf32>
    %540 = vector.shape_cast %539 : vector<1x16x128xf32> to vector<16x128xf32>
    %541 = vector.shape_cast %538 : vector<16x128xf32> to vector<1x16x128xf32>
    tpu.vector_store %arg7[%c0_442, %c64_443, %c0_444], %541 {strides = array<i32>} : memref<1x256x128xf32, #tpu.memory_space<vmem>>, vector<1x16x128xf32>,
    %542 = vector.extract_strided_slice %534 {offsets = [24, 0], sizes = [16, 128], strides = [1, 1]} : vector<96x128xf32> to vector<16x128xf32>
    %c0_445 = arith.constant 0 : index
    %c80_446 = arith.constant 80 : index
    %c0_447 = arith.constant 0 : index
    %543 = vector.load %arg1[%c0_445, %c80_446, %c0_447] : memref<1x256x128xf32, #tpu.memory_space<vmem>>, vector<1x16x128xf32>
    %544 = vector.shape_cast %543 : vector<1x16x128xf32> to vector<16x128xf32>
    %545 = arith.addf %542, %544 : vector<16x128xf32>
    %c0_448 = arith.constant 0 : index
    %c80_449 = arith.constant 80 : index
    %c0_450 = arith.constant 0 : index
    %546 = vector.load %arg7[%c0_448, %c80_449, %c0_450] : memref<1x256x128xf32, #tpu.memory_space<vmem>>, vector<1x16x128xf32>
    %547 = vector.shape_cast %546 : vector<1x16x128xf32> to vector<16x128xf32>
    %548 = vector.shape_cast %545 : vector<16x128xf32> to vector<1x16x128xf32>
    tpu.vector_store %arg7[%c0_448, %c80_449, %c0_450], %548 {strides = array<i32>} : memref<1x256x128xf32, #tpu.memory_space<vmem>>, vector<1x16x128xf32>,
    %549 = vector.extract_strided_slice %534 {offsets = [48, 0], sizes = [16, 128], strides = [1, 1]} : vector<96x128xf32> to vector<16x128xf32>
    %c0_451 = arith.constant 0 : index
    %c96_452 = arith.constant 96 : index
    %c0_453 = arith.constant 0 : index
    %550 = vector.load %arg1[%c0_451, %c96_452, %c0_453] : memref<1x256x128xf32, #tpu.memory_space<vmem>>, vector<1x16x128xf32>
    %551 = vector.shape_cast %550 : vector<1x16x128xf32> to vector<16x128xf32>
    %552 = arith.addf %549, %551 : vector<16x128xf32>
    %c0_454 = arith.constant 0 : index
    %c96_455 = arith.constant 96 : index
    %c0_456 = arith.constant 0 : index
    %553 = vector.load %arg7[%c0_454, %c96_455, %c0_456] : memref<1x256x128xf32, #tpu.memory_space<vmem>>, vector<1x16x128xf32>
    %554 = vector.shape_cast %553 : vector<1x16x128xf32> to vector<16x128xf32>
    %555 = vector.shape_cast %552 : vector<16x128xf32> to vector<1x16x128xf32>
    tpu.vector_store %arg7[%c0_454, %c96_455, %c0_456], %555 {strides = array<i32>} : memref<1x256x128xf32, #tpu.memory_space<vmem>>, vector<1x16x128xf32>,
    %556 = vector.extract_strided_slice %534 {offsets = [72, 0], sizes = [16, 128], strides = [1, 1]} : vector<96x128xf32> to vector<16x128xf32>
    %c0_457 = arith.constant 0 : index
    %c112_458 = arith.constant 112 : index
    %c0_459 = arith.constant 0 : index
    %557 = vector.load %arg1[%c0_457, %c112_458, %c0_459] : memref<1x256x128xf32, #tpu.memory_space<vmem>>, vector<1x16x128xf32>
    %558 = vector.shape_cast %557 : vector<1x16x128xf32> to vector<16x128xf32>
    %559 = arith.addf %556, %558 : vector<16x128xf32>
    %c0_460 = arith.constant 0 : index
    %c112_461 = arith.constant 112 : index
    %c0_462 = arith.constant 0 : index
    %560 = vector.load %arg7[%c0_460, %c112_461, %c0_462] : memref<1x256x128xf32, #tpu.memory_space<vmem>>, vector<1x16x128xf32>
    %561 = vector.shape_cast %560 : vector<1x16x128xf32> to vector<16x128xf32>
    %562 = vector.shape_cast %559 : vector<16x128xf32> to vector<1x16x128xf32>
    tpu.vector_store %arg7[%c0_460, %c112_461, %c0_462], %562 {strides = array<i32>} : memref<1x256x128xf32, #tpu.memory_space<vmem>>, vector<1x16x128xf32>,
    %cst_463 = arith.constant 0.000000e+00 : f32
    %563 = vector.broadcast %cst_463 : f32 to vector<96x128xf32>
    %c199_464 = arith.constant 199 : index
    %c0_465 = arith.constant 0 : index
    %564 = vector.load %arg9[%c199_464, %c0_465] : memref<448x128xbf16, #tpu.memory_space<vmem>>, vector<96x128xbf16>
    %c0_466 = arith.constant 0 : index
    %c0_467 = arith.constant 0 : index
    %c0_468 = arith.constant 0 : index
    %565 = vector.load %arg6[%c0_466, %c0_467, %c0_468] : memref<9x128x128xbf16, #tpu.memory_space<vmem>>, vector<1x128x128xbf16>
    %566 = vector.shape_cast %565 : vector<1x128x128xbf16> to vector<128x128xbf16>
    %cst_469 = arith.constant dense<0.000000e+00> : vector<96x128xf32>
    %567 = tpu.matmul %564, %566, %cst_469 {dimension_numbers = #tpu.dot_dimension_numbers<[1], [0], [0], [1], [0, 0, 1, 1], [], []>} : vector<96x128xbf16>, vector<128x128xbf16>, vector<96x128xf32> -> vector<96x128xf32>
    %568 = arith.addf %563, %567 : vector<96x128xf32>
    %c200_470 = arith.constant 200 : index
    %c0_471 = arith.constant 0 : index
    %569 = vector.load %arg9[%c200_470, %c0_471] : memref<448x128xbf16, #tpu.memory_space<vmem>>, vector<96x128xbf16>
    %c1_472 = arith.constant 1 : index
    %c0_473 = arith.constant 0 : index
    %c0_474 = arith.constant 0 : index
    %570 = vector.load %arg6[%c1_472, %c0_473, %c0_474] : memref<9x128x128xbf16, #tpu.memory_space<vmem>>, vector<1x128x128xbf16>
    %571 = vector.shape_cast %570 : vector<1x128x128xbf16> to vector<128x128xbf16>
    %cst_475 = arith.constant dense<0.000000e+00> : vector<96x128xf32>
    %572 = tpu.matmul %569, %571, %cst_475 {dimension_numbers = #tpu.dot_dimension_numbers<[1], [0], [0], [1], [0, 0, 1, 1], [], []>} : vector<96x128xbf16>, vector<128x128xbf16>, vector<96x128xf32> -> vector<96x128xf32>
    %573 = arith.addf %568, %572 : vector<96x128xf32>
    %c201_476 = arith.constant 201 : index
    %c0_477 = arith.constant 0 : index
    %574 = vector.load %arg9[%c201_476, %c0_477] : memref<448x128xbf16, #tpu.memory_space<vmem>>, vector<96x128xbf16>
    %c2_478 = arith.constant 2 : index
    %c0_479 = arith.constant 0 : index
    %c0_480 = arith.constant 0 : index
    %575 = vector.load %arg6[%c2_478, %c0_479, %c0_480] : memref<9x128x128xbf16, #tpu.memory_space<vmem>>, vector<1x128x128xbf16>
    %576 = vector.shape_cast %575 : vector<1x128x128xbf16> to vector<128x128xbf16>
    %cst_481 = arith.constant dense<0.000000e+00> : vector<96x128xf32>
    %577 = tpu.matmul %574, %576, %cst_481 {dimension_numbers = #tpu.dot_dimension_numbers<[1], [0], [0], [1], [0, 0, 1, 1], [], []>} : vector<96x128xbf16>, vector<128x128xbf16>, vector<96x128xf32> -> vector<96x128xf32>
    %578 = arith.addf %573, %577 : vector<96x128xf32>
    %c223_482 = arith.constant 223 : index
    %c0_483 = arith.constant 0 : index
    %579 = vector.load %arg9[%c223_482, %c0_483] : memref<448x128xbf16, #tpu.memory_space<vmem>>, vector<96x128xbf16>
    %c3_484 = arith.constant 3 : index
    %c0_485 = arith.constant 0 : index
    %c0_486 = arith.constant 0 : index
    %580 = vector.load %arg6[%c3_484, %c0_485, %c0_486] : memref<9x128x128xbf16, #tpu.memory_space<vmem>>, vector<1x128x128xbf16>
    %581 = vector.shape_cast %580 : vector<1x128x128xbf16> to vector<128x128xbf16>
    %cst_487 = arith.constant dense<0.000000e+00> : vector<96x128xf32>
    %582 = tpu.matmul %579, %581, %cst_487 {dimension_numbers = #tpu.dot_dimension_numbers<[1], [0], [0], [1], [0, 0, 1, 1], [], []>} : vector<96x128xbf16>, vector<128x128xbf16>, vector<96x128xf32> -> vector<96x128xf32>
    %583 = arith.addf %578, %582 : vector<96x128xf32>
    %c224_488 = arith.constant 224 : index
    %c0_489 = arith.constant 0 : index
    %584 = vector.load %arg9[%c224_488, %c0_489] : memref<448x128xbf16, #tpu.memory_space<vmem>>, vector<96x128xbf16>
    %c4_490 = arith.constant 4 : index
    %c0_491 = arith.constant 0 : index
    %c0_492 = arith.constant 0 : index
    %585 = vector.load %arg6[%c4_490, %c0_491, %c0_492] : memref<9x128x128xbf16, #tpu.memory_space<vmem>>, vector<1x128x128xbf16>
    %586 = vector.shape_cast %585 : vector<1x128x128xbf16> to vector<128x128xbf16>
    %cst_493 = arith.constant dense<0.000000e+00> : vector<96x128xf32>
    %587 = tpu.matmul %584, %586, %cst_493 {dimension_numbers = #tpu.dot_dimension_numbers<[1], [0], [0], [1], [0, 0, 1, 1], [], []>} : vector<96x128xbf16>, vector<128x128xbf16>, vector<96x128xf32> -> vector<96x128xf32>
    %588 = arith.addf %583, %587 : vector<96x128xf32>
    %c225_494 = arith.constant 225 : index
    %c0_495 = arith.constant 0 : index
    %589 = vector.load %arg9[%c225_494, %c0_495] : memref<448x128xbf16, #tpu.memory_space<vmem>>, vector<96x128xbf16>
    %c5_496 = arith.constant 5 : index
    %c0_497 = arith.constant 0 : index
    %c0_498 = arith.constant 0 : index
    %590 = vector.load %arg6[%c5_496, %c0_497, %c0_498] : memref<9x128x128xbf16, #tpu.memory_space<vmem>>, vector<1x128x128xbf16>
    %591 = vector.shape_cast %590 : vector<1x128x128xbf16> to vector<128x128xbf16>
    %cst_499 = arith.constant dense<0.000000e+00> : vector<96x128xf32>
    %592 = tpu.matmul %589, %591, %cst_499 {dimension_numbers = #tpu.dot_dimension_numbers<[1], [0], [0], [1], [0, 0, 1, 1], [], []>} : vector<96x128xbf16>, vector<128x128xbf16>, vector<96x128xf32> -> vector<96x128xf32>
    %593 = arith.addf %588, %592 : vector<96x128xf32>
    %c247_500 = arith.constant 247 : index
    %c0_501 = arith.constant 0 : index
    %594 = vector.load %arg9[%c247_500, %c0_501] : memref<448x128xbf16, #tpu.memory_space<vmem>>, vector<96x128xbf16>
    %c6_502 = arith.constant 6 : index
    %c0_503 = arith.constant 0 : index
    %c0_504 = arith.constant 0 : index
    %595 = vector.load %arg6[%c6_502, %c0_503, %c0_504] : memref<9x128x128xbf16, #tpu.memory_space<vmem>>, vector<1x128x128xbf16>
    %596 = vector.shape_cast %595 : vector<1x128x128xbf16> to vector<128x128xbf16>
    %cst_505 = arith.constant dense<0.000000e+00> : vector<96x128xf32>
    %597 = tpu.matmul %594, %596, %cst_505 {dimension_numbers = #tpu.dot_dimension_numbers<[1], [0], [0], [1], [0, 0, 1, 1], [], []>} : vector<96x128xbf16>, vector<128x128xbf16>, vector<96x128xf32> -> vector<96x128xf32>
    %598 = arith.addf %593, %597 : vector<96x128xf32>
    %c248_506 = arith.constant 248 : index
    %c0_507 = arith.constant 0 : index
    %599 = vector.load %arg9[%c248_506, %c0_507] : memref<448x128xbf16, #tpu.memory_space<vmem>>, vector<96x128xbf16>
    %c7_508 = arith.constant 7 : index
    %c0_509 = arith.constant 0 : index
    %c0_510 = arith.constant 0 : index
    %600 = vector.load %arg6[%c7_508, %c0_509, %c0_510] : memref<9x128x128xbf16, #tpu.memory_space<vmem>>, vector<1x128x128xbf16>
    %601 = vector.shape_cast %600 : vector<1x128x128xbf16> to vector<128x128xbf16>
    %cst_511 = arith.constant dense<0.000000e+00> : vector<96x128xf32>
    %602 = tpu.matmul %599, %601, %cst_511 {dimension_numbers = #tpu.dot_dimension_numbers<[1], [0], [0], [1], [0, 0, 1, 1], [], []>} : vector<96x128xbf16>, vector<128x128xbf16>, vector<96x128xf32> -> vector<96x128xf32>
    %603 = arith.addf %598, %602 : vector<96x128xf32>
    %c249_512 = arith.constant 249 : index
    %c0_513 = arith.constant 0 : index
    %604 = vector.load %arg9[%c249_512, %c0_513] : memref<448x128xbf16, #tpu.memory_space<vmem>>, vector<96x128xbf16>
    %c8_514 = arith.constant 8 : index
    %c0_515 = arith.constant 0 : index
    %c0_516 = arith.constant 0 : index
    %605 = vector.load %arg6[%c8_514, %c0_515, %c0_516] : memref<9x128x128xbf16, #tpu.memory_space<vmem>>, vector<1x128x128xbf16>
    %606 = vector.shape_cast %605 : vector<1x128x128xbf16> to vector<128x128xbf16>
    %cst_517 = arith.constant dense<0.000000e+00> : vector<96x128xf32>
    %607 = tpu.matmul %604, %606, %cst_517 {dimension_numbers = #tpu.dot_dimension_numbers<[1], [0], [0], [1], [0, 0, 1, 1], [], []>} : vector<96x128xbf16>, vector<128x128xbf16>, vector<96x128xf32> -> vector<96x128xf32>
    %608 = arith.addf %603, %607 : vector<96x128xf32>
    %609 = vector.extract_strided_slice %608 {offsets = [0, 0], sizes = [16, 128], strides = [1, 1]} : vector<96x128xf32> to vector<16x128xf32>
    %c0_518 = arith.constant 0 : index
    %c128_519 = arith.constant 128 : index
    %c0_520 = arith.constant 0 : index
    %610 = vector.load %arg1[%c0_518, %c128_519, %c0_520] : memref<1x256x128xf32, #tpu.memory_space<vmem>>, vector<1x16x128xf32>
    %611 = vector.shape_cast %610 : vector<1x16x128xf32> to vector<16x128xf32>
    %612 = arith.addf %609, %611 : vector<16x128xf32>
    %c0_521 = arith.constant 0 : index
    %c128_522 = arith.constant 128 : index
    %c0_523 = arith.constant 0 : index
    %613 = vector.load %arg7[%c0_521, %c128_522, %c0_523] : memref<1x256x128xf32, #tpu.memory_space<vmem>>, vector<1x16x128xf32>
    %614 = vector.shape_cast %613 : vector<1x16x128xf32> to vector<16x128xf32>
    %615 = vector.shape_cast %612 : vector<16x128xf32> to vector<1x16x128xf32>
    tpu.vector_store %arg7[%c0_521, %c128_522, %c0_523], %615 {strides = array<i32>} : memref<1x256x128xf32, #tpu.memory_space<vmem>>, vector<1x16x128xf32>,
    %616 = vector.extract_strided_slice %608 {offsets = [24, 0], sizes = [16, 128], strides = [1, 1]} : vector<96x128xf32> to vector<16x128xf32>
    %c0_524 = arith.constant 0 : index
    %c144_525 = arith.constant 144 : index
    %c0_526 = arith.constant 0 : index
    %617 = vector.load %arg1[%c0_524, %c144_525, %c0_526] : memref<1x256x128xf32, #tpu.memory_space<vmem>>, vector<1x16x128xf32>
    %618 = vector.shape_cast %617 : vector<1x16x128xf32> to vector<16x128xf32>
    %619 = arith.addf %616, %618 : vector<16x128xf32>
    %c0_527 = arith.constant 0 : index
    %c144_528 = arith.constant 144 : index
    %c0_529 = arith.constant 0 : index
    %620 = vector.load %arg7[%c0_527, %c144_528, %c0_529] : memref<1x256x128xf32, #tpu.memory_space<vmem>>, vector<1x16x128xf32>
    %621 = vector.shape_cast %620 : vector<1x16x128xf32> to vector<16x128xf32>
    %622 = vector.shape_cast %619 : vector<16x128xf32> to vector<1x16x128xf32>
    tpu.vector_store %arg7[%c0_527, %c144_528, %c0_529], %622 {strides = array<i32>} : memref<1x256x128xf32, #tpu.memory_space<vmem>>, vector<1x16x128xf32>,
    %623 = vector.extract_strided_slice %608 {offsets = [48, 0], sizes = [16, 128], strides = [1, 1]} : vector<96x128xf32> to vector<16x128xf32>
    %c0_530 = arith.constant 0 : index
    %c160_531 = arith.constant 160 : index
    %c0_532 = arith.constant 0 : index
    %624 = vector.load %arg1[%c0_530, %c160_531, %c0_532] : memref<1x256x128xf32, #tpu.memory_space<vmem>>, vector<1x16x128xf32>
    %625 = vector.shape_cast %624 : vector<1x16x128xf32> to vector<16x128xf32>
    %626 = arith.addf %623, %625 : vector<16x128xf32>
    %c0_533 = arith.constant 0 : index
    %c160_534 = arith.constant 160 : index
    %c0_535 = arith.constant 0 : index
    %627 = vector.load %arg7[%c0_533, %c160_534, %c0_535] : memref<1x256x128xf32, #tpu.memory_space<vmem>>, vector<1x16x128xf32>
    %628 = vector.shape_cast %627 : vector<1x16x128xf32> to vector<16x128xf32>
    %629 = vector.shape_cast %626 : vector<16x128xf32> to vector<1x16x128xf32>
    tpu.vector_store %arg7[%c0_533, %c160_534, %c0_535], %629 {strides = array<i32>} : memref<1x256x128xf32, #tpu.memory_space<vmem>>, vector<1x16x128xf32>,
    %630 = vector.extract_strided_slice %608 {offsets = [72, 0], sizes = [16, 128], strides = [1, 1]} : vector<96x128xf32> to vector<16x128xf32>
    %c0_536 = arith.constant 0 : index
    %c176_537 = arith.constant 176 : index
    %c0_538 = arith.constant 0 : index
    %631 = vector.load %arg1[%c0_536, %c176_537, %c0_538] : memref<1x256x128xf32, #tpu.memory_space<vmem>>, vector<1x16x128xf32>
    %632 = vector.shape_cast %631 : vector<1x16x128xf32> to vector<16x128xf32>
    %633 = arith.addf %630, %632 : vector<16x128xf32>
    %c0_539 = arith.constant 0 : index
    %c176_540 = arith.constant 176 : index
    %c0_541 = arith.constant 0 : index
    %634 = vector.load %arg7[%c0_539, %c176_540, %c0_541] : memref<1x256x128xf32, #tpu.memory_space<vmem>>, vector<1x16x128xf32>
    %635 = vector.shape_cast %634 : vector<1x16x128xf32> to vector<16x128xf32>
    %636 = vector.shape_cast %633 : vector<16x128xf32> to vector<1x16x128xf32>
    tpu.vector_store %arg7[%c0_539, %c176_540, %c0_541], %636 {strides = array<i32>} : memref<1x256x128xf32, #tpu.memory_space<vmem>>, vector<1x16x128xf32>,
    %cst_542 = arith.constant 0.000000e+00 : f32
    %637 = vector.broadcast %cst_542 : f32 to vector<96x128xf32>
    %c295_543 = arith.constant 295 : index
    %c0_544 = arith.constant 0 : index
    %638 = vector.load %arg9[%c295_543, %c0_544] : memref<448x128xbf16, #tpu.memory_space<vmem>>, vector<96x128xbf16>
    %c0_545 = arith.constant 0 : index
    %c0_546 = arith.constant 0 : index
    %c0_547 = arith.constant 0 : index
    %639 = vector.load %arg6[%c0_545, %c0_546, %c0_547] : memref<9x128x128xbf16, #tpu.memory_space<vmem>>, vector<1x128x128xbf16>
    %640 = vector.shape_cast %639 : vector<1x128x128xbf16> to vector<128x128xbf16>
    %cst_548 = arith.constant dense<0.000000e+00> : vector<96x128xf32>
    %641 = tpu.matmul %638, %640, %cst_548 {dimension_numbers = #tpu.dot_dimension_numbers<[1], [0], [0], [1], [0, 0, 1, 1], [], []>} : vector<96x128xbf16>, vector<128x128xbf16>, vector<96x128xf32> -> vector<96x128xf32>
    %642 = arith.addf %637, %641 : vector<96x128xf32>
    %c296_549 = arith.constant 296 : index
    %c0_550 = arith.constant 0 : index
    %643 = vector.load %arg9[%c296_549, %c0_550] : memref<448x128xbf16, #tpu.memory_space<vmem>>, vector<96x128xbf16>
    %c1_551 = arith.constant 1 : index
    %c0_552 = arith.constant 0 : index
    %c0_553 = arith.constant 0 : index
    %644 = vector.load %arg6[%c1_551, %c0_552, %c0_553] : memref<9x128x128xbf16, #tpu.memory_space<vmem>>, vector<1x128x128xbf16>
    %645 = vector.shape_cast %644 : vector<1x128x128xbf16> to vector<128x128xbf16>
    %cst_554 = arith.constant dense<0.000000e+00> : vector<96x128xf32>
    %646 = tpu.matmul %643, %645, %cst_554 {dimension_numbers = #tpu.dot_dimension_numbers<[1], [0], [0], [1], [0, 0, 1, 1], [], []>} : vector<96x128xbf16>, vector<128x128xbf16>, vector<96x128xf32> -> vector<96x128xf32>
    %647 = arith.addf %642, %646 : vector<96x128xf32>
    %c297_555 = arith.constant 297 : index
    %c0_556 = arith.constant 0 : index
    %648 = vector.load %arg9[%c297_555, %c0_556] : memref<448x128xbf16, #tpu.memory_space<vmem>>, vector<96x128xbf16>
    %c2_557 = arith.constant 2 : index
    %c0_558 = arith.constant 0 : index
    %c0_559 = arith.constant 0 : index
    %649 = vector.load %arg6[%c2_557, %c0_558, %c0_559] : memref<9x128x128xbf16, #tpu.memory_space<vmem>>, vector<1x128x128xbf16>
    %650 = vector.shape_cast %649 : vector<1x128x128xbf16> to vector<128x128xbf16>
    %cst_560 = arith.constant dense<0.000000e+00> : vector<96x128xf32>
    %651 = tpu.matmul %648, %650, %cst_560 {dimension_numbers = #tpu.dot_dimension_numbers<[1], [0], [0], [1], [0, 0, 1, 1], [], []>} : vector<96x128xbf16>, vector<128x128xbf16>, vector<96x128xf32> -> vector<96x128xf32>
    %652 = arith.addf %647, %651 : vector<96x128xf32>
    %c319_561 = arith.constant 319 : index
    %c0_562 = arith.constant 0 : index
    %653 = vector.load %arg9[%c319_561, %c0_562] : memref<448x128xbf16, #tpu.memory_space<vmem>>, vector<96x128xbf16>
    %c3_563 = arith.constant 3 : index
    %c0_564 = arith.constant 0 : index
    %c0_565 = arith.constant 0 : index
    %654 = vector.load %arg6[%c3_563, %c0_564, %c0_565] : memref<9x128x128xbf16, #tpu.memory_space<vmem>>, vector<1x128x128xbf16>
    %655 = vector.shape_cast %654 : vector<1x128x128xbf16> to vector<128x128xbf16>
    %cst_566 = arith.constant dense<0.000000e+00> : vector<96x128xf32>
    %656 = tpu.matmul %653, %655, %cst_566 {dimension_numbers = #tpu.dot_dimension_numbers<[1], [0], [0], [1], [0, 0, 1, 1], [], []>} : vector<96x128xbf16>, vector<128x128xbf16>, vector<96x128xf32> -> vector<96x128xf32>
    %657 = arith.addf %652, %656 : vector<96x128xf32>
    %c320_567 = arith.constant 320 : index
    %c0_568 = arith.constant 0 : index
    %658 = vector.load %arg9[%c320_567, %c0_568] : memref<448x128xbf16, #tpu.memory_space<vmem>>, vector<96x128xbf16>
    %c4_569 = arith.constant 4 : index
    %c0_570 = arith.constant 0 : index
    %c0_571 = arith.constant 0 : index
    %659 = vector.load %arg6[%c4_569, %c0_570, %c0_571] : memref<9x128x128xbf16, #tpu.memory_space<vmem>>, vector<1x128x128xbf16>
    %660 = vector.shape_cast %659 : vector<1x128x128xbf16> to vector<128x128xbf16>
    %cst_572 = arith.constant dense<0.000000e+00> : vector<96x128xf32>
    %661 = tpu.matmul %658, %660, %cst_572 {dimension_numbers = #tpu.dot_dimension_numbers<[1], [0], [0], [1], [0, 0, 1, 1], [], []>} : vector<96x128xbf16>, vector<128x128xbf16>, vector<96x128xf32> -> vector<96x128xf32>
    %662 = arith.addf %657, %661 : vector<96x128xf32>
    %c321_573 = arith.constant 321 : index
    %c0_574 = arith.constant 0 : index
    %663 = vector.load %arg9[%c321_573, %c0_574] : memref<448x128xbf16, #tpu.memory_space<vmem>>, vector<96x128xbf16>
    %c5_575 = arith.constant 5 : index
    %c0_576 = arith.constant 0 : index
    %c0_577 = arith.constant 0 : index
    %664 = vector.load %arg6[%c5_575, %c0_576, %c0_577] : memref<9x128x128xbf16, #tpu.memory_space<vmem>>, vector<1x128x128xbf16>
    %665 = vector.shape_cast %664 : vector<1x128x128xbf16> to vector<128x128xbf16>
    %cst_578 = arith.constant dense<0.000000e+00> : vector<96x128xf32>
    %666 = tpu.matmul %663, %665, %cst_578 {dimension_numbers = #tpu.dot_dimension_numbers<[1], [0], [0], [1], [0, 0, 1, 1], [], []>} : vector<96x128xbf16>, vector<128x128xbf16>, vector<96x128xf32> -> vector<96x128xf32>
    %667 = arith.addf %662, %666 : vector<96x128xf32>
    %c343_579 = arith.constant 343 : index
    %c0_580 = arith.constant 0 : index
    %668 = vector.load %arg9[%c343_579, %c0_580] : memref<448x128xbf16, #tpu.memory_space<vmem>>, vector<96x128xbf16>
    %c6_581 = arith.constant 6 : index
    %c0_582 = arith.constant 0 : index
    %c0_583 = arith.constant 0 : index
    %669 = vector.load %arg6[%c6_581, %c0_582, %c0_583] : memref<9x128x128xbf16, #tpu.memory_space<vmem>>, vector<1x128x128xbf16>
    %670 = vector.shape_cast %669 : vector<1x128x128xbf16> to vector<128x128xbf16>
    %cst_584 = arith.constant dense<0.000000e+00> : vector<96x128xf32>
    %671 = tpu.matmul %668, %670, %cst_584 {dimension_numbers = #tpu.dot_dimension_numbers<[1], [0], [0], [1], [0, 0, 1, 1], [], []>} : vector<96x128xbf16>, vector<128x128xbf16>, vector<96x128xf32> -> vector<96x128xf32>
    %672 = arith.addf %667, %671 : vector<96x128xf32>
    %c344_585 = arith.constant 344 : index
    %c0_586 = arith.constant 0 : index
    %673 = vector.load %arg9[%c344_585, %c0_586] : memref<448x128xbf16, #tpu.memory_space<vmem>>, vector<96x128xbf16>
    %c7_587 = arith.constant 7 : index
    %c0_588 = arith.constant 0 : index
    %c0_589 = arith.constant 0 : index
    %674 = vector.load %arg6[%c7_587, %c0_588, %c0_589] : memref<9x128x128xbf16, #tpu.memory_space<vmem>>, vector<1x128x128xbf16>
    %675 = vector.shape_cast %674 : vector<1x128x128xbf16> to vector<128x128xbf16>
    %cst_590 = arith.constant dense<0.000000e+00> : vector<96x128xf32>
    %676 = tpu.matmul %673, %675, %cst_590 {dimension_numbers = #tpu.dot_dimension_numbers<[1], [0], [0], [1], [0, 0, 1, 1], [], []>} : vector<96x128xbf16>, vector<128x128xbf16>, vector<96x128xf32> -> vector<96x128xf32>
    %677 = arith.addf %672, %676 : vector<96x128xf32>
    %c345_591 = arith.constant 345 : index
    %c0_592 = arith.constant 0 : index
    %678 = vector.load %arg9[%c345_591, %c0_592] : memref<448x128xbf16, #tpu.memory_space<vmem>>, vector<96x128xbf16>
    %c8_593 = arith.constant 8 : index
    %c0_594 = arith.constant 0 : index
    %c0_595 = arith.constant 0 : index
    %679 = vector.load %arg6[%c8_593, %c0_594, %c0_595] : memref<9x128x128xbf16, #tpu.memory_space<vmem>>, vector<1x128x128xbf16>
    %680 = vector.shape_cast %679 : vector<1x128x128xbf16> to vector<128x128xbf16>
    %cst_596 = arith.constant dense<0.000000e+00> : vector<96x128xf32>
    %681 = tpu.matmul %678, %680, %cst_596 {dimension_numbers = #tpu.dot_dimension_numbers<[1], [0], [0], [1], [0, 0, 1, 1], [], []>} : vector<96x128xbf16>, vector<128x128xbf16>, vector<96x128xf32> -> vector<96x128xf32>
    %682 = arith.addf %677, %681 : vector<96x128xf32>
    %683 = vector.extract_strided_slice %682 {offsets = [0, 0], sizes = [16, 128], strides = [1, 1]} : vector<96x128xf32> to vector<16x128xf32>
    %c0_597 = arith.constant 0 : index
    %c192_598 = arith.constant 192 : index
    %c0_599 = arith.constant 0 : index
    %684 = vector.load %arg1[%c0_597, %c192_598, %c0_599] : memref<1x256x128xf32, #tpu.memory_space<vmem>>, vector<1x16x128xf32>
    %685 = vector.shape_cast %684 : vector<1x16x128xf32> to vector<16x128xf32>
    %686 = arith.addf %683, %685 : vector<16x128xf32>
    %c0_600 = arith.constant 0 : index
    %c192_601 = arith.constant 192 : index
    %c0_602 = arith.constant 0 : index
    %687 = vector.load %arg7[%c0_600, %c192_601, %c0_602] : memref<1x256x128xf32, #tpu.memory_space<vmem>>, vector<1x16x128xf32>
    %688 = vector.shape_cast %687 : vector<1x16x128xf32> to vector<16x128xf32>
    %689 = vector.shape_cast %686 : vector<16x128xf32> to vector<1x16x128xf32>
    tpu.vector_store %arg7[%c0_600, %c192_601, %c0_602], %689 {strides = array<i32>} : memref<1x256x128xf32, #tpu.memory_space<vmem>>, vector<1x16x128xf32>,
    %690 = vector.extract_strided_slice %682 {offsets = [24, 0], sizes = [16, 128], strides = [1, 1]} : vector<96x128xf32> to vector<16x128xf32>
    %c0_603 = arith.constant 0 : index
    %c208_604 = arith.constant 208 : index
    %c0_605 = arith.constant 0 : index
    %691 = vector.load %arg1[%c0_603, %c208_604, %c0_605] : memref<1x256x128xf32, #tpu.memory_space<vmem>>, vector<1x16x128xf32>
    %692 = vector.shape_cast %691 : vector<1x16x128xf32> to vector<16x128xf32>
    %693 = arith.addf %690, %692 : vector<16x128xf32>
    %c0_606 = arith.constant 0 : index
    %c208_607 = arith.constant 208 : index
    %c0_608 = arith.constant 0 : index
    %694 = vector.load %arg7[%c0_606, %c208_607, %c0_608] : memref<1x256x128xf32, #tpu.memory_space<vmem>>, vector<1x16x128xf32>
    %695 = vector.shape_cast %694 : vector<1x16x128xf32> to vector<16x128xf32>
    %696 = vector.shape_cast %693 : vector<16x128xf32> to vector<1x16x128xf32>
    tpu.vector_store %arg7[%c0_606, %c208_607, %c0_608], %696 {strides = array<i32>} : memref<1x256x128xf32, #tpu.memory_space<vmem>>, vector<1x16x128xf32>,
    %697 = vector.extract_strided_slice %682 {offsets = [48, 0], sizes = [16, 128], strides = [1, 1]} : vector<96x128xf32> to vector<16x128xf32>
    %c0_609 = arith.constant 0 : index
    %c224_610 = arith.constant 224 : index
    %c0_611 = arith.constant 0 : index
    %698 = vector.load %arg1[%c0_609, %c224_610, %c0_611] : memref<1x256x128xf32, #tpu.memory_space<vmem>>, vector<1x16x128xf32>
    %699 = vector.shape_cast %698 : vector<1x16x128xf32> to vector<16x128xf32>
    %700 = arith.addf %697, %699 : vector<16x128xf32>
    %c0_612 = arith.constant 0 : index
    %c224_613 = arith.constant 224 : index
    %c0_614 = arith.constant 0 : index
    %701 = vector.load %arg7[%c0_612, %c224_613, %c0_614] : memref<1x256x128xf32, #tpu.memory_space<vmem>>, vector<1x16x128xf32>
    %702 = vector.shape_cast %701 : vector<1x16x128xf32> to vector<16x128xf32>
    %703 = vector.shape_cast %700 : vector<16x128xf32> to vector<1x16x128xf32>
    tpu.vector_store %arg7[%c0_612, %c224_613, %c0_614], %703 {strides = array<i32>} : memref<1x256x128xf32, #tpu.memory_space<vmem>>, vector<1x16x128xf32>,
    %704 = vector.extract_strided_slice %682 {offsets = [72, 0], sizes = [16, 128], strides = [1, 1]} : vector<96x128xf32> to vector<16x128xf32>
    %c0_615 = arith.constant 0 : index
    %c240_616 = arith.constant 240 : index
    %c0_617 = arith.constant 0 : index
    %705 = vector.load %arg1[%c0_615, %c240_616, %c0_617] : memref<1x256x128xf32, #tpu.memory_space<vmem>>, vector<1x16x128xf32>
    %706 = vector.shape_cast %705 : vector<1x16x128xf32> to vector<16x128xf32>
    %707 = arith.addf %704, %706 : vector<16x128xf32>
    %c0_618 = arith.constant 0 : index
    %c240_619 = arith.constant 240 : index
    %c0_620 = arith.constant 0 : index
    %708 = vector.load %arg7[%c0_618, %c240_619, %c0_620] : memref<1x256x128xf32, #tpu.memory_space<vmem>>, vector<1x16x128xf32>
    %709 = vector.shape_cast %708 : vector<1x16x128xf32> to vector<16x128xf32>
    %710 = vector.shape_cast %707 : vector<16x128xf32> to vector<1x16x128xf32>
    tpu.vector_store %arg7[%c0_618, %c240_619, %c0_620], %710 {strides = array<i32>} : memref<1x256x128xf32, #tpu.memory_space<vmem>>, vector<1x16x128xf32>,
    return
  }
  func.func @transform_0(%arg0: i32) -> (i32, i32, i32) {
    %c0_i32 = arith.constant 0 : i32
    %c0_i32_0 = arith.constant 0 : i32
    %c0_i32_1 = arith.constant 0 : i32
    return %arg0, %c0_i32, %c0_i32_0 : i32, i32, i32
  }
  func.func @transform_1(%arg0: i32) -> (i32, i32) {
    %c0_i32 = arith.constant 0 : i32
    %c0_i32_0 = arith.constant 0 : i32
    %c0_i32_1 = arith.constant 0 : i32
    return %c0_i32, %c0_i32_0 : i32, i32
  }
  func.func @transform_2(%arg0: i32) -> (i32, i32) {
    %c0_i32 = arith.constant 0 : i32
    %c0_i32_0 = arith.constant 0 : i32
    %c0_i32_1 = arith.constant 0 : i32
    return %c0_i32, %c0_i32_0 : i32, i32
  }
  func.func @transform_3(%arg0: i32) -> (i32, i32, i32) {
    %c0_i32 = arith.constant 0 : i32
    %c0_i32_0 = arith.constant 0 : i32
    %c0_i32_1 = arith.constant 0 : i32
    %c0_i32_2 = arith.constant 0 : i32
    return %c0_i32, %c0_i32_0, %c0_i32_1 : i32, i32, i32
  }
  func.func @transform_4(%arg0: i32) -> (i32, i32) {
    %c0_i32 = arith.constant 0 : i32
    %c0_i32_0 = arith.constant 0 : i32
    %c0_i32_1 = arith.constant 0 : i32
    return %c0_i32, %c0_i32_0 : i32, i32
  }
  func.func @transform_5(%arg0: i32) -> (i32, i32, i32) {
    %c0_i32 = arith.constant 0 : i32
    %c0_i32_0 = arith.constant 0 : i32
    %c0_i32_1 = arith.constant 0 : i32
    %c0_i32_2 = arith.constant 0 : i32
    return %c0_i32, %c0_i32_0, %c0_i32_1 : i32, i32, i32
  }
  func.func @transform_6(%arg0: i32) -> (i32, i32, i32) {
    %c0_i32 = arith.constant 0 : i32
    %c0_i32_0 = arith.constant 0 : i32
    %c0_i32_1 = arith.constant 0 : i32
    return %arg0, %c0_i32, %c0_i32_0 : i32, i32, i32
  }
}

</mosaic_0001>

<bundles_post_ra>
// kernel: tpu_custom_call.1
= control target key start
LH: loop header
LB: loop body
LE: loop exit
PB: predicated region body
PF: predicated region fallthrough
CT: control target
= control target key end

     0   :  { %11 = vsyncpa [#allocation5], 0  ;;  %s22777_s0 = inlined_call_operand.hbm [shape: f32[2,256,128], index: 0, kind: input, shape index: {}]   ;;  %s22778_s1 = inlined_call_operand.vmem [shape: f32[1,128], index: 1, kind: input, shape index: {}]   ;;  %s22779_s2 = inlined_call_operand.vmem [shape: f32[1,128], index: 2, kind: input, shape index: {}]   ;;  %s22780_s3 = inlined_call_operand.hbm [shape: bf16[9,128,128], index: 3, kind: input, shape index: {}]   ;;  %s22781_s4 = inlined_call_operand.vmem [shape: f32[1,128], index: 4, kind: input, shape index: {}]   ;;  %s22782_s5 = inlined_call_operand.hbm [shape: bf16[9,128,128], index: 5, kind: input, shape index: {}]   ;;  %s22783_s6 = inlined_call_operand.hbm [shape: f32[2,256,128], index: 6, kind: output, shape index: {}]  }
   0x1   :  { %13 = vsyncpa [#allocation5 + $0x1], 0 }
   0x2   :  { %14 = vsyncpa [#allocation8], 0 }
   0x3   :  { %15 = vsyncpa [#allocation6], 0 }
   0x4   :  { %17 = vsyncpa [#allocation6 + $0x1], 0  ;;  %s19410_s21 = smov 0   ;;  %s19412_s22 = smov 0  }
   0x5   :  { %s19414_s23 = smov 0   ;;  %s19416_s24 = smov 0  }
   0x6 LB: > { %s19431_s25 = sadd.s32 4294967295, %s19362_s24   ;;  %s14896_s26 = sadd.s32 4294967294, %s19362_s24   ;;  %s19362_s24 = sphi %s19416_s24, %s22816_s24   ;;  %s19358_s23 = sphi %s19414_s23, %s22815_s23   ;;  %s19354_s22 = sphi %s19412_s22, %s22814_s22   ;;  %s19350_s21 = sphi %s19410_s21, %s22813_s21  }
   0x7   : > { %p43_p0 = scmp.ne.s32.totalorder %s19354_s22, %s19350_s21  ;;  %p22784_p1 = scmp.eq.s32.totalorder %s19431_s25, 0 }
   0x8   : > { %p178_p3 = scmp.eq.s32.totalorder %s14896_s26, 1  ;;  %p14897_p5 = scmp.ge.s32.totalorder %s19362_s24, 1 }
   0x9   : > { %p19440_p4 = por %p22784_p1, %p43_p0  ;;  %p185_p7 = scmp.lt.s32.totalorder %s19362_s24, 3 }
   0xa   : > { %p19445_p6 = por %p178_p3, %p43_p0  ;;  %s19364_s30 = smov [#allocation7]  }
   0xb   : > { %s22791_s27 = scalar_select %p19440_p4, 1, 0 }
   0xc   : > { %s22792_s28 = scalar_select %p19445_p6, 1, 0 }
   0xd   : > { %p19450_p8 = pnand %p14897_p5, %p185_p7  ;;  %s203_s7 = sshll.u32 %s19364_s30, 4  ;;  %s19454_s7 = int_to_ptr.vmem [resolvable:$true] %s203_s7 }
   0xe   : > { %s19365_s9 = smov [#allocation9]   ;;  %s19206_s13 = scalar_lea.hbm %s22780_s3, 9216 }
   0xf   : > { %p18531_p9 = pneg %p19450_p8  ;;  %s219_s10 = sshll.u32 %s19365_s9, 4  ;;  %s19465_s10 = int_to_ptr.vmem [resolvable:$true] %s219_s10 }
  0x10   : > { %p19207_p12 = scmp.ne.s32.totalorder %s22780_s3, %s19206_s13  ;;  %p19213_p5 = scmp.lt.u32.totalorder %s19206_s13, %s22780_s3 }
  0x11   : > { %p19461_p11 = pnand %p18531_p9, %p22784_p1 }
  0x13   : > { %p19208_p13 = pneg %p19461_p11 }
  0x15   : > { %p19209_p0 = pnand %p19208_p13, %p19207_p12 }
  0x17   : > { %p19210_p3 = pneg %p19209_p0 }
  0x19   : > { %p19215_p7 = pnand %p19213_p5, %p19210_p3 }
  0x1b   : > { %19218 = shalt.err (!%p19215_p7)
}
  0x1c   : > { %s19219_s18 = scalar_lea.vmem %s19454_s7, 9216  ;;  %p19227_p2 = scmp.lt.s32.totalorder %s19454_s7, %s19454_s7 }
  0x1d   : > { %p19220_p9 = scmp.ne.s32.totalorder %s19454_s7, %s19219_s18  ;;  %p19228_p12 = scmp.lt.s32.totalorder %s19219_s18, %s19219_s18 }
  0x1f   : > { %p19222_p10 = pnand %p19220_p9, %p19208_p13  ;;  %p19229_p0 = por %p19228_p12, %p19227_p2 }
  0x21   : > { %p19223_p1 = pneg %p19222_p10 }
  0x23   : > { %p19230_p6 = pnand %p19229_p0, %p19223_p1 }
  0x25   : > { %19233 = shalt.err (!%p19230_p6)
}
  0x26   : > { %s19366_s19 = smov 64   ;;  %s19367_s20 = smov 4  }
  0x27   : > { %18534 = dma.hbm_to_vmem [thread:$0]  (!%p19461_p11), %s22780_s3, 9216, %s19454_s7, [#allocation8], %s19366_s19, %s19366_s19, %s19367_s20  }
  0x28   : > { %s19234_s12 = scalar_lea.hbm %s22782_s5, 9216 }
  0x29   : > { %p19235_p2 = scmp.ne.s32.totalorder %s22782_s5, %s19234_s12  ;;  %p19241_p10 = scmp.lt.u32.totalorder %s19234_s12, %s22782_s5 }
  0x2b   : > { %p19237_p1 = pnand %p19235_p2, %p19208_p13 }
  0x2d   : > { %p19238_p6 = pneg %p19237_p1 }
  0x2f   : > { %p19243_p3 = pnand %p19241_p10, %p19238_p6 }
  0x31   : > { %19246 = shalt.err (!%p19243_p3)
}
  0x32   : > { %s19247_s7 = scalar_lea.vmem %s19465_s10, 9216  ;;  %p19255_p12 = scmp.lt.s32.totalorder %s19465_s10, %s19465_s10 }
  0x33   : > { %p19248_p5 = scmp.ne.s32.totalorder %s19465_s10, %s19247_s7  ;;  %p19256_p0 = scmp.lt.s32.totalorder %s19247_s7, %s19247_s7 }
  0x35   : > { %p19250_p7 = pnand %p19248_p5, %p19208_p13  ;;  %p19257_p2 = por %p19256_p0, %p19255_p12 }
  0x37   : > { %p19251_p9 = pneg %p19250_p7 }
  0x39   : > { %p19258_p1 = pnand %p19257_p2, %p19251_p9 }
  0x3b   : > { %19261 = shalt.err (!%p19258_p1)
}
  0x3c   : > { %18537 = dma.hbm_to_vmem [thread:$0]  (!%p19461_p11), %s22782_s5, 9216, %s19465_s10, [#allocation8], %s19366_s19, %s19366_s19, %s19367_s20  }
  0x3d   : > { %s19520_s26 = sadd.s32 1, %s19362_s24   ;;  %s30_s8 = sadd.s32 1, %s19358_s23 }
  0x3e   : > { %s27_s30 = ssub.s32 %s19362_s24, %s19520_s26  ;;  %p37_p13 = scmp.ne.s32.totalorder %s19358_s23, %s19354_s22 }
  0x3f   : > { %p28_p6 = scmp.eq.s32.totalorder %s27_s30, 0  ;;  %p38_p10 = scmp.eq.s32.totalorder %s19362_s24, 0 }
  0x40   : > { %p22795_p3 = scmp.eq.s32.totalorder %s19431_s25, 1  ;;  %p18548_p7 = scmp.lt.s32.totalorder %s19362_s24, 2 }
  0x41   : > { %s19536_s11 = scalar_select %p28_p6, %s19358_s23, %s30_s8  }
  0x42   : > { %p19530_p5 = por %p22795_p3, %p37_p13  ;;  %p39_p9 = por %p38_p10, %p37_p13 }
  0x43   : > { %s233_s12 = sand.u32 1, %s19358_s23   ;;  %s15493_s10 = sshll.u32 %s19362_s24, 12 }
  0x44   : > { %s22796_s9 = scalar_select %p19530_p5, 1, 0 }
  0x45   : > { %s14901_s13 = sshll.u32 %s233_s12, 8  ;;  %s19543_s14 = scalar_lea.hbm %s22777_s0, %s15493_s10 }
  0x46   : > { %s237_s15 = scalar_lea.vmem [#allocation4], %s14901_s13  ;;  %p19547_p11 = pnand %p18548_p7, %p39_p9 }
  0x47   : > { %s244_s16 = sshll.u32 %s237_s15, 4  ;;  %s19551_s17 = scalar_lea.sflag [#allocation5], %s233_s12  ;;  %s19545_s16 = int_to_ptr.vmem [resolvable:$true] %s244_s16 }
  0x48   : > { %s19262_s18 = scalar_lea.hbm %s19543_s14, 4096  ;;  %p19264_p0 = pneg %p19547_p11 }
  0x49   : > { %p19263_p12 = scmp.ne.s32.totalorder %s19543_s14, %s19262_s18  ;;  %s19267_s13 = scalar_lea.hbm %s22777_s0, 8192 }
  0x4a   : > { %p19268_p13 = scmp.lt.u32.totalorder %s19543_s14, %s22777_s0  ;;  %p19269_p6 = scmp.lt.u32.totalorder %s19267_s13, %s19262_s18 }
  0x4b   : > { %p19265_p2 = pnand %p19264_p0, %p19263_p12  ;;  %p19271_p3 = scmp.lt.u32.totalorder %s19262_s18, %s19543_s14 }
  0x4c   : > { %p19270_p10 = por %p19269_p6, %p19268_p13 }
  0x4d   : > { %p19266_p1 = pneg %p19265_p2 }
  0x4e   : > { %p19272_p7 = por %p19271_p3, %p19270_p10 }
  0x50   : > { %p19273_p9 = pnand %p19272_p7, %p19266_p1 }
  0x52   : > { %19276 = shalt.err (!%p19273_p9)
}
  0x53   : > { %s19277_s12 = scalar_lea.vmem %s19545_s16, 4096  ;;  %s19368_s20 = smov [#allocation4]  }
  0x54   : > { %p19278_p12 = scmp.ne.s32.totalorder %s19545_s16, %s19277_s12  ;;  %s19282_s15 = sshll.u32 %s19368_s20, 4  ;;  %s19283_s15 = int_to_ptr.vmem [resolvable:$false] %s19282_s15 }
  0x55   : > { %s19284_s8 = scalar_lea.vmem %s19283_s15, 8192  ;;  %p19285_p4 = scmp.lt.s32.totalorder %s19545_s16, %s19283_s15 }
  0x56   : > { %p19280_p2 = pnand %p19278_p12, %p19264_p0  ;;  %p19286_p13 = scmp.lt.s32.totalorder %s19284_s8, %s19277_s12 }
  0x58   : > { %p19281_p5 = pneg %p19280_p2  ;;  %p19287_p6 = por %p19286_p13, %p19285_p4 }
  0x5a   : > { %p19288_p10 = pnand %p19287_p6, %p19281_p5 }
  0x5c   : > { %19291 = shalt.err (!%p19288_p10)
}
  0x5d   : > { %s19369_s18 = smov 128   ;;  %s19370_s30 = smov 8  }
  0x5e   : > { %18541 = dma.hbm_to_vmem [thread:$0]  (!%p19547_p11), %s19543_s14, 4096, %s19545_s16, %s19551_s17, %s19369_s18, %s19369_s18, %s19370_s30  }
  0x5f   : > { %256 = sbr.rel (%p19450_p8) target bundleno = 1514 (0x5ea), region = 44 }
  0x66   : > { %s19582_s13 = sand.u32 1, %s19354_s22   ;;  %p22798_p4 = scmp.ne.s32.totalorder %s22791_s27, 0 }
  0x67   : > { %s14905_s10 = sshll.u32 %s19582_s13, 8  ;;  %s259_s19 = scalar_lea.sflag [#allocation5], %s19582_s13 }
  0x68   : > { %s19588_s12 = scalar_lea.vmem [#allocation4], %s14905_s10 }
  0x69   : > { %19337 = dma.done.wait (%p22798_p4), %s259_s19, 4096  }
  0x6a   : > { %19339 = vsyncadd (%p22798_p4), %s259_s19, 4294963200  ;;  %p22799_p5 = scmp.eq.s32.totalorder %s19431_s25, 0 }
  0x6c   : > { %19341 = dma.done.wait (%p22799_p5), [#allocation8], 18432   ;;  %p22800_p8 = pmov %p22799_p5 }
  0x6d   : > { %v19371_v0 = vmov 0   ;;  %v18593_v1 = vld [vmem:[#allocation7 + $0x40] sm:$0xff]   ;;  %v18595_v3 = vld [vmem:[#allocation7 + $0x48] sm:$0xff]   ;;  %v18597_v5 = vld [vmem:[#allocation7 + $0x50] sm:$0xff]   ;;  %vm611_vm0 = vcmask 1043456   ;;  %s22201_s27 = scalar_lea.vmem [#allocation10], %s14905_s10 }
  0x6e   : > { %19343 = vsyncadd (%p22800_p8), [#allocation8], 4294948864  ;;  %300 = vst [vmem:[#allocation2] sm:$0xff] %v19371_v0  ;;  %v18594_v2 = vld [vmem:[#allocation7] sm:$0xff]   ;;  %16503 = vmatprep.subr.bf16.mxu0 %v18593_v1  ;;  %v18596_v4 = vld [vmem:[#allocation7 + $0x8] sm:$0xff]   ;;  %v768_v11 = vrot.slane %v19371_v0, 3 }
  0x6f   : > { %301 = vst [vmem:[#allocation2 + $0x8] sm:$0xff] %v19371_v0  ;;  %303 = vst [vmem:[#allocation2 + $0x18] sm:$0xff] %v19371_v0  ;;  %16531 = vmatprep.subr.bf16.mxu1 %v18594_v2  ;;  %16504 = vmatpush3.bf16.msra.mxu0 %v18593_v1  ;;  %v18598_v6 = vld [vmem:[#allocation7 + $0x10] sm:$0xff]   ;;  %v18599_v7 = vld [vmem:[#allocation7 + $0x58] sm:$0xff]   ;;  %vm756_vm1 = vsmask.f32 4352 }
  0x70   : > { %304 = vst [vmem:[#allocation2 + $0x20] sm:$0xff] %v19371_v0  ;;  %306 = vst [vmem:[#allocation2 + $0x30] sm:$0xff] %v19371_v0  ;;  %16532 = vmatpush3.bf16.msra.mxu1 %v18594_v2  ;;  %16505 = vmatprep.subr.bf16.mxu0 %v18595_v3  ;;  %v18600_v8 = vld [vmem:[#allocation7 + $0x18] sm:$0xff]   ;;  %v18601_v9 = vld [vmem:[#allocation7 + $0x60] sm:$0xff]   ;;  %v19640_v13 = vrot.slane %v19371_v0, 4  ;;  %s15494_s10 = sshll.u32 %s19431_s25, 12 }
  0x71   : > { %307 = vst [vmem:[#allocation2 + $0x38] sm:$0xff] %v19371_v0  ;;  %309 = vst [vmem:[#allocation2 + $0x48] sm:$0xff] %v19371_v0  ;;  %16533 = vmatprep.subr.bf16.mxu1 %v18596_v4  ;;  %v18602_v10 = vld [vmem:[#allocation7 + $0x20] sm:$0xff]   ;;  %v18603_v12 = vld [vmem:[#allocation7 + $0x68] sm:$0xff]   ;;  %vm968_vm2 = vsmask.f32 3328  ;;  %s22730_s7 = scalar_lea.hbm %s22783_s6, %s15494_s10 }
  0x72   : > { %310 = vst [vmem:[#allocation2 + $0x50] sm:$0xff] %v19371_v0  ;;  %312 = vst [vmem:[#allocation2 + $0x60] sm:$0xff] %v19371_v0  ;;  %v18604_v14 = vld [vmem:[#allocation7 + $0x28] sm:$0xff]   ;;  %v19647_v17 = vld [vmem:[%s22778_s1] ss:$0 sm:$0xff]  ;;  %v772_v23 = vor.u32 %v19640_v13, %v768_v11  ;;  %s14804_s29 = sshll.u32 %s22201_s27, 4  ;;  %s22732_s29 = int_to_ptr.vmem [resolvable:$true] %s14804_s29 }
  0x73   : > { %313 = vst [vmem:[#allocation2 + $0x68] sm:$0xff] %v19371_v0  ;;  %315 = vst [vmem:[#allocation2 + $0x78] sm:$0xff] %v19371_v0  ;;  %16506 = vmatpush3.bf16.msra.mxu0 %v18595_v3  ;;  %v19653_v21 = vld [vmem:[%s22779_s2] ss:$0 sm:$0xff]  ;;  %v359_v24 = vld [vmem:[%s19588_s12 + $0x8] sm:$0xff]  ;;  %s14791_s17 = scalar_lea.sflag [#allocation6], %s19582_s13 }
  0x74   : > { %316 = vst [vmem:[#allocation2 + $0x80] sm:$0xff] %v19371_v0  ;;  %318 = vst [vmem:[#allocation2 + $0x90] sm:$0xff] %v19371_v0  ;;  %16534 = vmatpush3.bf16.msra.mxu1 %v18596_v4  ;;  %16507 = vmatprep.subr.bf16.mxu0 %v18597_v5  ;;  %v358_v22 = vld [vmem:[%s19588_s12] sm:$0xff]  ;;  %v18605_v26 = vld [vmem:[#allocation7 + $0x70] sm:$0xff]   ;;  %v367_v30 = vmul.f32 %v19647_v17, %v359_v24  ;;  %vm1169_vm3 = vsmask.f32 256 }
  0x75   : > { %319 = vst [vmem:[#allocation2 + $0x98] sm:$0xff] %v19371_v0  ;;  %321 = vst [vmem:[#allocation2 + $0xa8] sm:$0xff] %v19371_v0  ;;  %16535 = vmatprep.subr.bf16.mxu1 %v18598_v6  ;;  %v19642_v15 = vld [vmem:[#allocation2] sm:$0xf0]  ;;  %v366_v25 = vmul.f32 %v19647_v17, %v358_v22  ;;  %v18606_v32 = vld [vmem:[#allocation7 + $0x30] sm:$0xff]   ;;  %s19292_s25 = scalar_lea.vmem %s22732_s29, 4096 }
  0x76   : > { %322 = vst [vmem:[#allocation2 + $0xb0] sm:$0xff] %v19371_v0  ;;  %324 = vst [vmem:[#allocation2 + $0xc0] sm:$0xff] %v19371_v0  ;;  %v563_v16 = vld [vmem:[#allocation2] sm:$0xf8]  ;;  %v612_v18 = vrot.slane %v19642_v15, 4  ;;  %v375_v34 = vadd.f32 %v19653_v21, %v367_v30  ;;  %v18607_v38 = vld [vmem:[#allocation7 + $0x78] sm:$0xff]   ;;  %p19293_p11 = scmp.ne.s32.totalorder %s22732_s29, %s19292_s25 }
  0x77   : > { %325 = vst [vmem:[#allocation2 + $0xc8] sm:$0xff] %v19371_v0  ;;  %326 = vst [vmem:[#allocation2 + $0xd0] sm:$0xff] %v19371_v0  ;;  %16508 = vmatpush3.bf16.msra.mxu0 %v18597_v5  ;;  %v758_v19 = vshrl.u32 %v563_v16, 16  ;;  %v761_v20 = vshll.u32 %v563_v16, 16  ;;  %v374_v31 = vadd.f32 %v19653_v21, %v366_v25  ;;  %v18608_v39 = vld [vmem:[#allocation7 + $0x38] sm:$0xff]   ;;  %v380_v41 = vld [vmem:[%s19588_s12 + $0x10] sm:$0xff] }
  0x78   : > { %327 = vst [vmem:[#allocation2 + $0xd8] sm:$0xff] %v19371_v0  ;;  %328 = vst [vmem:[#allocation3] sm:$0xff] %v19371_v0  ;;  %16536 = vmatpush3.bf16.msra.mxu1 %v18598_v6  ;;  %16509 = vmatprep.subr.bf16.mxu0 %v18599_v7  ;;  %v614_v27 = vsel %vm611_vm0, %v612_v18, %v19640_v13  ;;  %v377_v37 = vmax.f32 %v375_v34, 0.0  ;;  %v381_v42 = vld [vmem:[%s19588_s12 + $0x18] sm:$0xff]  ;;  %v18609_v46 = vld [vmem:[#allocation7 + $0x80] sm:$0xff]   ;;  %v382_v47 = vmul.f32 %v19647_v17, %v380_v41  ;;  %p22810_p0 = scmp.ne.s32.totalorder %s22796_s9, 0 }
  0x79   : > { %329 = vst [vmem:[#allocation3 + $0x8] sm:$0xff] %v19371_v0  ;;  %331 = vst [vmem:[#allocation3 + $0x18] sm:$0xff] %v19371_v0  ;;  %16537 = vmatprep.subr.bf16.mxu1 %v18600_v8  ;;  %v760_v28 = vrot.slane %v758_v19, 3  ;;  %v763_v29 = vrot.slane %v761_v20, 4  ;;  %16519 = vmatprep.mubr.bf16.mxu0 %v614_v27  ;;  %v376_v35 = vmax.f32 %v374_v31, 0.0  ;;  %v383_v48 = vmul.f32 %v19647_v17, %v381_v42  ;;  %v18610_v51 = vld [vmem:[#allocation7 + $0xc0] sm:$0xff]  }
  0x7a   : > { %332 = vst [vmem:[#allocation3 + $0x20] sm:$0xff] %v19371_v0  ;;  %334 = vst [vmem:[#allocation3 + $0x30] sm:$0xff] %v19371_v0  ;;  %v384_v52 = vadd.f32 %v19653_v21, %v382_v47  ;;  %v394_v57 = vld [vmem:[%s19588_s12 + $0x20] sm:$0xff]  ;;  %v395_v58 = vld [vmem:[%s19588_s12 + $0x28] sm:$0xff]  ;;  %v970_v11 = vshrl.u32 %v19642_v15, 16  ;;  %p19294_p1 = pnand %p19293_p11, %p22810_p0 }
  0x7b   : > { %335 = vst [vmem:[#allocation3 + $0x38] sm:$0xff] %v19371_v0  ;;  %337 = vst [vmem:[#allocation3 + $0x48] sm:$0xff] %v19371_v0  ;;  %16510 = vmatpush3.bf16.msra.mxu0 %v18599_v7  ;;  %v764_v33 = vor.u32 %v763_v29, %v760_v28  ;;  %v19665_v40 = vpack.c.bf16 %v377_v37, %v376_v35  ;;  %v385_v53 = vadd.f32 %v19653_v21, %v383_v48  ;;  %v18611_v59 = vld [vmem:[#allocation7 + $0x88] sm:$0xff]   ;;  %v18613_v5 = vld [vmem:[#allocation7 + $0x90] sm:$0xff]   ;;  %vm1535_vm4 = vsmask.f32 7424 }
  0x7c   : > { %338 = vst [vmem:[#allocation3 + $0x50] sm:$0xff] %v19371_v0  ;;  %340 = vst [vmem:[#allocation3 + $0x60] sm:$0xff] %v19371_v0  ;;  %16538 = vmatpush3.bf16.msra.mxu1 %v18600_v8  ;;  %16511 = vmatprep.subr.bf16.mxu0 %v18601_v9  ;;  %v386_v56 = vmax.f32 %v384_v52, 0.0  ;;  %v396_v61 = vmul.f32 %v19647_v17, %v394_v57  ;;  %v397_v62 = vmul.f32 %v19647_v17, %v395_v58  ;;  %v18612_v1 = vld [vmem:[#allocation7 + $0xc8] sm:$0xff]   ;;  %v18616_v16 = vld [vmem:[#allocation7 + $0xd8] sm:$0xff]   ;;  %p19295_p3 = pneg %p19294_p1 }
  0x7d   : > { %341 = vst [vmem:[#allocation3 + $0x68] sm:$0xff] %v19371_v0  ;;  %343 = vst [vmem:[#allocation3 + $0x78] sm:$0xff] %v19371_v0  ;;  %16539 = vmatprep.subr.bf16.mxu1 %v18602_v10  ;;  %v773_v36 = vsel %vm756_vm1, %v764_v33, %v772_v23  ;;  %v615_v43 = vrot.slane %v19665_v40, 4  ;;  %v19671_v44 = vshrl.u32 %v19665_v40, 16  ;;  %v19674_v45 = vshll.u32 %v19665_v40, 16  ;;  %v18617_v22 = vld [vmem:[#allocation7 + $0xa0] sm:$0xff]  }
  0x7e   : > { %344 = vst [vmem:[#allocation3 + $0x80] sm:$0xff] %v19371_v0  ;;  %346 = vst [vmem:[#allocation3 + $0x90] sm:$0xff] %v19371_v0  ;;  %16547 = vmatprep.mubr.bf16.mxu1 %v773_v36  ;;  %v387_v60 = vmax.f32 %v385_v53, 0.0  ;;  %v398_v3 = vadd.f32 %v19653_v21, %v396_v61  ;;  %v399_v4 = vadd.f32 %v19653_v21, %v397_v62  ;;  %v19700_v18 = vld [vmem:[#allocation2 + $0x30] sm:$0xf]  ;;  %v18618_v25 = vld [vmem:[#allocation7 + $0xe0] sm:$0xff]  }
  0x7f   : > { %347 = vst [vmem:[#allocation3 + $0x98] sm:$0xff] %v19371_v0  ;;  %349 = vst [vmem:[#allocation3 + $0xa8] sm:$0xff] %v19371_v0  ;;  %16512 = vmatpush3.bf16.msra.mxu0 %v18601_v9  ;;  %v777_v49 = vrot.slane %v19671_v44, 3  ;;  %v780_v50 = vrot.slane %v19674_v45, 4  ;;  %v616_v54 = vsel %vm611_vm0, %v19640_v13, %v615_v43  ;;  %v18614_v9 = vld [vmem:[#allocation7 + $0xd0] sm:$0xff]   ;;  %v405_v62 = vld [vmem:[%s19588_s12 + $0x38] sm:$0xff] }
  0x80   : > { %350 = vst [vmem:[#allocation3 + $0xb0] sm:$0xff] %v19371_v0  ;;  %352 = vst [vmem:[#allocation3 + $0xc0] sm:$0xff] %v19371_v0  ;;  %16540 = vmatpush3.bf16.msra.mxu1 %v18602_v10  ;;  %16513 = vmatprep.subr.bf16.mxu0 %v18603_v12  ;;  %v388_v2 = vpack.c.bf16 %v387_v60, %v386_v56  ;;  %v400_v7 = vmax.f32 %v398_v3, 0.0  ;;  %v401_v8 = vmax.f32 %v399_v4, 0.0  ;;  %v1145_v48 = vld [vmem:[#allocation2 + $0x8] sm:$0x80] }
  0x81   : > { %353 = vst [vmem:[#allocation3 + $0xc8] sm:$0xff] %v19371_v0  ;;  %354 = vst [vmem:[#allocation3 + $0xd0] sm:$0xff] %v19371_v0  ;;  %16541 = vmatprep.subr.bf16.mxu1 %v18604_v14  ;;  %v19686_v55 = vor.u32 %v780_v50, %v777_v49  ;;  %v18621_v58 = vld [vmem:[#allocation7 + $0xb0] sm:$0xff]   ;;  %v1171_v61 = vshrl.u32 %v1145_v48, 16 }
  0x82   : > { %355 = vst [vmem:[#allocation3 + $0xd8] sm:$0xff] %v19371_v0  ;;  %v390_v6 = vrot.slane %v388_v2, 4  ;;  %v19696_v10 = vpack.c.bf16 %v401_v8, %v400_v7  ;;  %v982_v7 = vrot.slane %v19674_v45, 5  ;;  %v18623_v8 = vld [vmem:[#allocation7 + $0xb8] sm:$0xff]  }
  0x83   : > { %16514 = vmatpush3.bf16.msra.mxu0 %v18603_v12  ;;  %v782_v63 = vsel %vm756_vm1, %v772_v23, %v19686_v55  ;;  %v973_v12 = vshll.u32 %v19642_v15, 16  ;;  %v19708_v23 = vrot.slane %v970_v11, 4  ;;  %v978_v15 = vrot.slane %v19371_v0, 5 }
  0x84   : > { %16542 = vmatpush3.bf16.msra.mxu1 %v18604_v14  ;;  %16515 = vmatprep.subr.bf16.mxu0 %v18605_v26  ;;  %392 = vst [vmem:[#allocation2 + $0x20] ss:$-4 sps:$4 sm:$0xff] %v390_v6   ;;  %v18615_v14 = vld [vmem:[#allocation7 + $0x98] sm:$0xff]   ;;  %v19703_v19 = vshrl.u32 %v19696_v10, 16  ;;  %v19706_v20 = vshll.u32 %v19696_v10, 16  ;;  %v19719_v29 = vrot.slane %v19696_v10, 4 }
  0x85   : > { %16543 = vmatprep.subr.bf16.mxu1 %v18606_v32  ;;  %v19710_v24 = vrot.slane %v973_v12, 5  ;;  %v814_v0 = vshll.u32 %v19700_v18, 16  ;;  %v979_v2 = vor.u32 %v978_v15, %v19640_v13  ;;  %v981_v6 = vrot.slane %v19671_v44, 4 }
  0x86   : > { %v804_v30 = vrot.slane %v19703_v19, 3  ;;  %v807_v31 = vrot.slane %v19706_v20, 4  ;;  %v407_v12 = vmul.f32 %v19647_v17, %v405_v62 }
  0x87   : > { %16516 = vmatpush3.bf16.msra.mxu0 %v18605_v26  ;;  %v811_v26 = vshrl.u32 %v19700_v18, 16  ;;  %v816_v57 = vrot.slane %v814_v0, 4 }
  0x88   : > { %16544 = vmatpush3.bf16.msra.mxu1 %v18606_v32  ;;  %16517 = vmatprep.subr.bf16.mxu0 %v18607_v38  ;;  %v19755_v52 = vor.u32 %v807_v31, %v804_v30  ;;  %v409_v15 = vadd.f32 %v19653_v21, %v407_v12  ;;  %v18625_v31 = vld [vmem:[#allocation7 + $0x100] sm:$0xff]  }
  0x89   : > { %16545 = vmatprep.subr.bf16.mxu1 %v18608_v39  ;;  %v813_v56 = vrot.slane %v811_v26, 3 }
  0x8b   : > { %16518 = vmatpush3.bf16.msra.mxu0 %v18607_v38  ;;  %v19714_v27 = vld [vmem:[#allocation2 + $0x18] sm:$0xff]  ;;  %v19716_v28 = vld [vmem:[#allocation2 + $0x20] sm:$0xff]  ;;  %v18619_v38 = vld [vmem:[#allocation7 + $0xa8] sm:$0xff]  }
  0x8c   : > { %16546 = vmatpush3.bf16.msra.mxu1 %v18608_v39  ;;  %16559 = vmatprep.subr.bf16.mxu0 %v18609_v46  ;;  %v617_v32 = vrot.slane %v19714_v27, 4  ;;  %v19726_v33 = vshrl.u32 %v19714_v27, 16  ;;  %v19729_v34 = vshll.u32 %v19714_v27, 16  ;;  %v19732_v35 = vrot.slane %v19716_v28, 4 }
  0x8d   : > { %16587 = vmatprep.subr.bf16.mxu1 %v18610_v51  ;;  %v19735_v36 = vshrl.u32 %v19716_v28, 16  ;;  %v19738_v37 = vshll.u32 %v19716_v28, 16  ;;  %v1177_v39 = vrot.slane %v19671_v44, 7 }
  0x8e   : > { %16520 = vmatmul.mubr.bf16.vlgmr.msra.gmra.mrb[0].mxu0 %v616_v54  ;;  %v618_v41 = vsel %vm611_vm0, %v615_v43, %v617_v32  ;;  %v786_v42 = vrot.slane %v19726_v33, 3  ;;  %v620_v47 = vsel %vm611_vm0, %v617_v32, %v19732_v35  ;;  %v19753_v43 = vsel %vm611_vm0, %v19732_v35, %v19719_v29 }
  0x8f   : > { %16548 = vmatmul.mubr.bf16.vlgmr.msra.gmra.mrb[0].mxu1 %v782_v63  ;;  %16560 = vmatpush3.bf16.msra.mxu0 %v18609_v46  ;;  %v789_v46 = vrot.slane %v19729_v34, 4  ;;  %v795_v49 = vrot.slane %v19735_v36, 3  ;;  %v798_v50 = vrot.slane %v19738_v37, 4  ;;  %v623_v54 = vrot.slane %v19700_v18, 4 }
  0x90   : > { %16588 = vmatpush3.bf16.msra.mxu1 %v18610_v51  ;;  %16561 = vmatprep.subr.bf16.mxu0 %v18611_v59  ;;  %v18620_v51 = vld [vmem:[#allocation7 + $0xe8] sm:$0xff]   ;;  %v985_v18 = vrot.slane %v19726_v33, 4  ;;  %v1185_v30 = vrot.slane %v19726_v33, 7  ;;  %v411_v32 = vmax.f32 %v409_v15, 0.0  ;;  %v1193_v48 = vrot.slane %v19735_v36, 7 }
  0x91   : > { %16589 = vmatprep.subr.bf16.mxu1 %v18612_v1  ;;  %16523 = vmatprep.mubr.bf16.mxu0 %v618_v41  ;;  %v790_v53 = vor.u32 %v789_v46, %v786_v42  ;;  %v19759_v60 = vor.u32 %v798_v50, %v795_v49  ;;  %v624_v13 = vsel %vm611_vm0, %v19719_v29, %v623_v54  ;;  %v18626_v42 = vld [vmem:[#allocation7 + $0x140] sm:$0xff]   ;;  %v18627_v54 = vld [vmem:[#allocation7 + $0x108] sm:$0xff]  }
  0x92   : > { %v1188_v50 = vor.u32 %v1185_v30, %v19729_v34 }
  0x93   : > { %16562 = vmatpush3.bf16.msra.mxu0 %v18611_v59  ;;  %v404_v59 = vld [vmem:[%s19588_s12 + $0x30] sm:$0xff]  ;;  %v791_v63 = vsel %vm756_vm1, %v19686_v55, %v790_v53  ;;  %v800_v3 = vsel %vm756_vm1, %v790_v53, %v19759_v60  ;;  %v19773_v4 = vsel %vm756_vm1, %v19759_v60, %v19755_v52  ;;  %v817_v55 = vor.u32 %v816_v57, %v813_v56 }
  0x94   : > { %16590 = vmatpush3.bf16.msra.mxu1 %v18612_v1  ;;  %16563 = vmatprep.subr.bf16.mxu0 %v18613_v5  ;;  %v976_v1 = vor.u32 %v19710_v24, %v19708_v23  ;;  %v406_v11 = vmul.f32 %v19647_v17, %v404_v59  ;;  %v18624_v23 = vld [vmem:[#allocation7 + $0xf8] sm:$0xff]   ;;  %v1201_v57 = vrot.slane %v19703_v19, 7  ;;  %v993_v59 = vrot.slane %v19703_v19, 4 }
  0x95   : > { %16591 = vmatprep.subr.bf16.mxu1 %v18614_v9  ;;  %16551 = vmatprep.mubr.bf16.mxu1 %v791_v63  ;;  %v818_v26 = vsel %vm756_vm1, %v19755_v52, %v817_v55  ;;  %v1189_v62 = vsel %vm1169_vm3, %v1177_v39, %v1188_v50  ;;  %v18628_v63 = vld [vmem:[#allocation7 + $0x148] sm:$0xff]  }
  0x96   : > { %16524 = vmatmul.mubr.bf16.gmra.mrb[4].mxu0 %v620_v47  ;;  %v408_v24 = vadd.f32 %v19653_v21, %v406_v11  ;;  %v989_v47 = vrot.slane %v19735_v36, 4 }
  0x97   : > { %16564 = vmatpush3.bf16.msra.mxu0 %v18613_v5  ;;  %16527 = vmatprep.mubr.bf16.mxu0 %v19753_v43  ;;  %v18622_v5 = vld [vmem:[#allocation7 + $0xf0] sm:$0xff]  }
  0x98   : > { %16592 = vmatpush3.bf16.msra.mxu1 %v18614_v9  ;;  %16565 = vmatprep.subr.bf16.mxu0 %v18615_v14  ;;  %v1173_v9 = vrot.slane %v1171_v61, 7  ;;  %v410_v0 = vmax.f32 %v408_v24, 0.0  ;;  %v994_v61 = vrot.slane %v19706_v20, 5 }
  0x99   : > { %16593 = vmatprep.subr.bf16.mxu1 %v18616_v16  ;;  %16552 = vmatmul.mubr.bf16.gmra.mrb[4].mxu1 %v800_v3  ;;  %v419_v3 = vld [vmem:[%s19588_s12 + $0x48] sm:$0xff] }
  0x9a   : > { %16555 = vmatprep.mubr.bf16.mxu1 %v19773_v4  ;;  %v412_v46 = vpack.c.bf16 %v411_v32, %v410_v0 }
  0x9b   : > { %16566 = vmatpush3.bf16.msra.mxu0 %v18615_v14  ;;  %v980_v14 = vsel %vm968_vm2, %v976_v1, %v979_v2 }
  0x9c   : > { %16594 = vmatpush3.bf16.msra.mxu1 %v18616_v16  ;;  %16567 = vmatprep.subr.bf16.mxu0 %v18617_v22  ;;  %v1180_v16 = vor.u32 %v1177_v39, %v19674_v45  ;;  %v414_v53 = vrot.slane %v412_v46, 4 }
  0x9d   : > { %16595 = vmatprep.subr.bf16.mxu1 %v18618_v25 }
  0x9e   : > { %16528 = vmatmul.mubr.bf16.gmra.mrb[8].mxu0 %v624_v13  ;;  %416 = vst [vmem:[#allocation2 + $0x38] ss:$-4 sps:$4 sm:$0xff] %v414_v53   ;;  %v18630_v13 = vld [vmem:[#allocation7 + $0x150] sm:$0xff]   ;;  %v1541_v53 = vrot.slane %v19674_v45, 1  ;;  %v1546_v45 = vrot.slane %v19729_v34, 1 }
  0x9f   : > { %16568 = vmatpush3.bf16.msra.mxu0 %v18617_v22  ;;  %v986_v22 = vrot.slane %v19729_v34, 5  ;;  %16575 = vmatprep.mubr.bf16.mxu0 %v980_v14  ;;  %v18631_v14 = vld [vmem:[#allocation7 + $0x118] sm:$0xff]  }
  0xa0   : > { %16596 = vmatpush3.bf16.msra.mxu1 %v18618_v25  ;;  %16569 = vmatprep.subr.bf16.mxu0 %v18619_v38  ;;  %v983_v25 = vor.u32 %v982_v7, %v981_v6  ;;  %v421_v6 = vmul.f32 %v19647_v17, %v419_v3  ;;  %v1204_v7 = vor.u32 %v1201_v57, %v19706_v20  ;;  %v18640_v34 = vld [vmem:[#allocation7 + $0x178] sm:$0xff]  }
  0xa1   : > { %16597 = vmatprep.subr.bf16.mxu1 %v18620_v51  ;;  %v987_v41 = vor.u32 %v986_v22, %v985_v18  ;;  %16556 = vmatmul.mubr.bf16.gmra.mrb[8].mxu1 %v818_v26 }
  0xa2   : > { %v984_v49 = vsel %vm968_vm2, %v979_v2, %v983_v25  ;;  %v418_v2 = vld [vmem:[%s19588_s12 + $0x40] sm:$0xff]  ;;  %v423_v11 = vadd.f32 %v19653_v21, %v421_v6  ;;  %v1562_v6 = vrot.slane %v19706_v20, 1 }
  0xa3   : > { %16570 = vmatpush3.bf16.msra.mxu0 %v18619_v38  ;;  %v1181_v38 = vsel %vm1169_vm3, %v1173_v9, %v1180_v16  ;;  %v988_v56 = vsel %vm968_vm2, %v983_v25, %v987_v41  ;;  %v420_v55 = vmul.f32 %v19647_v17, %v418_v2  ;;  %v18636_v2 = vld [vmem:[#allocation7 + $0x168] sm:$0xff]  }
  0xa4   : > { %16598 = vmatpush3.bf16.msra.mxu1 %v18620_v51  ;;  %16571 = vmatprep.subr.bf16.mxu0 %v18621_v58  ;;  %v990_v51 = vrot.slane %v19738_v37, 5  ;;  %v425_v24 = vmax.f32 %v423_v11, 0.0 }
  0xa5   : > { %16599 = vmatprep.subr.bf16.mxu1 %v18622_v5  ;;  %16603 = vmatprep.mubr.bf16.mxu1 %v1181_v38  ;;  %v422_v9 = vadd.f32 %v19653_v21, %v420_v55  ;;  %v950_v16 = vld [vmem:[#allocation2 + $0x30] sm:$0x1f]  ;;  %v19825_v22 = vld [vmem:[#allocation2 + $0x38] sm:$0xff]  ;;  %v18641_v55 = vld [vmem:[#allocation7 + $0x180] sm:$0xff]  }
  0xa6   : > { %v19807_v1 = vor.u32 %v990_v51, %v989_v47  ;;  %v19823_v18 = vld [vmem:[#allocation2 + $0x30] sm:$0xff]  ;;  %v998_v15 = vshrl.u32 %v950_v16, 16  ;;  %v1001_v25 = vshll.u32 %v950_v16, 16  ;;  %v19840_v0 = vshrl.u32 %v19825_v22, 16  ;;  %v18632_v47 = vld [vmem:[#allocation7 + $0x158] sm:$0xff]  }
  0xa7   : > { %16572 = vmatpush3.bf16.msra.mxu0 %v18621_v58  ;;  %v1196_v58 = vor.u32 %v1193_v48, %v19738_v37  ;;  %v19828_v21 = vshrl.u32 %v19823_v18, 16  ;;  %v19831_v26 = vshll.u32 %v19823_v18, 16  ;;  %v19846_v46 = vshll.u32 %v19825_v22, 16  ;;  %v18645_v16 = vld [vmem:[#allocation7 + $0x190] sm:$0xff]  }
  0xa8   : > { %16600 = vmatpush3.bf16.msra.mxu1 %v18622_v5  ;;  %16573 = vmatprep.subr.bf16.mxu0 %v18623_v8  ;;  %v18629_v5 = vld [vmem:[#allocation7 + $0x110] sm:$0xff]   ;;  %v992_v12 = vsel %vm968_vm2, %v987_v41, %v19807_v1  ;;  %v1000_v38 = vrot.slane %v998_v15, 4  ;;  %v1003_v41 = vrot.slane %v1001_v25, 5  ;;  %v18647_v15 = vld [vmem:[#allocation7 + $0x198] sm:$0xff]  }
  0xa9   : > { %16601 = vmatprep.subr.bf16.mxu1 %v18624_v23  ;;  %v1197_v39 = vsel %vm1169_vm3, %v1185_v30, %v1196_v58  ;;  %v1205_v30 = vsel %vm1169_vm3, %v1193_v48, %v1204_v7  ;;  %v18633_v48 = vld [vmem:[#allocation7 + $0x120] sm:$0xff]   ;;  %v1554_v7 = vrot.slane %v19738_v37, 1  ;;  %v2167_v37 = vrot.slane %v19840_v0, 4 }
  0xaa   : > { %v1004_v50 = vor.u32 %v1003_v41, %v1000_v38 }
  0xab   : > { %16574 = vmatpush3.bf16.msra.mxu0 %v18623_v8  ;;  %v19817_v8 = vor.u32 %v994_v61, %v993_v59  ;;  %v18635_v61 = vld [vmem:[#allocation7 + $0x128] sm:$0xff]   ;;  %v1558_v11 = vor.u32 %v1554_v7, %v19735_v36 }
  0xac   : > { %16602 = vmatpush3.bf16.msra.mxu1 %v18624_v23  ;;  %16615 = vmatprep.subr.bf16.mxu0 %v18625_v31  ;;  %v424_v23 = vmax.f32 %v422_v9, 0.0  ;;  %v2163_v9 = vrot.slane %v19828_v21, 4 }
  0xad   : > { %16643 = vmatprep.subr.bf16.mxu1 %v18626_v42  ;;  %v1563_v36 = vsel %vm1535_vm4, %v1558_v11, %v1562_v6 }
  0xae   : > { %16576 = vmatmul.mubr.bf16.vlgmr.msra.gmra.mrb[12].mxu0 %v984_v49  ;;  %v19842_v32 = vpack.c.bf16 %v425_v24, %v424_v23  ;;  %v1217_v49 = vrot.slane %v19840_v0, 7  ;;  %v2168_v24 = vrot.slane %v19846_v46, 5 }
  0xaf   : > { %16616 = vmatpush3.bf16.msra.mxu0 %v18625_v31  ;;  %16579 = vmatprep.mubr.bf16.mxu0 %v988_v56  ;;  %v19837_v31 = vsel %vm968_vm2, %v19807_v1, %v19817_v8  ;;  %v18634_v56 = vld [vmem:[#allocation7 + $0x160] sm:$0xff]  }
  0xb0   : > { %16617 = vmatprep.subr.bf16.mxu0 %v18627_v54  ;;  %16604 = vmatmul.mubr.bf16.vlgmr.msra.gmra.mrb[12].mxu1 %v1189_v62  ;;  %427 = vst [vmem:[#allocation2 + $0x40] sm:$0xff] %v19842_v32  ;;  %v1220_v59 = vor.u32 %v19846_v46, %v1217_v49  ;;  %v1542_v62 = vor.u32 %v1541_v53, %v19671_v44  ;;  %v18639_v44 = vld [vmem:[#allocation7 + $0x138] sm:$0xff]   ;;  %v1578_v53 = vrot.slane %v19846_v46, 1 }
  0xb1   : > { %16644 = vmatpush3.bf16.msra.mxu1 %v18626_v42  ;;  %16607 = vmatprep.mubr.bf16.mxu1 %v1197_v39  ;;  %v1209_v42 = vrot.slane %v19828_v21, 7  ;;  %v18643_v39 = vld [vmem:[#allocation7 + $0x188] sm:$0xff]   ;;  %v19880_v41 = vor.u32 %v2168_v24, %v2167_v37 }
  0xb2   : > { %16645 = vmatprep.subr.bf16.mxu1 %v18628_v63  ;;  %v1547_v3 = vsel %vm1535_vm4, %v1542_v62, %v1546_v45 }
  0xb3   : > { %16618 = vmatpush3.bf16.msra.mxu0 %v18627_v54  ;;  %v1212_v51 = vor.u32 %v19831_v26, %v1209_v42  ;;  %v1005_v54 = vsel %vm968_vm2, %v19817_v8, %v1004_v50  ;;  %v428_v50 = vld [vmem:[%s19588_s12 + $0x50] sm:$0xff] }
  0xb4   : > { %16619 = vmatprep.subr.bf16.mxu0 %v18629_v5 }
  0xb5   : > { %16646 = vmatpush3.bf16.msra.mxu1 %v18628_v63  ;;  %v1213_v58 = vsel %vm1169_vm3, %v1201_v57, %v1212_v51  ;;  %v1221_v63 = vsel %vm1169_vm3, %v1209_v42, %v1220_v59  ;;  %v18637_v57 = vld [vmem:[#allocation7 + $0x130] sm:$0xff]   ;;  %v1566_v42 = vor.u32 %v1562_v6, %v19703_v19  ;;  %v2566_v51 = vrot.slane %v19846_v46, 4 }
  0xb6   : > { %16580 = vmatmul.mubr.bf16.gmra.mrb[16].mxu0 %v992_v12  ;;  %16647 = vmatprep.subr.bf16.mxu1 %v18630_v13  ;;  %v1727_v12 = vld [vmem:[#allocation2 + $0x18] sm:$0xf8]  ;;  %v430_v19 = vmul.f32 %v19647_v17, %v428_v50  ;;  %v18657_v50 = vld [vmem:[#allocation7 + $0x200] sm:$0xff]  }
  0xb7   : > { %16620 = vmatpush3.bf16.msra.mxu0 %v18629_v5  ;;  %16583 = vmatprep.mubr.bf16.mxu0 %v19837_v31  ;;  %v18638_v5 = vld [vmem:[#allocation7 + $0x170] sm:$0xff]   ;;  %v1752_v25 = vshrl.u32 %v1727_v12, 16 }
  0xb8   : > { %16621 = vmatprep.subr.bf16.mxu0 %v18631_v14  ;;  %16608 = vmatmul.mubr.bf16.gmra.mrb[16].mxu1 %v1205_v30  ;;  %v1755_v30 = vshll.u32 %v1727_v12, 16 }
  0xb9   : > { %16648 = vmatpush3.bf16.msra.mxu1 %v18630_v13  ;;  %16611 = vmatprep.mubr.bf16.mxu1 %v1213_v58  ;;  %v18642_v13 = vld [vmem:[#allocation7 + $0x1c0] sm:$0xff]   ;;  %v1754_v58 = vrot.slane %v1752_v25, 3 }
  0xba   : > { %16649 = vmatprep.subr.bf16.mxu1 %v18632_v47  ;;  %v1757_v59 = vrot.slane %v1755_v30, 4  ;;  %v18654_v30 = vld [vmem:[#allocation7 + $0x1f0] sm:$0xff]  }
  0xbb   : > { %16622 = vmatpush3.bf16.msra.mxu0 %v18631_v14  ;;  %v2164_v14 = vrot.slane %v19831_v26, 5 }
  0xbc   : > { %16623 = vmatprep.subr.bf16.mxu0 %v18633_v48  ;;  %v1758_v6 = vor.u32 %v1757_v59, %v1754_v58 }
  0xbd   : > { %16650 = vmatpush3.bf16.msra.mxu1 %v18632_v47  ;;  %v2165_v23 = vor.u32 %v2164_v14, %v2163_v9  ;;  %v2563_v47 = vrot.slane %v19840_v0, 3  ;;  %v1582_v9 = vor.u32 %v1578_v53, %v19840_v0  ;;  %v18651_v14 = vld [vmem:[#allocation7 + $0x1a8] sm:$0xff]  }
  0xbe   : > { %16584 = vmatmul.mubr.bf16.gmra.mrb[20].mxu0 %v1005_v54  ;;  %16651 = vmatprep.subr.bf16.mxu1 %v18634_v56 }
  0xbf   : > { %16624 = vmatpush3.bf16.msra.mxu0 %v18633_v48  ;;  %16631 = vmatprep.mubr.bf16.mxu0 %v19665_v40  ;;  %v1550_v40 = vor.u32 %v1546_v45, %v19726_v33  ;;  %v18644_v33 = vld [vmem:[#allocation7 + $0x1c8] sm:$0xff]   ;;  %v19878_v38 = vsel %vm968_vm2, %v19817_v8, %v2165_v23  ;;  %v1517_v48 = vld [vmem:[#allocation2 + $0x40] sm:$0x1]  ;;  %v19887_v49 = vsel %vm968_vm2, %v2165_v23, %v19880_v41  ;;  %v429_v8 = vld [vmem:[%s19588_s12 + $0x58] sm:$0xff] }
  0xc0   : > { %16625 = vmatprep.subr.bf16.mxu0 %v18635_v61  ;;  %16612 = vmatmul.mubr.bf16.gmra.mrb[20].mxu1 %v1221_v63  ;;  %v431_v54 = vmul.f32 %v19647_v17, %v429_v8  ;;  %v18648_v45 = vld [vmem:[#allocation7 + $0x1d8] sm:$0xff]   ;;  %v1584_v46 = vshll.u32 %v1517_v48, 16  ;;  %v19903_v17 = vld [vmem:[%s22779_s2] ss:$0 sm:$0xff] }
  0xc1   : > { %16652 = vmatpush3.bf16.msra.mxu1 %v18634_v56  ;;  %16659 = vmatprep.mubr.bf16.mxu1 %v1547_v3  ;;  %v1555_v20 = vsel %vm1535_vm4, %v1550_v40, %v1554_v7  ;;  %v19911_v40 = vld [vmem:[#allocation2 + $0x18] sm:$0xf0]  ;;  %v19916_v7 = vld [vmem:[%s22778_s1] ss:$0 sm:$0xff] }
  0xc2   : > { %16653 = vmatprep.subr.bf16.mxu1 %v18636_v2  ;;  %v433_v63 = vadd.f32 %v19903_v17, %v431_v54  ;;  %v1586_v11 = vrot.slane %v1584_v46, 1  ;;  %v1977_v23 = vrot.slane %v19911_v40, 4  ;;  %v18656_v48 = vld [vmem:[#allocation7 + $0x1f8] sm:$0xff]   ;;  %v18661_v46 = vld [vmem:[#allocation7 + $0x210] sm:$0xff]  }
  0xc3   : > { %16626 = vmatpush3.bf16.msra.mxu0 %v18635_v61  ;;  %v19897_v61 = vor.u32 %v2566_v51, %v2563_v47  ;;  %v1783_v47 = vrot.slane %v19831_v26, 4  ;;  %v1799_v51 = vshll.u32 %v19842_v32, 16 }
  0xc4   : > { %16627 = vmatprep.subr.bf16.mxu0 %v18637_v57  ;;  %v435_v3 = vmax.f32 %v433_v63, 0.0 }
  0xc5   : > { %16654 = vmatpush3.bf16.msra.mxu1 %v18636_v2  ;;  %v18649_v2 = vld [vmem:[#allocation7 + $0x1a0] sm:$0xff]   ;;  %v1801_v59 = vrot.slane %v1799_v51, 4 }
  0xc6   : > { %16655 = vmatprep.subr.bf16.mxu1 %v18638_v5 }
  0xc7   : > { %16628 = vmatpush3.bf16.msra.mxu0 %v18637_v57 }
  0xc8   : > { %16629 = vmatprep.subr.bf16.mxu0 %v18639_v44 }
  0xc9   : > { %16656 = vmatpush3.bf16.msra.mxu1 %v18638_v5  ;;  %v442_v5 = vld [vmem:[%s19588_s12 + $0x60] sm:$0xff] }
  0xca   : > { %16657 = vmatprep.subr.bf16.mxu1 %v18640_v34 }
  0xcb   : > { %16630 = vmatpush3.bf16.msra.mxu0 %v18639_v44  ;;  %v443_v44 = vld [vmem:[%s19588_s12 + $0x68] sm:$0xff] }
  0xcc   : > { %16671 = vmatprep.subr.bf16.mxu0 %v18641_v55 }
  0xcd   : > { %16658 = vmatpush3.bf16.msra.mxu1 %v18640_v34  ;;  %v18650_v34 = vld [vmem:[#allocation7 + $0x1e0] sm:$0xff]  }
  0xce   : > { %16632 = vmatmul.mubr.bf16.vlgmr.msra.gmra.mrb[24].mxu0 %v19714_v27  ;;  %16699 = vmatprep.subr.bf16.mxu1 %v18642_v13  ;;  %v18646_v27 = vld [vmem:[#allocation7 + $0x1d0] sm:$0xff]  }
  0xcf   : > { %16672 = vmatpush3.bf16.msra.mxu0 %v18641_v55  ;;  %16635 = vmatprep.mubr.bf16.mxu0 %v19716_v28  ;;  %v1570_v28 = vrot.slane %v19831_v26, 1  ;;  %v1982_v26 = vrot.slane %v19823_v18, 4 }
  0xd0   : > { %16673 = vmatprep.subr.bf16.mxu0 %v18643_v39  ;;  %16660 = vmatmul.mubr.bf16.vlgmr.msra.gmra.mrb[24].mxu1 %v1555_v20 }
  0xd1   : > { %16700 = vmatpush3.bf16.msra.mxu1 %v18642_v13  ;;  %16663 = vmatprep.mubr.bf16.mxu1 %v1563_v36  ;;  %v1574_v56 = vor.u32 %v1570_v28, %v19828_v21  ;;  %v1571_v62 = vsel %vm1535_vm4, %v1566_v42, %v1570_v28  ;;  %v444_v13 = vmul.f32 %v19916_v7, %v442_v5  ;;  %v18655_v42 = vld [vmem:[#allocation7 + $0x1b8] sm:$0xff]   ;;  %v1780_v28 = vrot.slane %v19828_v21, 3  ;;  %v18659_v21 = vld [vmem:[#allocation7 + $0x208] sm:$0xff]  }
  0xd2   : > { %16701 = vmatprep.subr.bf16.mxu1 %v18644_v33  ;;  %v1587_v36 = vsel %vm1535_vm4, %v1582_v9, %v1586_v11  ;;  %v2151_v5 = vshll.u32 %v19911_v40, 16  ;;  %v18664_v9 = vld [vmem:[#allocation7 + $0x58] sm:$0xff]  }
  0xd3   : > { %16674 = vmatpush3.bf16.msra.mxu0 %v18643_v39  ;;  %v1579_v55 = vsel %vm1535_vm4, %v1574_v56, %v1578_v53  ;;  %v445_v39 = vmul.f32 %v19916_v7, %v443_v44  ;;  %v446_v20 = vadd.f32 %v19903_v17, %v444_v13  ;;  %v1784_v8 = vor.u32 %v1783_v47, %v1780_v28  ;;  %v18658_v53 = vld [vmem:[#allocation7 + $0x40] sm:$0xff]   ;;  %v452_v56 = vld [vmem:[%s19588_s12 + $0x70] sm:$0xff] }
  0xd4   : > { %16675 = vmatprep.subr.bf16.mxu0 %v18645_v16  ;;  %v454_v63 = vmul.f32 %v19916_v7, %v452_v56  ;;  %v18674_v56 = vld [vmem:[#allocation7 + $0x80] sm:$0xff]  }
  0xd5   : > { %16702 = vmatpush3.bf16.msra.mxu1 %v18644_v33  ;;  %v447_v33 = vadd.f32 %v19903_v17, %v445_v39  ;;  %v448_v24 = vmax.f32 %v446_v20, 0.0  ;;  %v1785_v58 = vsel %vm756_vm1, %v19755_v52, %v1784_v8  ;;  %v1983_v52 = vsel %vm611_vm0, %v19719_v29, %v1982_v26 }
  0xd6   : > { %16636 = vmatmul.mubr.bf16.gmra.mrb[28].mxu0 %v19696_v10  ;;  %v432_v10 = vadd.f32 %v19903_v17, %v430_v19  ;;  %16703 = vmatprep.subr.bf16.mxu1 %v18646_v27  ;;  %v19938_v19 = vld [vmem:[#allocation2 + $0x48] sm:$0xf]  ;;  %v456_v44 = vadd.f32 %v19903_v17, %v454_v63  ;;  %v1794_v29 = vsel %vm756_vm1, %v1784_v8, %v19897_v61  ;;  %v19968_v39 = vrot.slane %v19842_v32, 4 }
  0xd7   : > { %16676 = vmatpush3.bf16.msra.mxu0 %v18645_v16  ;;  %16639 = vmatprep.mubr.bf16.mxu0 %v19823_v18  ;;  %v1767_v16 = vsel %vm756_vm1, %v1758_v6, %v19759_v60  ;;  %v449_v0 = vmax.f32 %v447_v33, 0.0  ;;  %v1979_v60 = vsel %vm611_vm0, %v1977_v23, %v19732_v35  ;;  %v1796_v35 = vshrl.u32 %v19842_v32, 16  ;;  %v18663_v6 = vld [vmem:[#allocation7 + $0x218] sm:$0xff]   ;;  %v18677_v32 = vld [vmem:[#allocation7 + $0x10] sm:$0xff]  }
  0xd8   : > { %16677 = vmatprep.subr.bf16.mxu0 %v18647_v15  ;;  %v434_v57 = vmax.f32 %v432_v10, 0.0  ;;  %16664 = vmatmul.mubr.bf16.gmra.mrb[28].mxu1 %v1571_v62  ;;  %v453_v62 = vld [vmem:[%s19588_s12 + $0x78] sm:$0xff]  ;;  %v1805_v18 = vshrl.u32 %v19938_v19, 16  ;;  %v1808_v10 = vshll.u32 %v19938_v19, 16  ;;  %v458_v13 = vmax.f32 %v456_v44, 0.0 }
  0xd9   : > { %16704 = vmatpush3.bf16.msra.mxu1 %v18646_v27  ;;  %16667 = vmatprep.mubr.bf16.mxu1 %v1579_v55  ;;  %v18652_v27 = vld [vmem:[#allocation7 + $0x1e8] sm:$0xff]   ;;  %v19928_v25 = vpack.c.bf16 %v449_v0, %v448_v24  ;;  %v1798_v54 = vrot.slane %v1796_v35, 3  ;;  %v18666_v24 = vld [vmem:[#allocation7 + $0x60] sm:$0xff]  }
  0xda   : > { %v436_v12 = vpack.c.bf16 %v435_v3, %v434_v57  ;;  %16705 = vmatprep.subr.bf16.mxu1 %v18648_v45  ;;  %v2148_v3 = vshrl.u32 %v19911_v40, 16 }
  0xdb   : > { %16678 = vmatpush3.bf16.msra.mxu0 %v18647_v15  ;;  %v18653_v15 = vld [vmem:[#allocation7 + $0x1b0] sm:$0xff]   ;;  %451 = vst [vmem:[#allocation2 + $0x58] sm:$0xff] %v19928_v25  ;;  %v19959_v57 = vor.u32 %v1801_v59, %v1798_v54  ;;  %v2171_v59 = vrot.slane %v1796_v35, 4 }
  0xdc   : > { %16679 = vmatprep.subr.bf16.mxu0 %v18649_v2  ;;  %v438_v37 = vrot.slane %v436_v12, 4  ;;  %v2150_v12 = vrot.slane %v2148_v3, 4 }
  0xdd   : > { %16706 = vmatpush3.bf16.msra.mxu1 %v18648_v45  ;;  %v18660_v45 = vld [vmem:[#allocation7 + $0x48] sm:$0xff]   ;;  %v19973_v11 = vsel %vm756_vm1, %v19897_v61, %v19959_v57 }
  0xde   : > { %16640 = vmatmul.mubr.bf16.gmra.mrb[32].mxu0 %v19825_v22  ;;  %440 = vst [vmem:[#allocation2 + $0x50] ss:$-4 sps:$4 sm:$0xff] %v438_v37   ;;  %16707 = vmatprep.subr.bf16.mxu1 %v18650_v34  ;;  %v18665_v37 = vld [vmem:[#allocation7 + $0x220] sm:$0xff]  }
  0xdf   : > { %16680 = vmatpush3.bf16.msra.mxu0 %v18649_v2  ;;  %16687 = vmatprep.mubr.bf16.mxu0 %v1767_v16  ;;  %v455_v2 = vmul.f32 %v19916_v7, %v453_v62  ;;  %v2172_v62 = vrot.slane %v1799_v51, 5 }
  0xe0   : > { %16681 = vmatprep.subr.bf16.mxu0 %v18651_v14  ;;  %16668 = vmatmul.mubr.bf16.gmra.mrb[32].mxu1 %v1587_v36  ;;  %v1988_v36 = vrot.slane %v19938_v19, 4 }
  0xe1   : > { %16708 = vmatpush3.bf16.msra.mxu1 %v18650_v34  ;;  %16715 = vmatprep.mubr.bf16.mxu1 %v1979_v60  ;;  %v1807_v34 = vrot.slane %v1805_v18, 3  ;;  %v457_v55 = vadd.f32 %v19903_v17, %v455_v2  ;;  %v18667_v60 = vld [vmem:[#allocation7 + $0x228] sm:$0xff]  }
  0xe2   : > { %16709 = vmatprep.subr.bf16.mxu1 %v18652_v27  ;;  %v1989_v47 = vsel %vm611_vm0, %v19968_v39, %v1988_v36  ;;  %v467_v2 = vld [vmem:[%s19588_s12 + $0x88] sm:$0xff] }
  0xe3   : > { %16682 = vmatpush3.bf16.msra.mxu0 %v18651_v14  ;;  %v459_v40 = vmax.f32 %v457_v55, 0.0  ;;  %v2153_v14 = vrot.slane %v2151_v5, 5  ;;  %v469_v51 = vmul.f32 %v19916_v7, %v467_v2  ;;  %v18689_v2 = vld [vmem:[#allocation7 + $0xc0] sm:$0xff]  }
  0xe4   : > { %16683 = vmatprep.subr.bf16.mxu0 %v18653_v15 }
  0xe5   : > { %16710 = vmatpush3.bf16.msra.mxu1 %v18652_v27  ;;  %v460_v16 = vpack.c.bf16 %v459_v40, %v458_v13  ;;  %v2154_v27 = vor.u32 %v2153_v14, %v2150_v12  ;;  %v19996_v19 = vld [vmem:[#allocation2 + $0x48] sm:$0xff]  ;;  %v20004_v63 = vld [vmem:[#allocation2 + $0x50] sm:$0xff] }
  0xe6   : > { %16711 = vmatprep.subr.bf16.mxu1 %v18654_v30  ;;  %v2129_v54 = vld [vmem:[#allocation2 + $0x48] sm:$0x1f]  ;;  %v2413_v18 = vrot.slane %v19996_v19, 4 }
  0xe7   : > { %16684 = vmatpush3.bf16.msra.mxu0 %v18653_v15  ;;  %v462_v23 = vrot.slane %v460_v16, 4  ;;  %v18680_v16 = vld [vmem:[#allocation7 + $0x98] sm:$0xff]  }
  0xe8   : > { %16685 = vmatprep.subr.bf16.mxu0 %v18655_v42 }
  0xe9   : > { %16712 = vmatpush3.bf16.msra.mxu1 %v18654_v30  ;;  %v19986_v30 = vld [vmem:[#allocation2 + $0x30] sm:$0xf0]  ;;  %464 = vst [vmem:[#allocation2 + $0x68] ss:$-4 sps:$4 sm:$0xff] %v462_v23  }
  0xea   : > { %16713 = vmatprep.subr.bf16.mxu1 %v18656_v48  ;;  %v2408_v28 = vrot.slane %v19986_v30, 4  ;;  %v2766_v12 = vshll.u32 %v19986_v30, 16 }
  0xeb   : > { %16686 = vmatpush3.bf16.msra.mxu0 %v18655_v42  ;;  %v2158_v42 = vsel %vm968_vm2, %v2154_v27, %v19807_v1  ;;  %v18670_v1 = vld [vmem:[#allocation7 + $0x70] sm:$0xff]  }
  0xec   : > { %16727 = vmatprep.subr.bf16.mxu0 %v18657_v50 }
  0xed   : > { %16714 = vmatpush3.bf16.msra.mxu1 %v18656_v48  ;;  %v18668_v48 = vld [vmem:[#allocation7 + $0x68] sm:$0xff]  }
  0xee   : > { %16688 = vmatmul.mubr.bf16.vlgmr.msra.gmra.mrb[36].mxu0 %v19773_v4  ;;  %16755 = vmatprep.subr.bf16.mxu1 %v18658_v53  ;;  %v19955_v4 = vrot.slane %v19825_v22, 4  ;;  %v1810_v22 = vrot.slane %v1808_v10, 4  ;;  %v2176_v10 = vshrl.u32 %v2129_v54, 16 }
  0xef   : > { %16728 = vmatpush3.bf16.msra.mxu0 %v18657_v50  ;;  %16691 = vmatprep.mubr.bf16.mxu0 %v1785_v58  ;;  %v18669_v50 = vld [vmem:[#allocation7 + $0x230] sm:$0xff]   ;;  %v18675_v58 = vld [vmem:[#allocation7 + $0x8] sm:$0xff]  }
  0xf0   : > { %16729 = vmatprep.subr.bf16.mxu0 %v18659_v21  ;;  %16716 = vmatmul.mubr.bf16.vlgmr.msra.gmra.mrb[36].mxu1 %v19753_v43  ;;  %v18662_v43 = vld [vmem:[#allocation7 + $0x50] sm:$0xff]   ;;  %v1985_v20 = vsel %vm611_vm0, %v1982_v26, %v19955_v4  ;;  %v1811_v33 = vor.u32 %v1810_v22, %v1807_v34  ;;  %v19981_v0 = vsel %vm611_vm0, %v19955_v4, %v19968_v39  ;;  %v18673_v26 = vld [vmem:[#allocation7] sm:$0xff]   ;;  %v18679_v34 = vld [vmem:[#allocation7 + $0x18] sm:$0xff]   ;;  %v2178_v55 = vrot.slane %v2176_v10, 4 }
  0xf1   : > { %16756 = vmatpush3.bf16.msra.mxu1 %v18658_v53  ;;  %16719 = vmatprep.mubr.bf16.mxu1 %v1983_v52  ;;  %v2410_v8 = vsel %vm611_vm0, %v2408_v28, %v19955_v4  ;;  %v18671_v53 = vld [vmem:[#allocation7 + $0x238] sm:$0xff]   ;;  %v466_v52 = vld [vmem:[%s19588_s12 + $0x80] sm:$0xff]  ;;  %v2179_v4 = vshll.u32 %v2129_v54, 16  ;;  %v2414_v22 = vsel %vm611_vm0, %v19968_v39, %v2413_v18  ;;  %v18683_v28 = vld [vmem:[#allocation7 + $0x28] sm:$0xff]   ;;  %v20051_v54 = vshrl.u32 %v20004_v63, 16 }
  0xf2   : > { %16757 = vmatprep.subr.bf16.mxu1 %v18660_v45  ;;  %v1812_v15 = vsel %vm756_vm1, %v19959_v57, %v1811_v33  ;;  %v468_v3 = vmul.f32 %v19916_v7, %v466_v52 }
  0xf3   : > { %16730 = vmatpush3.bf16.msra.mxu0 %v18659_v21  ;;  %v18672_v21 = vld [vmem:[#allocation7 + $0x78] sm:$0xff]  }
  0xf4   : > { %16731 = vmatprep.subr.bf16.mxu0 %v18661_v46  ;;  %v470_v44 = vadd.f32 %v19903_v17, %v468_v3 }
  0xf5   : > { %16758 = vmatpush3.bf16.msra.mxu1 %v18660_v45  ;;  %v2361_v45 = vld [vmem:[#allocation2 + $0x30] sm:$0xf8] }
  0xf6   : > { %16692 = vmatmul.mubr.bf16.gmra.mrb[40].mxu0 %v1794_v29  ;;  %16759 = vmatprep.subr.bf16.mxu1 %v18662_v43  ;;  %v2553_v35 = vshrl.u32 %v2361_v45, 16  ;;  %v2556_v5 = vshll.u32 %v2361_v45, 16  ;;  %v18678_v29 = vld [vmem:[#allocation7 + $0x90] sm:$0xff]   ;;  %v472_v13 = vmax.f32 %v470_v44, 0.0  ;;  %v20060_v45 = vshll.u32 %v19928_v25, 16 }
  0xf7   : > { %16732 = vmatpush3.bf16.msra.mxu0 %v18661_v46  ;;  %16695 = vmatprep.mubr.bf16.mxu0 %v19973_v11  ;;  %v18676_v46 = vld [vmem:[#allocation7 + $0x88] sm:$0xff]  }
  0xf8   : > { %16733 = vmatprep.subr.bf16.mxu0 %v18663_v6  ;;  %16720 = vmatmul.mubr.bf16.gmra.mrb[40].mxu1 %v1985_v20  ;;  %v2555_v40 = vrot.slane %v2553_v35, 3  ;;  %v2417_v20 = vrot.slane %v19928_v25, 4  ;;  %v2558_v33 = vrot.slane %v2556_v5, 4  ;;  %v2590_v35 = vrot.slane %v20051_v54, 3 }
  0xf9   : > { %16760 = vmatpush3.bf16.msra.mxu1 %v18662_v43  ;;  %16723 = vmatprep.mubr.bf16.mxu1 %v19981_v0  ;;  %v2415_v43 = vrot.slane %v20004_v63, 4 }
  0xfa   : > { %16761 = vmatprep.subr.bf16.mxu1 %v18664_v9  ;;  %v2559_v27 = vor.u32 %v2558_v33, %v2555_v40 }
  0xfb   : > { %16734 = vmatpush3.bf16.msra.mxu0 %v18663_v6  ;;  %v471_v6 = vadd.f32 %v19903_v17, %v469_v51  ;;  %v2418_v36 = vsel %vm611_vm0, %v2415_v43, %v2417_v20 }
  0xfc   : > { %16735 = vmatprep.subr.bf16.mxu0 %v18665_v37 }
  0xfd   : > { %16762 = vmatpush3.bf16.msra.mxu1 %v18664_v9  ;;  %v2763_v9 = vshrl.u32 %v19986_v30, 16  ;;  %v473_v14 = vmax.f32 %v471_v6, 0.0  ;;  %v2768_v30 = vrot.slane %v2766_v12, 5 }
  0xfe   : > { %16696 = vmatmul.mubr.bf16.gmra.mrb[44].mxu0 %v1812_v15  ;;  %16763 = vmatprep.subr.bf16.mxu1 %v18666_v24 }
  0xff   : > { %16736 = vmatpush3.bf16.msra.mxu0 %v18665_v37  ;;  %16743 = vmatprep.mubr.bf16.mxu0 %v2158_v42  ;;  %v20028_v37 = vpack.c.bf16 %v473_v14, %v472_v13  ;;  %v2765_v15 = vrot.slane %v2763_v9, 4  ;;  %v18682_v42 = vld [vmem:[#allocation7 + $0xa0] sm:$0xff]   ;;  %v2602_v9 = vrot.slane %v20060_v45, 4  ;;  %v18692_v14 = vld [vmem:[#allocation7 + $0x108] sm:$0xff]  }
 0x100   : > { %16737 = vmatprep.subr.bf16.mxu0 %v18667_v60  ;;  %16724 = vmatmul.mubr.bf16.gmra.mrb[44].mxu1 %v1989_v47 }
 0x101   : > { %16764 = vmatpush3.bf16.msra.mxu1 %v18666_v24  ;;  %16771 = vmatprep.mubr.bf16.mxu1 %v2410_v8  ;;  %v2416_v24 = vsel %vm611_vm0, %v2413_v18, %v2415_v43  ;;  %475 = vst [vmem:[#allocation2 + $0x70] sm:$0xff] %v20028_v37  ;;  %v18684_v8 = vld [vmem:[#allocation7 + $0xa8] sm:$0xff]   ;;  %v477_v18 = vld [vmem:[%s19588_s12 + $0x98] sm:$0xff] }
 0x102   : > { %16765 = vmatprep.subr.bf16.mxu1 %v18668_v48  ;;  %v479_v52 = vmul.f32 %v19916_v7, %v477_v18  ;;  %v18691_v43 = vld [vmem:[#allocation7 + $0xc8] sm:$0xff]  }
 0x103   : > { %16738 = vmatpush3.bf16.msra.mxu0 %v18667_v60 }
 0x104   : > { %16739 = vmatprep.subr.bf16.mxu0 %v18669_v50  ;;  %v481_v5 = vadd.f32 %v19903_v17, %v479_v52 }
 0x105   : > { %16766 = vmatpush3.bf16.msra.mxu1 %v18668_v48  ;;  %v2568_v48 = vsel %vm756_vm1, %v2559_v27, %v19897_v61  ;;  %v20088_v27 = vld [vmem:[#allocation2 + $0x40] sm:$0xff] }
 0x106   : > { %16767 = vmatprep.subr.bf16.mxu1 %v18670_v1 }
 0x107   : > { %16740 = vmatpush3.bf16.msra.mxu0 %v18669_v50  ;;  %v2769_v50 = vor.u32 %v2768_v30, %v2765_v15  ;;  %v18694_v30 = vld [vmem:[#allocation7 + $0x110] sm:$0xff]  }
 0x108   : > { %16741 = vmatprep.subr.bf16.mxu0 %v18671_v53 }
 0x109   : > { %16768 = vmatpush3.bf16.msra.mxu1 %v18670_v1  ;;  %v2773_v61 = vsel %vm968_vm2, %v2769_v50, %v19880_v41 }
 0x10a   : > { %16769 = vmatprep.subr.bf16.mxu1 %v18672_v21 }
 0x10b   : > { %16742 = vmatpush3.bf16.msra.mxu0 %v18671_v53  ;;  %v18685_v53 = vld [vmem:[#allocation7 + $0x30] sm:$0xff]  }
 0x10c   : > { %16783 = vmatprep.subr.bf16.mxu0 %v18673_v26 }
 0x10d   : > { %16770 = vmatpush3.bf16.msra.mxu1 %v18672_v21  ;;  %v20043_v21 = vshrl.u32 %v19996_v19, 16 }
 0x10e   : > { %16744 = vmatmul.mubr.bf16.vlgmr.msra.gmra.mrb[48].mxu0 %v19837_v31  ;;  %16811 = vmatprep.subr.bf16.mxu1 %v18674_v56  ;;  %v20011_v31 = vor.u32 %v2172_v62, %v2171_v59  ;;  %v18687_v59 = vld [vmem:[#allocation7 + $0x38] sm:$0xff]   ;;  %v20057_v62 = vshrl.u32 %v19928_v25, 16 }
 0x10f   : > { %16784 = vmatpush3.bf16.msra.mxu0 %v18673_v26  ;;  %16747 = vmatprep.mubr.bf16.mxu0 %v19878_v38  ;;  %v2181_v38 = vrot.slane %v2179_v4, 5  ;;  %v20046_v26 = vshll.u32 %v19996_v19, 16  ;;  %v18688_v4 = vld [vmem:[#allocation7 + $0xb8] sm:$0xff]   ;;  %v2581_v3 = vrot.slane %v20043_v21, 3 }
 0x110   : > { %16785 = vmatprep.subr.bf16.mxu0 %v18675_v58  ;;  %16772 = vmatmul.mubr.bf16.vlgmr.msra.gmra.mrb[48].mxu1 %v19981_v0  ;;  %v20025_v39 = vsel %vm968_vm2, %v19880_v41, %v20011_v31  ;;  %v18681_v0 = vld [vmem:[#allocation7 + $0x20] sm:$0xff]   ;;  %v2599_v6 = vrot.slane %v20057_v62, 3 }
 0x111   : > { %16812 = vmatpush3.bf16.msra.mxu1 %v18674_v56  ;;  %16775 = vmatprep.mubr.bf16.mxu1 %v2414_v22  ;;  %v2182_v23 = vor.u32 %v2181_v38, %v2178_v55  ;;  %v20054_v56 = vshll.u32 %v20004_v63, 16  ;;  %v2779_v44 = vrot.slane %v20046_v26, 5  ;;  %v18690_v55 = vld [vmem:[#allocation7 + $0x100] sm:$0xff]  }
 0x112   : > { %16813 = vmatprep.subr.bf16.mxu1 %v18676_v46 }
 0x113   : > { %16786 = vmatpush3.bf16.msra.mxu0 %v18675_v58  ;;  %v2183_v60 = vsel %vm968_vm2, %v20011_v31, %v2182_v23  ;;  %v18686_v58 = vld [vmem:[#allocation7 + $0xb0] sm:$0xff]   ;;  %v2593_v25 = vrot.slane %v20054_v56, 4  ;;  %v2783_v40 = vrot.slane %v20054_v56, 5 }
 0x114   : > { %16787 = vmatprep.subr.bf16.mxu0 %v18677_v32 }
 0x115   : > { %16814 = vmatpush3.bf16.msra.mxu1 %v18676_v46  ;;  %v476_v46 = vld [vmem:[%s19588_s12 + $0x90] sm:$0xff]  ;;  %v20084_v33 = vor.u32 %v2593_v25, %v2590_v35 }
 0x116   : > { %16748 = vmatmul.mubr.bf16.gmra.mrb[52].mxu0 %v19887_v49  ;;  %16815 = vmatprep.subr.bf16.mxu1 %v18678_v29  ;;  %v20031_v49 = vld [vmem:[#allocation2 + $0x60] sm:$0xf]  ;;  %v478_v10 = vmul.f32 %v19916_v7, %v476_v46  ;;  %v2778_v7 = vrot.slane %v20043_v21, 4 }
 0x117   : > { %16788 = vmatpush3.bf16.msra.mxu0 %v18677_v32  ;;  %16751 = vmatprep.mubr.bf16.mxu0 %v20025_v39  ;;  %v2419_v47 = vrot.slane %v20031_v49, 4  ;;  %v2606_v41 = vshrl.u32 %v20031_v49, 16  ;;  %v2584_v32 = vrot.slane %v20046_v26, 4 }
 0x118   : > { %16789 = vmatprep.subr.bf16.mxu0 %v18679_v34  ;;  %16776 = vmatmul.mubr.bf16.gmra.mrb[52].mxu1 %v2416_v24  ;;  %v480_v51 = vadd.f32 %v19903_v17, %v478_v10  ;;  %v2782_v17 = vrot.slane %v20051_v54, 4  ;;  %v2780_v23 = vor.u32 %v2779_v44, %v2778_v7  ;;  %v2609_v24 = vshll.u32 %v20031_v49, 16  ;;  %v18698_v7 = vld [vmem:[#allocation7 + $0x120] sm:$0xff]   ;;  %v18699_v44 = vld [vmem:[#allocation7 + $0xe8] sm:$0xff]  }
 0x119   : > { %16816 = vmatpush3.bf16.msra.mxu1 %v18678_v29  ;;  %16779 = vmatprep.mubr.bf16.mxu1 %v2418_v36  ;;  %v2420_v1 = vsel %vm611_vm0, %v2417_v20, %v2419_v47  ;;  %v2585_v22 = vor.u32 %v2584_v32, %v2581_v3  ;;  %v20076_v38 = vrot.slane %v2606_v41, 3  ;;  %v2786_v36 = vrot.slane %v20057_v62, 4  ;;  %v490_v3 = vld [vmem:[%s19588_s12 + $0xa0] sm:$0xff]  ;;  %v491_v32 = vld [vmem:[%s19588_s12 + $0xa8] sm:$0xff] }
 0x11a   : > { %16817 = vmatprep.subr.bf16.mxu1 %v18680_v16  ;;  %v482_v29 = vmax.f32 %v480_v51, 0.0  ;;  %v20090_v15 = vor.u32 %v2783_v40, %v2782_v17  ;;  %v2966_v47 = vshrl.u32 %v20088_v27, 16  ;;  %v20132_v51 = vld [vmem:[%s22778_s1] ss:$0 sm:$0xff]  ;;  %v18701_v17 = vld [vmem:[#allocation7 + $0xf0] sm:$0xff]  }
 0x11b   : > { %16790 = vmatpush3.bf16.msra.mxu0 %v18679_v34  ;;  %v483_v34 = vmax.f32 %v481_v5, 0.0  ;;  %v2586_v20 = vsel %vm756_vm1, %v19959_v57, %v2585_v22  ;;  %v20092_v57 = vor.u32 %v2602_v9, %v2599_v6  ;;  %v2595_v49 = vsel %vm756_vm1, %v2585_v22, %v20084_v33 }
 0x11c   : > { %16791 = vmatprep.subr.bf16.mxu0 %v18681_v0  ;;  %v2785_v41 = vsel %vm968_vm2, %v2780_v23, %v20090_v15  ;;  %v492_v5 = vmul.f32 %v20132_v51, %v490_v3  ;;  %v3515_v3 = vld [vmem:[#allocation2 + $0x48] sm:$0xf8] }
 0x11d   : > { %16818 = vmatpush3.bf16.msra.mxu1 %v18680_v16  ;;  %v484_v13 = vpack.c.bf16 %v483_v34, %v482_v29  ;;  %v18693_v16 = vld [vmem:[#allocation7 + $0xd0] sm:$0xff]   ;;  %v493_v29 = vmul.f32 %v20132_v51, %v491_v32  ;;  %v20140_v34 = vld [vmem:[%s22779_s2] ss:$0 sm:$0xff] }
 0x11e   : > { %16752 = vmatmul.mubr.bf16.gmra.mrb[56].mxu0 %v2183_v60  ;;  %16819 = vmatprep.subr.bf16.mxu1 %v18682_v42  ;;  %v2781_v60 = vsel %vm968_vm2, %v20011_v31, %v2780_v23  ;;  %v20104_v31 = vsel %vm756_vm1, %v20084_v33, %v20092_v57  ;;  %v494_v22 = vadd.f32 %v20140_v34, %v492_v5  ;;  %v18705_v23 = vld [vmem:[#allocation7 + $0x140] sm:$0xff]  }
 0x11f   : > { %16792 = vmatpush3.bf16.msra.mxu0 %v18681_v0  ;;  %16799 = vmatprep.mubr.bf16.mxu0 %v2568_v48  ;;  %v486_v12 = vrot.slane %v484_v13, 4  ;;  %v2938_v0 = vld [vmem:[#allocation2 + $0x38] sm:$0x80]  ;;  %v2611_v48 = vrot.slane %v2609_v24, 4  ;;  %v2984_v24 = vrot.slane %v20051_v54, 7 }
 0x120   : > { %16793 = vmatprep.subr.bf16.mxu0 %v18683_v28  ;;  %16780 = vmatmul.mubr.bf16.gmra.mrb[56].mxu1 %v2420_v1  ;;  %v2962_v1 = vshrl.u32 %v2938_v0, 16  ;;  %v496_v13 = vmax.f32 %v494_v22, 0.0  ;;  %v18710_v22 = vld [vmem:[#allocation7 + $0x190] sm:$0xff]  }
 0x121   : > { %16820 = vmatpush3.bf16.msra.mxu1 %v18682_v42  ;;  %16827 = vmatprep.mubr.bf16.mxu1 %v2773_v61  ;;  %488 = vst [vmem:[#allocation2 + $0x80] ss:$-4 sps:$4 sm:$0xff] %v486_v12   ;;  %v18695_v42 = vld [vmem:[#allocation7 + $0xd8] sm:$0xff]   ;;  %v2612_v46 = vor.u32 %v2611_v48, %v20076_v38  ;;  %v18700_v38 = vld [vmem:[#allocation7 + $0x128] sm:$0xff]   ;;  %v18702_v12 = vld [vmem:[#allocation7 + $0x130] sm:$0xff]  }
 0x122   : > { %16821 = vmatprep.subr.bf16.mxu1 %v18684_v8  ;;  %v18706_v48 = vld [vmem:[#allocation7 + $0x180] sm:$0xff]  }
 0x123   : > { %16794 = vmatpush3.bf16.msra.mxu0 %v18683_v28  ;;  %v2787_v28 = vrot.slane %v20060_v45, 5  ;;  %v2613_v35 = vsel %vm756_vm1, %v20092_v57, %v2612_v46 }
 0x124   : > { %16795 = vmatprep.subr.bf16.mxu0 %v18685_v53 }
 0x125   : > { %16822 = vmatpush3.bf16.msra.mxu1 %v18684_v8  ;;  %v20106_v61 = vor.u32 %v2787_v28, %v2786_v36  ;;  %v20151_v36 = vld [vmem:[#allocation2 + $0x60] sm:$0xff] }
 0x126   : > { %16823 = vmatprep.subr.bf16.mxu1 %v18686_v58 }
 0x127   : > { %16796 = vmatpush3.bf16.msra.mxu0 %v18685_v53  ;;  %v18697_v53 = vld [vmem:[#allocation7 + $0xe0] sm:$0xff]   ;;  %v20120_v52 = vsel %vm968_vm2, %v20090_v15, %v20106_v61 }
 0x128   : > { %16797 = vmatprep.subr.bf16.mxu0 %v18687_v59 }
 0x129   : > { %16824 = vmatpush3.bf16.msra.mxu1 %v18686_v58  ;;  %v20110_v58 = vrot.slane %v2966_v47, 7 }
 0x12a   : > { %16825 = vmatprep.subr.bf16.mxu1 %v18688_v4 }
 0x12b   : > { %16798 = vmatpush3.bf16.msra.mxu0 %v18687_v59  ;;  %v2969_v59 = vshll.u32 %v20088_v27, 16 }
 0x12c   : > { %16839 = vmatprep.subr.bf16.mxu0 %v18689_v2 }
 0x12d   : > { %16826 = vmatpush3.bf16.msra.mxu1 %v18688_v4  ;;  %v2964_v4 = vrot.slane %v2962_v1, 7 }
 0x12e   : > { %16800 = vmatmul.mubr.bf16.vlgmr.msra.gmra.mrb[60].mxu0 %v19973_v11  ;;  %16867 = vmatprep.subr.bf16.mxu1 %v18690_v55  ;;  %v2745_v11 = vld [vmem:[#allocation2 + $0x60] sm:$0x1f] }
 0x12f   : > { %16840 = vmatpush3.bf16.msra.mxu0 %v18689_v2  ;;  %16803 = vmatprep.mubr.bf16.mxu0 %v2586_v20  ;;  %v2791_v50 = vshrl.u32 %v2745_v11, 16  ;;  %v2794_v8 = vshll.u32 %v2745_v11, 16  ;;  %v2971_v2 = vor.u32 %v2969_v59, %v20110_v58  ;;  %v18703_v20 = vld [vmem:[#allocation7 + $0xf8] sm:$0xff]   ;;  %v2987_v11 = vor.u32 %v2984_v24, %v20054_v56 }
 0x130   : > { %16841 = vmatprep.subr.bf16.mxu0 %v18691_v43  ;;  %16828 = vmatmul.mubr.bf16.vlgmr.msra.gmra.mrb[60].mxu1 %v20025_v39  ;;  %v18696_v39 = vld [vmem:[#allocation7 + $0x118] sm:$0xff]  }
 0x131   : > { %16868 = vmatpush3.bf16.msra.mxu1 %v18690_v55  ;;  %16831 = vmatprep.mubr.bf16.mxu1 %v2781_v60  ;;  %v2793_v18 = vrot.slane %v2791_v50, 4  ;;  %v2796_v10 = vrot.slane %v2794_v8, 5  ;;  %v2972_v55 = vsel %vm1169_vm3, %v2964_v4, %v2971_v2  ;;  %v500_v60 = vld [vmem:[%s19588_s12 + $0xb0] sm:$0xff]  ;;  %v18707_v50 = vld [vmem:[#allocation7 + $0x148] sm:$0xff]   ;;  %v20175_v2 = vshll.u32 %v20151_v36, 16 }
 0x132   : > { %16869 = vmatprep.subr.bf16.mxu1 %v18692_v14  ;;  %v502_v8 = vmul.f32 %v20132_v51, %v500_v60  ;;  %v18715_v60 = vld [vmem:[#allocation7 + $0x168] sm:$0xff]  }
 0x133   : > { %16842 = vmatpush3.bf16.msra.mxu0 %v18691_v43  ;;  %v2797_v25 = vor.u32 %v2796_v10, %v2793_v18  ;;  %v495_v43 = vadd.f32 %v20140_v34, %v493_v29  ;;  %v18708_v18 = vld [vmem:[#allocation7 + $0x188] sm:$0xff]  }
 0x134   : > { %16843 = vmatprep.subr.bf16.mxu0 %v18693_v16 }
 0x135   : > { %16870 = vmatpush3.bf16.msra.mxu1 %v18692_v14  ;;  %v2798_v6 = vsel %vm968_vm2, %v20106_v61, %v2797_v25  ;;  %v497_v40 = vmax.f32 %v495_v43, 0.0  ;;  %v2976_v14 = vrot.slane %v20043_v21, 7 }
 0x136   : > { %16804 = vmatmul.mubr.bf16.gmra.mrb[64].mxu0 %v2595_v49  ;;  %16871 = vmatprep.subr.bf16.mxu1 %v18694_v30  ;;  %v2992_v49 = vrot.slane %v20057_v62, 7 }
 0x137   : > { %16844 = vmatpush3.bf16.msra.mxu0 %v18693_v16  ;;  %16807 = vmatprep.mubr.bf16.mxu0 %v20104_v31  ;;  %v498_v9 = vpack.c.bf16 %v497_v40, %v496_v13  ;;  %v18704_v16 = vld [vmem:[#allocation7 + $0x138] sm:$0xff]   ;;  %v2979_v0 = vor.u32 %v2976_v14, %v20046_v26  ;;  %v3542_v40 = vshll.u32 %v3515_v3, 16 }
 0x138   : > { %16845 = vmatprep.subr.bf16.mxu0 %v18695_v42  ;;  %16832 = vmatmul.mubr.bf16.gmra.mrb[64].mxu1 %v2785_v41  ;;  %v504_v41 = vadd.f32 %v20140_v34, %v502_v8  ;;  %v2995_v10 = vor.u32 %v2992_v49, %v20060_v45  ;;  %v18718_v8 = vld [vmem:[#allocation7 + $0x1b0] sm:$0xff]  }
 0x139   : > { %16872 = vmatpush3.bf16.msra.mxu1 %v18694_v30  ;;  %16835 = vmatprep.mubr.bf16.mxu1 %v20120_v52  ;;  %499 = vst [vmem:[#allocation2 + $0x88] sm:$0xff] %v498_v9  ;;  %v20156_v30 = vshrl.u32 %v20151_v36, 16  ;;  %v2980_v28 = vsel %vm1169_vm3, %v20110_v58, %v2979_v0  ;;  %v2988_v58 = vsel %vm1169_vm3, %v2976_v14, %v2987_v11  ;;  %v18712_v14 = vld [vmem:[#allocation7 + $0x198] sm:$0xff]  }
 0x13a   : > { %16873 = vmatprep.subr.bf16.mxu1 %v18696_v39  ;;  %v506_v5 = vmax.f32 %v504_v41, 0.0  ;;  %v2996_v43 = vsel %vm1169_vm3, %v2984_v24, %v2995_v10  ;;  %v20202_v0 = vld [vmem:[#allocation2 + $0x58] sm:$0xff] }
 0x13b   : > { %16846 = vmatpush3.bf16.msra.mxu0 %v18695_v42  ;;  %v501_v42 = vld [vmem:[%s19588_s12 + $0xb8] sm:$0xff]  ;;  %v3000_v4 = vrot.slane %v20156_v30, 7 }
 0x13c   : > { %16847 = vmatprep.subr.bf16.mxu0 %v18697_v53  ;;  %v503_v1 = vmul.f32 %v20132_v51, %v501_v42 }
 0x13d   : > { %16874 = vmatpush3.bf16.msra.mxu1 %v18696_v39  ;;  %v20164_v39 = vld [vmem:[#allocation2 + $0x68] sm:$0xff] }
 0x13e   : > { %16808 = vmatmul.mubr.bf16.gmra.mrb[68].mxu0 %v2613_v35  ;;  %16875 = vmatprep.subr.bf16.mxu1 %v18698_v7  ;;  %v505_v46 = vadd.f32 %v20140_v34, %v503_v1  ;;  %v20178_v32 = vshrl.u32 %v20164_v39, 16  ;;  %v20181_v35 = vshll.u32 %v20028_v37, 16  ;;  %v20194_v13 = vshll.u32 %v20164_v39, 16  ;;  %v18719_v1 = vld [vmem:[#allocation7 + $0x178] sm:$0xff]  }
 0x13f   : > { %16848 = vmatpush3.bf16.msra.mxu0 %v18697_v53  ;;  %16855 = vmatprep.mubr.bf16.mxu0 %v2972_v55  ;;  %v20167_v53 = vshrl.u32 %v20028_v37, 16  ;;  %v3003_v55 = vor.u32 %v20175_v2, %v3000_v4 }
 0x140   : > { %16849 = vmatprep.subr.bf16.mxu0 %v18699_v44  ;;  %16836 = vmatmul.mubr.bf16.gmra.mrb[68].mxu1 %v2798_v6  ;;  %v18711_v6 = vld [vmem:[#allocation7 + $0x158] sm:$0xff]  }
 0x141   : > { %16876 = vmatpush3.bf16.msra.mxu1 %v18698_v7  ;;  %16883 = vmatprep.mubr.bf16.mxu1 %v20088_v27  ;;  %v4747_v25 = vrot.slane %v20167_v53, 7  ;;  %v18709_v7 = vld [vmem:[#allocation7 + $0x150] sm:$0xff]   ;;  %v18716_v27 = vld [vmem:[#allocation7 + $0x1a8] sm:$0xff]  }
 0x142   : > { %16877 = vmatprep.subr.bf16.mxu1 %v18700_v38 }
 0x143   : > { %16850 = vmatpush3.bf16.msra.mxu0 %v18699_v44  ;;  %v507_v44 = vmax.f32 %v505_v46, 0.0  ;;  %v20187_v29 = vor.u32 %v4747_v25, %v20181_v35 }
 0x144   : > { %16851 = vmatprep.subr.bf16.mxu0 %v18701_v17 }
 0x145   : > { %16878 = vmatpush3.bf16.msra.mxu1 %v18700_v38  ;;  %v508_v37 = vpack.c.bf16 %v507_v44, %v506_v5  ;;  %v3008_v38 = vrot.slane %v20178_v32, 7  ;;  %v18720_v44 = vld [vmem:[#allocation7 + $0x1b8] sm:$0xff]  }
 0x146   : > { %16879 = vmatprep.subr.bf16.mxu1 %v18702_v12 }
 0x147   : > { %16852 = vmatpush3.bf16.msra.mxu0 %v18701_v17  ;;  %v3539_v17 = vshrl.u32 %v3515_v3, 16  ;;  %v510_v9 = vrot.slane %v508_v37, 4 }
 0x148   : > { %16853 = vmatprep.subr.bf16.mxu0 %v18703_v20 }
 0x149   : > { %16880 = vmatpush3.bf16.msra.mxu1 %v18702_v12  ;;  %v3329_v12 = vrot.slane %v2969_v59, 1  ;;  %512 = vst [vmem:[#allocation2 + $0x98] ss:$-4 sps:$4 sm:$0xff] %v510_v9   ;;  %v3541_v24 = vrot.slane %v3539_v17, 3  ;;  %v3567_v17 = vrot.slane %v20156_v30, 3  ;;  %v3579_v9 = vrot.slane %v20194_v13, 4 }
 0x14a   : > { %16881 = vmatprep.subr.bf16.mxu1 %v18704_v16 }
 0x14b   : > { %16854 = vmatpush3.bf16.msra.mxu0 %v18703_v20  ;;  %v3011_v20 = vor.u32 %v20194_v13, %v3008_v38  ;;  %v3330_v59 = vor.u32 %v3329_v12, %v2966_v47  ;;  %v18717_v47 = vld [vmem:[#allocation7 + $0x170] sm:$0xff]   ;;  %v3358_v12 = vrot.slane %v20175_v2, 1 }
 0x14c   : > { %16895 = vmatprep.subr.bf16.mxu0 %v18705_v23 }
 0x14d   : > { %16882 = vmatpush3.bf16.msra.mxu1 %v18704_v16  ;;  %v18713_v16 = vld [vmem:[#allocation7 + $0x160] sm:$0xff]   ;;  %v3012_v11 = vsel %vm1169_vm3, %v3000_v4, %v3011_v20 }
 0x14e   : > { %16856 = vmatmul.mubr.bf16.vlgmr.msra.gmra.mrb[72].mxu0 %v2980_v28  ;;  %16923 = vmatprep.subr.bf16.mxu1 %v18706_v48 }
 0x14f   : > { %16896 = vmatpush3.bf16.msra.mxu0 %v18705_v23  ;;  %16859 = vmatprep.mubr.bf16.mxu0 %v2988_v58  ;;  %v3334_v23 = vrot.slane %v20046_v26, 1 }
 0x150   : > { %16897 = vmatprep.subr.bf16.mxu0 %v18707_v50  ;;  %16884 = vmatmul.mubr.bf16.vlgmr.msra.gmra.mrb[72].mxu1 %v19996_v19  ;;  %v3004_v19 = vsel %vm1169_vm3, %v2992_v49, %v3003_v55  ;;  %v18714_v49 = vld [vmem:[#allocation7 + $0x1a0] sm:$0xff]   ;;  %v3350_v55 = vrot.slane %v20060_v45, 1  ;;  %v3576_v45 = vrot.slane %v20178_v32, 3 }
 0x151   : > { %16924 = vmatpush3.bf16.msra.mxu1 %v18706_v48  ;;  %16887 = vmatprep.mubr.bf16.mxu1 %v20004_v63  ;;  %v3544_v63 = vrot.slane %v3542_v40, 4  ;;  %v3335_v26 = vsel %vm1535_vm4, %v3330_v59, %v3334_v23  ;;  %v3338_v37 = vor.u32 %v3334_v23, %v20043_v21  ;;  %v3570_v40 = vrot.slane %v20175_v2, 4  ;;  %v20228_v21 = vld [vmem:[#allocation2 + $0x78] sm:$0xf]  ;;  %v3307_v23 = vld [vmem:[#allocation2 + $0x70] sm:$0x1] }
 0x152   : > { %16925 = vmatprep.subr.bf16.mxu1 %v18708_v18  ;;  %v3592_v59 = vshrl.u32 %v20228_v21, 16 }
 0x153   : > { %16898 = vmatpush3.bf16.msra.mxu0 %v18707_v50  ;;  %v3545_v42 = vor.u32 %v3544_v63, %v3541_v24  ;;  %v3571_v20 = vor.u32 %v3570_v40, %v3567_v17  ;;  %v3362_v24 = vor.u32 %v3358_v12, %v20156_v30  ;;  %v3366_v63 = vrot.slane %v20194_v13, 1 }
 0x154   : > { %16899 = vmatprep.subr.bf16.mxu0 %v18709_v7 }
 0x155   : > { %16926 = vmatpush3.bf16.msra.mxu1 %v18708_v18  ;;  %v3554_v41 = vsel %vm756_vm1, %v3545_v42, %v20084_v33  ;;  %v18721_v33 = vld [vmem:[#allocation7 + $0x1c0] sm:$0xff]   ;;  %v3595_v42 = vshll.u32 %v20228_v21, 16 }
 0x156   : > { %16860 = vmatmul.mubr.bf16.gmra.mrb[76].mxu0 %v2996_v43  ;;  %16927 = vmatprep.subr.bf16.mxu1 %v18710_v22  ;;  %v18722_v43 = vld [vmem:[#allocation7 + $0x200] sm:$0xff]  }
 0x157   : > { %16900 = vmatpush3.bf16.msra.mxu0 %v18709_v7  ;;  %16863 = vmatprep.mubr.bf16.mxu0 %v3004_v19 }
 0x158   : > { %16901 = vmatprep.subr.bf16.mxu0 %v18711_v6  ;;  %16888 = vmatmul.mubr.bf16.gmra.mrb[76].mxu1 %v20202_v0 }
 0x159   : > { %16928 = vmatpush3.bf16.msra.mxu1 %v18710_v22  ;;  %16891 = vmatprep.mubr.bf16.mxu1 %v20151_v36  ;;  %v3342_v22 = vrot.slane %v20054_v56, 1 }
 0x15a   : > { %16929 = vmatprep.subr.bf16.mxu1 %v18712_v14 }
 0x15b   : > { %16902 = vmatpush3.bf16.msra.mxu0 %v18711_v6  ;;  %v18723_v6 = vld [vmem:[#allocation7 + $0x1c8] sm:$0xff]   ;;  %v3346_v38 = vor.u32 %v3342_v22, %v20051_v54  ;;  %v3343_v56 = vsel %vm1535_vm4, %v3338_v37, %v3342_v22 }
 0x15c   : > { %16903 = vmatprep.subr.bf16.mxu0 %v18713_v16  ;;  %v18724_v54 = vld [vmem:[#allocation7 + $0x208] sm:$0xff]  }
 0x15d   : > { %16930 = vmatpush3.bf16.msra.mxu1 %v18712_v14  ;;  %v3351_v19 = vsel %vm1535_vm4, %v3346_v38, %v3350_v55  ;;  %v18725_v14 = vld [vmem:[#allocation7 + $0x1d0] sm:$0xff]   ;;  %v18728_v38 = vld [vmem:[#allocation7 + $0x218] sm:$0xff]  }
 0x15e   : > { %16864 = vmatmul.mubr.bf16.gmra.mrb[80].mxu0 %v3012_v11  ;;  %16931 = vmatprep.subr.bf16.mxu1 %v18714_v49  ;;  %v514_v11 = vld [vmem:[%s19588_s12 + $0xc0] sm:$0xff] }
 0x15f   : > { %16904 = vmatpush3.bf16.msra.mxu0 %v18713_v16  ;;  %16911 = vmatprep.mubr.bf16.mxu0 %v3335_v26  ;;  %v3354_v16 = vor.u32 %v3350_v55, %v20057_v62  ;;  %v20238_v26 = vor.u32 %v3579_v9, %v3576_v45  ;;  %v516_v62 = vmul.f32 %v20132_v51, %v514_v11 }
 0x160   : > { %16905 = vmatprep.subr.bf16.mxu0 %v18715_v60  ;;  %16892 = vmatmul.mubr.bf16.gmra.mrb[80].mxu1 %v20164_v39  ;;  %v3370_v9 = vor.u32 %v3366_v63, %v20178_v32 }
 0x161   : > { %v16521_v28 = vpop.f32.mrb[0].mxu0  ;;  %16932 = vmatpush3.bf16.msra.mxu1 %v18714_v49  ;;  %16939 = vmatprep.mubr.bf16.mxu1 %v3554_v41  ;;  %v515_v49 = vld [vmem:[%s19588_s12 + $0xc8] sm:$0xff]  ;;  %v3588_v41 = vrot.slane %v20181_v35, 4  ;;  %v3581_v22 = vsel %vm756_vm1, %v3571_v20, %v20238_v26 }
 0x162   : > { %v16549_v48 = vpop.f32.mrb[0].mxu1  ;;  %v713_v50 = vpop.f32.mrb[1].mxu0  ;;  %16933 = vmatprep.subr.bf16.mxu1 %v18716_v27 }
 0x163   : > { %v907_v46 = vpop.f32.mrb[1].mxu1  ;;  %v16522_v18 = vpop.f32.mrb[2].mxu0  ;;  %16906 = vmatpush3.bf16.msra.mxu0 %v18715_v60  ;;  %v18726_v48 = vld [vmem:[#allocation7 + $0x210] sm:$0xff]  }
 0x164   : > { %v20213_v58 = vadd.f32 %v907_v46, %v713_v50  ;;  %v16550_v10 = vpop.f32.mrb[2].mxu1  ;;  %v716_v4 = vpop.f32.mrb[3].mxu0  ;;  %16907 = vmatprep.subr.bf16.mxu0 %v18717_v47  ;;  %v3572_v50 = vsel %vm756_vm1, %v20092_v57, %v3571_v20  ;;  %v3367_v57 = vsel %vm1535_vm4, %v3362_v24, %v3366_v63 }
 0x165   : > { %v20215_v3 = vadd.f32 %v16550_v10, %v16522_v18  ;;  %v910_v5 = vpop.f32.mrb[3].mxu1  ;;  %16934 = vmatpush3.bf16.msra.mxu1 %v18716_v27  ;;  %v20241_v27 = vld [vmem:[#allocation2 + $0x48] sm:$0xf0]  ;;  %v3359_v18 = vsel %vm1535_vm4, %v3354_v16, %v3358_v12  ;;  %v3372_v10 = vshll.u32 %v3307_v23, 16  ;;  %v18729_v23 = vld [vmem:[#allocation7 + $0x1e0] sm:$0xff]  }
 0x166   : > { %v20217_v7 = vadd.f32 %v910_v5, %v716_v4  ;;  %16935 = vmatprep.subr.bf16.mxu1 %v18718_v8  ;;  %v3594_v5 = vrot.slane %v3592_v59, 3  ;;  %v3933_v17 = vshrl.u32 %v20241_v27, 16  ;;  %v3936_v40 = vshll.u32 %v20241_v27, 16  ;;  %v20267_v59 = vld [vmem:[#allocation2 + $0x50] sm:$0xff] }
 0x167   : > { %16908 = vmatpush3.bf16.msra.mxu0 %v18717_v47  ;;  %v517_v47 = vmul.f32 %v20132_v51, %v515_v49  ;;  %v518_v51 = vadd.f32 %v20140_v34, %v516_v62  ;;  %v3764_v11 = vrot.slane %v20267_v59, 4 }
 0x168   : > { %16909 = vmatprep.subr.bf16.mxu0 %v18719_v1  ;;  %v3935_v63 = vrot.slane %v3933_v17, 4  ;;  %v18735_v17 = vld [vmem:[#allocation7 + $0x1f8] sm:$0xff]  }
 0x169   : > { %16936 = vmatpush3.bf16.msra.mxu1 %v18718_v8  ;;  %v16525_v60 = vpop.f32.mrb[4].mxu0  ;;  %v18727_v8 = vld [vmem:[#allocation7 + $0x1d8] sm:$0xff]   ;;  %v520_v55 = vmax.f32 %v518_v51, 0.0 }
 0x16a   : > { %16937 = vmatprep.subr.bf16.mxu1 %v18720_v44  ;;  %v728_v28 = vpop.f32.mrb[5].mxu0 }
 0x16b   : > { %16910 = vmatpush3.bf16.msra.mxu0 %v18719_v1  ;;  %v3585_v1 = vrot.slane %v20167_v53, 3  ;;  %v16526_v46 = vpop.f32.mrb[6].mxu0 }
 0x16c   : > { %16951 = vmatprep.subr.bf16.mxu0 %v18721_v33  ;;  %v731_v4 = vpop.f32.mrb[7].mxu0 }
 0x16d   : > { %16938 = vmatpush3.bf16.msra.mxu1 %v18720_v44  ;;  %v16553_v44 = vpop.f32.mrb[4].mxu1  ;;  %v18733_v4 = vld [vmem:[#allocation7 + $0x1f0] sm:$0xff]  }
 0x16e   : > { %16912 = vmatmul.mubr.bf16.vlgmr.msra.gmra.mrb[84].mxu0 %v3343_v56  ;;  %16979 = vmatprep.subr.bf16.mxu1 %v18722_v43 }
 0x16f   : > { %16952 = vmatpush3.bf16.msra.mxu0 %v18721_v33  ;;  %16915 = vmatprep.mubr.bf16.mxu0 %v3351_v19  ;;  %v3597_v33 = vrot.slane %v3595_v42, 4  ;;  %v3374_v19 = vrot.slane %v3372_v10, 1 }
 0x170   : > { %16953 = vmatprep.subr.bf16.mxu0 %v18723_v6  ;;  %16940 = vmatmul.mubr.bf16.vlgmr.msra.gmra.mrb[84].mxu1 %v20104_v31  ;;  %v519_v31 = vadd.f32 %v20140_v34, %v517_v47  ;;  %v20258_v34 = vor.u32 %v3588_v41, %v3585_v1  ;;  %v18730_v47 = vld [vmem:[#allocation7 + $0x220] sm:$0xff]   ;;  %v18731_v1 = vld [vmem:[#allocation7 + $0x1e8] sm:$0xff]  }
 0x171   : > { %16980 = vmatpush3.bf16.msra.mxu1 %v18722_v43  ;;  %16943 = vmatprep.mubr.bf16.mxu1 %v3572_v50  ;;  %v20256_v43 = vadd.f32 %v16553_v44, %v16525_v60  ;;  %v16529_v24 = vpop.f32.mrb[8].mxu0  ;;  %v3938_v60 = vrot.slane %v3936_v40, 5  ;;  %v3375_v62 = vsel %vm1535_vm4, %v3370_v9, %v3374_v19  ;;  %v3766_v19 = vrot.slane %v20202_v0, 4 }
 0x172   : > { %16981 = vmatprep.subr.bf16.mxu1 %v18724_v54  ;;  %v521_v37 = vmax.f32 %v519_v31, 0.0  ;;  %v743_v49 = vpop.f32.mrb[9].mxu0  ;;  %v18732_v31 = vld [vmem:[#allocation7 + $0x228] sm:$0xff]  }
 0x173   : > { %16954 = vmatpush3.bf16.msra.mxu0 %v18723_v6  ;;  %v922_v6 = vpop.f32.mrb[5].mxu1  ;;  %v16530_v42 = vpop.f32.mrb[10].mxu0 }
 0x174   : > { %16955 = vmatprep.subr.bf16.mxu0 %v18725_v14  ;;  %v20262_v56 = vadd.f32 %v922_v6, %v728_v28  ;;  %v16554_v45 = vpop.f32.mrb[6].mxu1  ;;  %v522_v12 = vpack.c.bf16 %v521_v37, %v520_v55  ;;  %v3598_v28 = vor.u32 %v3597_v33, %v3594_v5  ;;  %v745_v50 = vpop.f32.mrb[11].mxu0  ;;  %v18734_v37 = vld [vmem:[#allocation7 + $0x230] sm:$0xff]  }
 0x175   : > { %16982 = vmatpush3.bf16.msra.mxu1 %v18724_v54  ;;  %v20265_v20 = vadd.f32 %v16554_v45, %v16526_v46  ;;  %v925_v16 = vpop.f32.mrb[7].mxu1  ;;  %v20273_v54 = vsel %vm756_vm1, %v20238_v26, %v20258_v34 }
 0x176   : > { %16916 = vmatmul.mubr.bf16.gmra.mrb[88].mxu0 %v3359_v18  ;;  %16983 = vmatprep.subr.bf16.mxu1 %v18726_v48  ;;  %523 = vst [vmem:[#allocation2 + $0xa0] sm:$0xff] %v522_v12  ;;  %v16557_v41 = vpop.f32.mrb[8].mxu1  ;;  %v3599_v10 = vsel %vm756_vm1, %v20258_v34, %v3598_v28 }
 0x177   : > { %16956 = vmatpush3.bf16.msra.mxu0 %v18725_v14  ;;  %16919 = vmatprep.mubr.bf16.mxu0 %v3367_v57  ;;  %v3763_v14 = vrot.slane %v20241_v27, 4  ;;  %v20278_v46 = vadd.f32 %v16557_v41, %v16529_v24  ;;  %v937_v18 = vpop.f32.mrb[9].mxu1 }
 0x178   : > { %16957 = vmatprep.subr.bf16.mxu0 %v18727_v8  ;;  %16944 = vmatmul.mubr.bf16.gmra.mrb[88].mxu1 %v3581_v22 }
 0x179   : > { %16984 = vmatpush3.bf16.msra.mxu1 %v18726_v48  ;;  %16947 = vmatprep.mubr.bf16.mxu1 %v20273_v54  ;;  %v3765_v27 = vsel %vm611_vm0, %v3763_v14, %v3764_v11  ;;  %v3939_v48 = vor.u32 %v3938_v60, %v3935_v63  ;;  %v3948_v14 = vrot.slane %v20156_v30, 4  ;;  %v3949_v60 = vrot.slane %v20175_v2, 5 }
 0x17a   : > { %16985 = vmatprep.subr.bf16.mxu1 %v18728_v38 }
 0x17b   : > { %16958 = vmatpush3.bf16.msra.mxu0 %v18727_v8  ;;  %v16558_v8 = vpop.f32.mrb[10].mxu1  ;;  %v3943_v22 = vsel %vm968_vm2, %v3939_v48, %v20090_v15  ;;  %v3950_v59 = vor.u32 %v3949_v60, %v3948_v14  ;;  %v3953_v48 = vrot.slane %v20194_v13, 5 }
 0x17c   : > { %16959 = vmatprep.subr.bf16.mxu0 %v18729_v23  ;;  %v939_v51 = vpop.f32.mrb[11].mxu1  ;;  %v4140_v8 = vld [vmem:[#allocation2 + $0x60] sm:$0xf8] }
 0x17d   : > { %16986 = vmatpush3.bf16.msra.mxu1 %v18728_v38  ;;  %v20285_v57 = vadd.f32 %v939_v51, %v745_v50  ;;  %v18739_v50 = vld [vmem:[#allocation7 + $0x48] sm:$0xff]   ;;  %v18741_v51 = vld [vmem:[#allocation7 + $0x50] sm:$0xff]  }
 0x17e   : > { %16920 = vmatmul.mubr.bf16.gmra.mrb[92].mxu0 %v3375_v62  ;;  %16987 = vmatprep.subr.bf16.mxu1 %v18730_v47 }
 0x17f   : > { %16960 = vmatpush3.bf16.msra.mxu0 %v18729_v23  ;;  %16967 = vmatprep.mubr.bf16.mxu0 %v3765_v27  ;;  %v3952_v27 = vrot.slane %v20178_v32, 4 }
 0x180   : > { %16961 = vmatprep.subr.bf16.mxu0 %v18731_v1  ;;  %16948 = vmatmul.mubr.bf16.gmra.mrb[92].mxu1 %v3599_v10 }
 0x181   : > { %v16577_v5 = vpop.f32.mrb[12].mxu0  ;;  %16988 = vmatpush3.bf16.msra.mxu1 %v18730_v47  ;;  %16995 = vmatprep.mubr.bf16.mxu1 %v3943_v22  ;;  %v3767_v47 = vsel %vm611_vm0, %v3764_v11, %v3766_v19 }
 0x182   : > { %v1094_v44 = vpop.f32.mrb[13].mxu0  ;;  %16989 = vmatprep.subr.bf16.mxu1 %v18732_v31 }
 0x183   : > { %v1137_v33 = vadd.f32 %v1094_v44, %v20213_v58  ;;  %v16578_v55 = vpop.f32.mrb[14].mxu0  ;;  %16962 = vmatpush3.bf16.msra.mxu0 %v18731_v1  ;;  %v16605_v40 = vpop.f32.mrb[12].mxu1  ;;  %v18736_v58 = vld [vmem:[#allocation7 + $0x238] sm:$0xff]   ;;  %v20309_v1 = vrot.slane %v20164_v39, 4  ;;  %v19175_v44 = vld [vmem:[#allocation2 + $0x70] sm:$0xff] }
 0x184   : > { %v1139_v6 = vadd.f32 %v16578_v55, %v20215_v3  ;;  %v1097_v38 = vpop.f32.mrb[15].mxu0  ;;  %16963 = vmatprep.subr.bf16.mxu0 %v18733_v4  ;;  %v1310_v9 = vpop.f32.mrb[13].mxu1  ;;  %v18737_v3 = vld [vmem:[#allocation7 + $0x40] sm:$0xff]   ;;  %v20322_v22 = vrot.slane %v19175_v44, 4  ;;  %v3951_v55 = vsel %vm968_vm2, %v20106_v61, %v3950_v59  ;;  %v20330_v40 = vor.u32 %v3953_v48, %v3952_v27  ;;  %v18748_v27 = vld [vmem:[#allocation7 + $0x28] sm:$0xff]   ;;  %v18749_v48 = vld [vmem:[#allocation7 + $0x70] sm:$0xff]  }
 0x185   : > { %v1138_v45 = vadd.f32 %v1097_v38, %v20217_v7  ;;  %v20293_v15 = vadd.f32 %v1310_v9, %v1137_v33  ;;  %v16606_v12 = vpop.f32.mrb[14].mxu1  ;;  %16990 = vmatpush3.bf16.msra.mxu1 %v18732_v31  ;;  %v3768_v7 = vrot.slane %v20151_v36, 4  ;;  %v18738_v36 = vld [vmem:[#allocation7] sm:$0xff]   ;;  %v3915_v31 = vld [vmem:[#allocation2 + $0x78] sm:$0x1f]  ;;  %v18742_v33 = vld [vmem:[#allocation7 + $0x10] sm:$0xff]  }
 0x186   : > { %v20295_v16 = vadd.f32 %v16606_v12, %v1139_v6  ;;  %v1313_v23 = vpop.f32.mrb[15].mxu1  ;;  %16991 = vmatprep.subr.bf16.mxu1 %v18734_v37  ;;  %v3956_v6 = vrot.slane %v20167_v53, 4  ;;  %v3957_v38 = vrot.slane %v20181_v35, 5  ;;  %v3964_v9 = vshll.u32 %v3915_v31, 16  ;;  %v18751_v44 = vld [vmem:[#allocation7 + $0x78] sm:$0xff]  }
 0x187   : > { %16964 = vmatpush3.bf16.msra.mxu0 %v18733_v4  ;;  %v20297_v24 = vadd.f32 %v1313_v23, %v1138_v45  ;;  %v3769_v41 = vsel %vm611_vm0, %v3766_v19, %v3768_v7  ;;  %v3771_v5 = vsel %vm611_vm0, %v3768_v7, %v20309_v1  ;;  %v3961_v45 = vshrl.u32 %v3915_v31, 16  ;;  %v18745_v7 = vld [vmem:[#allocation7 + $0x60] sm:$0xff]   ;;  %v18750_v31 = vld [vmem:[#allocation7 + $0x30] sm:$0xff]  }
 0x188   : > { %16965 = vmatprep.subr.bf16.mxu0 %v18735_v17  ;;  %v4335_v19 = vshll.u32 %v4140_v8, 16  ;;  %v20341_v14 = vor.u32 %v3957_v38, %v3956_v6  ;;  %v3966_v60 = vrot.slane %v3964_v9, 5  ;;  %v20373_v6 = vld [vmem:[#allocation2 + $0x80] sm:$0xff]  ;;  %v18752_v38 = vld [vmem:[#allocation7 + $0x38] sm:$0xff]  }
 0x189   : > { %v16581_v49 = vpop.f32.mrb[16].mxu0  ;;  %16992 = vmatpush3.bf16.msra.mxu1 %v18734_v37  ;;  %v18743_v37 = vld [vmem:[#allocation7 + $0x58] sm:$0xff]  }
 0x18a   : > { %v1141_v0 = vadd.f32 %v16581_v49, %v20256_v43  ;;  %v1109_v63 = vpop.f32.mrb[17].mxu0  ;;  %16993 = vmatprep.subr.bf16.mxu1 %v18736_v58  ;;  %v20339_v49 = vsel %vm611_vm0, %v20309_v1, %v20322_v22 }
 0x18b   : > { %v1140_v42 = vadd.f32 %v1109_v63, %v20262_v56  ;;  %v16582_v62 = vpop.f32.mrb[18].mxu0  ;;  %16966 = vmatpush3.bf16.msra.mxu0 %v18735_v17  ;;  %v16609_v43 = vpop.f32.mrb[16].mxu1  ;;  %v3963_v63 = vrot.slane %v3961_v45, 4 }
 0x18c   : > { %v1142_v28 = vadd.f32 %v16582_v62, %v20265_v20  ;;  %17007 = vmatprep.subr.bf16.mxu0 %v18737_v3  ;;  %v1112_v30 = vpop.f32.mrb[19].mxu0  ;;  %v20311_v2 = vadd.f32 %v16609_v43, %v1141_v0  ;;  %v1325_v56 = vpop.f32.mrb[17].mxu1  ;;  %v18740_v20 = vld [vmem:[#allocation7 + $0x8] sm:$0xff]   ;;  %v20343_v0 = vld [vmem:[#allocation2 + $0x60] sm:$0xf0] }
 0x18d   : > { %16994 = vmatpush3.bf16.msra.mxu1 %v18736_v58  ;;  %v20314_v11 = vadd.f32 %v1325_v56, %v1140_v42  ;;  %v16610_v18 = vpop.f32.mrb[18].mxu1  ;;  %v3774_v58 = vrot.slane %v20228_v21, 4  ;;  %v3955_v21 = vsel %vm968_vm2, %v3950_v59, %v20330_v40  ;;  %v20354_v30 = vsel %vm968_vm2, %v20330_v40, %v20341_v14  ;;  %v18746_v56 = vld [vmem:[#allocation7 + $0x20] sm:$0xff]  }
 0x18e   : > { %16968 = vmatmul.mubr.bf16.vlgmr.msra.gmra.mrb[96].mxu0 %v3767_v47  ;;  %v20318_v39 = vadd.f32 %v16610_v18, %v1142_v28  ;;  %17035 = vmatprep.subr.bf16.mxu1 %v18738_v36  ;;  %v1328_v10 = vpop.f32.mrb[19].mxu1  ;;  %v4337_v47 = vrot.slane %v4335_v19, 4  ;;  %v3967_v43 = vor.u32 %v3966_v60, %v3963_v63 }
 0x18f   : > { %17008 = vmatpush3.bf16.msra.mxu0 %v18737_v3  ;;  %16971 = vmatprep.mubr.bf16.mxu0 %v3769_v41  ;;  %v18744_v3 = vld [vmem:[#allocation7 + $0x18] sm:$0xff]   ;;  %v18747_v41 = vld [vmem:[#allocation7 + $0x68] sm:$0xff]  }
 0x190   : > { %17009 = vmatprep.subr.bf16.mxu0 %v18739_v50  ;;  %16996 = vmatmul.mubr.bf16.vlgmr.msra.gmra.mrb[96].mxu1 %v20120_v52  ;;  %v4332_v52 = vshrl.u32 %v4140_v8, 16  ;;  %v20363_v10 = vld [vmem:[#allocation2 + $0x78] sm:$0xff] }
 0x191   : > { %v16585_v4 = vpop.f32.mrb[20].mxu0  ;;  %17036 = vmatpush3.bf16.msra.mxu1 %v18738_v36  ;;  %16999 = vmatprep.mubr.bf16.mxu1 %v3951_v55  ;;  %v4187_v36 = vrot.slane %v20343_v0, 4 }
 0x192   : > { %v1144_v32 = vadd.f32 %v16585_v4, %v20278_v46  ;;  %v1124_v13 = vpop.f32.mrb[21].mxu0  ;;  %17037 = vmatprep.subr.bf16.mxu1 %v18740_v20  ;;  %v4334_v42 = vrot.slane %v4332_v52, 3 }
 0x193   : > { %v16586_v17 = vpop.f32.mrb[22].mxu0  ;;  %17010 = vmatpush3.bf16.msra.mxu0 %v18739_v50  ;;  %v16613_v12 = vpop.f32.mrb[20].mxu1  ;;  %v3775_v50 = vsel %vm611_vm0, %v20322_v22, %v3774_v58  ;;  %v4189_v59 = vsel %vm611_vm0, %v4187_v36, %v20309_v1  ;;  %v20390_v58 = vshll.u32 %v20373_v6, 16 }
 0x194   : > { %v1126_v46 = vpop.f32.mrb[23].mxu0  ;;  %17011 = vmatprep.subr.bf16.mxu0 %v18741_v51  ;;  %v20334_v23 = vadd.f32 %v16613_v12, %v1144_v32  ;;  %v1340_v35 = vpop.f32.mrb[21].mxu1  ;;  %v4338_v18 = vor.u32 %v4337_v47, %v4334_v42  ;;  %v4192_v12 = vrot.slane %v20363_v10, 4  ;;  %v20397_v42 = vld [vmem:[#allocation2 + $0x88] sm:$0xff]  ;;  %v20405_v47 = vld [vmem:[%s22778_s1] ss:$0 sm:$0xff] }
 0x195   : > { %v1143_v61 = vadd.f32 %v1126_v46, %v20285_v57  ;;  %17038 = vmatpush3.bf16.msra.mxu1 %v18740_v20  ;;  %v16614_v57 = vpop.f32.mrb[22].mxu1  ;;  %v3968_v20 = vsel %vm968_vm2, %v20341_v14, %v3967_v43 }
 0x196   : > { %16972 = vmatmul.mubr.bf16.gmra.mrb[100].mxu0 %v3771_v5  ;;  %v1342_v62 = vpop.f32.mrb[23].mxu1  ;;  %17039 = vmatprep.subr.bf16.mxu1 %v18742_v33  ;;  %v4347_v1 = vsel %vm756_vm1, %v4338_v18, %v20238_v26  ;;  %v524_v57 = vld [vmem:[%s19588_s12 + $0xd0] sm:$0xff] }
 0x197   : > { %17012 = vmatpush3.bf16.msra.mxu0 %v18741_v51  ;;  %v20347_v28 = vadd.f32 %v1342_v62, %v1143_v61  ;;  %16975 = vmatprep.mubr.bf16.mxu0 %v20339_v49  ;;  %v20400_v62 = vshrl.u32 %v20397_v42, 16 }
 0x198   : > { %17013 = vmatprep.subr.bf16.mxu0 %v18743_v37  ;;  %17000 = vmatmul.mubr.bf16.gmra.mrb[100].mxu1 %v3955_v21  ;;  %v525_v21 = vld [vmem:[%s19588_s12 + $0xd8] sm:$0xff] }
 0x199   : > { %17040 = vmatpush3.bf16.msra.mxu1 %v18742_v33  ;;  %17003 = vmatprep.mubr.bf16.mxu1 %v20354_v30  ;;  %v20370_v33 = vshrl.u32 %v20363_v10, 16  ;;  %v527_v36 = vmul.f32 %v20405_v47, %v525_v21  ;;  %v4545_v21 = vshll.u32 %v20343_v0, 16 }
 0x19a   : > { %17041 = vmatprep.subr.bf16.mxu1 %v18744_v3 }
 0x19b   : > { %17014 = vmatpush3.bf16.msra.mxu0 %v18743_v37  ;;  %v4360_v61 = vrot.slane %v20370_v33, 3 }
 0x19c   : > { %17015 = vmatprep.subr.bf16.mxu0 %v18745_v7 }
 0x19d   : > { %17042 = vmatpush3.bf16.msra.mxu1 %v18744_v3 }
 0x19e   : > { %16976 = vmatmul.mubr.bf16.gmra.mrb[104].mxu0 %v3775_v50  ;;  %17043 = vmatprep.subr.bf16.mxu1 %v18746_v56 }
 0x19f   : > { %17016 = vmatpush3.bf16.msra.mxu0 %v18745_v7  ;;  %17023 = vmatprep.mubr.bf16.mxu0 %v4189_v59 }
 0x1a0   : > { %17017 = vmatprep.subr.bf16.mxu0 %v18747_v41  ;;  %17004 = vmatmul.mubr.bf16.gmra.mrb[104].mxu1 %v3968_v20  ;;  %v20417_v20 = vld [vmem:[%s22779_s2] ss:$0 sm:$0xff] }
 0x1a1   : > { %v16633_v8 = vpop.f32.mrb[24].mxu0  ;;  %17044 = vmatpush3.bf16.msra.mxu1 %v18746_v56  ;;  %17051 = vmatprep.mubr.bf16.mxu1 %v4347_v1  ;;  %v18755_v56 = vld [vmem:[#allocation7 + $0x88] sm:$0xff]   ;;  %v4193_v1 = vsel %vm611_vm0, %v20322_v22, %v4192_v12 }
 0x1a2   : > { %v1460_v51 = vpop.f32.mrb[25].mxu0  ;;  %17045 = vmatprep.subr.bf16.mxu1 %v18748_v27 }
 0x1a3   : > { %v1503_v4 = vadd.f32 %v1460_v51, %v20293_v15  ;;  %v16634_v5 = vpop.f32.mrb[26].mxu0  ;;  %17018 = vmatpush3.bf16.msra.mxu0 %v18747_v41  ;;  %v16661_v55 = vpop.f32.mrb[24].mxu1  ;;  %v20376_v15 = vshll.u32 %v20363_v10, 16  ;;  %v20411_v41 = vshll.u32 %v20397_v42, 16  ;;  %v18756_v51 = vld [vmem:[#allocation7 + $0xc8] sm:$0xff]  }
 0x1a4   : > { %v1505_v32 = vadd.f32 %v16634_v5, %v20295_v16  ;;  %v1463_v13 = vpop.f32.mrb[27].mxu0  ;;  %17019 = vmatprep.subr.bf16.mxu0 %v18749_v48  ;;  %v1676_v26 = vpop.f32.mrb[25].mxu1  ;;  %v18753_v16 = vld [vmem:[#allocation7 + $0x80] sm:$0xff]   ;;  %v4372_v5 = vrot.slane %v20390_v58, 4  ;;  %v20433_v55 = vrot.slane %v20397_v42, 4 }
 0x1a5   : > { %v1504_v37 = vadd.f32 %v1463_v13, %v20297_v24  ;;  %v20378_v17 = vadd.f32 %v1676_v26, %v1503_v4  ;;  %v16662_v45 = vpop.f32.mrb[26].mxu1  ;;  %17046 = vmatpush3.bf16.msra.mxu1 %v18748_v27  ;;  %v20383_v24 = vshrl.u32 %v20373_v6, 16  ;;  %v4363_v7 = vrot.slane %v20376_v15, 4 }
 0x1a6   : > { %v20380_v9 = vadd.f32 %v16662_v45, %v1505_v32  ;;  %v1679_v52 = vpop.f32.mrb[27].mxu1  ;;  %17047 = vmatprep.subr.bf16.mxu1 %v18750_v31  ;;  %v4194_v13 = vrot.slane %v20373_v6, 4  ;;  %v4542_v45 = vshrl.u32 %v20343_v0, 16 }
 0x1a7   : > { %17020 = vmatpush3.bf16.msra.mxu0 %v18749_v48  ;;  %v20385_v46 = vadd.f32 %v1679_v52, %v1504_v37  ;;  %v4369_v18 = vrot.slane %v20383_v24, 3  ;;  %v529_v48 = vadd.f32 %v20417_v20, %v527_v36  ;;  %v4364_v4 = vor.u32 %v4363_v7, %v4360_v61  ;;  %v20436_v37 = vld [vmem:[#allocation2 + $0x90] sm:$0xf] }
 0x1a8   : > { %17021 = vmatprep.subr.bf16.mxu0 %v18751_v44 }
 0x1a9   : > { %v16637_v19 = vpop.f32.mrb[28].mxu0  ;;  %17048 = vmatpush3.bf16.msra.mxu1 %v18750_v31  ;;  %v18757_v31 = vld [vmem:[#allocation7 + $0x90] sm:$0xff]   ;;  %v4365_v7 = vsel %vm756_vm1, %v20258_v34, %v4364_v4  ;;  %v4544_v34 = vrot.slane %v4542_v45, 4 }
 0x1aa   : > { %v1507_v35 = vadd.f32 %v16637_v19, %v20311_v2  ;;  %v1475_v3 = vpop.f32.mrb[29].mxu0  ;;  %v526_v2 = vmul.f32 %v20405_v47, %v524_v57  ;;  %17049 = vmatprep.subr.bf16.mxu1 %v18752_v38  ;;  %v531_v19 = vmax.f32 %v529_v48, 0.0  ;;  %v4373_v57 = vor.u32 %v4372_v5, %v4369_v18  ;;  %v18760_v48 = vld [vmem:[#allocation7 + $0xd8] sm:$0xff]  }
 0x1ab   : > { %v1506_v63 = vadd.f32 %v1475_v3, %v20314_v11  ;;  %v16638_v60 = vpop.f32.mrb[30].mxu0  ;;  %17022 = vmatpush3.bf16.msra.mxu0 %v18751_v44  ;;  %v18754_v11 = vld [vmem:[#allocation7 + $0xc0] sm:$0xff]   ;;  %v16665_v59 = vpop.f32.mrb[28].mxu1  ;;  %v18758_v3 = vld [vmem:[#allocation7 + $0xd0] sm:$0xff]  }
 0x1ac   : > { %v1508_v50 = vadd.f32 %v16638_v60, %v20318_v39  ;;  %17063 = vmatprep.subr.bf16.mxu0 %v18753_v16  ;;  %v1478_v43 = vpop.f32.mrb[31].mxu0  ;;  %v528_v27 = vadd.f32 %v20417_v20, %v526_v2  ;;  %v20421_v39 = vadd.f32 %v16665_v59, %v1507_v35  ;;  %v1691_v8 = vpop.f32.mrb[29].mxu1  ;;  %v18759_v60 = vld [vmem:[#allocation7 + $0x98] sm:$0xff]   ;;  %v4195_v2 = vsel %vm611_vm0, %v4192_v12, %v4194_v13 }
 0x1ad   : > { %17050 = vmatpush3.bf16.msra.mxu1 %v18752_v38  ;;  %v20429_v44 = vadd.f32 %v1691_v8, %v1506_v63  ;;  %v16666_v32 = vpop.f32.mrb[30].mxu1  ;;  %v4381_v38 = vrot.slane %v20411_v41, 4  ;;  %v4717_v43 = vld [vmem:[#allocation2 + $0x68] sm:$0x80]  ;;  %v4547_v8 = vrot.slane %v4545_v21, 5  ;;  %v4374_v5 = vsel %vm756_vm1, %v4364_v4, %v4373_v57  ;;  %v18762_v4 = vld [vmem:[#allocation7 + $0xe0] sm:$0xff]  }
 0x1ae   : > { %17024 = vmatmul.mubr.bf16.vlgmr.msra.gmra.mrb[108].mxu0 %v20339_v49  ;;  %v4378_v49 = vrot.slane %v20400_v62, 3  ;;  %v20438_v26 = vadd.f32 %v16666_v32, %v1508_v50  ;;  %17091 = vmatprep.subr.bf16.mxu1 %v18754_v11  ;;  %v1694_v22 = vpop.f32.mrb[31].mxu1  ;;  %v530_v52 = vmax.f32 %v528_v27, 0.0  ;;  %v4741_v45 = vshrl.u32 %v4717_v43, 16  ;;  %v539_v21 = vld [vmem:[%s19588_s12 + $0xe8] sm:$0xff] }
 0x1af   : > { %17064 = vmatpush3.bf16.msra.mxu0 %v18753_v16  ;;  %17027 = vmatprep.mubr.bf16.mxu0 %v4193_v1 }
 0x1b0   : > { %17065 = vmatprep.subr.bf16.mxu0 %v18755_v56  ;;  %17052 = vmatmul.mubr.bf16.vlgmr.msra.gmra.mrb[108].mxu1 %v20273_v54  ;;  %v4385_v54 = vshrl.u32 %v20436_v37, 16  ;;  %v532_v36 = vpack.c.bf16 %v531_v19, %v530_v52 }
 0x1b1   : > { %v16641_v16 = vpop.f32.mrb[32].mxu0  ;;  %17092 = vmatpush3.bf16.msra.mxu1 %v18754_v11  ;;  %17055 = vmatprep.mubr.bf16.mxu1 %v4365_v7  ;;  %v4197_v11 = vsel %vm611_vm0, %v4194_v13, %v20433_v55  ;;  %v18765_v7 = vld [vmem:[#allocation7 + $0xb0] sm:$0xff]  }
 0x1b2   : > { %v1510_v61 = vadd.f32 %v16641_v16, %v20334_v23  ;;  %v1490_v35 = vpop.f32.mrb[33].mxu0  ;;  %v4388_v23 = vshll.u32 %v20436_v37, 16  ;;  %17093 = vmatprep.subr.bf16.mxu1 %v18756_v51  ;;  %v534_v12 = vrot.slane %v532_v36, 4  ;;  %v4387_v32 = vrot.slane %v4385_v54, 3 }
 0x1b3   : > { %v16642_v63 = vpop.f32.mrb[34].mxu0  ;;  %17066 = vmatpush3.bf16.msra.mxu0 %v18755_v56  ;;  %v16669_v59 = vpop.f32.mrb[32].mxu1  ;;  %v20455_v56 = vor.u32 %v4381_v38, %v4378_v49  ;;  %v18761_v49 = vld [vmem:[#allocation7 + $0xa0] sm:$0xff]   ;;  %v18764_v35 = vld [vmem:[#allocation7 + $0xe8] sm:$0xff]  }
 0x1b4   : > { %v1492_v50 = vpop.f32.mrb[35].mxu0  ;;  %17067 = vmatprep.subr.bf16.mxu0 %v18757_v31  ;;  %v20457_v18 = vadd.f32 %v16669_v59, %v1510_v61  ;;  %v1706_v27 = vpop.f32.mrb[33].mxu1  ;;  %v4390_v22 = vrot.slane %v4388_v23, 4  ;;  %536 = vst [vmem:[#allocation2 + $0xb0] ss:$-4 sps:$4 sm:$0xff] %v534_v12   ;;  %v4743_v61 = vrot.slane %v4741_v45, 7 }
 0x1b5   : > { %v1509_v0 = vadd.f32 %v1492_v50, %v20347_v28  ;;  %17094 = vmatpush3.bf16.msra.mxu1 %v18756_v51  ;;  %v16670_v1 = vpop.f32.mrb[34].mxu1  ;;  %v4198_v28 = vrot.slane %v20436_v37, 4  ;;  %v4383_v51 = vsel %vm756_vm1, %v4373_v57, %v20455_v56  ;;  %v18763_v37 = vld [vmem:[#allocation7 + $0xa8] sm:$0xff]   ;;  %v538_v57 = vld [vmem:[%s19588_s12 + $0xe0] sm:$0xff] }
 0x1b6   : > { %17028 = vmatmul.mubr.bf16.gmra.mrb[112].mxu0 %v4195_v2  ;;  %v1708_v13 = vpop.f32.mrb[35].mxu1  ;;  %17095 = vmatprep.subr.bf16.mxu1 %v18758_v3  ;;  %v4391_v16 = vor.u32 %v4390_v22, %v4387_v32  ;;  %v541_v2 = vmul.f32 %v20405_v47, %v539_v21  ;;  %v4751_v23 = vsel %vm1169_vm3, %v4743_v61, %v20187_v29  ;;  %v4558_v1 = vrot.slane %v20376_v15, 5  ;;  %v20499_v21 = vld [vmem:[#allocation2 + $0x90] sm:$0xff] }
 0x1b7   : > { %17068 = vmatpush3.bf16.msra.mxu0 %v18757_v31  ;;  %v20461_v38 = vadd.f32 %v1708_v13, %v1509_v0  ;;  %17031 = vmatprep.mubr.bf16.mxu0 %v4197_v11  ;;  %v4548_v31 = vor.u32 %v4547_v8, %v4544_v34  ;;  %v4199_v52 = vsel %vm611_vm0, %v20433_v55, %v4198_v28  ;;  %v18767_v34 = vld [vmem:[#allocation7 + $0xb8] sm:$0xff]   ;;  %v4755_v11 = vrot.slane %v20370_v33, 7 }
 0x1b8   : > { %17069 = vmatprep.subr.bf16.mxu0 %v18759_v60  ;;  %17056 = vmatmul.mubr.bf16.gmra.mrb[112].mxu1 %v4374_v5  ;;  %v543_v12 = vadd.f32 %v20417_v20, %v541_v2  ;;  %v4557_v8 = vrot.slane %v20370_v33, 4  ;;  %v18768_v13 = vld [vmem:[#allocation7 + $0xf8] sm:$0xff]   ;;  %v548_v2 = vld [vmem:[%s19588_s12 + $0xf0] sm:$0xff] }
 0x1b9   : > { %17096 = vmatpush3.bf16.msra.mxu1 %v18758_v3  ;;  %17059 = vmatprep.mubr.bf16.mxu1 %v4383_v51  ;;  %v4552_v19 = vsel %vm968_vm2, %v4548_v31, %v20330_v40  ;;  %v4392_v3 = vsel %vm756_vm1, %v20455_v56, %v4391_v16  ;;  %v18766_v40 = vld [vmem:[#allocation7 + $0xf0] sm:$0xff]  }
 0x1ba   : > { %17097 = vmatprep.subr.bf16.mxu1 %v18760_v48  ;;  %v545_v5 = vmax.f32 %v543_v12, 0.0  ;;  %v4559_v16 = vor.u32 %v4558_v1, %v4557_v8  ;;  %v20526_v1 = vld [vmem:[#allocation2 + $0x98] sm:$0xff] }
 0x1bb   : > { %17070 = vmatpush3.bf16.msra.mxu0 %v18759_v60  ;;  %v540_v60 = vmul.f32 %v20405_v47, %v538_v57  ;;  %v4562_v57 = vrot.slane %v20390_v58, 5 }
 0x1bc   : > { %17071 = vmatprep.subr.bf16.mxu0 %v18761_v49 }
 0x1bd   : > { %17098 = vmatpush3.bf16.msra.mxu1 %v18760_v48  ;;  %v542_v43 = vadd.f32 %v20417_v20, %v540_v60  ;;  %v4524_v60 = vld [vmem:[#allocation2 + $0x90] sm:$0x1f] }
 0x1be   : > { %17032 = vmatmul.mubr.bf16.gmra.mrb[116].mxu0 %v4199_v52  ;;  %17099 = vmatprep.subr.bf16.mxu1 %v18762_v4 }
 0x1bf   : > { %17072 = vmatpush3.bf16.msra.mxu0 %v18761_v49  ;;  %17079 = vmatprep.mubr.bf16.mxu0 %v4552_v19  ;;  %v544_v48 = vmax.f32 %v542_v43, 0.0  ;;  %v18769_v49 = vld [vmem:[#allocation7 + $0x100] sm:$0xff]   ;;  %v549_v43 = vld [vmem:[%s19588_s12 + $0xf8] sm:$0xff] }
 0x1c0   : > { %17073 = vmatprep.subr.bf16.mxu0 %v18763_v37  ;;  %17060 = vmatmul.mubr.bf16.gmra.mrb[116].mxu1 %v4392_v3  ;;  %v18771_v3 = vld [vmem:[#allocation7 + $0x108] sm:$0xff]  }
 0x1c1   : > { %v16689_v63 = vpop.f32.mrb[36].mxu0  ;;  %17100 = vmatpush3.bf16.msra.mxu1 %v18762_v4  ;;  %17107 = vmatprep.mubr.bf16.mxu1 %v4751_v23  ;;  %v546_v45 = vpack.c.bf16 %v545_v5, %v544_v48  ;;  %v4763_v4 = vrot.slane %v20383_v24, 7  ;;  %v4771_v23 = vrot.slane %v20400_v62, 7  ;;  %v4570_v48 = vshrl.u32 %v4524_v60, 16 }
 0x1c2   : > { %v1901_v54 = vpop.f32.mrb[37].mxu0  ;;  %17101 = vmatprep.subr.bf16.mxu1 %v18764_v35 }
 0x1c3   : > { %v1944_v36 = vadd.f32 %v1901_v54, %v20378_v17  ;;  %v16690_v50 = vpop.f32.mrb[38].mxu0  ;;  %17074 = vmatpush3.bf16.msra.mxu0 %v18763_v37  ;;  %v16717_v27 = vpop.f32.mrb[36].mxu1  ;;  %547 = vst [vmem:[#allocation2 + $0xb8] sm:$0xff] %v546_v45 }
 0x1c4   : > { %v1946_v59 = vadd.f32 %v16690_v50, %v20380_v9  ;;  %v1904_v0 = vpop.f32.mrb[39].mxu0  ;;  %17075 = vmatprep.subr.bf16.mxu0 %v18765_v7  ;;  %v2078_v17 = vpop.f32.mrb[37].mxu1  ;;  %v18772_v27 = vld [vmem:[#allocation7 + $0x148] sm:$0xff]  }
 0x1c5   : > { %v1945_v29 = vadd.f32 %v1904_v0, %v20385_v46  ;;  %v20485_v28 = vadd.f32 %v2078_v17, %v1944_v36  ;;  %v16718_v9 = vpop.f32.mrb[38].mxu1  ;;  %17102 = vmatpush3.bf16.msra.mxu1 %v18764_v35  ;;  %v4758_v46 = vor.u32 %v4755_v11, %v20376_v15  ;;  %v18770_v35 = vld [vmem:[#allocation7 + $0x140] sm:$0xff]   ;;  %v4565_v36 = vrot.slane %v20400_v62, 4 }
 0x1c6   : > { %v20487_v32 = vadd.f32 %v16718_v9, %v1946_v59  ;;  %v2081_v22 = vpop.f32.mrb[39].mxu1  ;;  %17103 = vmatprep.subr.bf16.mxu1 %v18766_v40  ;;  %v550_v59 = vmul.f32 %v20405_v47, %v548_v2  ;;  %v4573_v17 = vshll.u32 %v4524_v60, 16 }
 0x1c7   : > { %17076 = vmatpush3.bf16.msra.mxu0 %v18765_v7  ;;  %v20492_v51 = vadd.f32 %v2081_v22, %v1945_v29  ;;  %v4561_v7 = vrot.slane %v20383_v24, 4  ;;  %v4759_v63 = vsel %vm1169_vm3, %v4747_v25, %v4758_v46  ;;  %v4560_v25 = vsel %vm968_vm2, %v20341_v14, %v4559_v16  ;;  %v18773_v14 = vld [vmem:[#allocation7 + $0x110] sm:$0xff]  }
 0x1c8   : > { %17077 = vmatprep.subr.bf16.mxu0 %v18767_v34  ;;  %v4774_v22 = vor.u32 %v4771_v23, %v20411_v41  ;;  %v20536_v46 = vld [vmem:[#allocation2 + $0x70] sm:$0xff] }
 0x1c9   : > { %v16693_v31 = vpop.f32.mrb[40].mxu0  ;;  %17104 = vmatpush3.bf16.msra.mxu1 %v18766_v40  ;;  %v4766_v40 = vor.u32 %v4763_v4, %v20390_v58  ;;  %v4563_v29 = vor.u32 %v4562_v57, %v4561_v7  ;;  %v4572_v7 = vrot.slane %v4570_v48, 4  ;;  %v4575_v57 = vrot.slane %v4573_v17, 5 }
 0x1ca   : > { %v1948_v37 = vadd.f32 %v16693_v31, %v20421_v39  ;;  %v1916_v52 = vpop.f32.mrb[41].mxu0  ;;  %17105 = vmatprep.subr.bf16.mxu1 %v18768_v13  ;;  %v5104_v48 = vshrl.u32 %v20536_v46, 16 }
 0x1cb   : > { %v1947_v19 = vadd.f32 %v1916_v52, %v20429_v44  ;;  %v16694_v61 = vpop.f32.mrb[42].mxu0  ;;  %17078 = vmatpush3.bf16.msra.mxu0 %v18767_v34  ;;  %v16721_v54 = vpop.f32.mrb[40].mxu1  ;;  %v20518_v34 = vshrl.u32 %v20499_v21, 16  ;;  %v4767_v9 = vsel %vm1169_vm3, %v4755_v11, %v4766_v40  ;;  %v20542_v52 = vshll.u32 %v20499_v21, 16 }
 0x1cc   : > { %v1949_v39 = vadd.f32 %v16694_v61, %v20438_v26  ;;  %17119 = vmatprep.subr.bf16.mxu0 %v18769_v49  ;;  %v1919_v44 = vpop.f32.mrb[43].mxu0  ;;  %v4566_v26 = vrot.slane %v20411_v41, 5  ;;  %v20512_v50 = vadd.f32 %v16721_v54, %v1948_v37  ;;  %v2093_v53 = vpop.f32.mrb[41].mxu1  ;;  %v552_v11 = vadd.f32 %v20417_v20, %v550_v59 }
 0x1cd   : > { %17106 = vmatpush3.bf16.msra.mxu1 %v18768_v13  ;;  %v20522_v0 = vadd.f32 %v2093_v53, %v1947_v19  ;;  %v16722_v12 = vpop.f32.mrb[42].mxu1  ;;  %v4779_v37 = vrot.slane %v20518_v34, 7  ;;  %v4564_v61 = vsel %vm968_vm2, %v4559_v16, %v4563_v29  ;;  %v5106_v44 = vshll.u32 %v20536_v46, 16 }
 0x1ce   : > { %17080 = vmatmul.mubr.bf16.vlgmr.msra.gmra.mrb[120].mxu0 %v20354_v30  ;;  %v20524_v8 = vadd.f32 %v16722_v12, %v1949_v39  ;;  %17147 = vmatprep.subr.bf16.mxu1 %v18770_v35  ;;  %v2096_v30 = vpop.f32.mrb[43].mxu1  ;;  %v20534_v13 = vor.u32 %v4566_v26, %v4565_v36  ;;  %v18774_v39 = vld [vmem:[#allocation7 + $0x150] sm:$0xff]   ;;  %v4775_v40 = vsel %vm1169_vm3, %v4763_v4, %v4774_v22  ;;  %v18776_v4 = vld [vmem:[#allocation7 + $0x158] sm:$0xff]   ;;  %v18777_v12 = vld [vmem:[#allocation7 + $0x120] sm:$0xff]  }
 0x1cf   : > { %17120 = vmatpush3.bf16.msra.mxu0 %v18769_v49  ;;  %17083 = vmatprep.mubr.bf16.mxu0 %v4560_v25  ;;  %v551_v49 = vmul.f32 %v20405_v47, %v549_v43  ;;  %v20547_v47 = vshrl.u32 %v20526_v1, 16  ;;  %v20564_v25 = vshll.u32 %v20526_v1, 16 }
 0x1d0   : > { %17121 = vmatprep.subr.bf16.mxu0 %v18771_v3  ;;  %17108 = vmatmul.mubr.bf16.vlgmr.msra.gmra.mrb[120].mxu1 %v4759_v63  ;;  %v18775_v63 = vld [vmem:[#allocation7 + $0x118] sm:$0xff]   ;;  %v4568_v36 = vsel %vm968_vm2, %v4563_v29, %v20534_v13 }
 0x1d1   : > { %v16697_v5 = vpop.f32.mrb[44].mxu0  ;;  %17148 = vmatpush3.bf16.msra.mxu1 %v18770_v35  ;;  %v553_v60 = vadd.f32 %v20417_v20, %v551_v49  ;;  %17111 = vmatprep.mubr.bf16.mxu1 %v4767_v9  ;;  %v4782_v20 = vor.u32 %v20542_v52, %v4779_v37  ;;  %v4787_v53 = vrot.slane %v20547_v47, 7  ;;  %v18779_v49 = vld [vmem:[#allocation7 + $0x128] sm:$0xff]  }
 0x1d2   : > { %v1951_v45 = vadd.f32 %v16697_v5, %v20457_v18  ;;  %v1931_v31 = vpop.f32.mrb[45].mxu0  ;;  %17149 = vmatprep.subr.bf16.mxu1 %v18772_v27  ;;  %v18778_v5 = vld [vmem:[#allocation7 + $0x160] sm:$0xff]  }
 0x1d3   : > { %v16698_v19 = vpop.f32.mrb[46].mxu0  ;;  %17122 = vmatpush3.bf16.msra.mxu0 %v18771_v3  ;;  %v16725_v2 = vpop.f32.mrb[44].mxu1  ;;  %v554_v3 = vmax.f32 %v552_v11, 0.0  ;;  %v555_v43 = vmax.f32 %v553_v60, 0.0  ;;  %v4783_v30 = vsel %vm1169_vm3, %v4771_v23, %v4782_v20  ;;  %v4790_v9 = vor.u32 %v20564_v25, %v4787_v53  ;;  %v18780_v31 = vld [vmem:[#allocation7 + $0x168] sm:$0xff]   ;;  %v18783_v60 = vld [vmem:[#allocation7 + $0x138] sm:$0xff]  }
 0x1d4   : > { %v1933_v18 = vpop.f32.mrb[47].mxu0  ;;  %17123 = vmatprep.subr.bf16.mxu0 %v18773_v14  ;;  %v20552_v16 = vadd.f32 %v16725_v2, %v1951_v45  ;;  %v2108_v54 = vpop.f32.mrb[45].mxu1  ;;  %v5113_v45 = vrot.slane %v20376_v15, 1  ;;  %v20582_v11 = vld [vmem:[%s22781_s4] ss:$0 sm:$0xff]  ;;  %v18781_v19 = vld [vmem:[#allocation7 + $0x130] sm:$0xff]  }
 0x1d5   : > { %v1950_v35 = vadd.f32 %v1933_v18, %v20461_v38  ;;  %17150 = vmatpush3.bf16.msra.mxu1 %v18772_v27  ;;  %v16726_v26 = vpop.f32.mrb[46].mxu1  ;;  %v4576_v38 = vor.u32 %v4575_v57, %v4572_v7  ;;  %v5108_v27 = vrot.slane %v5106_v44, 1  ;;  %v556_v17 = vpack.c.bf16 %v555_v43, %v554_v3  ;;  %v19179_v7 = vld [vmem:[#allocation2 + $0x70] sm:$0xff] }
 0x1d6   : > { %17084 = vmatmul.mubr.bf16.gmra.mrb[124].mxu0 %v4564_v61  ;;  %v2110_v59 = vpop.f32.mrb[47].mxu1  ;;  %17151 = vmatprep.subr.bf16.mxu1 %v18774_v39  ;;  %v4791_v23 = vsel %vm1169_vm3, %v4779_v37, %v4790_v9  ;;  %v18782_v44 = vld [vmem:[#allocation7 + $0x170] sm:$0xff]   ;;  %v18787_v9 = vld [vmem:[#allocation7 + $0x188] sm:$0xff]  }
 0x1d7   : > { %17124 = vmatpush3.bf16.msra.mxu0 %v18773_v14  ;;  %v20566_v29 = vadd.f32 %v2110_v59, %v1950_v35  ;;  %17087 = vmatprep.mubr.bf16.mxu0 %v4568_v36  ;;  %v4577_v14 = vsel %vm968_vm2, %v20534_v13, %v4576_v38  ;;  %v558_v22 = vrot.slane %v556_v17, 4  ;;  %v5109_v46 = vor.u32 %v5108_v27, %v5104_v48  ;;  %v18784_v36 = vld [vmem:[#allocation7 + $0x178] sm:$0xff]  }
 0x1d8   : > { %17125 = vmatprep.subr.bf16.mxu0 %v18775_v63  ;;  %17112 = vmatmul.mubr.bf16.gmra.mrb[124].mxu1 %v4775_v40  ;;  %v5117_v59 = vor.u32 %v5113_v45, %v20370_v33 }
 0x1d9   : > { %17152 = vmatpush3.bf16.msra.mxu1 %v18774_v39  ;;  %17115 = vmatprep.mubr.bf16.mxu1 %v4783_v30  ;;  %560 = vst [vmem:[#allocation2 + $0xc8] ss:$-4 sps:$4 sm:$0xff] %v558_v22   ;;  %v5114_v57 = vsel %vm1535_vm4, %v5109_v46, %v5113_v45  ;;  %v18786_v30 = vld [vmem:[#allocation7 + $0x1c0] sm:$0xff]  }
 0x1da   : > { %17153 = vmatprep.subr.bf16.mxu1 %v18776_v4 }
 0x1db   : > { %17126 = vmatpush3.bf16.msra.mxu0 %v18775_v63 }
 0x1dc   : > { %17127 = vmatprep.subr.bf16.mxu0 %v18777_v12 }
 0x1dd   : > { %17154 = vmatpush3.bf16.msra.mxu1 %v18776_v4  ;;  %v5121_v4 = vrot.slane %v20390_v58, 1 }
 0x1de   : > { %17088 = vmatmul.mubr.bf16.gmra.mrb[128].mxu0 %v4577_v14  ;;  %17155 = vmatprep.subr.bf16.mxu1 %v18778_v5 }
 0x1df   : > { %17128 = vmatpush3.bf16.msra.mxu0 %v18777_v12  ;;  %17135 = vmatprep.mubr.bf16.mxu0 %v19179_v7  ;;  %v5125_v22 = vor.u32 %v5121_v4, %v20383_v24  ;;  %v20615_v7 = vld [vmem:[#allocation2 + $0x80] sm:$0xff] }
 0x1e0   : > { %17129 = vmatprep.subr.bf16.mxu0 %v18779_v49  ;;  %17116 = vmatmul.mubr.bf16.gmra.mrb[128].mxu1 %v4791_v23 }
 0x1e1   : > { %v16745_v61 = vpop.f32.mrb[48].mxu0  ;;  %17156 = vmatpush3.bf16.msra.mxu1 %v18778_v5  ;;  %17163 = vmatprep.mubr.bf16.mxu1 %v5114_v57  ;;  %v18789_v57 = vld [vmem:[#allocation7 + $0x190] sm:$0xff]  }
 0x1e2   : > { %v2272_v15 = vpop.f32.mrb[49].mxu0  ;;  %17157 = vmatprep.subr.bf16.mxu1 %v18780_v31 }
 0x1e3   : > { %v2315_v18 = vadd.f32 %v2272_v15, %v20485_v28  ;;  %v16746_v37 = vpop.f32.mrb[50].mxu0  ;;  %17130 = vmatpush3.bf16.msra.mxu0 %v18779_v49  ;;  %v16773_v2 = vpop.f32.mrb[48].mxu1  ;;  %v5294_v49 = vld [vmem:[#allocation2 + $0x78] sm:$0xf8] }
 0x1e4   : > { %v2317_v39 = vadd.f32 %v16746_v37, %v20487_v32  ;;  %v2275_v63 = vpop.f32.mrb[51].mxu0  ;;  %17131 = vmatprep.subr.bf16.mxu0 %v18781_v19  ;;  %v20589_v54 = vpop.f32.mrb[49].mxu1  ;;  %v18785_v32 = vld [vmem:[#allocation7 + $0x180] sm:$0xff]  }
 0x1e5   : > { %v2329_v35 = vadd.f32 %v20582_v11, %v2315_v18  ;;  %v2316_v3 = vadd.f32 %v2275_v63, %v20492_v51  ;;  %v20591_v40 = vpop.f32.mrb[50].mxu1  ;;  %17158 = vmatpush3.bf16.msra.mxu1 %v18780_v31  ;;  %v5122_v31 = vsel %vm1535_vm4, %v5117_v59, %v5121_v4  ;;  %v5318_v18 = vshrl.u32 %v5294_v49, 16 }
 0x1e6   : > { %v20594_v26 = vpop.f32.mrb[51].mxu1  ;;  %17159 = vmatprep.subr.bf16.mxu1 %v18782_v44  ;;  %v2331_v12 = vadd.f32 %v20582_v11, %v2317_v39 }
 0x1e7   : > { %v2330_v28 = vadd.f32 %v20582_v11, %v2316_v3  ;;  %17132 = vmatpush3.bf16.msra.mxu0 %v18781_v19  ;;  %v2337_v20 = vmax.f32 %v2329_v35, 0.0  ;;  %v18788_v19 = vld [vmem:[#allocation7 + $0x1c8] sm:$0xff]   ;;  %v18790_v3 = vld [vmem:[#allocation7 + $0x1d0] sm:$0xff]  }
 0x1e8   : > { %17133 = vmatprep.subr.bf16.mxu0 %v18783_v60 }
 0x1e9   : > { %v2338_v38 = vmax.f32 %v2330_v28, 0.0  ;;  %v16749_v53 = vpop.f32.mrb[52].mxu0  ;;  %17160 = vmatpush3.bf16.msra.mxu1 %v18782_v44  ;;  %v5321_v44 = vshll.u32 %v5294_v49, 16  ;;  %v5326_v28 = vshrl.u32 %v20615_v7, 16 }
 0x1ea   : > { %v2319_v51 = vadd.f32 %v16749_v53, %v20512_v50  ;;  %v2287_v43 = vpop.f32.mrb[53].mxu0  ;;  %17161 = vmatprep.subr.bf16.mxu1 %v18784_v36  ;;  %v18791_v53 = vld [vmem:[#allocation7 + $0x198] sm:$0xff]  }
 0x1eb   : > { %v2345_v48 = vpack.c.bf16 %v2338_v38, %v2337_v20  ;;  %v2318_v27 = vadd.f32 %v2287_v43, %v20522_v0  ;;  %v16750_v17 = vpop.f32.mrb[54].mxu0  ;;  %17134 = vmatpush3.bf16.msra.mxu0 %v18783_v60  ;;  %v20604_v58 = vpop.f32.mrb[52].mxu1  ;;  %v5129_v0 = vrot.slane %v20411_v41, 1 }
 0x1ec   : > { %v2333_v14 = vadd.f32 %v20582_v11, %v2319_v51  ;;  %v2320_v5 = vadd.f32 %v16750_v17, %v20524_v8  ;;  %17175 = vmatprep.subr.bf16.mxu0 %v18785_v32  ;;  %v2290_v50 = vpop.f32.mrb[55].mxu0  ;;  %v20610_v45 = vpop.f32.mrb[53].mxu1  ;;  %v2339_v8 = vmax.f32 %v2331_v12, 0.0  ;;  %v5086_v51 = vld [vmem:[#allocation2 + $0xa0] sm:$0x1]  ;;  %v5145_v12 = vrot.slane %v20564_v25, 1 }
 0x1ed   : > { %2346 = vst [vmem:[#allocation3 + $0x10] sm:$0xff] %v2345_v48  ;;  %v2332_v33 = vadd.f32 %v20582_v11, %v2318_v27  ;;  %17162 = vmatpush3.bf16.msra.mxu1 %v18784_v36  ;;  %v20613_v61 = vpop.f32.mrb[54].mxu1  ;;  %v5130_v63 = vsel %vm1535_vm4, %v5125_v22, %v5129_v0  ;;  %v5329_v36 = vshll.u32 %v20615_v7, 16  ;;  %v5133_v38 = vor.u32 %v5129_v0, %v20400_v62 }
 0x1ee   : > { %v2334_v46 = vadd.f32 %v20582_v11, %v2320_v5  ;;  %17136 = vmatmul.mubr.bf16.vlgmr.msra.gmra.mrb[132].mxu0 %v20363_v10  ;;  %v2341_v24 = vmax.f32 %v2333_v14, 0.0  ;;  %17203 = vmatprep.subr.bf16.mxu1 %v18786_v30  ;;  %v2527_v15 = vpop.f32.mrb[55].mxu1  ;;  %v5137_v10 = vrot.slane %v20542_v52, 1  ;;  %v5320_v48 = vrot.slane %v5318_v18, 3 }
 0x1ef   : > { %v2340_v23 = vmax.f32 %v2332_v33, 0.0  ;;  %17176 = vmatpush3.bf16.msra.mxu0 %v18785_v32  ;;  %17139 = vmatprep.mubr.bf16.mxu0 %v20373_v6  ;;  %v5323_v27 = vrot.slane %v5321_v44, 4  ;;  %v5328_v17 = vrot.slane %v5326_v28, 3  ;;  %v5151_v50 = vshll.u32 %v5086_v51, 16  ;;  %v18793_v33 = vld [vmem:[#allocation7 + $0x1a0] sm:$0xff]  }
 0x1f0   : > { %v2342_v41 = vmax.f32 %v2334_v46, 0.0  ;;  %17177 = vmatprep.subr.bf16.mxu0 %v18787_v9  ;;  %17164 = vmatmul.mubr.bf16.vlgmr.msra.gmra.mrb[132].mxu1 %v5122_v31  ;;  %v5141_v4 = vor.u32 %v5137_v10, %v20518_v34  ;;  %v5138_v14 = vsel %vm1535_vm4, %v5133_v38, %v5137_v10  ;;  %v5543_v18 = vrot.slane %v20615_v7, 4 }
 0x1f1   : > { %v2347_v37 = vpack.c.bf16 %v2340_v23, %v2339_v8  ;;  %v16753_v39 = vpop.f32.mrb[56].mxu0  ;;  %17204 = vmatpush3.bf16.msra.mxu1 %v18786_v30  ;;  %17167 = vmatprep.mubr.bf16.mxu1 %v5130_v63  ;;  %v5331_v30 = vrot.slane %v5329_v36, 4  ;;  %v5324_v46 = vor.u32 %v5323_v27, %v5320_v48  ;;  %v5149_v23 = vor.u32 %v5145_v12, %v20547_v47  ;;  %v18797_v63 = vld [vmem:[#allocation7 + $0x1b0] sm:$0xff]   ;;  %v18801_v48 = vld [vmem:[#allocation7 + $0x200] sm:$0xff]  }
 0x1f2   : > { %v2353_v60 = vpack.c.bf16 %v2342_v41, %v2341_v24  ;;  %v2322_v2 = vadd.f32 %v16753_v39, %v20552_v16  ;;  %v2302_v35 = vpop.f32.mrb[57].mxu0  ;;  %17205 = vmatprep.subr.bf16.mxu1 %v18788_v19  ;;  %v5146_v49 = vsel %vm1535_vm4, %v5141_v4, %v5145_v12  ;;  %v5153_v31 = vrot.slane %v5151_v50, 1  ;;  %v18794_v24 = vld [vmem:[#allocation7 + $0x1e0] sm:$0xff]   ;;  %v18795_v41 = vld [vmem:[#allocation7 + $0x1a8] sm:$0xff]  }
 0x1f3   : > { %v2349_v32 = vrot.slane %v2347_v37, 4  ;;  %v16754_v20 = vpop.f32.mrb[58].mxu0  ;;  %17178 = vmatpush3.bf16.msra.mxu0 %v18787_v9  ;;  %v20626_v59 = vpop.f32.mrb[56].mxu1  ;;  %v18796_v39 = vld [vmem:[#allocation7 + $0x1e8] sm:$0xff]   ;;  %v5346_v4 = vrot.slane %v20518_v34, 3  ;;  %v5349_v12 = vrot.slane %v20542_v52, 4 }
 0x1f4   : > { %2354 = vst [vmem:[#allocation3 + $0x28] sm:$0xff] %v2353_v60  ;;  %v2304_v6 = vpop.f32.mrb[59].mxu0  ;;  %17179 = vmatprep.subr.bf16.mxu0 %v18789_v57  ;;  %v2336_v16 = vadd.f32 %v20582_v11, %v2322_v2  ;;  %v2539_v62 = vpop.f32.mrb[57].mxu1  ;;  %v5154_v37 = vsel %vm1535_vm4, %v5149_v23, %v5153_v31  ;;  %v5358_v23 = vrot.slane %v20564_v25, 4 }
 0x1f5   : > { %2351 = vst [vmem:[#allocation3 + $0x20] ss:$-4 sps:$4 sm:$0xff] %v2349_v32   ;;  %v2321_v43 = vadd.f32 %v2304_v6, %v20566_v29  ;;  %17206 = vmatpush3.bf16.msra.mxu1 %v18788_v19  ;;  %v16782_v5 = vpop.f32.mrb[58].mxu1  ;;  %v20644_v19 = vld [vmem:[#allocation2 + $0x78] sm:$0xf0]  ;;  %v18798_v32 = vld [vmem:[#allocation7 + $0x1f0] sm:$0xff]  }
 0x1f6   : > { %17140 = vmatmul.mubr.bf16.gmra.mrb[136].mxu0 %v20397_v42  ;;  %17207 = vmatprep.subr.bf16.mxu1 %v18790_v3  ;;  %v18792_v42 = vld [vmem:[#allocation7 + $0x1d8] sm:$0xff]   ;;  %v20637_v9 = vpop.f32.mrb[59].mxu1  ;;  %v2344_v22 = vmax.f32 %v2336_v16, 0.0  ;;  %v5542_v10 = vrot.slane %v20644_v19, 4 }
 0x1f7   : > { %v2335_v29 = vadd.f32 %v20582_v11, %v2321_v43  ;;  %17180 = vmatpush3.bf16.msra.mxu0 %v18789_v57  ;;  %17143 = vmatprep.mubr.bf16.mxu0 %v20499_v21  ;;  %v20641_v11 = vor.u32 %v5331_v30, %v5328_v17  ;;  %v18799_v6 = vld [vmem:[#allocation7 + $0x1b8] sm:$0xff]   ;;  %v20664_v17 = vld [vmem:[#allocation2 + $0xa0] sm:$0xff] }
 0x1f8   : > { %17181 = vmatprep.subr.bf16.mxu0 %v18791_v53  ;;  %17168 = vmatmul.mubr.bf16.gmra.mrb[136].mxu1 %v5138_v14  ;;  %v5544_v2 = vsel %vm611_vm0, %v5542_v10, %v5543_v18  ;;  %v18800_v43 = vld [vmem:[#allocation7 + $0x1f8] sm:$0xff]   ;;  %v5365_v14 = vshll.u32 %v20664_v17, 16 }
 0x1f9   : > { %v2343_v0 = vmax.f32 %v2335_v29, 0.0  ;;  %17208 = vmatpush3.bf16.msra.mxu1 %v18790_v3  ;;  %17171 = vmatprep.mubr.bf16.mxu1 %v5146_v49  ;;  %v5333_v57 = vsel %vm756_vm1, %v5324_v46, %v20641_v11  ;;  %v18802_v49 = vld [vmem:[#allocation7 + $0x40] sm:$0xff]   ;;  %v18803_v46 = vld [vmem:[#allocation7 + $0x208] sm:$0xff]  }
 0x1fa   : > { %17209 = vmatprep.subr.bf16.mxu1 %v18792_v42 }
 0x1fb   : > { %v2355_v8 = vpack.c.bf16 %v2344_v22, %v2343_v0  ;;  %17182 = vmatpush3.bf16.msra.mxu0 %v18791_v53  ;;  %v5342_v0 = vsel %vm756_vm1, %v20641_v11, %v20455_v56  ;;  %v5367_v11 = vrot.slane %v5365_v14, 4 }
 0x1fc   : > { %17183 = vmatprep.subr.bf16.mxu0 %v18793_v33 }
 0x1fd   : > { %v2357_v15 = vrot.slane %v2355_v8, 4  ;;  %17210 = vmatpush3.bf16.msra.mxu1 %v18792_v42  ;;  %v5350_v42 = vor.u32 %v5349_v12, %v5346_v4  ;;  %v5355_v8 = vrot.slane %v20547_v47, 3  ;;  %v5549_v4 = vrot.slane %v20526_v1, 4 }
 0x1fe   : > { %17144 = vmatmul.mubr.bf16.gmra.mrb[140].mxu0 %v20526_v1  ;;  %17211 = vmatprep.subr.bf16.mxu1 %v18794_v24 }
 0x1ff   : > { %2359 = vst [vmem:[#allocation3 + $0x38] ss:$-4 sps:$4 sm:$0xff] %v2357_v15   ;;  %17184 = vmatpush3.bf16.msra.mxu0 %v18793_v33  ;;  %17191 = vmatprep.mubr.bf16.mxu0 %v5333_v57  ;;  %v5351_v10 = vsel %vm756_vm1, %v20455_v56, %v5350_v42 }
 0x200   : > { %17185 = vmatprep.subr.bf16.mxu0 %v18795_v41  ;;  %17172 = vmatmul.mubr.bf16.gmra.mrb[140].mxu1 %v5154_v37  ;;  %v5547_v37 = vrot.slane %v20499_v21, 4 }
 0x201   : > { %v16801_v44 = vpop.f32.mrb[60].mxu0  ;;  %17212 = vmatpush3.bf16.msra.mxu1 %v18794_v24  ;;  %17219 = vmatprep.mubr.bf16.mxu1 %v5544_v2  ;;  %v20680_v24 = vld [vmem:[#allocation2 + $0xa8] sm:$0xf] }
 0x202   : > { %v2702_v60 = vpop.f32.mrb[61].mxu0  ;;  %17213 = vmatprep.subr.bf16.mxu1 %v18796_v39  ;;  %v18804_v44 = vld [vmem:[#allocation7 + $0x48] sm:$0xff]   ;;  %v5371_v2 = vshrl.u32 %v20680_v24, 16 }
 0x203   : > { %v2703_v35 = vadd.f32 %v2702_v60, %v20589_v54  ;;  %v16802_v3 = vpop.f32.mrb[62].mxu0  ;;  %17186 = vmatpush3.bf16.msra.mxu0 %v18795_v41  ;;  %v16829_v53 = vpop.f32.mrb[60].mxu1  ;;  %v5359_v60 = vor.u32 %v5358_v23, %v5355_v8  ;;  %v18808_v23 = vld [vmem:[#allocation7 + $0x58] sm:$0xff]  }
 0x204   : > { %v2713_v20 = vadd.f32 %v16802_v3, %v20591_v40  ;;  %v2705_v38 = vpop.f32.mrb[63].mxu0  ;;  %17187 = vmatprep.subr.bf16.mxu0 %v18797_v63  ;;  %v2887_v16 = vpop.f32.mrb[61].mxu1  ;;  %v5548_v53 = vsel %vm611_vm0, %v20433_v55, %v5547_v37  ;;  %v5373_v12 = vrot.slane %v5371_v2, 3 }
 0x205   : > { %v2706_v51 = vadd.f32 %v2705_v38, %v20594_v26  ;;  %v20660_v54 = vadd.f32 %v2887_v16, %v2703_v35  ;;  %v16830_v62 = vpop.f32.mrb[62].mxu1  ;;  %17214 = vmatpush3.bf16.msra.mxu1 %v18796_v39  ;;  %v5362_v26 = vshrl.u32 %v20664_v17, 16  ;;  %v5374_v35 = vshll.u32 %v20680_v24, 16 }
 0x206   : > { %v20662_v40 = vadd.f32 %v16830_v62, %v2713_v20  ;;  %v2890_v27 = vpop.f32.mrb[63].mxu1  ;;  %17215 = vmatprep.subr.bf16.mxu1 %v18798_v32  ;;  %v5712_v20 = vshrl.u32 %v20644_v19, 16 }
 0x207   : > { %17188 = vmatpush3.bf16.msra.mxu0 %v18797_v63  ;;  %v20667_v30 = vadd.f32 %v2890_v27, %v2706_v51  ;;  %v5715_v51 = vshll.u32 %v20644_v19, 16  ;;  %v5376_v62 = vrot.slane %v5374_v35, 4  ;;  %v18806_v27 = vld [vmem:[#allocation7 + $0x50] sm:$0xff]   ;;  %v20712_v19 = vrot.slane %v20664_v17, 4 }
 0x208   : > { %17189 = vmatprep.subr.bf16.mxu0 %v18799_v6  ;;  %v18814_v35 = vld [vmem:[#allocation7 + $0x70] sm:$0xff]  }
 0x209   : > { %v16805_v29 = vpop.f32.mrb[64].mxu0  ;;  %17216 = vmatpush3.bf16.msra.mxu1 %v18798_v32  ;;  %v18805_v32 = vld [vmem:[#allocation7 + $0x210] sm:$0xff]   ;;  %v20725_v7 = vsel %vm611_vm0, %v5549_v4, %v20712_v19 }
 0x20a   : > { %v2725_v5 = vadd.f32 %v16805_v29, %v20604_v58  ;;  %v2717_v50 = vpop.f32.mrb[65].mxu0  ;;  %17217 = vmatprep.subr.bf16.mxu1 %v18800_v43 }
 0x20b   : > { %v2718_v33 = vadd.f32 %v2717_v50, %v20610_v45  ;;  %v16806_v22 = vpop.f32.mrb[66].mxu0  ;;  %17190 = vmatpush3.bf16.msra.mxu0 %v18799_v6  ;;  %v5364_v45 = vrot.slane %v5362_v26, 3  ;;  %v16833_v41 = vpop.f32.mrb[64].mxu1  ;;  %v5714_v50 = vrot.slane %v5712_v20, 4 }
 0x20c   : > { %v2728_v58 = vadd.f32 %v16806_v22, %v20613_v61  ;;  %17231 = vmatprep.subr.bf16.mxu0 %v18801_v48  ;;  %v2720_v31 = vpop.f32.mrb[67].mxu0  ;;  %v20684_v15 = vadd.f32 %v16833_v41, %v2725_v5  ;;  %v2902_v57 = vpop.f32.mrb[65].mxu1  ;;  %v5546_v61 = vsel %vm611_vm0, %v5543_v18, %v20433_v55  ;;  %v5719_v22 = vrot.slane %v5326_v28, 4 }
 0x20d   : > { %17218 = vmatpush3.bf16.msra.mxu1 %v18800_v43  ;;  %v20693_v39 = vadd.f32 %v2902_v57, %v2718_v33  ;;  %v16834_v63 = vpop.f32.mrb[66].mxu1  ;;  %v20699_v21 = vor.u32 %v5367_v11, %v5364_v45  ;;  %v5360_v43 = vsel %vm756_vm1, %v5350_v42, %v5359_v60  ;;  %v5717_v33 = vrot.slane %v5715_v51, 5  ;;  %v18810_v45 = vld [vmem:[#allocation7 + $0x60] sm:$0xff]   ;;  %v18811_v57 = vld [vmem:[#allocation7 + $0x228] sm:$0xff]  }
 0x20e   : > { %17192 = vmatmul.mubr.bf16.vlgmr.msra.gmra.mrb[144].mxu0 %v5342_v0  ;;  %v20697_v3 = vadd.f32 %v16834_v63, %v2728_v58  ;;  %17259 = vmatprep.subr.bf16.mxu1 %v18802_v49  ;;  %v2905_v18 = vpop.f32.mrb[67].mxu1  ;;  %v5720_v0 = vrot.slane %v5329_v36, 5  ;;  %v18809_v58 = vld [vmem:[#allocation7 + $0x220] sm:$0xff]   ;;  %v5553_v11 = vrot.slane %v20680_v24, 4  ;;  %v18813_v24 = vld [vmem:[#allocation7 + $0x230] sm:$0xff]   ;;  %v5727_v51 = vrot.slane %v20518_v34, 4 }
 0x20f   : > { %17232 = vmatpush3.bf16.msra.mxu0 %v18801_v48  ;;  %17195 = vmatprep.mubr.bf16.mxu0 %v5351_v10  ;;  %v5369_v55 = vsel %vm756_vm1, %v5359_v60, %v20699_v21  ;;  %v5718_v28 = vor.u32 %v5717_v33, %v5714_v50  ;;  %v20756_v50 = vld [vmem:[#allocation2 + $0xb0] sm:$0xff] }
 0x210   : > { %17233 = vmatprep.subr.bf16.mxu0 %v18803_v46  ;;  %17220 = vmatmul.mubr.bf16.vlgmr.msra.gmra.mrb[144].mxu1 %v5546_v61  ;;  %v20727_v36 = vor.u32 %v5720_v0, %v5719_v22  ;;  %v20732_v61 = vld [vmem:[#allocation2 + $0x90] sm:$0xf0]  ;;  %v5554_v63 = vsel %vm611_vm0, %v20712_v19, %v5553_v11 }
 0x211   : > { %v16809_v56 = vpop.f32.mrb[68].mxu0  ;;  %17260 = vmatpush3.bf16.msra.mxu1 %v18802_v49  ;;  %17223 = vmatprep.mubr.bf16.mxu1 %v5548_v53  ;;  %v5550_v49 = vsel %vm611_vm0, %v5547_v37, %v5549_v4  ;;  %v5966_v37 = vrot.slane %v20732_v61, 4 }
 0x212   : > { %v2740_v38 = vadd.f32 %v16809_v56, %v20626_v59  ;;  %v2732_v6 = vpop.f32.mrb[69].mxu0  ;;  %17261 = vmatprep.subr.bf16.mxu1 %v18804_v44  ;;  %v18807_v59 = vld [vmem:[#allocation7 + $0x218] sm:$0xff]   ;;  %v5722_v10 = vsel %vm968_vm2, %v5718_v28, %v20727_v36  ;;  %v5726_v0 = vsel %vm968_vm2, %v20727_v36, %v20534_v13  ;;  %v5973_v36 = vrot.slane %v20756_v50, 4 }
 0x213   : > { %v16810_v16 = vpop.f32.mrb[70].mxu0  ;;  %17234 = vmatpush3.bf16.msra.mxu0 %v18803_v46  ;;  %v16837_v29 = vpop.f32.mrb[68].mxu1  ;;  %v5377_v46 = vor.u32 %v5376_v62, %v5373_v12  ;;  %v5968_v18 = vsel %vm611_vm0, %v5966_v37, %v5549_v4  ;;  %v5728_v4 = vrot.slane %v20542_v52, 5  ;;  %v18816_v62 = vld [vmem:[#allocation7 + $0x78] sm:$0xff]  }
 0x214   : > { %v2734_v48 = vpop.f32.mrb[71].mxu0  ;;  %17235 = vmatprep.subr.bf16.mxu0 %v18805_v32  ;;  %v20714_v42 = vadd.f32 %v16837_v29, %v2740_v38  ;;  %v2917_v1 = vpop.f32.mrb[69].mxu1  ;;  %v18815_v38 = vld [vmem:[#allocation7 + $0x238] sm:$0xff]  }
 0x215   : > { %v2735_v5 = vadd.f32 %v2734_v48, %v20637_v9  ;;  %17262 = vmatpush3.bf16.msra.mxu1 %v18804_v44  ;;  %v16838_v9 = vpop.f32.mrb[70].mxu1  ;;  %v5378_v41 = vsel %vm756_vm1, %v20699_v21, %v5377_v46  ;;  %v18812_v44 = vld [vmem:[#allocation7 + $0x68] sm:$0xff]   ;;  %v18817_v48 = vld [vmem:[#allocation7] sm:$0xff]   ;;  %v5919_v1 = vld [vmem:[#allocation2 + $0x90] sm:$0xf8] }
 0x216   : > { %17196 = vmatmul.mubr.bf16.gmra.mrb[148].mxu0 %v5360_v43  ;;  %v2919_v8 = vpop.f32.mrb[71].mxu1  ;;  %17263 = vmatprep.subr.bf16.mxu1 %v18806_v27  ;;  %v5731_v9 = vrot.slane %v20547_v47, 4 }
 0x217   : > { %17236 = vmatpush3.bf16.msra.mxu0 %v18805_v32  ;;  %v20721_v31 = vadd.f32 %v2919_v8, %v2735_v5  ;;  %17199 = vmatprep.mubr.bf16.mxu0 %v5369_v55  ;;  %v5694_v32 = vld [vmem:[#allocation2 + $0xa8] sm:$0x1f]  ;;  %v20754_v55 = vor.u32 %v5728_v4, %v5727_v51 }
 0x218   : > { %17237 = vmatprep.subr.bf16.mxu0 %v18807_v59  ;;  %17224 = vmatmul.mubr.bf16.gmra.mrb[148].mxu1 %v5550_v49  ;;  %v5732_v49 = vrot.slane %v20564_v25, 5 }
 0x219   : > { %17264 = vmatpush3.bf16.msra.mxu1 %v18806_v27  ;;  %17227 = vmatprep.mubr.bf16.mxu1 %v20725_v7 }
 0x21a   : > { %17265 = vmatprep.subr.bf16.mxu1 %v18808_v23 }
 0x21b   : > { %17238 = vmatpush3.bf16.msra.mxu0 %v18807_v59 }
 0x21c   : > { %17239 = vmatprep.subr.bf16.mxu0 %v18809_v58 }
 0x21d   : > { %17266 = vmatpush3.bf16.msra.mxu1 %v18808_v23  ;;  %v18818_v23 = vld [vmem:[#allocation7 + $0x80] sm:$0xff]  }
 0x21e   : > { %17200 = vmatmul.mubr.bf16.gmra.mrb[152].mxu0 %v5378_v41  ;;  %17267 = vmatprep.subr.bf16.mxu1 %v18810_v45  ;;  %v7703_v41 = vld [vmem:[#allocation3 + $0x28] sm:$0xff] }
 0x21f   : > { %17240 = vmatpush3.bf16.msra.mxu0 %v18809_v58  ;;  %17247 = vmatprep.mubr.bf16.mxu0 %v5722_v10  ;;  %v18819_v58 = vld [vmem:[#allocation7 + $0x8] sm:$0xff]  }
 0x220   : > { %17241 = vmatprep.subr.bf16.mxu0 %v18811_v57  ;;  %17228 = vmatmul.mubr.bf16.gmra.mrb[152].mxu1 %v5554_v63  ;;  %v18821_v63 = vld [vmem:[#allocation7 + $0x10] sm:$0xff]  }
 0x221   : > { %v16857_v60 = vpop.f32.mrb[72].mxu0  ;;  %17268 = vmatpush3.bf16.msra.mxu1 %v18810_v45  ;;  %17275 = vmatprep.mubr.bf16.mxu1 %v5968_v18  ;;  %v5735_v45 = vrot.slane %v5362_v26, 4 }
 0x222   : > { %v3101_v2 = vpop.f32.mrb[73].mxu0  ;;  %17269 = vmatprep.subr.bf16.mxu1 %v18812_v44  ;;  %v20784_v60 = vld [vmem:[#allocation2 + $0x98] sm:$0xff] }
 0x223   : > { %v3144_v56 = vadd.f32 %v3101_v2, %v20660_v54  ;;  %v16858_v20 = vpop.f32.mrb[74].mxu0  ;;  %17242 = vmatpush3.bf16.msra.mxu0 %v18811_v57  ;;  %v16885_v16 = vpop.f32.mrb[72].mxu1  ;;  %v20746_v54 = vld [vmem:[#allocation2 + $0xa8] sm:$0xff]  ;;  %v5730_v57 = vsel %vm968_vm2, %v20534_v13, %v20754_v55  ;;  %v6119_v2 = vshrl.u32 %v20784_v60, 16  ;;  %v6122_v13 = vshll.u32 %v20784_v60, 16 }
 0x224   : > { %v3146_v6 = vadd.f32 %v16858_v20, %v20662_v40  ;;  %v3104_v53 = vpop.f32.mrb[75].mxu0  ;;  %17243 = vmatprep.subr.bf16.mxu0 %v18813_v24  ;;  %v3250_v12 = vpop.f32.mrb[73].mxu1  ;;  %v5740_v40 = vshrl.u32 %v5694_v32, 16  ;;  %v5971_v28 = vrot.slane %v20746_v54, 4  ;;  %v20792_v20 = vshll.u32 %v7703_v41, 16 }
 0x225   : > { %v3145_v43 = vadd.f32 %v3104_v53, %v20667_v30  ;;  %v20748_v27 = vadd.f32 %v3250_v12, %v3144_v56  ;;  %v16886_v59 = vpop.f32.mrb[74].mxu1  ;;  %17270 = vmatpush3.bf16.msra.mxu1 %v18812_v44  ;;  %v5743_v30 = vshll.u32 %v5694_v32, 16  ;;  %v20781_v44 = vld [vmem:[#allocation2 + $0xb8] sm:$0xff]  ;;  %v5733_v32 = vor.u32 %v5732_v49, %v5731_v9 }
 0x226   : > { %v20750_v29 = vadd.f32 %v16886_v59, %v3146_v6  ;;  %v3253_v34 = vpop.f32.mrb[75].mxu1  ;;  %17271 = vmatprep.subr.bf16.mxu1 %v18814_v35  ;;  %v20775_v26 = vrot.slane %v5740_v40, 4  ;;  %v20790_v56 = vshrl.u32 %v7703_v41, 16  ;;  %v6321_v16 = vshrl.u32 %v20732_v61, 16  ;;  %v18822_v40 = vld [vmem:[#allocation7 + $0x90] sm:$0xff]  }
 0x227   : > { %17244 = vmatpush3.bf16.msra.mxu0 %v18813_v24  ;;  %v20752_v5 = vadd.f32 %v3253_v34, %v3145_v43  ;;  %v20777_v17 = vrot.slane %v5743_v30, 5  ;;  %v5975_v24 = vrot.slane %v20781_v44, 4  ;;  %v6324_v43 = vshll.u32 %v20732_v61, 16  ;;  %v18823_v34 = vld [vmem:[#allocation7 + $0x18] sm:$0xff]  }
 0x228   : > { %17245 = vmatprep.subr.bf16.mxu0 %v18815_v38  ;;  %v5972_v30 = vsel %vm611_vm0, %v20712_v19, %v5971_v28  ;;  %v6121_v61 = vrot.slane %v6119_v2, 3 }
 0x229   : > { %v16861_v52 = vpop.f32.mrb[76].mxu0  ;;  %17272 = vmatpush3.bf16.msra.mxu1 %v18814_v35 }
 0x22a   : > { %v3148_v33 = vadd.f32 %v16861_v52, %v20684_v15  ;;  %v3116_v22 = vpop.f32.mrb[77].mxu0  ;;  %v5736_v15 = vrot.slane %v5365_v14, 5  ;;  %17273 = vmatprep.subr.bf16.mxu1 %v18816_v62  ;;  %v6114_v14 = vshll.u32 %v5919_v1, 16 }
 0x22b   : > { %v3147_v46 = vadd.f32 %v3116_v22, %v20693_v39  ;;  %v16862_v8 = vpop.f32.mrb[78].mxu0  ;;  %17246 = vmatpush3.bf16.msra.mxu0 %v18815_v38  ;;  %v6111_v39 = vshrl.u32 %v5919_v1, 16  ;;  %v16889_v11 = vpop.f32.mrb[76].mxu1  ;;  %v8282_v38 = vld [vmem:[#allocation3 + $0x30] sm:$0xff]  ;;  %v8283_v1 = vld [vmem:[#allocation3 + $0x38] sm:$0xff]  ;;  %v8125_v22 = vrot.slane %v20790_v56, 4 }
 0x22c   : > { %v3149_v47 = vadd.f32 %v16862_v8, %v20697_v3  ;;  %17287 = vmatprep.subr.bf16.mxu0 %v18817_v48  ;;  %v3119_v25 = vpop.f32.mrb[79].mxu0  ;;  %v20779_v10 = vadd.f32 %v16889_v11, %v3148_v33  ;;  %v3265_v37 = vpop.f32.mrb[77].mxu1  ;;  %v18820_v3 = vld [vmem:[#allocation7 + $0x88] sm:$0xff]   ;;  %v20800_v12 = vor.u32 %v5736_v15, %v5735_v45  ;;  %v20812_v52 = vshrl.u32 %v8282_v38, 16  ;;  %v20829_v15 = vld [vmem:[#allocation2 + $0xc0] sm:$0xf] }
 0x22d   : > { %17274 = vmatpush3.bf16.msra.mxu1 %v18816_v62  ;;  %v20788_v35 = vadd.f32 %v3265_v37, %v3147_v46  ;;  %v16890_v18 = vpop.f32.mrb[78].mxu1  ;;  %v20796_v51 = vrot.slane %v6111_v39, 3  ;;  %v20802_v62 = vrot.slane %v6114_v14, 4  ;;  %v20820_v9 = vshll.u32 %v8282_v38, 16 }
 0x22e   : > { %17248 = vmatmul.mubr.bf16.vlgmr.msra.gmra.mrb[156].mxu0 %v5726_v0  ;;  %v20794_v6 = vadd.f32 %v16890_v18, %v3149_v47  ;;  %17315 = vmatprep.subr.bf16.mxu1 %v18818_v23  ;;  %v3268_v53 = vpop.f32.mrb[79].mxu1  ;;  %v8126_v0 = vrot.slane %v20792_v20, 5  ;;  %v20823_v8 = vshrl.u32 %v8283_v1, 16  ;;  %v5738_v45 = vsel %vm968_vm2, %v5733_v32, %v20800_v12 }
 0x22f   : > { %17288 = vmatpush3.bf16.msra.mxu0 %v18817_v48  ;;  %17251 = vmatprep.mubr.bf16.mxu0 %v5730_v57  ;;  %v9293_v47 = vrot.slane %v20812_v52, 4  ;;  %v5974_v39 = vsel %vm611_vm0, %v5971_v28, %v5973_v36  ;;  %v20839_v41 = vshll.u32 %v8283_v1, 16  ;;  %v18825_v57 = vld [vmem:[#allocation7 + $0x20] sm:$0xff]   ;;  %v5976_v14 = vsel %vm611_vm0, %v5973_v36, %v5975_v24 }
 0x230   : > { %17289 = vmatprep.subr.bf16.mxu0 %v18819_v58  ;;  %17276 = vmatmul.mubr.bf16.vlgmr.msra.gmra.mrb[156].mxu1 %v20725_v7  ;;  %v6124_v7 = vrot.slane %v6122_v13, 4  ;;  %v6323_v37 = vrot.slane %v6321_v16, 4  ;;  %v6117_v28 = vor.u32 %v20802_v62, %v20796_v51  ;;  %v20857_v36 = vor.u32 %v8126_v0, %v8125_v22  ;;  %v18826_v16 = vld [vmem:[#allocation7 + $0xa0] sm:$0xff]  }
 0x231   : > { %v16865_v4 = vpop.f32.mrb[80].mxu0  ;;  %17316 = vmatpush3.bf16.msra.mxu1 %v18818_v23  ;;  %17279 = vmatprep.mubr.bf16.mxu1 %v5972_v30  ;;  %v5977_v51 = vrot.slane %v20829_v15, 4  ;;  %v18829_v30 = vld [vmem:[#allocation7 + $0x30] sm:$0xff]   ;;  %v20887_v22 = vshll.u32 %v20746_v54, 16 }
 0x232   : > { %v3151_v48 = vadd.f32 %v16865_v4, %v20714_v42  ;;  %v3131_v59 = vpop.f32.mrb[81].mxu0  ;;  %v5734_v42 = vsel %vm968_vm2, %v20754_v55, %v5733_v32  ;;  %17317 = vmatprep.subr.bf16.mxu1 %v18820_v3  ;;  %v20853_v18 = vor.u32 %v6124_v7, %v6121_v61  ;;  %v6329_v32 = vrot.slane %v6122_v13, 5  ;;  %v18827_v4 = vld [vmem:[#allocation7 + $0x28] sm:$0xff]  }
 0x233   : > { %v16866_v33 = vpop.f32.mrb[82].mxu0  ;;  %17290 = vmatpush3.bf16.msra.mxu0 %v18819_v58  ;;  %v16893_v49 = vpop.f32.mrb[80].mxu1  ;;  %v18824_v58 = vld [vmem:[#allocation7 + $0x98] sm:$0xff]  }
 0x234   : > { %v3133_v19 = vpop.f32.mrb[83].mxu0  ;;  %17291 = vmatprep.subr.bf16.mxu0 %v18821_v63  ;;  %v20825_v23 = vadd.f32 %v16893_v49, %v3151_v48  ;;  %v3280_v55 = vpop.f32.mrb[81].mxu1  ;;  %v6126_v62 = vsel %vm756_vm1, %v6117_v28, %v20853_v18  ;;  %v20882_v33 = vshrl.u32 %v20746_v54, 16 }
 0x235   : > { %v3150_v46 = vadd.f32 %v3133_v19, %v20721_v31  ;;  %17318 = vmatpush3.bf16.msra.mxu1 %v18820_v3  ;;  %v16894_v25 = vpop.f32.mrb[82].mxu1  ;;  %v5746_v31 = vor.u32 %v20777_v17, %v20775_v26  ;;  %v9294_v26 = vrot.slane %v20820_v9, 5  ;;  %v6326_v3 = vrot.slane %v6324_v43, 5  ;;  %v18830_v19 = vld [vmem:[#allocation7 + $0xb0] sm:$0xff]   ;;  %v18831_v55 = vld [vmem:[#allocation7 + $0x38] sm:$0xff]  }
 0x236   : > { %17252 = vmatmul.mubr.bf16.gmra.mrb[160].mxu0 %v5734_v42  ;;  %v3282_v11 = vpop.f32.mrb[83].mxu1  ;;  %17319 = vmatprep.subr.bf16.mxu1 %v18822_v40  ;;  %v9297_v43 = vrot.slane %v20823_v8, 4  ;;  %v18832_v25 = vld [vmem:[#allocation7 + $0xb8] sm:$0xff]  }
 0x237   : > { %17292 = vmatpush3.bf16.msra.mxu0 %v18821_v63  ;;  %v20847_v17 = vadd.f32 %v3282_v11, %v3150_v46  ;;  %17255 = vmatprep.mubr.bf16.mxu0 %v5738_v45  ;;  %v6328_v63 = vrot.slane %v6119_v2, 4  ;;  %v9295_v38 = vor.u32 %v9294_v26, %v9293_v47  ;;  %v5747_v53 = vsel %vm968_vm2, %v20800_v12, %v5746_v31 }
 0x238   : > { %17293 = vmatprep.subr.bf16.mxu0 %v18823_v34  ;;  %17280 = vmatmul.mubr.bf16.gmra.mrb[160].mxu1 %v5974_v39  ;;  %v9298_v2 = vrot.slane %v20839_v41, 5  ;;  %v6327_v48 = vor.u32 %v6326_v3, %v6323_v37  ;;  %v6139_v31 = vrot.slane %v20882_v33, 3  ;;  %v6142_v39 = vrot.slane %v20887_v22, 4  ;;  %v18833_v37 = vld [vmem:[#allocation7 + $0xc0] sm:$0xff]  }
 0x239   : > { %17320 = vmatpush3.bf16.msra.mxu1 %v18822_v40  ;;  %v20866_v60 = vsel %vm968_vm2, %v20857_v36, %v9295_v38  ;;  %17283 = vmatprep.mubr.bf16.mxu1 %v5976_v14  ;;  %v20872_v59 = vor.u32 %v6329_v32, %v6328_v63  ;;  %v18828_v40 = vld [vmem:[#allocation7 + $0xa8] sm:$0xff]   ;;  %v6336_v3 = vrot.slane %v20882_v33, 4  ;;  %v6337_v63 = vrot.slane %v20887_v22, 5 }
 0x23a   : > { %17321 = vmatprep.subr.bf16.mxu1 %v18824_v58  ;;  %v20868_v13 = vor.u32 %v9298_v2, %v9297_v43  ;;  %v20909_v32 = vshrl.u32 %v20781_v44, 16  ;;  %v20916_v43 = vshll.u32 %v20781_v44, 16 }
 0x23b   : > { %17294 = vmatpush3.bf16.msra.mxu0 %v18823_v34  ;;  %v5978_v34 = vsel %vm611_vm0, %v5975_v24, %v5977_v51  ;;  %v6331_v7 = vsel %vm968_vm2, %v6327_v48, %v20872_v59  ;;  %v6143_v51 = vor.u32 %v6142_v39, %v6139_v31  ;;  %v18835_v48 = vld [vmem:[#allocation7 + $0xc8] sm:$0xff]   ;;  %v6335_v39 = vsel %vm968_vm2, %v20872_v59, %v20800_v12 }
 0x23c   : > { %17295 = vmatprep.subr.bf16.mxu0 %v18825_v57  ;;  %v20879_v61 = vsel %vm968_vm2, %v9295_v38, %v20868_v13 }
 0x23d   : > { %17322 = vmatpush3.bf16.msra.mxu1 %v18824_v58 }
 0x23e   : > { %17256 = vmatmul.mubr.bf16.gmra.mrb[164].mxu0 %v5747_v53  ;;  %17323 = vmatprep.subr.bf16.mxu1 %v18826_v16 }
 0x23f   : > { %17296 = vmatpush3.bf16.msra.mxu0 %v18825_v57  ;;  %17303 = vmatprep.mubr.bf16.mxu0 %v6126_v62  ;;  %v18834_v62 = vld [vmem:[#allocation7 + $0x100] sm:$0xff]  }
 0x240   : > { %17297 = vmatprep.subr.bf16.mxu0 %v18827_v4  ;;  %17284 = vmatmul.mubr.bf16.gmra.mrb[164].mxu1 %v5978_v34 }
 0x241   : > { %v16913_v1 = vpop.f32.mrb[84].mxu0  ;;  %17324 = vmatpush3.bf16.msra.mxu1 %v18826_v16  ;;  %17331 = vmatprep.mubr.bf16.mxu1 %v6331_v7  ;;  %v6135_v16 = vsel %vm756_vm1, %v20853_v18, %v20699_v21  ;;  %v20926_v7 = vor.u32 %v6337_v63, %v6336_v3 }
 0x242   : > { %v3464_v42 = vpop.f32.mrb[85].mxu0  ;;  %17325 = vmatprep.subr.bf16.mxu1 %v18828_v40 }
 0x243   : > { %v3507_v24 = vadd.f32 %v3464_v42, %v20748_v27  ;;  %v16914_v0 = vpop.f32.mrb[86].mxu0  ;;  %17298 = vmatpush3.bf16.msra.mxu0 %v18827_v4  ;;  %v16941_v58 = vpop.f32.mrb[84].mxu1  ;;  %v20895_v27 = vshrl.u32 %v20756_v50, 16  ;;  %v20924_v42 = vld [vmem:[#allocation2 + $0xc0] sm:$0x1f] }
 0x244   : > { %v3509_v49 = vadd.f32 %v16914_v0, %v20750_v29  ;;  %v3467_v46 = vpop.f32.mrb[87].mxu0  ;;  %17299 = vmatprep.subr.bf16.mxu0 %v18829_v30  ;;  %v3688_v47 = vpop.f32.mrb[85].mxu1  ;;  %v20900_v29 = vshll.u32 %v20756_v50, 16  ;;  %v6160_v58 = vrot.slane %v20916_v43, 4 }
 0x245   : > { %v3508_v45 = vadd.f32 %v3467_v46, %v20752_v5  ;;  %v20897_v11 = vadd.f32 %v3688_v47, %v3507_v24  ;;  %v16942_v57 = vpop.f32.mrb[86].mxu1  ;;  %17326 = vmatpush3.bf16.msra.mxu1 %v18828_v40  ;;  %v6148_v40 = vrot.slane %v20895_v27, 3  ;;  %v6340_v34 = vrot.slane %v20895_v27, 4 }
 0x246   : > { %v20902_v14 = vadd.f32 %v16942_v57, %v3509_v49  ;;  %v3691_v5 = vpop.f32.mrb[87].mxu1  ;;  %17327 = vmatprep.subr.bf16.mxu1 %v18830_v19  ;;  %v6341_v1 = vrot.slane %v20900_v29, 5  ;;  %v6164_v24 = vshrl.u32 %v20829_v15, 16  ;;  %v18836_v49 = vld [vmem:[#allocation7 + $0x108] sm:$0xff]   ;;  %v6144_v46 = vsel %vm756_vm1, %v20699_v21, %v6143_v51 }
 0x247   : > { %17300 = vmatpush3.bf16.msra.mxu0 %v18829_v30  ;;  %v20904_v26 = vadd.f32 %v3691_v5, %v3508_v45  ;;  %v20935_v45 = vld [vmem:[#allocation2 + $0xa0] sm:$0xff]  ;;  %v6167_v21 = vshll.u32 %v20829_v15, 16  ;;  %v6496_v5 = vld [vmem:[#allocation2 + $0x98] sm:$0x80] }
 0x248   : > { %17301 = vmatprep.subr.bf16.mxu0 %v18831_v55  ;;  %v20951_v59 = vor.u32 %v6341_v1, %v6340_v34  ;;  %v6166_v34 = vrot.slane %v6164_v24, 3  ;;  %v18839_v1 = vld [vmem:[#allocation7 + $0xd8] sm:$0xff]  }
 0x249   : > { %v16917_v28 = vpop.f32.mrb[88].mxu0  ;;  %17328 = vmatpush3.bf16.msra.mxu1 %v18830_v19 }
 0x24a   : > { %v3511_v38 = vadd.f32 %v16917_v28, %v20779_v10  ;;  %v3479_v53 = vpop.f32.mrb[89].mxu0  ;;  %v6151_v10 = vrot.slane %v20900_v29, 4  ;;  %17329 = vmatprep.subr.bf16.mxu1 %v18832_v25 }
 0x24b   : > { %v3510_v2 = vadd.f32 %v3479_v53, %v20788_v35  ;;  %v16918_v4 = vpop.f32.mrb[90].mxu0  ;;  %17302 = vmatpush3.bf16.msra.mxu0 %v18831_v55  ;;  %v16945_v35 = vpop.f32.mrb[88].mxu1  ;;  %v6157_v55 = vrot.slane %v20909_v32, 3 }
 0x24c   : > { %v3512_v18 = vadd.f32 %v16918_v4, %v20794_v6  ;;  %17343 = vmatprep.subr.bf16.mxu0 %v18833_v37  ;;  %v3482_v30 = vpop.f32.mrb[91].mxu0  ;;  %v20929_v0 = vadd.f32 %v16945_v35, %v3511_v38  ;;  %v3703_v19 = vpop.f32.mrb[89].mxu1  ;;  %v18837_v6 = vld [vmem:[#allocation7 + $0xd0] sm:$0xff]   ;;  %v20942_v57 = vor.u32 %v6151_v10, %v6148_v40  ;;  %v6339_v38 = vsel %vm968_vm2, %v20800_v12, %v20926_v7 }
 0x24d   : > { %17330 = vmatpush3.bf16.msra.mxu1 %v18832_v25  ;;  %v20937_v47 = vadd.f32 %v3703_v19, %v3510_v2  ;;  %v16946_v31 = vpop.f32.mrb[90].mxu1  ;;  %v6349_v25 = vshrl.u32 %v20924_v42, 16  ;;  %v20955_v2 = vor.u32 %v6160_v58, %v6157_v55  ;;  %v6344_v4 = vrot.slane %v20909_v32, 4 }
 0x24e   : > { %17304 = vmatmul.mubr.bf16.vlgmr.msra.gmra.mrb[168].mxu0 %v6135_v16  ;;  %v20945_v28 = vadd.f32 %v16946_v31, %v3512_v18  ;;  %17371 = vmatprep.subr.bf16.mxu1 %v18834_v62  ;;  %v3706_v3 = vpop.f32.mrb[91].mxu1  ;;  %v18838_v16 = vld [vmem:[#allocation7 + $0x110] sm:$0xff]   ;;  %v6345_v40 = vrot.slane %v20916_v43, 5  ;;  %v6153_v12 = vsel %vm756_vm1, %v6143_v51, %v20942_v57  ;;  %v6169_v18 = vrot.slane %v6167_v21, 4 }
 0x24f   : > { %17344 = vmatpush3.bf16.msra.mxu0 %v18833_v37  ;;  %17307 = vmatprep.mubr.bf16.mxu0 %v6144_v46  ;;  %v6524_v37 = vshrl.u32 %v20935_v45, 16  ;;  %v6352_v30 = vshll.u32 %v20924_v42, 16  ;;  %v6351_v35 = vrot.slane %v6349_v25, 4  ;;  %v6520_v19 = vshrl.u32 %v6496_v5, 16  ;;  %v18840_v3 = vld [vmem:[#allocation7 + $0x118] sm:$0xff]   ;;  %v18841_v25 = vld [vmem:[#allocation7 + $0xe0] sm:$0xff]  }
 0x250   : > { %17345 = vmatprep.subr.bf16.mxu0 %v18835_v48  ;;  %17332 = vmatmul.mubr.bf16.vlgmr.msra.gmra.mrb[168].mxu1 %v6335_v39  ;;  %v20972_v42 = vsel %vm756_vm1, %v20942_v57, %v20955_v2  ;;  %v20974_v24 = vor.u32 %v6345_v40, %v6344_v4  ;;  %v6527_v58 = vshll.u32 %v20935_v45, 16  ;;  %v6343_v31 = vsel %vm968_vm2, %v20926_v7, %v20951_v59  ;;  %v18843_v4 = vld [vmem:[#allocation7 + $0xe8] sm:$0xff]  }
 0x251   : > { %v16921_v63 = vpop.f32.mrb[92].mxu0  ;;  %17372 = vmatpush3.bf16.msra.mxu1 %v18834_v62  ;;  %17335 = vmatprep.mubr.bf16.mxu1 %v6339_v38  ;;  %v20965_v62 = vrot.slane %v6524_v37, 7  ;;  %v6170_v39 = vor.u32 %v6169_v18, %v6166_v34  ;;  %v6354_v21 = vrot.slane %v6352_v30, 5  ;;  %v18844_v40 = vld [vmem:[#allocation7 + $0x128] sm:$0xff]   ;;  %v18846_v30 = vld [vmem:[#allocation7 + $0x130] sm:$0xff]  }
 0x252   : > { %v3514_v15 = vadd.f32 %v16921_v63, %v20825_v23  ;;  %v3494_v53 = vpop.f32.mrb[93].mxu0  ;;  %17373 = vmatprep.subr.bf16.mxu1 %v18836_v49 }
 0x253   : > { %v16922_v10 = vpop.f32.mrb[94].mxu0  ;;  %17346 = vmatpush3.bf16.msra.mxu0 %v18835_v48  ;;  %v16949_v46 = vpop.f32.mrb[92].mxu1  ;;  %v6529_v7 = vor.u32 %v6527_v58, %v20965_v62  ;;  %v6171_v38 = vsel %vm756_vm1, %v20955_v2, %v6170_v39  ;;  %v6355_v53 = vor.u32 %v6354_v21, %v6351_v35 }
 0x254   : > { %v3496_v23 = vpop.f32.mrb[95].mxu0  ;;  %17347 = vmatprep.subr.bf16.mxu0 %v18837_v6  ;;  %v20967_v48 = vadd.f32 %v16949_v46, %v3514_v15  ;;  %v3718_v51 = vpop.f32.mrb[93].mxu1  ;;  %v18842_v15 = vld [vmem:[#allocation7 + $0x120] sm:$0xff]   ;;  %v18845_v10 = vld [vmem:[#allocation7 + $0xf0] sm:$0xff]  }
 0x255   : > { %v3513_v55 = vadd.f32 %v3496_v23, %v20847_v17  ;;  %17374 = vmatpush3.bf16.msra.mxu1 %v18836_v49  ;;  %v16950_v17 = vpop.f32.mrb[94].mxu1  ;;  %v20986_v49 = vsel %vm968_vm2, %v20951_v59, %v20974_v24  ;;  %v6534_v23 = vrot.slane %v20882_v33, 7  ;;  %v21000_v51 = vld [vmem:[#allocation2 + $0xc0] sm:$0xff] }
 0x256   : > { %17308 = vmatmul.mubr.bf16.gmra.mrb[172].mxu0 %v6153_v12  ;;  %v3720_v5 = vpop.f32.mrb[95].mxu1  ;;  %17375 = vmatprep.subr.bf16.mxu1 %v18838_v16 }
 0x257   : > { %17348 = vmatpush3.bf16.msra.mxu0 %v18837_v6  ;;  %v20980_v63 = vadd.f32 %v3720_v5, %v3513_v55  ;;  %17311 = vmatprep.mubr.bf16.mxu0 %v20972_v42  ;;  %v6522_v6 = vrot.slane %v6520_v19, 7  ;;  %v18847_v19 = vld [vmem:[#allocation7 + $0xf8] sm:$0xff]   ;;  %v6537_v21 = vor.u32 %v6534_v23, %v20887_v22 }
 0x258   : > { %17349 = vmatprep.subr.bf16.mxu0 %v18839_v1  ;;  %17336 = vmatmul.mubr.bf16.gmra.mrb[172].mxu1 %v6343_v31 }
 0x259   : > { %17376 = vmatpush3.bf16.msra.mxu1 %v18838_v16  ;;  %17339 = vmatprep.mubr.bf16.mxu1 %v20986_v49  ;;  %v6530_v12 = vsel %vm1169_vm3, %v6522_v6, %v6529_v7  ;;  %v6356_v16 = vsel %vm968_vm2, %v20974_v24, %v6355_v53 }
 0x25a   : > { %17377 = vmatprep.subr.bf16.mxu1 %v18840_v3 }
 0x25b   : > { %17350 = vmatpush3.bf16.msra.mxu0 %v18839_v1 }
 0x25c   : > { %17351 = vmatprep.subr.bf16.mxu0 %v18841_v25 }
 0x25d   : > { %17378 = vmatpush3.bf16.msra.mxu1 %v18840_v3 }
 0x25e   : > { %17312 = vmatmul.mubr.bf16.gmra.mrb[176].mxu0 %v6171_v38  ;;  %17379 = vmatprep.subr.bf16.mxu1 %v18842_v15  ;;  %v21009_v38 = vld [vmem:[#allocation2 + $0xc8] sm:$0xff] }
 0x25f   : > { %17352 = vmatpush3.bf16.msra.mxu0 %v18841_v25  ;;  %17359 = vmatprep.mubr.bf16.mxu0 %v6530_v12  ;;  %v18848_v25 = vld [vmem:[#allocation7 + $0x138] sm:$0xff]  }
 0x260   : > { %17353 = vmatprep.subr.bf16.mxu0 %v18843_v4  ;;  %17340 = vmatmul.mubr.bf16.gmra.mrb[176].mxu1 %v6356_v16  ;;  %v6538_v16 = vsel %vm1169_vm3, %v20965_v62, %v6537_v21 }
 0x261   : > { %v16969_v34 = vpop.f32.mrb[96].mxu0  ;;  %17380 = vmatpush3.bf16.msra.mxu1 %v18842_v15  ;;  %17387 = vmatprep.mubr.bf16.mxu1 %v20935_v45  ;;  %v21014_v15 = vld [vmem:[%s22781_s4] ss:$0 sm:$0xff] }
 0x262   : > { %v3864_v18 = vpop.f32.mrb[97].mxu0  ;;  %17381 = vmatprep.subr.bf16.mxu1 %v18844_v40 }
 0x263   : > { %v3907_v1 = vadd.f32 %v3864_v18, %v20897_v11  ;;  %v16970_v35 = vpop.f32.mrb[98].mxu0  ;;  %17354 = vmatpush3.bf16.msra.mxu0 %v18843_v4  ;;  %v16997_v17 = vpop.f32.mrb[96].mxu1  ;;  %v6542_v11 = vrot.slane %v20895_v27, 7  ;;  %v6550_v18 = vrot.slane %v20909_v32, 7 }
 0x264   : > { %v3909_v46 = vadd.f32 %v16970_v35, %v20902_v14  ;;  %v3867_v55 = vpop.f32.mrb[99].mxu0  ;;  %17355 = vmatprep.subr.bf16.mxu0 %v18845_v10  ;;  %v4057_v39 = vpop.f32.mrb[97].mxu1  ;;  %v21007_v14 = vshrl.u32 %v21000_v51, 16  ;;  %v18851_v17 = vld [vmem:[#allocation7 + $0x148] sm:$0xff]  }
 0x265   : > { %v3908_v31 = vadd.f32 %v3867_v55, %v20904_v26  ;;  %v4100_v5 = vadd.f32 %v4057_v39, %v3907_v1  ;;  %v16998_v3 = vpop.f32.mrb[98].mxu1  ;;  %17382 = vmatpush3.bf16.msra.mxu1 %v18844_v40  ;;  %v18849_v26 = vld [vmem:[#allocation7 + $0x140] sm:$0xff]   ;;  %v6545_v34 = vor.u32 %v6542_v11, %v20900_v29 }
 0x266   : > { %v4102_v6 = vadd.f32 %v16998_v3, %v3909_v46  ;;  %v4060_v7 = vpop.f32.mrb[99].mxu1  ;;  %17383 = vmatprep.subr.bf16.mxu1 %v18846_v30  ;;  %v18850_v55 = vld [vmem:[#allocation7 + $0x180] sm:$0xff]  }
 0x267   : > { %17356 = vmatpush3.bf16.msra.mxu0 %v18845_v10  ;;  %v4108_v53 = vadd.f32 %v21014_v15, %v4100_v5  ;;  %v4101_v4 = vadd.f32 %v4060_v7, %v3908_v31  ;;  %v21028_v31 = vshrl.u32 %v21009_v38, 16  ;;  %v21036_v7 = vshll.u32 %v21000_v51, 16 }
 0x268   : > { %17357 = vmatprep.subr.bf16.mxu0 %v18847_v19 }
 0x269   : > { %v16973_v40 = vpop.f32.mrb[100].mxu0  ;;  %v4109_v1 = vadd.f32 %v21014_v15, %v4101_v4  ;;  %17384 = vmatpush3.bf16.msra.mxu1 %v18846_v30  ;;  %v4116_v62 = vmax.f32 %v4108_v53, 0.0  ;;  %v4110_v53 = vadd.f32 %v21014_v15, %v4102_v6  ;;  %v6566_v6 = vrot.slane %v21028_v31, 7 }
 0x26a   : > { %v3911_v10 = vadd.f32 %v16973_v40, %v20929_v0  ;;  %v3879_v12 = vpop.f32.mrb[101].mxu0  ;;  %v6558_v0 = vrot.slane %v21007_v14, 7  ;;  %17385 = vmatprep.subr.bf16.mxu1 %v18848_v25 }
 0x26b   : > { %v3910_v35 = vadd.f32 %v3879_v12, %v20937_v47  ;;  %v16974_v46 = vpop.f32.mrb[102].mxu0  ;;  %17358 = vmatpush3.bf16.msra.mxu0 %v18847_v19  ;;  %v4117_v21 = vmax.f32 %v4109_v1, 0.0  ;;  %v17001_v5 = vpop.f32.mrb[100].mxu1  ;;  %v6546_v47 = vsel %vm1169_vm3, %v6534_v23, %v6545_v34  ;;  %v6553_v19 = vor.u32 %v6550_v18, %v20916_v43  ;;  %v18852_v12 = vld [vmem:[#allocation7 + $0x188] sm:$0xff]   ;;  %v18853_v34 = vld [vmem:[#allocation7 + $0x150] sm:$0xff]  }
 0x26c   : > { %v3912_v29 = vadd.f32 %v16974_v46, %v20945_v28  ;;  %17399 = vmatprep.subr.bf16.mxu0 %v18849_v26  ;;  %v3882_v39 = vpop.f32.mrb[103].mxu0  ;;  %v4104_v30 = vadd.f32 %v17001_v5, %v3911_v10  ;;  %v4072_v3 = vpop.f32.mrb[101].mxu1  ;;  %v7073_v10 = vld [vmem:[#allocation2 + $0xa8] sm:$0xf8] }
 0x26d   : > { %v4124_v4 = vpack.c.bf16 %v4117_v21, %v4116_v62  ;;  %17386 = vmatpush3.bf16.msra.mxu1 %v18848_v25  ;;  %v4103_v28 = vadd.f32 %v4072_v3, %v3910_v35  ;;  %v17002_v40 = vpop.f32.mrb[102].mxu1  ;;  %v21043_v25 = vshll.u32 %v21009_v38, 16  ;;  %v18855_v39 = vld [vmem:[#allocation7 + $0x158] sm:$0xff]   ;;  %v6561_v21 = vor.u32 %v21036_v7, %v6558_v0 }
 0x26e   : > { %17360 = vmatmul.mubr.bf16.vlgmr.msra.gmra.mrb[180].mxu0 %v6538_v16  ;;  %v4112_v16 = vadd.f32 %v21014_v15, %v4104_v30  ;;  %v4105_v1 = vadd.f32 %v17002_v40, %v3912_v29  ;;  %17427 = vmatprep.subr.bf16.mxu1 %v18850_v55  ;;  %v4075_v23 = vpop.f32.mrb[103].mxu1  ;;  %v18854_v29 = vld [vmem:[#allocation7 + $0x190] sm:$0xff]   ;;  %v7097_v5 = vshrl.u32 %v7073_v10, 16  ;;  %v4118_v30 = vmax.f32 %v4110_v53, 0.0 }
 0x26f   : > { %17400 = vmatpush3.bf16.msra.mxu0 %v18849_v26  ;;  %4125 = vst [vmem:[#allocation3 + $0x40] sm:$0xff] %v4124_v4  ;;  %v4111_v43 = vadd.f32 %v21014_v15, %v4103_v28  ;;  %17363 = vmatprep.mubr.bf16.mxu0 %v6546_v47  ;;  %v7100_v53 = vshll.u32 %v7073_v10, 16  ;;  %v6562_v27 = vsel %vm1169_vm3, %v6550_v18, %v6561_v21  ;;  %v18856_v10 = vld [vmem:[#allocation7 + $0x198] sm:$0xff]   ;;  %v6892_v18 = vrot.slane %v20887_v22, 1  ;;  %v18859_v21 = vld [vmem:[#allocation7 + $0x168] sm:$0xff]  }
 0x270   : > { %17401 = vmatprep.subr.bf16.mxu0 %v18851_v17  ;;  %v4113_v26 = vadd.f32 %v21014_v15, %v4105_v1  ;;  %17388 = vmatmul.mubr.bf16.vlgmr.msra.gmra.mrb[180].mxu1 %v20746_v54  ;;  %v4120_v3 = vmax.f32 %v4112_v16, 0.0  ;;  %v6554_v54 = vsel %vm1169_vm3, %v6542_v11, %v6553_v19  ;;  %v6887_v11 = vrot.slane %v6527_v58, 1 }
 0x271   : > { %v16977_v46 = vpop.f32.mrb[104].mxu0  ;;  %v4119_v47 = vmax.f32 %v4111_v43, 0.0  ;;  %17428 = vmatpush3.bf16.msra.mxu1 %v18850_v55  ;;  %17391 = vmatprep.mubr.bf16.mxu1 %v20756_v50 }
 0x272   : > { %v3914_v35 = vadd.f32 %v16977_v46, %v20967_v48  ;;  %v3894_v62 = vpop.f32.mrb[105].mxu0  ;;  %v4121_v28 = vmax.f32 %v4113_v26, 0.0  ;;  %17429 = vmatprep.subr.bf16.mxu1 %v18852_v12  ;;  %v18857_v46 = vld [vmem:[#allocation7 + $0x160] sm:$0xff]   ;;  %v6888_v58 = vor.u32 %v6887_v11, %v6524_v37 }
 0x273   : > { %v16978_v4 = vpop.f32.mrb[106].mxu0  ;;  %17402 = vmatpush3.bf16.msra.mxu0 %v18851_v17  ;;  %v4126_v40 = vpack.c.bf16 %v4119_v47, %v4118_v30  ;;  %v17005_v1 = vpop.f32.mrb[104].mxu1  ;;  %v18858_v62 = vld [vmem:[#allocation7 + $0x1a0] sm:$0xff]  }
 0x274   : > { %v3896_v48 = vpop.f32.mrb[107].mxu0  ;;  %17403 = vmatprep.subr.bf16.mxu0 %v18853_v34  ;;  %v4132_v16 = vpack.c.bf16 %v4121_v28, %v4120_v3  ;;  %v4107_v43 = vadd.f32 %v17005_v1, %v3914_v35  ;;  %v4087_v55 = vpop.f32.mrb[105].mxu1  ;;  %v6893_v22 = vsel %vm1535_vm4, %v6888_v58, %v6892_v18 }
 0x275   : > { %v3913_v23 = vadd.f32 %v3896_v48, %v20980_v63  ;;  %v4128_v17 = vrot.slane %v4126_v40, 4  ;;  %17430 = vmatpush3.bf16.msra.mxu1 %v18852_v12  ;;  %v17006_v19 = vpop.f32.mrb[106].mxu1  ;;  %v6569_v63 = vor.u32 %v21043_v25, %v6566_v6  ;;  %v7099_v12 = vrot.slane %v7097_v5, 3 }
 0x276   : > { %17364 = vmatmul.mubr.bf16.gmra.mrb[184].mxu0 %v6554_v54  ;;  %4133 = vst [vmem:[#allocation3 + $0x58] sm:$0xff] %v4132_v16  ;;  %v4089_v50 = vpop.f32.mrb[107].mxu1  ;;  %17431 = vmatprep.subr.bf16.mxu1 %v18854_v29  ;;  %v4115_v32 = vadd.f32 %v21014_v15, %v4107_v43  ;;  %v21076_v54 = vld [vmem:[#allocation2 + $0xb8] sm:$0xff] }
 0x277   : > { %17404 = vmatpush3.bf16.msra.mxu0 %v18853_v34  ;;  %4130 = vst [vmem:[#allocation3 + $0x50] ss:$-4 sps:$4 sm:$0xff] %v4128_v17   ;;  %v4106_v26 = vadd.f32 %v4089_v50, %v3913_v23  ;;  %17367 = vmatprep.mubr.bf16.mxu0 %v6562_v27  ;;  %v7102_v34 = vrot.slane %v7100_v53, 4  ;;  %v6570_v35 = vsel %vm1169_vm3, %v6558_v0, %v6569_v63  ;;  %v18861_v0 = vld [vmem:[#allocation7 + $0x170] sm:$0xff]   ;;  %v18863_v53 = vld [vmem:[#allocation7 + $0x178] sm:$0xff]   ;;  %v6906_v43 = vshll.u32 %v21076_v54, 16 }
 0x278   : > { %17405 = vmatprep.subr.bf16.mxu0 %v18855_v39  ;;  %17392 = vmatmul.mubr.bf16.gmra.mrb[184].mxu1 %v20781_v44  ;;  %v4123_v44 = vmax.f32 %v4115_v32, 0.0  ;;  %v18862_v23 = vld [vmem:[#allocation7 + $0x1b0] sm:$0xff]   ;;  %v18864_v19 = vld [vmem:[#allocation7 + $0x1b8] sm:$0xff]   ;;  %v6896_v63 = vor.u32 %v6892_v18, %v20882_v33  ;;  %v7125_v33 = vrot.slane %v21007_v14, 3  ;;  %v7128_v18 = vrot.slane %v21036_v7, 4 }
 0x279   : > { %v4114_v6 = vadd.f32 %v21014_v15, %v4106_v26  ;;  %17432 = vmatpush3.bf16.msra.mxu1 %v18854_v29  ;;  %17395 = vmatprep.mubr.bf16.mxu1 %v21000_v51  ;;  %v7103_v45 = vor.u32 %v7102_v34, %v7099_v12  ;;  %v8862_v15 = vld [vmem:[#allocation3 + $0x40] sm:$0xff]  ;;  %v18860_v29 = vld [vmem:[#allocation7 + $0x1a8] sm:$0xff]  }
 0x27a   : > { %17433 = vmatprep.subr.bf16.mxu1 %v18856_v10  ;;  %v21078_v28 = vshrl.u32 %v8862_v15, 16  ;;  %v21090_v12 = vshll.u32 %v8862_v15, 16 }
 0x27b   : > { %17406 = vmatpush3.bf16.msra.mxu0 %v18855_v39  ;;  %v4122_v30 = vmax.f32 %v4114_v6, 0.0  ;;  %v6861_v39 = vld [vmem:[#allocation2 + $0xb0] sm:$0xff]  ;;  %v7112_v4 = vsel %vm756_vm1, %v7103_v45, %v20942_v57  ;;  %v6910_v45 = vshrl.u32 %v21076_v54, 16 }
 0x27c   : > { %17407 = vmatprep.subr.bf16.mxu0 %v18857_v46  ;;  %v6898_v40 = vshll.u32 %v6861_v39, 16  ;;  %v6902_v57 = vshrl.u32 %v6861_v39, 16  ;;  %v22787_v27 = vrot.slane %v21078_v28, 7  ;;  %v7134_v39 = vrot.slane %v21028_v31, 3 }
 0x27d   : > { %v4134_v37 = vpack.c.bf16 %v4123_v44, %v4122_v30  ;;  %17434 = vmatpush3.bf16.msra.mxu1 %v18856_v10  ;;  %v18865_v10 = vld [vmem:[#allocation7 + $0x1c0] sm:$0xff]  }
 0x27e   : > { %17368 = vmatmul.mubr.bf16.gmra.mrb[188].mxu0 %v6570_v35  ;;  %17435 = vmatprep.subr.bf16.mxu1 %v18858_v62  ;;  %v6900_v50 = vrot.slane %v6898_v40, 1  ;;  %v6908_v35 = vrot.slane %v6906_v43, 1  ;;  %v21099_v44 = vor.u32 %v22787_v27, %v21090_v12  ;;  %v7129_v40 = vor.u32 %v7128_v18, %v7125_v33 }
 0x27f   : > { %17408 = vmatpush3.bf16.msra.mxu0 %v18857_v46  ;;  %v4136_v5 = vrot.slane %v4134_v37, 4  ;;  %17415 = vmatprep.mubr.bf16.mxu0 %v6893_v22  ;;  %v21085_v46 = vld [vmem:[#allocation2] sm:$0xff]  ;;  %v6924_v18 = vrot.slane %v21043_v25, 1 }
 0x280   : > { %17409 = vmatprep.subr.bf16.mxu0 %v18859_v21  ;;  %17396 = vmatmul.mubr.bf16.gmra.mrb[188].mxu1 %v21009_v38  ;;  %v7141_v32 = vshrl.u32 %v21085_v46, 16  ;;  %v6901_v30 = vsel %vm1535_vm4, %v6896_v63, %v6900_v50  ;;  %v18866_v37 = vld [vmem:[#allocation7 + $0x200] sm:$0xff]  }
 0x281   : > { %v17025_v3 = vpop.f32.mrb[108].mxu0  ;;  %4138 = vst [vmem:[#allocation3 + $0x68] ss:$-4 sps:$4 sm:$0xff] %v4136_v5   ;;  %17436 = vmatpush3.bf16.msra.mxu1 %v18858_v62  ;;  %17443 = vmatprep.mubr.bf16.mxu1 %v7112_v4 }
 0x282   : > { %v4288_v47 = vpop.f32.mrb[109].mxu0  ;;  %17437 = vmatprep.subr.bf16.mxu1 %v18860_v29  ;;  %v21106_v5 = vrot.slane %v7141_v32, 3  ;;  %v7144_v3 = vshll.u32 %v21085_v46, 16 }
 0x283   : > { %v17026_v48 = vpop.f32.mrb[110].mxu0  ;;  %17410 = vmatpush3.bf16.msra.mxu0 %v18859_v21  ;;  %v17053_v16 = vpop.f32.mrb[108].mxu1  ;;  %v6904_v21 = vor.u32 %v6902_v57, %v6900_v50  ;;  %v6916_v57 = vrot.slane %v21036_v7, 1 }
 0x284   : > { %v4291_v1 = vpop.f32.mrb[111].mxu0  ;;  %17411 = vmatprep.subr.bf16.mxu0 %v18861_v0  ;;  %v4481_v55 = vpop.f32.mrb[109].mxu1 }
 0x285   : > { %v21082_v11 = vadd.f32 %v4481_v55, %v4288_v47  ;;  %v17054_v17 = vpop.f32.mrb[110].mxu1  ;;  %17438 = vmatpush3.bf16.msra.mxu1 %v18860_v29  ;;  %v18867_v29 = vld [vmem:[#allocation7 + $0x1c8] sm:$0xff]   ;;  %v6909_v54 = vsel %vm1535_vm4, %v6904_v21, %v6908_v35  ;;  %v6912_v55 = vor.u32 %v6910_v45, %v6908_v35  ;;  %v7130_v35 = vsel %vm756_vm1, %v20955_v2, %v7129_v40  ;;  %v18871_v2 = vld [vmem:[#allocation7 + $0x1d8] sm:$0xff]  }
 0x286   : > { %v21088_v26 = vadd.f32 %v17054_v17, %v17026_v48  ;;  %v4484_v58 = vpop.f32.mrb[111].mxu1  ;;  %17439 = vmatprep.subr.bf16.mxu1 %v18862_v23  ;;  %v18868_v48 = vld [vmem:[#allocation7 + $0x208] sm:$0xff]   ;;  %v6920_v33 = vor.u32 %v6916_v57, %v21007_v14 }
 0x287   : > { %17412 = vmatpush3.bf16.msra.mxu0 %v18861_v0  ;;  %v21092_v34 = vadd.f32 %v4484_v58, %v4291_v1  ;;  %v7137_v1 = vrot.slane %v21043_v25, 4  ;;  %v21118_v17 = vld [vmem:[#allocation2 + $0xa8] sm:$0xf0]  ;;  %v18869_v58 = vld [vmem:[#allocation7 + $0x1d0] sm:$0xff]  }
 0x288   : > { %17413 = vmatprep.subr.bf16.mxu0 %v18863_v53 }
 0x289   : > { %v17029_v6 = vpop.f32.mrb[112].mxu0  ;;  %17440 = vmatpush3.bf16.msra.mxu1 %v18862_v23  ;;  %v6865_v23 = vld [vmem:[#allocation2 + $0xd0] sm:$0x1]  ;;  %v7138_v21 = vor.u32 %v7137_v1, %v7134_v39  ;;  %v7491_v39 = vshrl.u32 %v21118_v17, 16 }
 0x28a   : > { %v4303_v62 = vpop.f32.mrb[113].mxu0  ;;  %17441 = vmatprep.subr.bf16.mxu1 %v18864_v19  ;;  %v6930_v45 = vshll.u32 %v6865_v23, 16  ;;  %v18872_v23 = vld [vmem:[#allocation7 + $0x218] sm:$0xff]  }
 0x28b   : > { %17414 = vmatpush3.bf16.msra.mxu0 %v18863_v53  ;;  %v17030_v22 = vpop.f32.mrb[114].mxu0  ;;  %v17057_v0 = vpop.f32.mrb[112].mxu1  ;;  %v21113_v53 = vld [vmem:[#allocation2 + $0xd8] sm:$0xf]  ;;  %v7139_v1 = vsel %vm756_vm1, %v7129_v40, %v7138_v21 }
 0x28c   : > { %17455 = vmatprep.subr.bf16.mxu0 %v18865_v10  ;;  %v4306_v15 = vpop.f32.mrb[115].mxu0  ;;  %v21109_v47 = vadd.f32 %v17057_v0, %v17029_v6  ;;  %v4496_v4 = vpop.f32.mrb[113].mxu1 }
 0x28d   : > { %17442 = vmatpush3.bf16.msra.mxu1 %v18864_v19  ;;  %v21115_v16 = vadd.f32 %v4496_v4, %v4303_v62  ;;  %v17058_v43 = vpop.f32.mrb[114].mxu1  ;;  %v7146_v19 = vrot.slane %v7144_v3, 4  ;;  %v7150_v15 = vshrl.u32 %v21113_v53, 16  ;;  %v7494_v4 = vshll.u32 %v21118_v17, 16 }
 0x28e   : > { %17416 = vmatmul.mubr.bf16.vlgmr.msra.gmra.mrb[192].mxu0 %v6901_v30  ;;  %17483 = vmatprep.subr.bf16.mxu1 %v18866_v37  ;;  %v21120_v63 = vadd.f32 %v17058_v43, %v17030_v22  ;;  %v4499_v50 = vpop.f32.mrb[115].mxu1  ;;  %v6917_v30 = vsel %vm1535_vm4, %v6912_v55, %v6916_v57  ;;  %v6925_v43 = vsel %vm1535_vm4, %v6920_v33, %v6924_v18  ;;  %v7321_v33 = vrot.slane %v21118_v17, 4 }
 0x28f   : > { %17456 = vmatpush3.bf16.msra.mxu0 %v18865_v10  ;;  %17419 = vmatprep.mubr.bf16.mxu0 %v6909_v54  ;;  %v18870_v10 = vld [vmem:[#allocation7 + $0x210] sm:$0xff]   ;;  %v6928_v57 = vor.u32 %v6924_v18, %v21028_v31  ;;  %v6932_v50 = vrot.slane %v6930_v45, 1  ;;  %v7496_v40 = vrot.slane %v7494_v4, 5  ;;  %v21159_v4 = vrot.slane %v21085_v46, 4 }
 0x290   : > { %17457 = vmatprep.subr.bf16.mxu0 %v18867_v29  ;;  %17444 = vmatmul.mubr.bf16.vlgmr.msra.gmra.mrb[192].mxu1 %v20972_v42  ;;  %v7153_v42 = vshll.u32 %v21113_v53, 16  ;;  %v21147_v18 = vld [vmem:[#allocation2 + $0xb0] sm:$0xff] }
 0x291   : > { %v17033_v6 = vpop.f32.mrb[116].mxu0  ;;  %17484 = vmatpush3.bf16.msra.mxu1 %v18866_v37  ;;  %17447 = vmatprep.mubr.bf16.mxu1 %v7130_v35  ;;  %v18873_v35 = vld [vmem:[#allocation7 + $0x1e0] sm:$0xff]   ;;  %v7322_v45 = vrot.slane %v21147_v18, 4 }
 0x292   : > { %v4318_v62 = vpop.f32.mrb[117].mxu0  ;;  %17485 = vmatprep.subr.bf16.mxu1 %v18868_v48 }
 0x293   : > { %17458 = vmatpush3.bf16.msra.mxu0 %v18867_v29  ;;  %v17034_v22 = vpop.f32.mrb[118].mxu0  ;;  %v17061_v54 = vpop.f32.mrb[116].mxu1  ;;  %v7152_v62 = vrot.slane %v7150_v15, 3  ;;  %v18875_v15 = vld [vmem:[#allocation7 + $0x1e8] sm:$0xff]  }
 0x294   : > { %17459 = vmatprep.subr.bf16.mxu0 %v18869_v58  ;;  %v4320_v0 = vpop.f32.mrb[119].mxu0  ;;  %v21134_v37 = vadd.f32 %v17061_v54, %v17033_v6  ;;  %v4511_v29 = vpop.f32.mrb[117].mxu1  ;;  %v7155_v22 = vrot.slane %v7153_v42, 4  ;;  %v21140_v6 = vor.u32 %v7146_v19, %v21106_v5  ;;  %v6933_v5 = vsel %vm1535_vm4, %v6928_v57, %v6932_v50  ;;  %v10060_v42 = vld [vmem:[#allocation3 + $0x68] sm:$0xff] }
 0x295   : > { %17486 = vmatpush3.bf16.msra.mxu1 %v18868_v48  ;;  %v17062_v55 = vpop.f32.mrb[118].mxu1  ;;  %v18874_v48 = vld [vmem:[#allocation7 + $0x220] sm:$0xff]  }
 0x296   : > { %17420 = vmatmul.mubr.bf16.gmra.mrb[196].mxu0 %v6917_v30  ;;  %17487 = vmatprep.subr.bf16.mxu1 %v18870_v10  ;;  %v4513_v27 = vpop.f32.mrb[119].mxu1  ;;  %v7493_v30 = vrot.slane %v7491_v39, 4  ;;  %v7156_v19 = vor.u32 %v7155_v22, %v7152_v62  ;;  %v21167_v55 = vshrl.u32 %v10060_v42, 16  ;;  %v21170_v62 = vshll.u32 %v10060_v42, 16 }
 0x297   : > { %17460 = vmatpush3.bf16.msra.mxu0 %v18869_v58  ;;  %v21142_v54 = vadd.f32 %v4513_v27, %v4320_v0  ;;  %17423 = vmatprep.mubr.bf16.mxu0 %v6925_v43  ;;  %v7148_v58 = vsel %vm756_vm1, %v7138_v21, %v21140_v6  ;;  %v7323_v27 = vsel %vm611_vm0, %v7321_v33, %v7322_v45  ;;  %v18877_v0 = vld [vmem:[#allocation7 + $0x1f0] sm:$0xff]   ;;  %v21165_v43 = vrot.slane %v7141_v32, 4  ;;  %v19186_v33 = vld [vmem:[#allocation2 + $0xb8] sm:$0xff] }
 0x298   : > { %17461 = vmatprep.subr.bf16.mxu0 %v18871_v2  ;;  %17448 = vmatmul.mubr.bf16.gmra.mrb[196].mxu1 %v7139_v1  ;;  %v7497_v21 = vor.u32 %v7496_v40, %v7493_v30  ;;  %v7157_v17 = vsel %vm756_vm1, %v21140_v6, %v7156_v19  ;;  %v18878_v1 = vld [vmem:[#allocation7 + $0x230] sm:$0xff]   ;;  %v18879_v30 = vld [vmem:[#allocation7 + $0x1f8] sm:$0xff]   ;;  %v11450_v19 = vrot.slane %v21167_v55, 3  ;;  %v7506_v42 = vrot.slane %v21007_v14, 4 }
 0x299   : > { %17488 = vmatpush3.bf16.msra.mxu1 %v18870_v10  ;;  %17451 = vmatprep.mubr.bf16.mxu1 %v7148_v58  ;;  %v18876_v10 = vld [vmem:[#allocation7 + $0x228] sm:$0xff]  }
 0x29a   : > { %17489 = vmatprep.subr.bf16.mxu1 %v18872_v23 }
 0x29b   : > { %17462 = vmatpush3.bf16.msra.mxu0 %v18871_v2  ;;  %v21156_v2 = vld [vmem:[#allocation3 + $0x30] sm:$0xf] }
 0x29c   : > { %17463 = vmatprep.subr.bf16.mxu0 %v18873_v35  ;;  %v7944_v32 = vshrl.u32 %v21156_v2, 16 }
 0x29d   : > { %17490 = vmatpush3.bf16.msra.mxu1 %v18872_v23  ;;  %v7501_v23 = vsel %vm968_vm2, %v7497_v21, %v20951_v59 }
 0x29e   : > { %17424 = vmatmul.mubr.bf16.gmra.mrb[200].mxu0 %v6933_v5  ;;  %17491 = vmatprep.subr.bf16.mxu1 %v18874_v48  ;;  %v18881_v5 = vld [vmem:[#allocation9 + $0x40] sm:$0xff]  }
 0x29f   : > { %17464 = vmatpush3.bf16.msra.mxu0 %v18873_v35  ;;  %17471 = vmatprep.mubr.bf16.mxu0 %v7323_v27 }
 0x2a0   : > { %17465 = vmatprep.subr.bf16.mxu0 %v18875_v15  ;;  %17452 = vmatmul.mubr.bf16.gmra.mrb[200].mxu1 %v7157_v17  ;;  %v7326_v17 = vrot.slane %v21000_v51, 4 }
 0x2a1   : > { %v17081_v39 = vpop.f32.mrb[120].mxu0  ;;  %17492 = vmatpush3.bf16.msra.mxu1 %v18874_v48  ;;  %17499 = vmatprep.mubr.bf16.mxu1 %v7501_v23  ;;  %v18880_v48 = vld [vmem:[#allocation7 + $0x238] sm:$0xff]  }
 0x2a2   : > { %v4666_v29 = vpop.f32.mrb[121].mxu0  ;;  %17493 = vmatprep.subr.bf16.mxu1 %v18876_v10  ;;  %v11657_v39 = vrot.slane %v21167_v55, 4 }
 0x2a3   : > { %v4709_v57 = vadd.f32 %v4666_v29, %v21082_v11  ;;  %v17082_v50 = vpop.f32.mrb[122].mxu0  ;;  %17466 = vmatpush3.bf16.msra.mxu0 %v18875_v15  ;;  %v17109_v59 = vpop.f32.mrb[120].mxu1  ;;  %v7324_v11 = vrot.slane %v19186_v33, 4 }
 0x2a4   : > { %v4711_v22 = vadd.f32 %v17082_v50, %v21088_v26  ;;  %v4669_v35 = vpop.f32.mrb[123].mxu0  ;;  %17467 = vmatprep.subr.bf16.mxu0 %v18877_v0  ;;  %v4880_v58 = vpop.f32.mrb[121].mxu1  ;;  %v11453_v26 = vrot.slane %v21170_v62, 4  ;;  %v18882_v59 = vld [vmem:[#allocation9] sm:$0xff]  }
 0x2a5   : > { %v4710_v40 = vadd.f32 %v4669_v35, %v21092_v34  ;;  %v21176_v15 = vadd.f32 %v4880_v58, %v4709_v57  ;;  %v17110_v27 = vpop.f32.mrb[122].mxu1  ;;  %17494 = vmatpush3.bf16.msra.mxu1 %v18876_v10  ;;  %v11658_v10 = vrot.slane %v21170_v62, 5  ;;  %v7325_v14 = vsel %vm611_vm0, %v7322_v45, %v7324_v11  ;;  %v18884_v45 = vld [vmem:[#allocation9 + $0x8] sm:$0xff]  }
 0x2a6   : > { %v21179_v21 = vadd.f32 %v17110_v27, %v4711_v22  ;;  %v4883_v34 = vpop.f32.mrb[123].mxu1  ;;  %17495 = vmatprep.subr.bf16.mxu1 %v18878_v1  ;;  %v21186_v57 = vor.u32 %v11453_v26, %v11450_v19  ;;  %v7507_v22 = vrot.slane %v21036_v7, 5  ;;  %v18883_v7 = vld [vmem:[#allocation9 + $0x48] sm:$0xff]   ;;  %v21201_v19 = vld [vmem:[#allocation3 + $0x10] sm:$0xff]  ;;  %v7327_v27 = vsel %vm611_vm0, %v7324_v11, %v7326_v17 }
 0x2a7   : > { %17468 = vmatpush3.bf16.msra.mxu0 %v18877_v0  ;;  %v21184_v29 = vadd.f32 %v4883_v34, %v4710_v40  ;;  %v21195_v40 = vld [vmem:[#allocation2 + $0xd8] sm:$0x1f]  ;;  %v21197_v58 = vor.u32 %v11658_v10, %v11657_v39  ;;  %v18885_v26 = vld [vmem:[#allocation9 + $0x50] sm:$0xff]   ;;  %v7510_v39 = vrot.slane %v21028_v31, 4  ;;  %v7515_v11 = vrot.slane %v7144_v3, 5 }
 0x2a8   : > { %17469 = vmatprep.subr.bf16.mxu0 %v18879_v30  ;;  %v7508_v34 = vor.u32 %v7507_v22, %v7506_v42  ;;  %v7698_v22 = vld [vmem:[#allocation3] sm:$0xf8] }
 0x2a9   : > { %v17085_v23 = vpop.f32.mrb[124].mxu0  ;;  %17496 = vmatpush3.bf16.msra.mxu1 %v18878_v1 }
 0x2aa   : > { %v4713_v0 = vadd.f32 %v17085_v23, %v21109_v47  ;;  %v4681_v50 = vpop.f32.mrb[125].mxu0  ;;  %17497 = vmatprep.subr.bf16.mxu1 %v18880_v48  ;;  %v7509_v42 = vsel %vm968_vm2, %v20974_v24, %v7508_v34 }
 0x2ab   : > { %v4712_v35 = vadd.f32 %v4681_v50, %v21115_v16  ;;  %v17086_v51 = vpop.f32.mrb[126].mxu0  ;;  %17470 = vmatpush3.bf16.msra.mxu0 %v18879_v30  ;;  %v17113_v1 = vpop.f32.mrb[124].mxu1  ;;  %v7328_v16 = vrot.slane %v21009_v38, 4  ;;  %v7511_v38 = vrot.slane %v21043_v25, 5  ;;  %v7519_v50 = vshrl.u32 %v21195_v40, 16 }
 0x2ac   : > { %v4714_v47 = vadd.f32 %v17086_v51, %v21120_v63  ;;  %17511 = vmatprep.subr.bf16.mxu0 %v18881_v5  ;;  %v4684_v33 = vpop.f32.mrb[127].mxu0  ;;  %v21203_v30 = vadd.f32 %v17113_v1, %v4713_v0  ;;  %v4895_v18 = vpop.f32.mrb[125].mxu1  ;;  %v7522_v1 = vshll.u32 %v21195_v40, 16  ;;  %v7894_v40 = vshll.u32 %v7698_v22, 16 }
 0x2ad   : > { %17498 = vmatpush3.bf16.msra.mxu1 %v18880_v48  ;;  %v21207_v63 = vadd.f32 %v4895_v18, %v4712_v35  ;;  %v17114_v23 = vpop.f32.mrb[126].mxu1  ;;  %v7749_v35 = vrot.slane %v21201_v19, 4  ;;  %v7329_v3 = vsel %vm611_vm0, %v7326_v17, %v7328_v16  ;;  %v18887_v33 = vld [vmem:[#allocation9 + $0x58] sm:$0xff]   ;;  %v7521_v18 = vrot.slane %v7519_v50, 4 }
 0x2ae   : > { %17472 = vmatmul.mubr.bf16.vlgmr.msra.gmra.mrb[204].mxu0 %v7325_v14  ;;  %v21210_v10 = vadd.f32 %v17114_v23, %v4714_v47  ;;  %17539 = vmatprep.subr.bf16.mxu1 %v18882_v59  ;;  %v4898_v0 = vpop.f32.mrb[127].mxu1  ;;  %v21224_v14 = vrot.slane %v7944_v32, 3  ;;  %v18886_v47 = vld [vmem:[#allocation9 + $0x10] sm:$0xff]   ;;  %v7524_v50 = vrot.slane %v7522_v1, 5 }
 0x2af   : > { %17512 = vmatpush3.bf16.msra.mxu0 %v18881_v5  ;;  %17475 = vmatprep.mubr.bf16.mxu0 %v7327_v27  ;;  %v18893_v1 = vld [vmem:[#allocation9 + $0x70] sm:$0xff]  }
 0x2b0   : > { %17513 = vmatprep.subr.bf16.mxu0 %v18883_v7  ;;  %17500 = vmatmul.mubr.bf16.vlgmr.msra.gmra.mrb[204].mxu1 %v20986_v49  ;;  %v7512_v49 = vor.u32 %v7511_v38, %v7510_v39  ;;  %v18888_v39 = vld [vmem:[#allocation9 + $0x18] sm:$0xff]  }
 0x2b1   : > { %v17089_v51 = vpop.f32.mrb[128].mxu0  ;;  %17540 = vmatpush3.bf16.msra.mxu1 %v18882_v59  ;;  %17503 = vmatprep.mubr.bf16.mxu1 %v7509_v42  ;;  %v21230_v59 = vld [vmem:[#allocation3] sm:$0xf0]  ;;  %v7896_v42 = vrot.slane %v7894_v40, 4 }
 0x2b2   : > { %v4716_v25 = vadd.f32 %v17089_v51, %v21134_v37  ;;  %v4696_v5 = vpop.f32.mrb[129].mxu0  ;;  %v7332_v37 = vrot.slane %v21113_v53, 4  ;;  %17541 = vmatprep.subr.bf16.mxu1 %v18884_v45  ;;  %v7331_v53 = vsel %vm611_vm0, %v7328_v16, %v21159_v4  ;;  %v7513_v0 = vsel %vm968_vm2, %v7508_v34, %v7512_v49  ;;  %v18889_v51 = vld [vmem:[#allocation9 + $0x60] sm:$0xff]  }
 0x2b3   : > { %v17090_v46 = vpop.f32.mrb[130].mxu0  ;;  %17514 = vmatpush3.bf16.msra.mxu0 %v18883_v7  ;;  %v17117_v27 = vpop.f32.mrb[128].mxu1  ;;  %v7891_v7 = vshrl.u32 %v7698_v22, 16  ;;  %v18890_v22 = vld [vmem:[#allocation9 + $0x20] sm:$0xff]  }
 0x2b4   : > { %v4698_v24 = vpop.f32.mrb[131].mxu0  ;;  %17515 = vmatprep.subr.bf16.mxu0 %v18885_v26  ;;  %v21232_v23 = vadd.f32 %v17117_v27, %v4716_v25  ;;  %v4910_v17 = vpop.f32.mrb[129].mxu1  ;;  %v21238_v25 = vor.u32 %v7515_v11, %v21165_v43  ;;  %v7333_v34 = vsel %vm611_vm0, %v21159_v4, %v7332_v37  ;;  %v7525_v46 = vor.u32 %v7524_v50, %v7521_v18  ;;  %v18891_v43 = vld [vmem:[#allocation9 + $0x68] sm:$0xff]  }
 0x2b5   : > { %v4715_v32 = vadd.f32 %v4698_v24, %v21142_v54  ;;  %17542 = vmatpush3.bf16.msra.mxu1 %v18884_v45  ;;  %v17118_v38 = vpop.f32.mrb[130].mxu1  ;;  %v7746_v45 = vrot.slane %v21230_v59, 4  ;;  %v21248_v11 = vshrl.u32 %v21201_v19, 16  ;;  %v21261_v17 = vld [vmem:[#allocation3 + $0x18] sm:$0xff] }
 0x2b6   : > { %17476 = vmatmul.mubr.bf16.gmra.mrb[208].mxu0 %v7329_v3  ;;  %v4912_v54 = vpop.f32.mrb[131].mxu1  ;;  %17543 = vmatprep.subr.bf16.mxu1 %v18886_v47  ;;  %v7517_v16 = vsel %vm968_vm2, %v7512_v49, %v21238_v25  ;;  %v21251_v3 = vshll.u32 %v21201_v19, 16  ;;  %v18892_v49 = vld [vmem:[#allocation9 + $0x28] sm:$0xff]   ;;  %v7526_v37 = vsel %vm968_vm2, %v21238_v25, %v7525_v46  ;;  %v18894_v38 = vld [vmem:[#allocation9 + $0x30] sm:$0xff]  }
 0x2b7   : > { %17516 = vmatpush3.bf16.msra.mxu0 %v18885_v26  ;;  %v21240_v5 = vadd.f32 %v4912_v54, %v4715_v32  ;;  %17479 = vmatprep.mubr.bf16.mxu0 %v7331_v53  ;;  %v7893_v26 = vrot.slane %v7891_v7, 3  ;;  %v7910_v18 = vrot.slane %v21248_v11, 3  ;;  %v18895_v54 = vld [vmem:[#allocation9 + $0x78] sm:$0xff]  }
 0x2b8   : > { %17517 = vmatprep.subr.bf16.mxu0 %v18887_v33  ;;  %17504 = vmatmul.mubr.bf16.gmra.mrb[208].mxu1 %v7513_v0  ;;  %v7913_v7 = vrot.slane %v21251_v3, 4 }
 0x2b9   : > { %17544 = vmatpush3.bf16.msra.mxu1 %v18886_v47  ;;  %17507 = vmatprep.mubr.bf16.mxu1 %v7517_v16  ;;  %v7748_v47 = vsel %vm611_vm0, %v7746_v45, %v21159_v4  ;;  %v21269_v45 = vshrl.u32 %v21261_v17, 16 }
 0x2ba   : > { %17545 = vmatprep.subr.bf16.mxu1 %v18888_v39 }
 0x2bb   : > { %17518 = vmatpush3.bf16.msra.mxu0 %v18887_v33  ;;  %v7897_v33 = vor.u32 %v7896_v42, %v7893_v26  ;;  %v21272_v42 = vshll.u32 %v21261_v17, 16 }
 0x2bc   : > { %17519 = vmatprep.subr.bf16.mxu0 %v18889_v51 }
 0x2bd   : > { %17546 = vmatpush3.bf16.msra.mxu1 %v18888_v39  ;;  %v7906_v32 = vsel %vm756_vm1, %v7897_v33, %v21140_v6  ;;  %v21263_v39 = vld [vmem:[#allocation3 + $0x20] sm:$0xff] }
 0x2be   : > { %17480 = vmatmul.mubr.bf16.gmra.mrb[212].mxu0 %v7333_v34  ;;  %17547 = vmatprep.subr.bf16.mxu1 %v18890_v22  ;;  %v21280_v46 = vshll.u32 %v21263_v39, 16 }
 0x2bf   : > { %17520 = vmatpush3.bf16.msra.mxu0 %v18889_v51  ;;  %17527 = vmatprep.mubr.bf16.mxu0 %v7748_v47  ;;  %v18897_v47 = vld [vmem:[#allocation9 + $0x80] sm:$0xff]  }
 0x2c0   : > { %17521 = vmatprep.subr.bf16.mxu0 %v18891_v43  ;;  %17508 = vmatmul.mubr.bf16.gmra.mrb[212].mxu1 %v7526_v37 }
 0x2c1   : > { %v17137_v24 = vpop.f32.mrb[132].mxu0  ;;  %17548 = vmatpush3.bf16.msra.mxu1 %v18890_v22  ;;  %17555 = vmatprep.mubr.bf16.mxu1 %v7906_v32  ;;  %v21277_v22 = vshrl.u32 %v21263_v39, 16 }
 0x2c2   : > { %v5029_v27 = vpop.f32.mrb[133].mxu0  ;;  %17549 = vmatprep.subr.bf16.mxu1 %v18892_v49  ;;  %v7751_v24 = vrot.slane %v21261_v17, 4 }
 0x2c3   : > { %v5072_v53 = vadd.f32 %v5029_v27, %v21176_v15  ;;  %v17138_v40 = vpop.f32.mrb[134].mxu0  ;;  %17522 = vmatpush3.bf16.msra.mxu0 %v18891_v43  ;;  %v17165_v51 = vpop.f32.mrb[132].mxu1 }
 0x2c4   : > { %v5074_v0 = vadd.f32 %v17138_v40, %v21179_v21  ;;  %v5032_v50 = vpop.f32.mrb[135].mxu0  ;;  %17523 = vmatprep.subr.bf16.mxu0 %v18893_v1  ;;  %v5243_v26 = vpop.f32.mrb[133].mxu1  ;;  %v18896_v21 = vld [vmem:[#allocation9 + $0x38] sm:$0xff]   ;;  %v7922_v40 = vrot.slane %v21272_v42, 4  ;;  %v21295_v51 = vrot.slane %v21263_v39, 4 }
 0x2c5   : > { %v5073_v16 = vadd.f32 %v5032_v50, %v21184_v29  ;;  %v21274_v15 = vadd.f32 %v5243_v26, %v5072_v53  ;;  %v17166_v34 = vpop.f32.mrb[134].mxu1  ;;  %17550 = vmatpush3.bf16.msra.mxu1 %v18892_v49  ;;  %v7919_v49 = vrot.slane %v21269_v45, 3  ;;  %v7931_v26 = vrot.slane %v21280_v46, 4 }
 0x2c6   : > { %v21282_v29 = vadd.f32 %v17166_v34, %v5074_v0  ;;  %v5246_v43 = vpop.f32.mrb[135].mxu1  ;;  %17551 = vmatprep.subr.bf16.mxu1 %v18894_v38 }
 0x2c7   : > { %17524 = vmatpush3.bf16.msra.mxu0 %v18893_v1  ;;  %v21284_v33 = vadd.f32 %v5246_v43, %v5073_v16  ;;  %v21288_v1 = vld [vmem:[#allocation3 + $0x28] sm:$0xff]  ;;  %v7928_v16 = vrot.slane %v21277_v22, 3 }
 0x2c8   : > { %17525 = vmatprep.subr.bf16.mxu0 %v18895_v54 }
 0x2c9   : > { %v17141_v37 = vpop.f32.mrb[136].mxu0  ;;  %17552 = vmatpush3.bf16.msra.mxu1 %v18894_v38  ;;  %v7914_v38 = vor.u32 %v7913_v7, %v7910_v18 }
 0x2ca   : > { %v5076_v32 = vadd.f32 %v17141_v37, %v21203_v30  ;;  %v5044_v53 = vpop.f32.mrb[137].mxu0  ;;  %17553 = vmatprep.subr.bf16.mxu1 %v18896_v21  ;;  %v18898_v30 = vld [vmem:[#allocation9 + $0xc0] sm:$0xff]  }
 0x2cb   : > { %v5075_v0 = vadd.f32 %v5044_v53, %v21207_v63  ;;  %v17142_v50 = vpop.f32.mrb[138].mxu0  ;;  %17526 = vmatpush3.bf16.msra.mxu0 %v18895_v54  ;;  %v17169_v37 = vpop.f32.mrb[136].mxu1  ;;  %v7750_v63 = vsel %vm611_vm0, %v21159_v4, %v7749_v35  ;;  %v18899_v54 = vld [vmem:[#allocation9 + $0x88] sm:$0xff]   ;;  %v8102_v4 = vshrl.u32 %v21230_v59, 16  ;;  %v7915_v19 = vsel %vm756_vm1, %v21140_v6, %v7914_v38 }
 0x2cc   : > { %v5077_v34 = vadd.f32 %v17142_v50, %v21210_v10  ;;  %17567 = vmatprep.subr.bf16.mxu0 %v18897_v47  ;;  %v5047_v43 = vpop.f32.mrb[139].mxu0  ;;  %v21304_v53 = vadd.f32 %v17169_v37, %v5076_v32  ;;  %v5258_v31 = vpop.f32.mrb[137].mxu1  ;;  %v7752_v10 = vsel %vm611_vm0, %v7749_v35, %v7751_v24  ;;  %v7923_v50 = vor.u32 %v7922_v40, %v7919_v49  ;;  %v18901_v49 = vld [vmem:[#allocation9 + $0x90] sm:$0xff]  }
 0x2cd   : > { %v18900_v43 = vld [vmem:[#allocation9 + $0xc8] sm:$0xff]   ;;  %17554 = vmatpush3.bf16.msra.mxu1 %v18896_v21  ;;  %v21311_v27 = vadd.f32 %v5258_v31, %v5075_v0  ;;  %v17170_v48 = vpop.f32.mrb[138].mxu1  ;;  %v8105_v32 = vshll.u32 %v21230_v59, 16  ;;  %v22801_v6 = vshll.u32 %v21156_v2, 16 }
 0x2ce   : > { %17528 = vmatmul.mubr.bf16.vlgmr.msra.gmra.mrb[216].mxu0 %v7750_v63  ;;  %v21314_v18 = vadd.f32 %v17170_v48, %v5077_v34  ;;  %17595 = vmatprep.subr.bf16.mxu1 %v18898_v30  ;;  %v5261_v7 = vpop.f32.mrb[139].mxu1  ;;  %v8277_v21 = vld [vmem:[#allocation3 + $0x8] sm:$0x80]  ;;  %v7924_v31 = vsel %vm756_vm1, %v7914_v38, %v7923_v50  ;;  %v7937_v48 = vrot.slane %v20790_v56, 3  ;;  %v18902_v34 = vld [vmem:[#allocation9 + $0xd0] sm:$0xff]   ;;  %v8104_v63 = vrot.slane %v8102_v4, 4 }
 0x2cf   : > { %17531 = vmatprep.mubr.bf16.mxu0 %v7752_v10  ;;  %17568 = vmatpush3.bf16.msra.mxu0 %v18897_v47  ;;  %v7940_v47 = vrot.slane %v20792_v20, 4  ;;  %v7949_v37 = vrot.slane %v22801_v6, 4  ;;  %v8107_v7 = vrot.slane %v8105_v32, 5 }
 0x2d0   : > { %17569 = vmatprep.subr.bf16.mxu0 %v18899_v54  ;;  %17556 = vmatmul.mubr.bf16.vlgmr.msra.gmra.mrb[216].mxu1 %v7915_v19  ;;  %v7754_v19 = vsel %vm611_vm0, %v7751_v24, %v21295_v51  ;;  %v18904_v24 = vld [vmem:[#allocation9 + $0xd8] sm:$0xff]  }
 0x2d1   : > { %v17145_v35 = vpop.f32.mrb[140].mxu0  ;;  %17559 = vmatprep.mubr.bf16.mxu1 %v7924_v31  ;;  %17596 = vmatpush3.bf16.msra.mxu1 %v18898_v30  ;;  %v18903_v30 = vld [vmem:[#allocation9 + $0x98] sm:$0xff]   ;;  %v21338_v32 = vor.u32 %v7940_v47, %v7937_v48  ;;  %v18907_v47 = vld [vmem:[#allocation9 + $0xa8] sm:$0xff]  }
 0x2d2   : > { %v5079_v40 = vadd.f32 %v17145_v35, %v21232_v23  ;;  %v5059_v0 = vpop.f32.mrb[141].mxu0  ;;  %17597 = vmatprep.subr.bf16.mxu1 %v18900_v43  ;;  %v21330_v35 = vor.u32 %v7931_v26, %v7928_v16  ;;  %v18905_v26 = vld [vmem:[#allocation9 + $0xa0] sm:$0xff]  }
 0x2d3   : > { %v17146_v59 = vpop.f32.mrb[142].mxu0  ;;  %17570 = vmatpush3.bf16.msra.mxu0 %v18899_v54  ;;  %v17173_v38 = vpop.f32.mrb[140].mxu1  ;;  %v22802_v54 = vrot.slane %v21288_v1, 4 }
 0x2d4   : > { %v5061_v10 = vpop.f32.mrb[143].mxu0  ;;  %17571 = vmatprep.subr.bf16.mxu0 %v18901_v49  ;;  %v21332_v31 = vadd.f32 %v17173_v38, %v5079_v40  ;;  %v5273_v0 = vpop.f32.mrb[141].mxu1  ;;  %v8108_v40 = vor.u32 %v8107_v7, %v8104_v63  ;;  %v22803_v63 = vrot.slane %v21156_v2, 4 }
 0x2d5   : > { %v5078_v23 = vadd.f32 %v5061_v10, %v21240_v5  ;;  %v7756_v4 = vsel %vm611_vm0, %v21295_v51, %v22802_v54  ;;  %v8302_v5 = vshrl.u32 %v8277_v21, 16  ;;  %17598 = vmatpush3.bf16.msra.mxu1 %v18900_v43  ;;  %v17174_v59 = vpop.f32.mrb[142].mxu1  ;;  %v7933_v10 = vsel %vm756_vm1, %v7923_v50, %v21330_v35  ;;  %v18909_v0 = vld [vmem:[#allocation9 + $0xb0] sm:$0xff]  }
 0x2d6   : > { %17532 = vmatmul.mubr.bf16.gmra.mrb[220].mxu0 %v7754_v19  ;;  %v5275_v16 = vpop.f32.mrb[143].mxu1  ;;  %17599 = vmatprep.subr.bf16.mxu1 %v18902_v34  ;;  %v21347_v21 = vsel %vm756_vm1, %v21330_v35, %v21338_v32  ;;  %v8308_v43 = vrot.slane %v21248_v11, 7  ;;  %v8112_v50 = vsel %vm968_vm2, %v8108_v40, %v21238_v25  ;;  %v22804_v7 = vmov %v22802_v54  ;;  %v18908_v19 = vld [vmem:[#allocation9 + $0xe8] sm:$0xff]  }
 0x2d7   : > { %17535 = vmatprep.mubr.bf16.mxu0 %v7756_v4  ;;  %17572 = vmatpush3.bf16.msra.mxu0 %v18901_v49  ;;  %v21340_v6 = vadd.f32 %v5275_v16, %v5078_v23  ;;  %v18906_v49 = vld [vmem:[#allocation9 + $0xe0] sm:$0xff]   ;;  %v8304_v48 = vrot.slane %v8302_v5, 7  ;;  %v7758_v38 = vsel %vm611_vm0, %v22804_v7, %v22803_v63  ;;  %v7950_v23 = vor.u32 %v7949_v37, %v21224_v14 }
 0x2d8   : > { %17573 = vmatprep.subr.bf16.mxu0 %v18903_v30  ;;  %17560 = vmatmul.mubr.bf16.gmra.mrb[220].mxu1 %v7933_v10  ;;  %v8113_v54 = vrot.slane %v21248_v11, 4  ;;  %v8114_v59 = vrot.slane %v21251_v3, 5  ;;  %v8118_v7 = vrot.slane %v21272_v42, 5 }
 0x2d9   : > { %17563 = vmatprep.mubr.bf16.mxu1 %v21347_v21  ;;  %17600 = vmatpush3.bf16.msra.mxu1 %v18902_v34  ;;  %v8311_v34 = vor.u32 %v8308_v43, %v21251_v3  ;;  %v7951_v2 = vsel %vm756_vm1, %v21338_v32, %v7950_v23 }
 0x2da   : > { %17601 = vmatprep.subr.bf16.mxu1 %v18904_v24 }
 0x2db   : > { %17574 = vmatpush3.bf16.msra.mxu0 %v18903_v30  ;;  %v8312_v14 = vsel %vm1169_vm3, %v8304_v48, %v8311_v34  ;;  %v18911_v48 = vld [vmem:[#allocation9 + $0xb8] sm:$0xff]   ;;  %v8115_v34 = vor.u32 %v8114_v59, %v8113_v54 }
 0x2dc   : > { %17575 = vmatprep.subr.bf16.mxu0 %v18905_v26 }
 0x2dd   : > { %17602 = vmatpush3.bf16.msra.mxu1 %v18904_v24 }
 0x2de   : > { %17536 = vmatmul.mubr.bf16.gmra.mrb[224].mxu0 %v7758_v38  ;;  %17603 = vmatprep.subr.bf16.mxu1 %v18906_v49 }
 0x2df   : > { %17583 = vmatprep.mubr.bf16.mxu0 %v8112_v50  ;;  %17576 = vmatpush3.bf16.msra.mxu0 %v18905_v26  ;;  %v18910_v26 = vld [vmem:[#allocation9 + $0xf0] sm:$0xff]  }
 0x2e0   : > { %17577 = vmatprep.subr.bf16.mxu0 %v18907_v47  ;;  %17564 = vmatmul.mubr.bf16.gmra.mrb[224].mxu1 %v7951_v2  ;;  %v8316_v2 = vrot.slane %v21269_v45, 7 }
 0x2e1   : > { %v17193_v30 = vpop.f32.mrb[144].mxu0  ;;  %17604 = vmatpush3.bf16.msra.mxu1 %v18906_v49  ;;  %17611 = vmatprep.mubr.bf16.mxu1 %v8312_v14 }
 0x2e2   : > { %v5467_v37 = vpop.f32.mrb[145].mxu0  ;;  %17605 = vmatprep.subr.bf16.mxu1 %v18908_v19  ;;  %v18913_v30 = vld [vmem:[#allocation9 + $0x100] sm:$0xff]  }
 0x2e3   : > { %v5510_v4 = vadd.f32 %v5467_v37, %v21274_v15  ;;  %v17194_v5 = vpop.f32.mrb[146].mxu0  ;;  %17578 = vmatpush3.bf16.msra.mxu0 %v18907_v47  ;;  %v17221_v40 = vpop.f32.mrb[144].mxu1  ;;  %v8117_v15 = vrot.slane %v21269_v45, 4  ;;  %v18912_v47 = vld [vmem:[#allocation9 + $0xf8] sm:$0xff]   ;;  %v8324_v37 = vrot.slane %v21277_v22, 7 }
 0x2e4   : > { %v5512_v24 = vadd.f32 %v17194_v5, %v21282_v29  ;;  %v5470_v16 = vpop.f32.mrb[147].mxu0  ;;  %17579 = vmatprep.subr.bf16.mxu0 %v18909_v0  ;;  %v5643_v50 = vpop.f32.mrb[145].mxu1  ;;  %v18914_v40 = vld [vmem:[#allocation9 + $0x140] sm:$0xff]  }
 0x2e5   : > { %v5511_v10 = vadd.f32 %v5470_v16, %v21284_v33  ;;  %v21370_v63 = vadd.f32 %v5643_v50, %v5510_v4  ;;  %v17222_v49 = vpop.f32.mrb[146].mxu1  ;;  %17606 = vmatpush3.bf16.msra.mxu1 %v18908_v19 }
 0x2e6   : > { %v21374_v38 = vadd.f32 %v17222_v49, %v5512_v24  ;;  %v5646_v29 = vpop.f32.mrb[147].mxu1  ;;  %17607 = vmatprep.subr.bf16.mxu1 %v18910_v26  ;;  %v8119_v24 = vor.u32 %v8118_v7, %v8117_v15  ;;  %v18915_v49 = vld [vmem:[#allocation9 + $0x108] sm:$0xff]  }
 0x2e7   : > { %17580 = vmatpush3.bf16.msra.mxu0 %v18909_v0  ;;  %v21376_v23 = vadd.f32 %v5646_v29, %v5511_v10  ;;  %v8083_v0 = vld [vmem:[#allocation3 + $0x30] sm:$0x1f]  ;;  %v8116_v10 = vsel %vm968_vm2, %v21238_v25, %v8115_v34 }
 0x2e8   : > { %17581 = vmatprep.subr.bf16.mxu0 %v18911_v48  ;;  %v8120_v25 = vsel %vm968_vm2, %v8115_v34, %v8119_v24  ;;  %v8130_v29 = vshrl.u32 %v8083_v0, 16 }
 0x2e9   : > { %v17197_v33 = vpop.f32.mrb[148].mxu0  ;;  %17608 = vmatpush3.bf16.msra.mxu1 %v18910_v26 }
 0x2ea   : > { %v5514_v19 = vadd.f32 %v17197_v33, %v21304_v53  ;;  %v5482_v14 = vpop.f32.mrb[149].mxu0  ;;  %17609 = vmatprep.subr.bf16.mxu1 %v18912_v47  ;;  %v8319_v53 = vor.u32 %v8316_v2, %v21272_v42 }
 0x2eb   : > { %v5513_v4 = vadd.f32 %v5482_v14, %v21311_v27  ;;  %v17198_v5 = vpop.f32.mrb[150].mxu0  ;;  %17582 = vmatpush3.bf16.msra.mxu0 %v18911_v48  ;;  %v17225_v59 = vpop.f32.mrb[148].mxu1  ;;  %v8327_v27 = vor.u32 %v8324_v37, %v21280_v46  ;;  %v8122_v48 = vrot.slane %v21280_v46, 5  ;;  %v18916_v14 = vld [vmem:[#allocation9 + $0x148] sm:$0xff]  }
 0x2ec   : > { %v5515_v16 = vadd.f32 %v17198_v5, %v21314_v18  ;;  %v5485_v54 = vpop.f32.mrb[151].mxu0  ;;  %17623 = vmatprep.subr.bf16.mxu0 %v18913_v30  ;;  %v21386_v50 = vadd.f32 %v17225_v59, %v5514_v19  ;;  %v5658_v26 = vpop.f32.mrb[149].mxu1  ;;  %v8121_v18 = vrot.slane %v21277_v22, 4  ;;  %v8332_v5 = vrot.slane %v20790_v56, 7 }
 0x2ed   : > { %17610 = vmatpush3.bf16.msra.mxu1 %v18912_v47  ;;  %v21393_v15 = vadd.f32 %v5658_v26, %v5513_v4  ;;  %v17226_v7 = vpop.f32.mrb[150].mxu1  ;;  %v8320_v54 = vsel %vm1169_vm3, %v8308_v43, %v8319_v53  ;;  %v8133_v4 = vshll.u32 %v8083_v0, 16  ;;  %v8328_v59 = vsel %vm1169_vm3, %v8316_v2, %v8327_v27  ;;  %v18917_v26 = vld [vmem:[#allocation9 + $0x110] sm:$0xff]  }
 0x2ee   : > { %17584 = vmatmul.mubr.bf16.vlgmr.msra.gmra.mrb[228].mxu0 %v8116_v10  ;;  %v21396_v33 = vadd.f32 %v17226_v7, %v5515_v16  ;;  %17651 = vmatprep.subr.bf16.mxu1 %v18914_v40  ;;  %v5661_v19 = vpop.f32.mrb[151].mxu1  ;;  %v21404_v10 = vor.u32 %v8122_v48, %v8121_v18  ;;  %v8340_v7 = vrot.slane %v20812_v52, 7 }
 0x2ef   : > { %17587 = vmatprep.mubr.bf16.mxu0 %v8120_v25  ;;  %17624 = vmatpush3.bf16.msra.mxu0 %v18913_v30  ;;  %v8132_v19 = vrot.slane %v8130_v29, 4  ;;  %v18918_v30 = vld [vmem:[#allocation9 + $0x150] sm:$0xff]   ;;  %v8135_v53 = vrot.slane %v8133_v4, 5  ;;  %v18919_v29 = vld [vmem:[#allocation9 + $0x118] sm:$0xff]  }
 0x2f0   : > { %17612 = vmatmul.mubr.bf16.vlgmr.msra.gmra.mrb[228].mxu1 %v8320_v54  ;;  %17625 = vmatprep.subr.bf16.mxu0 %v18915_v49  ;;  %v8124_v48 = vsel %vm968_vm2, %v8119_v24, %v21404_v10  ;;  %v18920_v4 = vld [vmem:[#allocation9 + $0x158] sm:$0xff]  }
 0x2f1   : > { %v17201_v47 = vpop.f32.mrb[152].mxu0  ;;  %17615 = vmatprep.mubr.bf16.mxu1 %v8328_v59  ;;  %17652 = vmatpush3.bf16.msra.mxu1 %v18914_v40  ;;  %v8343_v40 = vor.u32 %v20820_v9, %v8340_v7 }
 0x2f2   : > { %v5517_v34 = vadd.f32 %v17201_v47, %v21332_v31  ;;  %v5497_v16 = vpop.f32.mrb[153].mxu0  ;;  %17653 = vmatprep.subr.bf16.mxu1 %v18916_v14  ;;  %v8335_v31 = vor.u32 %v8332_v5, %v20792_v20 }
 0x2f3   : > { %v17202_v25 = vpop.f32.mrb[154].mxu0  ;;  %v17229_v0 = vpop.f32.mrb[152].mxu1  ;;  %17626 = vmatpush3.bf16.msra.mxu0 %v18915_v49  ;;  %v8348_v49 = vrot.slane %v20823_v8, 7  ;;  %v8344_v59 = vsel %vm1169_vm3, %v8332_v5, %v8343_v40  ;;  %v18921_v16 = vld [vmem:[#allocation9 + $0x120] sm:$0xff]   ;;  %v18924_v5 = vld [vmem:[#allocation9 + $0x168] sm:$0xff]  }
 0x2f4   : > { %v5499_v43 = vpop.f32.mrb[155].mxu0  ;;  %v21409_v27 = vadd.f32 %v17229_v0, %v5517_v34  ;;  %v5673_v18 = vpop.f32.mrb[153].mxu1  ;;  %17627 = vmatprep.subr.bf16.mxu0 %v18917_v26  ;;  %v8136_v34 = vor.u32 %v8135_v53, %v8132_v19  ;;  %v18922_v25 = vld [vmem:[#allocation9 + $0x160] sm:$0xff]   ;;  %v8676_v0 = vrot.slane %v21272_v42, 1 }
 0x2f5   : > { %v5516_v2 = vadd.f32 %v5499_v43, %v21340_v6  ;;  %17654 = vmatpush3.bf16.msra.mxu1 %v18916_v14  ;;  %v17230_v54 = vpop.f32.mrb[154].mxu1  ;;  %v21417_v6 = vsel %vm968_vm2, %v21404_v10, %v20857_v36  ;;  %v8336_v14 = vsel %vm1169_vm3, %v8324_v37, %v8335_v31  ;;  %v8671_v43 = vrot.slane %v21251_v3, 1 }
 0x2f6   : > { %17588 = vmatmul.mubr.bf16.gmra.mrb[232].mxu0 %v8124_v48  ;;  %v5675_v47 = vpop.f32.mrb[155].mxu1  ;;  %17655 = vmatprep.subr.bf16.mxu1 %v18918_v30  ;;  %v8351_v18 = vor.u32 %v20839_v41, %v8348_v49  ;;  %v8137_v37 = vsel %vm968_vm2, %v20857_v36, %v8136_v34  ;;  %v18925_v36 = vld [vmem:[#allocation9 + $0x130] sm:$0xff]   ;;  %v21442_v49 = vld [vmem:[%s22781_s4] ss:$0 sm:$0xff] }
 0x2f7   : > { %17591 = vmatprep.mubr.bf16.mxu0 %v21417_v6  ;;  %v21421_v24 = vadd.f32 %v5675_v47, %v5516_v2  ;;  %17628 = vmatpush3.bf16.msra.mxu0 %v18917_v26  ;;  %v18923_v2 = vld [vmem:[#allocation9 + $0x128] sm:$0xff]   ;;  %v19188_v26 = vld [vmem:[#allocation3 + $0x10] sm:$0xff]  ;;  %v8672_v19 = vor.u32 %v8671_v43, %v21248_v11 }
 0x2f8   : > { %17616 = vmatmul.mubr.bf16.gmra.mrb[232].mxu1 %v8336_v14  ;;  %17629 = vmatprep.subr.bf16.mxu0 %v18919_v29  ;;  %v8352_v3 = vsel %vm1169_vm3, %v8340_v7, %v8351_v18  ;;  %v18926_v7 = vld [vmem:[#allocation9 + $0x170] sm:$0xff]   ;;  %v8684_v14 = vrot.slane %v21280_v46, 1 }
 0x2f9   : > { %17619 = vmatprep.mubr.bf16.mxu1 %v8344_v59  ;;  %17656 = vmatpush3.bf16.msra.mxu1 %v18918_v30  ;;  %v8677_v31 = vsel %vm1535_vm4, %v8672_v19, %v8676_v0  ;;  %v18927_v59 = vld [vmem:[#allocation9 + $0x138] sm:$0xff]  }
 0x2fa   : > { %17657 = vmatprep.subr.bf16.mxu1 %v18920_v4 }
 0x2fb   : > { %17630 = vmatpush3.bf16.msra.mxu0 %v18919_v29 }
 0x2fc   : > { %17631 = vmatprep.subr.bf16.mxu0 %v18921_v16 }
 0x2fd   : > { %17658 = vmatpush3.bf16.msra.mxu1 %v18920_v4 }
 0x2fe   : > { %17592 = vmatmul.mubr.bf16.gmra.mrb[236].mxu0 %v8137_v37  ;;  %17659 = vmatprep.subr.bf16.mxu1 %v18922_v25 }
 0x2ff   : > { %17639 = vmatprep.mubr.bf16.mxu0 %v19188_v26  ;;  %17632 = vmatpush3.bf16.msra.mxu0 %v18921_v16  ;;  %v18928_v16 = vld [vmem:[#allocation9 + $0x178] sm:$0xff]   ;;  %v18929_v26 = vld [vmem:[#allocation9 + $0x180] sm:$0xff]  }
 0x300   : > { %17620 = vmatmul.mubr.bf16.gmra.mrb[236].mxu1 %v8352_v3  ;;  %17633 = vmatprep.subr.bf16.mxu0 %v18923_v2 }
 0x301   : > { %v17249_v30 = vpop.f32.mrb[156].mxu0  ;;  %17660 = vmatpush3.bf16.msra.mxu1 %v18922_v25  ;;  %17667 = vmatprep.mubr.bf16.mxu1 %v8677_v31  ;;  %v8692_v31 = vrot.slane %v20792_v20, 1 }
 0x302   : > { %v5836_v53 = vpop.f32.mrb[157].mxu0  ;;  %17661 = vmatprep.subr.bf16.mxu1 %v18924_v5  ;;  %v18930_v30 = vld [vmem:[#allocation9 + $0x1c0] sm:$0xff]  }
 0x303   : > { %v5879_v48 = vadd.f32 %v5836_v53, %v21370_v63  ;;  %v17250_v40 = vpop.f32.mrb[158].mxu0  ;;  %v17277_v54 = vpop.f32.mrb[156].mxu1  ;;  %17634 = vmatpush3.bf16.msra.mxu0 %v18923_v2 }
 0x304   : > { %v5881_v11 = vadd.f32 %v17250_v40, %v21374_v38  ;;  %v5839_v29 = vpop.f32.mrb[159].mxu0  ;;  %v21447_v63 = vpop.f32.mrb[157].mxu1  ;;  %17635 = vmatprep.subr.bf16.mxu0 %v18925_v36  ;;  %v18931_v40 = vld [vmem:[#allocation9 + $0x188] sm:$0xff]   ;;  %v8688_v54 = vor.u32 %v8684_v14, %v21277_v22  ;;  %v8700_v22 = vrot.slane %v20820_v9, 1 }
 0x305   : > { %v5887_v47 = vadd.f32 %v21442_v49, %v5879_v48  ;;  %v5880_v4 = vadd.f32 %v5839_v29, %v21376_v23  ;;  %v21449_v38 = vpop.f32.mrb[158].mxu1  ;;  %17662 = vmatpush3.bf16.msra.mxu1 %v18924_v5 }
 0x306   : > { %v21452_v43 = vpop.f32.mrb[159].mxu1  ;;  %17663 = vmatprep.subr.bf16.mxu1 %v18926_v7  ;;  %v5889_v2 = vadd.f32 %v21442_v49, %v5881_v11 }
 0x307   : > { %v5888_v34 = vadd.f32 %v21442_v49, %v5880_v4  ;;  %v5895_v25 = vmax.f32 %v5887_v47, 0.0  ;;  %17636 = vmatpush3.bf16.msra.mxu0 %v18925_v36  ;;  %v18932_v47 = vld [vmem:[#allocation9 + $0x1c8] sm:$0xff]  }
 0x308   : > { %17637 = vmatprep.subr.bf16.mxu0 %v18927_v59  ;;  %v5897_v11 = vmax.f32 %v5889_v2, 0.0  ;;  %v8857_v2 = vld [vmem:[#allocation3 + $0x18] sm:$0xf8] }
 0x309   : > { %v5896_v18 = vmax.f32 %v5888_v34, 0.0  ;;  %v17253_v23 = vpop.f32.mrb[160].mxu0  ;;  %17664 = vmatpush3.bf16.msra.mxu1 %v18926_v7 }
 0x30a   : > { %v5883_v46 = vadd.f32 %v17253_v23, %v21386_v50  ;;  %v5851_v37 = vpop.f32.mrb[161].mxu0  ;;  %17665 = vmatprep.subr.bf16.mxu1 %v18928_v16  ;;  %v8680_v50 = vor.u32 %v8676_v0, %v21269_v45 }
 0x30b   : > { %v5903_v19 = vpack.c.bf16 %v5896_v18, %v5895_v25  ;;  %v5882_v5 = vadd.f32 %v5851_v37, %v21393_v15  ;;  %v17254_v3 = vpop.f32.mrb[162].mxu0  ;;  %17638 = vmatpush3.bf16.msra.mxu0 %v18927_v59  ;;  %v21464_v15 = vpop.f32.mrb[160].mxu1 }
 0x30c   : > { %v5891_v53 = vadd.f32 %v21442_v49, %v5883_v46  ;;  %v5884_v48 = vadd.f32 %v17254_v3, %v21396_v33  ;;  %v5854_v36 = vpop.f32.mrb[163].mxu0  ;;  %17679 = vmatprep.subr.bf16.mxu0 %v18929_v26  ;;  %v21468_v33 = vpop.f32.mrb[161].mxu1  ;;  %v8685_v34 = vsel %vm1535_vm4, %v8680_v50, %v8684_v14  ;;  %v8648_v50 = vld [vmem:[#allocation3 + $0x40] sm:$0x1] }
 0x30d   : > { %5904 = vst [vmem:[#allocation3 + $0x70] sm:$0xff] %v5903_v19  ;;  %v5890_v29 = vadd.f32 %v21442_v49, %v5882_v5  ;;  %17666 = vmatpush3.bf16.msra.mxu1 %v18928_v16  ;;  %v21470_v42 = vpop.f32.mrb[162].mxu1  ;;  %v8693_v16 = vsel %vm1535_vm4, %v8688_v54, %v8692_v31  ;;  %v8882_v19 = vshrl.u32 %v8857_v2, 16  ;;  %v8885_v5 = vshll.u32 %v8857_v2, 16  ;;  %v18938_v2 = vld [vmem:[#allocation9 + $0x1e0] sm:$0xff]  }
 0x30e   : > { %v5899_v7 = vmax.f32 %v5891_v53, 0.0  ;;  %v5892_v20 = vadd.f32 %v21442_v49, %v5884_v48  ;;  %17640 = vmatmul.mubr.bf16.vlgmr.msra.gmra.mrb[240].mxu0 %v21261_v17  ;;  %17707 = vmatprep.subr.bf16.mxu1 %v18930_v30  ;;  %v6085_v0 = vpop.f32.mrb[163].mxu1  ;;  %v18933_v17 = vld [vmem:[#allocation9 + $0x190] sm:$0xff]   ;;  %v8704_v48 = vor.u32 %v8700_v22, %v20812_v52 }
 0x30f   : > { %v5898_v4 = vmax.f32 %v5890_v29, 0.0  ;;  %17643 = vmatprep.mubr.bf16.mxu0 %v21263_v39  ;;  %17680 = vmatpush3.bf16.msra.mxu0 %v18929_v26  ;;  %v18934_v26 = vld [vmem:[#allocation9 + $0x1d0] sm:$0xff]   ;;  %v8696_v29 = vor.u32 %v8692_v31, %v20790_v56  ;;  %v8884_v54 = vrot.slane %v8882_v19, 3  ;;  %v8714_v56 = vshll.u32 %v8648_v50, 16  ;;  %v18937_v31 = vld [vmem:[#allocation9 + $0x1a0] sm:$0xff]  }
 0x310   : > { %v5900_v45 = vmax.f32 %v5892_v20, 0.0  ;;  %17668 = vmatmul.mubr.bf16.vlgmr.msra.gmra.mrb[240].mxu1 %v8685_v34  ;;  %17681 = vmatprep.subr.bf16.mxu0 %v18931_v40 }
 0x311   : > { %v5905_v59 = vpack.c.bf16 %v5898_v4, %v5897_v11  ;;  %v17257_v25 = vpop.f32.mrb[164].mxu0  ;;  %17671 = vmatprep.mubr.bf16.mxu1 %v8693_v16  ;;  %17708 = vmatpush3.bf16.msra.mxu1 %v18930_v30  ;;  %v18935_v30 = vld [vmem:[#allocation9 + $0x198] sm:$0xff]   ;;  %v8887_v4 = vrot.slane %v8885_v5, 4 }
 0x312   : > { %v5911_v18 = vpack.c.bf16 %v5900_v45, %v5899_v7  ;;  %v5886_v23 = vadd.f32 %v17257_v25, %v21409_v27  ;;  %v5866_v46 = vpop.f32.mrb[165].mxu0  ;;  %17709 = vmatprep.subr.bf16.mxu1 %v18932_v47  ;;  %v8708_v7 = vrot.slane %v20839_v41, 1  ;;  %v21494_v25 = vld [vmem:[#allocation3 + $0x18] sm:$0xf0] }
 0x313   : > { %v5907_v37 = vrot.slane %v5905_v59, 4  ;;  %v17258_v14 = vpop.f32.mrb[166].mxu0  ;;  %17682 = vmatpush3.bf16.msra.mxu0 %v18931_v40  ;;  %v21480_v27 = vpop.f32.mrb[164].mxu1  ;;  %v8701_v59 = vsel %vm1535_vm4, %v8696_v29, %v8700_v22  ;;  %v8888_v22 = vor.u32 %v8887_v4, %v8884_v54  ;;  %v9107_v46 = vrot.slane %v21494_v25, 4 }
 0x314   : > { %5912 = vst [vmem:[#allocation3 + $0x88] sm:$0xff] %v5911_v18  ;;  %v5868_v39 = vpop.f32.mrb[167].mxu0  ;;  %v5894_v3 = vadd.f32 %v21442_v49, %v5886_v23  ;;  %17683 = vmatprep.subr.bf16.mxu0 %v18933_v17  ;;  %v6097_v36 = vpop.f32.mrb[165].mxu1  ;;  %v8716_v23 = vrot.slane %v8714_v56, 1  ;;  %v21500_v14 = vld [vmem:[#allocation3 + $0x38] sm:$0xff]  ;;  %v8910_v56 = vrot.slane %v20812_v52, 3 }
 0x315   : > { %5909 = vst [vmem:[#allocation3 + $0x80] ss:$-4 sps:$4 sm:$0xff] %v5907_v37   ;;  %v5885_v53 = vadd.f32 %v5868_v39, %v21421_v24  ;;  %17710 = vmatpush3.bf16.msra.mxu1 %v18932_v47  ;;  %v17286_v20 = vpop.f32.mrb[166].mxu1  ;;  %v18936_v24 = vld [vmem:[#allocation9 + $0x1d8] sm:$0xff]   ;;  %v21490_v47 = vld [vmem:[#allocation3 + $0x30] sm:$0xff]  ;;  %v8712_v37 = vor.u32 %v8708_v7, %v20823_v8  ;;  %v8897_v39 = vsel %vm756_vm1, %v8888_v22, %v21330_v35  ;;  %v18945_v22 = vld [vmem:[#allocation9 + $0x200] sm:$0xff]  }
 0x316   : > { %17644 = vmatmul.mubr.bf16.gmra.mrb[244].mxu0 %v21288_v1  ;;  %17711 = vmatprep.subr.bf16.mxu1 %v18934_v26  ;;  %v21487_v40 = vpop.f32.mrb[167].mxu1  ;;  %v5902_v45 = vmax.f32 %v5894_v3, 0.0  ;;  %v8709_v1 = vsel %vm1535_vm4, %v8704_v48, %v8708_v7  ;;  %v18941_v36 = vld [vmem:[#allocation9 + $0x1b0] sm:$0xff]  }
 0x317   : > { %v5893_v11 = vadd.f32 %v21442_v49, %v5885_v53  ;;  %17647 = vmatprep.mubr.bf16.mxu0 %v21490_v47  ;;  %17684 = vmatpush3.bf16.msra.mxu0 %v18933_v17  ;;  %v10636_v49 = vld [vmem:[#allocation3 + $0x70] sm:$0xff]  ;;  %v18939_v17 = vld [vmem:[#allocation9 + $0x1a8] sm:$0xff]   ;;  %v8717_v5 = vsel %vm1535_vm4, %v8712_v37, %v8716_v23  ;;  %v9109_v53 = vsel %vm611_vm0, %v9107_v46, %v21295_v51 }
 0x318   : > { %17672 = vmatmul.mubr.bf16.gmra.mrb[244].mxu1 %v8701_v59  ;;  %17685 = vmatprep.subr.bf16.mxu0 %v18935_v30  ;;  %v21496_v18 = vshrl.u32 %v10636_v49, 16  ;;  %v18942_v7 = vld [vmem:[#allocation9 + $0x1f0] sm:$0xff]   ;;  %v19192_v46 = vld [vmem:[#allocation3 + $0x28] sm:$0xff] }
 0x319   : > { %v5901_v0 = vmax.f32 %v5893_v11, 0.0  ;;  %17675 = vmatprep.mubr.bf16.mxu1 %v8709_v1  ;;  %17712 = vmatpush3.bf16.msra.mxu1 %v18934_v26  ;;  %v18940_v26 = vld [vmem:[#allocation9 + $0x1e8] sm:$0xff]  }
 0x31a   : > { %17713 = vmatprep.subr.bf16.mxu1 %v18936_v24  ;;  %v22788_v19 = vrot.slane %v21496_v18, 7 }
 0x31b   : > { %v5913_v34 = vpack.c.bf16 %v5902_v45, %v5901_v0  ;;  %17686 = vmatpush3.bf16.msra.mxu0 %v18935_v30  ;;  %v21509_v30 = vshll.u32 %v10636_v49, 16  ;;  %v18943_v45 = vld [vmem:[#allocation9 + $0x1b8] sm:$0xff]   ;;  %v8913_v49 = vrot.slane %v20820_v9, 4  ;;  %v9110_v9 = vrot.slane %v19192_v46, 4 }
 0x31c   : > { %17687 = vmatprep.subr.bf16.mxu0 %v18937_v31 }
 0x31d   : > { %v5915_v16 = vrot.slane %v5913_v34, 4  ;;  %17714 = vmatpush3.bf16.msra.mxu1 %v18936_v24  ;;  %v21516_v20 = vor.u32 %v22788_v19, %v21509_v30  ;;  %v8914_v37 = vor.u32 %v8913_v49, %v8910_v56 }
 0x31e   : > { %17648 = vmatmul.mubr.bf16.gmra.mrb[248].mxu0 %v21500_v14  ;;  %17715 = vmatprep.subr.bf16.mxu1 %v18938_v2 }
 0x31f   : > { %5917 = vst [vmem:[#allocation3 + $0x98] ss:$-4 sps:$4 sm:$0xff] %v5915_v16   ;;  %17688 = vmatpush3.bf16.msra.mxu0 %v18937_v31  ;;  %17695 = vmatprep.mubr.bf16.mxu0 %v8897_v39 }
 0x320   : > { %17676 = vmatmul.mubr.bf16.gmra.mrb[248].mxu1 %v8717_v5  ;;  %17689 = vmatprep.subr.bf16.mxu0 %v18939_v17  ;;  %v8919_v5 = vrot.slane %v20823_v8, 3  ;;  %v9111_v8 = vsel %vm611_vm0, %v21295_v51, %v9110_v9 }
 0x321   : > { %v17305_v3 = vpop.f32.mrb[168].mxu0  ;;  %17716 = vmatpush3.bf16.msra.mxu1 %v18938_v2  ;;  %17723 = vmatprep.mubr.bf16.mxu1 %v9109_v53  ;;  %v9112_v53 = vrot.slane %v21490_v47, 4  ;;  %v18953_v47 = vld [vmem:[#allocation9 + $0x220] sm:$0xff]  }
 0x322   : > { %v6260_v48 = vpop.f32.mrb[169].mxu0  ;;  %17717 = vmatprep.subr.bf16.mxu1 %v18940_v26 }
 0x323   : > { %v6261_v35 = vadd.f32 %v6260_v48, %v21447_v63  ;;  %v17306_v50 = vpop.f32.mrb[170].mxu0  ;;  %v17333_v24 = vpop.f32.mrb[168].mxu1  ;;  %17690 = vmatpush3.bf16.msra.mxu0 %v18939_v17  ;;  %v18946_v17 = vld [vmem:[#allocation9 + $0x40] sm:$0xff]   ;;  %v9113_v51 = vsel %vm611_vm0, %v9110_v9, %v9112_v53 }
 0x324   : > { %v6271_v11 = vadd.f32 %v17306_v50, %v21449_v38  ;;  %v6263_v29 = vpop.f32.mrb[171].mxu0  ;;  %v6445_v4 = vpop.f32.mrb[169].mxu1  ;;  %17691 = vmatprep.subr.bf16.mxu0 %v18941_v36  ;;  %v18944_v38 = vld [vmem:[#allocation9 + $0x1f8] sm:$0xff]   ;;  %v8931_v50 = vrot.slane %v21090_v12, 4 }
 0x325   : > { %v6264_v54 = vadd.f32 %v6263_v29, %v21452_v43  ;;  %v17334_v0 = vpop.f32.mrb[170].mxu1  ;;  %17718 = vmatpush3.bf16.msra.mxu1 %v18940_v26  ;;  %v21519_v63 = vadd.f32 %v6445_v4, %v6261_v35  ;;  %v8928_v35 = vrot.slane %v21078_v28, 3  ;;  %v21549_v4 = vrot.slane %v21500_v14, 4 }
 0x326   : > { %v6448_v59 = vpop.f32.mrb[171].mxu1  ;;  %17719 = vmatprep.subr.bf16.mxu1 %v18942_v7  ;;  %v21523_v1 = vadd.f32 %v17334_v0, %v6271_v11  ;;  %v9281_v0 = vshll.u32 %v21494_v25, 16 }
 0x327   : > { %17692 = vmatpush3.bf16.msra.mxu0 %v18941_v36  ;;  %v21525_v34 = vadd.f32 %v6448_v59, %v6264_v54  ;;  %v21535_v36 = vld [vmem:[#allocation3 + $0x48] sm:$0xf] }
 0x328   : > { %17693 = vmatprep.subr.bf16.mxu0 %v18943_v45  ;;  %v8935_v56 = vshrl.u32 %v21535_v36, 16  ;;  %v8938_v49 = vshll.u32 %v21535_v36, 16 }
 0x329   : > { %v17309_v31 = vpop.f32.mrb[172].mxu0  ;;  %17720 = vmatpush3.bf16.msra.mxu1 %v18942_v7  ;;  %v18948_v7 = vld [vmem:[#allocation9 + $0x48] sm:$0xff]  }
 0x32a   : > { %v6283_v43 = vadd.f32 %v17309_v31, %v21464_v15  ;;  %v6275_v2 = vpop.f32.mrb[173].mxu0  ;;  %17721 = vmatprep.subr.bf16.mxu1 %v18944_v38  ;;  %v8922_v15 = vrot.slane %v20839_v41, 4  ;;  %v8915_v41 = vsel %vm756_vm1, %v21338_v32, %v8914_v37 }
 0x32b   : > { %v6276_v16 = vadd.f32 %v6275_v2, %v21468_v33  ;;  %v17310_v23 = vpop.f32.mrb[174].mxu0  ;;  %v17337_v26 = vpop.f32.mrb[172].mxu1  ;;  %17694 = vmatpush3.bf16.msra.mxu0 %v18943_v45  ;;  %v18947_v33 = vld [vmem:[#allocation9 + $0x208] sm:$0xff]   ;;  %v21559_v2 = vor.u32 %v8931_v50, %v8928_v35  ;;  %v18952_v50 = vld [vmem:[#allocation9 + $0x58] sm:$0xff]  }
 0x32c   : > { %v6286_v52 = vadd.f32 %v17310_v23, %v21470_v42  ;;  %v6278_v39 = vpop.f32.mrb[175].mxu0  ;;  %v6460_v3 = vpop.f32.mrb[173].mxu1  ;;  %17735 = vmatprep.subr.bf16.mxu0 %v18945_v22  ;;  %v21533_v48 = vadd.f32 %v17337_v26, %v6283_v43  ;;  %v8923_v54 = vor.u32 %v8922_v15, %v8919_v5  ;;  %v18950_v43 = vld [vmem:[#allocation9 + $0x50] sm:$0xff]   ;;  %v18951_v26 = vld [vmem:[#allocation9 + $0x218] sm:$0xff]  }
 0x32d   : > { %17722 = vmatpush3.bf16.msra.mxu1 %v18944_v38  ;;  %v17338_v42 = vpop.f32.mrb[174].mxu1  ;;  %v21539_v11 = vadd.f32 %v6460_v3, %v6276_v16  ;;  %v18949_v38 = vld [vmem:[#allocation9 + $0x210] sm:$0xff]   ;;  %v21565_v39 = vld [vmem:[#allocation3 + $0x40] sm:$0xff]  ;;  %v11831_v5 = vld [vmem:[#allocation3 + $0x98] sm:$0xff]  ;;  %v8937_v3 = vrot.slane %v8935_v56, 3 }
 0x32e   : > { %17696 = vmatmul.mubr.bf16.vlgmr.msra.gmra.mrb[252].mxu0 %v21347_v21  ;;  %17763 = vmatprep.subr.bf16.mxu1 %v18946_v17  ;;  %v6463_v29 = vpop.f32.mrb[175].mxu1  ;;  %v21546_v24 = vadd.f32 %v17338_v42, %v6286_v52  ;;  %v9278_v21 = vshrl.u32 %v21494_v25, 16  ;;  %v11830_v23 = vld [vmem:[#allocation3 + $0x90] sm:$0xff]  ;;  %v8924_v52 = vsel %vm756_vm1, %v8914_v37, %v8923_v54  ;;  %v8933_v35 = vsel %vm756_vm1, %v8923_v54, %v21559_v2 }
 0x32f   : > { %17699 = vmatprep.mubr.bf16.mxu0 %v8915_v41  ;;  %17736 = vmatpush3.bf16.msra.mxu0 %v18945_v22  ;;  %v11253_v22 = vld [vmem:[#allocation3 + $0x88] sm:$0xff]  ;;  %v9283_v41 = vrot.slane %v9281_v0, 5  ;;  %v21576_v29 = vshrl.u32 %v11830_v23, 16  ;;  %v21594_v0 = vshll.u32 %v11831_v5, 16 }
 0x330   : > { %17724 = vmatmul.mubr.bf16.vlgmr.msra.gmra.mrb[252].mxu1 %v9111_v8  ;;  %17737 = vmatprep.subr.bf16.mxu0 %v18947_v33  ;;  %v21570_v42 = vshrl.u32 %v11253_v22, 16  ;;  %v9280_v8 = vrot.slane %v9278_v21, 4  ;;  %v9118_v21 = vrot.slane %v21535_v36, 4  ;;  %v9677_v36 = vshrl.u32 %v21500_v14, 16 }
 0x331   : > { %v17313_v45 = vpop.f32.mrb[176].mxu0  ;;  %17727 = vmatprep.mubr.bf16.mxu1 %v9113_v51  ;;  %17764 = vmatpush3.bf16.msra.mxu1 %v18946_v17  ;;  %v21568_v17 = vrot.slane %v21565_v39, 4  ;;  %v21584_v51 = vshll.u32 %v11830_v23, 16  ;;  %v18955_v23 = vld [vmem:[#allocation9 + $0x228] sm:$0xff]  }
 0x332   : > { %v6298_v32 = vadd.f32 %v17313_v45, %v21480_v27  ;;  %v6290_v59 = vpop.f32.mrb[177].mxu0  ;;  %17765 = vmatprep.subr.bf16.mxu1 %v18948_v7 }
 0x333   : > { %v17314_v31 = vpop.f32.mrb[178].mxu0  ;;  %v17341_v16 = vpop.f32.mrb[176].mxu1  ;;  %17738 = vmatpush3.bf16.msra.mxu0 %v18947_v33  ;;  %v8940_v33 = vrot.slane %v8938_v49, 4  ;;  %v21591_v54 = vsel %vm611_vm0, %v21549_v4, %v21568_v17  ;;  %v9500_v59 = vld [vmem:[#allocation3 + $0x30] sm:$0xf0]  ;;  %v18954_v49 = vld [vmem:[#allocation9 + $0x60] sm:$0xff]  }
 0x334   : > { %v6292_v25 = vpop.f32.mrb[179].mxu0  ;;  %v21563_v46 = vadd.f32 %v17341_v16, %v6298_v32  ;;  %v6475_v9 = vpop.f32.mrb[177].mxu1  ;;  %17739 = vmatprep.subr.bf16.mxu0 %v18949_v38  ;;  %v21586_v32 = vshrl.u32 %v11831_v5, 16  ;;  %v9284_v31 = vor.u32 %v9283_v41, %v9280_v8  ;;  %v12836_v16 = vrot.slane %v21584_v51, 5 }
 0x335   : > { %v6293_v27 = vadd.f32 %v6292_v25, %v21487_v40  ;;  %17766 = vmatpush3.bf16.msra.mxu1 %v18948_v7  ;;  %v17342_v15 = vpop.f32.mrb[178].mxu1  ;;  %v21572_v40 = vshll.u32 %v11253_v22, 16  ;;  %v9115_v7 = vsel %vm611_vm0, %v9112_v53, %v21549_v4  ;;  %v8941_v53 = vor.u32 %v8940_v33, %v8937_v3  ;;  %v18956_v3 = vld [vmem:[#allocation9 + $0x68] sm:$0xff]   ;;  %v9477_v33 = vld [vmem:[#allocation3 + $0x30] sm:$0xf8] }
 0x336   : > { %v6477_v37 = vpop.f32.mrb[179].mxu1  ;;  %17700 = vmatmul.mubr.bf16.gmra.mrb[0].mxu0 %v8924_v52  ;;  %17767 = vmatprep.subr.bf16.mxu1 %v18950_v43  ;;  %v12835_v25 = vrot.slane %v21576_v29, 4  ;;  %v22789_v22 = vshll.u32 %v21500_v14, 16  ;;  %v12840_v52 = vrot.slane %v21594_v0, 5  ;;  %v9288_v15 = vsel %vm968_vm2, %v9284_v31, %v21404_v10 }
 0x337   : > { %v21582_v45 = vadd.f32 %v6477_v37, %v6293_v27  ;;  %17703 = vmatprep.mubr.bf16.mxu0 %v8933_v35  ;;  %17740 = vmatpush3.bf16.msra.mxu0 %v18949_v38  ;;  %v11673_v38 = vrot.slane %v21570_v42, 4  ;;  %v11674_v56 = vrot.slane %v21572_v40, 5  ;;  %v12839_v27 = vrot.slane %v21586_v32, 4 }
 0x338   : > { %17728 = vmatmul.mubr.bf16.gmra.mrb[0].mxu1 %v9115_v7  ;;  %17741 = vmatprep.subr.bf16.mxu0 %v18951_v26  ;;  %v8942_v9 = vsel %vm756_vm1, %v21559_v2, %v8941_v53  ;;  %v9119_v35 = vsel %vm611_vm0, %v21568_v17, %v9118_v21  ;;  %v21615_v41 = vrot.slane %v9677_v36, 3  ;;  %v18957_v21 = vld [vmem:[#allocation9 + $0x230] sm:$0xff]  }
 0x339   : > { %17731 = vmatprep.mubr.bf16.mxu1 %v21591_v54  ;;  %17768 = vmatpush3.bf16.msra.mxu1 %v18950_v43  ;;  %v9524_v43 = vrot.slane %v9500_v59, 4  ;;  %v21607_v5 = vor.u32 %v11674_v56, %v11673_v38  ;;  %v21611_v37 = vor.u32 %v12840_v52, %v12839_v27  ;;  %v9882_v38 = vshll.u32 %v9500_v59, 16 }
 0x33a   : > { %17769 = vmatprep.subr.bf16.mxu1 %v18952_v50 }
 0x33b   : > { %17742 = vmatpush3.bf16.msra.mxu0 %v18951_v26  ;;  %v12837_v26 = vor.u32 %v12836_v16, %v12835_v25  ;;  %22805 = vst [vmem:[#allocation14_spill] sm:$0xff] %v21611_v37  ;;  %v9526_v10 = vsel %vm611_vm0, %v9524_v43, %v21549_v4  ;;  %v9669_v16 = vshrl.u32 %v9477_v33, 16  ;;  %v18958_v4 = vld [vmem:[#allocation9 + $0x70] sm:$0xff]  }
 0x33c   : > { %17743 = vmatprep.subr.bf16.mxu0 %v18953_v47 }
 0x33d   : > { %17770 = vmatpush3.bf16.msra.mxu1 %v18952_v50  ;;  %v21619_v50 = vrot.slane %v22789_v22, 4  ;;  %v21623_v7 = vsel %vm968_vm2, %v21607_v5, %v12837_v26  ;;  %v21629_v56 = vsel %vm968_vm2, %v12837_v26, %v21611_v37  ;;  %v18959_v26 = vld [vmem:[#allocation9 + $0x238] sm:$0xff]  }
 0x33e   : > { %17704 = vmatmul.mubr.bf16.gmra.mrb[4].mxu0 %v8942_v9  ;;  %17771 = vmatprep.subr.bf16.mxu1 %v18954_v49 }
 0x33f   : > { %17744 = vmatpush3.bf16.msra.mxu0 %v18953_v47  ;;  %17751 = vmatprep.mubr.bf16.mxu0 %v9288_v15  ;;  %v9879_v47 = vshrl.u32 %v9500_v59, 16  ;;  %v9672_v59 = vshll.u32 %v9477_v33, 16 }
 0x340   : > { %17732 = vmatmul.mubr.bf16.gmra.mrb[4].mxu1 %v9119_v35  ;;  %17745 = vmatprep.subr.bf16.mxu0 %v18955_v23 }
 0x341   : > { %v17361_v8 = vpop.f32.mrb[180].mxu0  ;;  %17772 = vmatpush3.bf16.msra.mxu1 %v18954_v49  ;;  %17779 = vmatprep.mubr.bf16.mxu1 %v9526_v10  ;;  %v21640_v10 = vrot.slane %v9677_v36, 4  ;;  %v18961_v36 = vld [vmem:[#allocation9] sm:$0xff]  }
 0x342   : > { %v6659_v53 = vpop.f32.mrb[181].mxu0  ;;  %17773 = vmatprep.subr.bf16.mxu1 %v18956_v3  ;;  %v21638_v8 = vrot.slane %v9882_v38, 5 }
 0x343   : > { %v6702_v31 = vadd.f32 %v6659_v53, %v21519_v63  ;;  %v17362_v25 = vpop.f32.mrb[182].mxu0  ;;  %v17389_v43 = vpop.f32.mrb[180].mxu1  ;;  %17746 = vmatpush3.bf16.msra.mxu0 %v18955_v23  ;;  %v21636_v63 = vrot.slane %v9879_v47, 4  ;;  %v18960_v23 = vld [vmem:[#allocation9 + $0x78] sm:$0xff]  }
 0x344   : > { %v6704_v27 = vadd.f32 %v17362_v25, %v21523_v1  ;;  %v6662_v52 = vpop.f32.mrb[183].mxu0  ;;  %v6808_v15 = vpop.f32.mrb[181].mxu1  ;;  %17747 = vmatprep.subr.bf16.mxu0 %v18957_v21  ;;  %v21646_v25 = vld [vmem:[#allocation3 + $0x48] sm:$0xff]  ;;  %v9301_v43 = vrot.slane %v21078_v28, 4 }
 0x345   : > { %v6703_v9 = vadd.f32 %v6662_v52, %v21525_v34  ;;  %v21634_v35 = vadd.f32 %v6808_v15, %v6702_v31  ;;  %v17390_v49 = vpop.f32.mrb[182].mxu1  ;;  %17774 = vmatpush3.bf16.msra.mxu1 %v18956_v3  ;;  %v21648_v31 = vrot.slane %v9669_v16, 3  ;;  %v21650_v3 = vrot.slane %v9672_v59, 4 }
 0x346   : > { %v21642_v1 = vadd.f32 %v17390_v49, %v6704_v27  ;;  %v6811_v53 = vpop.f32.mrb[183].mxu1  ;;  %17775 = vmatprep.subr.bf16.mxu1 %v18958_v4  ;;  %v9529_v59 = vrot.slane %v21646_v25, 4 }
 0x347   : > { %v21644_v34 = vadd.f32 %v6811_v53, %v6703_v9  ;;  %17748 = vmatpush3.bf16.msra.mxu0 %v18957_v21  ;;  %v18962_v9 = vld [vmem:[#allocation9 + $0x80] sm:$0xff]   ;;  %v18963_v53 = vld [vmem:[#allocation9 + $0x8] sm:$0xff]  }
 0x348   : > { %17749 = vmatprep.subr.bf16.mxu0 %v18959_v26 }
 0x349   : > { %v17365_v33 = vpop.f32.mrb[184].mxu0  ;;  %17776 = vmatpush3.bf16.msra.mxu1 %v18958_v4 }
 0x34a   : > { %v6706_v47 = vadd.f32 %v17365_v33, %v21533_v48  ;;  %v6674_v38 = vpop.f32.mrb[185].mxu0  ;;  %17777 = vmatprep.subr.bf16.mxu1 %v18960_v23  ;;  %v9259_v33 = vld [vmem:[#allocation3 + $0x48] sm:$0x1f] }
 0x34b   : > { %v6705_v27 = vadd.f32 %v6674_v38, %v21539_v11  ;;  %v17366_v52 = vpop.f32.mrb[186].mxu0  ;;  %v17393_v16 = vpop.f32.mrb[184].mxu1  ;;  %17750 = vmatpush3.bf16.msra.mxu0 %v18959_v26  ;;  %v9302_v38 = vrot.slane %v21090_v12, 5  ;;  %v18964_v26 = vld [vmem:[#allocation9 + $0x88] sm:$0xff]   ;;  %v9530_v12 = vsel %vm611_vm0, %v21568_v17, %v9529_v59 }
 0x34c   : > { %v6707_v21 = vadd.f32 %v17366_v52, %v21546_v24  ;;  %v6677_v15 = vpop.f32.mrb[187].mxu0  ;;  %v21657_v49 = vadd.f32 %v17393_v16, %v6706_v47  ;;  %v6823_v48 = vpop.f32.mrb[185].mxu1  ;;  %17791 = vmatprep.subr.bf16.mxu0 %v18961_v36  ;;  %v21666_v52 = vld [vmem:[#allocation3 + $0x58] sm:$0xff] }
 0x34d   : > { %17778 = vmatpush3.bf16.msra.mxu1 %v18960_v23  ;;  %v21659_v4 = vadd.f32 %v6823_v48, %v6705_v27  ;;  %v17394_v11 = vpop.f32.mrb[186].mxu1  ;;  %v21669_v23 = vld [vmem:[#allocation3 + $0x50] sm:$0xff]  ;;  %v9306_v15 = vshrl.u32 %v9259_v33, 16 }
 0x34e   : > { %v21662_v19 = vadd.f32 %v17394_v11, %v6707_v21  ;;  %17752 = vmatmul.mubr.bf16.vlgmr.msra.gmra.mrb[8].mxu0 %v21417_v6  ;;  %17819 = vmatprep.subr.bf16.mxu1 %v18962_v9  ;;  %v6826_v24 = vpop.f32.mrb[187].mxu1  ;;  %v18965_v6 = vld [vmem:[#allocation9 + $0x10] sm:$0xff]   ;;  %v21674_v11 = vor.u32 %v9302_v38, %v9301_v43 }
 0x34f   : > { %17755 = vmatprep.mubr.bf16.mxu0 %v20866_v60  ;;  %17792 = vmatpush3.bf16.msra.mxu0 %v18961_v36  ;;  %v9309_v36 = vshll.u32 %v9259_v33, 16  ;;  %v18966_v48 = vld [vmem:[#allocation9 + $0x90] sm:$0xff]  }
 0x350   : > { %17780 = vmatmul.mubr.bf16.vlgmr.msra.gmra.mrb[8].mxu1 %v21591_v54  ;;  %17793 = vmatprep.subr.bf16.mxu0 %v18963_v53  ;;  %v9531_v54 = vrot.slane %v21669_v23, 4  ;;  %v9304_v43 = vsel %vm968_vm2, %v20868_v13, %v21674_v11  ;;  %v18970_v13 = vld [vmem:[#allocation9 + $0xa0] sm:$0xff]  }
 0x351   : > { %v17369_v47 = vpop.f32.mrb[188].mxu0  ;;  %17783 = vmatprep.mubr.bf16.mxu1 %v9530_v12  ;;  %17820 = vmatpush3.bf16.msra.mxu1 %v18962_v9  ;;  %v9533_v9 = vrot.slane %v21666_v52, 4  ;;  %v18967_v12 = vld [vmem:[#allocation9 + $0x18] sm:$0xff]  }
 0x352   : > { %v6709_v27 = vadd.f32 %v17369_v47, %v21563_v46  ;;  %v6689_v21 = vpop.f32.mrb[189].mxu0  ;;  %17821 = vmatprep.subr.bf16.mxu1 %v18964_v26 }
 0x353   : > { %v17370_v60 = vpop.f32.mrb[190].mxu0  ;;  %v17397_v24 = vpop.f32.mrb[188].mxu1  ;;  %17794 = vmatpush3.bf16.msra.mxu0 %v18963_v53  ;;  %v9308_v21 = vrot.slane %v9306_v15, 4  ;;  %v9532_v53 = vsel %vm611_vm0, %v9529_v59, %v9531_v54  ;;  %v18969_v15 = vld [vmem:[#allocation9 + $0x20] sm:$0xff]   ;;  %v21697_v59 = vor.u32 %v21619_v50, %v21615_v41  ;;  %v18972_v50 = vld [vmem:[#allocation9 + $0xa8] sm:$0xff]  }
 0x354   : > { %v6691_v16 = vpop.f32.mrb[191].mxu0  ;;  %v21678_v46 = vadd.f32 %v17397_v24, %v6709_v27  ;;  %v6838_v47 = vpop.f32.mrb[189].mxu1  ;;  %17795 = vmatprep.subr.bf16.mxu0 %v18965_v6  ;;  %v9311_v60 = vrot.slane %v9309_v36, 5  ;;  %v21688_v27 = vld [vmem:[#allocation3 + $0x60] sm:$0xf] }
 0x355   : > { %v6708_v17 = vadd.f32 %v6691_v16, %v21582_v45  ;;  %17822 = vmatpush3.bf16.msra.mxu1 %v18964_v26  ;;  %v17398_v33 = vpop.f32.mrb[190].mxu1  ;;  %v18968_v45 = vld [vmem:[#allocation9 + $0x98] sm:$0xff]   ;;  %v9534_v26 = vsel %vm611_vm0, %v9531_v54, %v9533_v9 }
 0x356   : > { %v6840_v22 = vpop.f32.mrb[191].mxu1  ;;  %17756 = vmatmul.mubr.bf16.gmra.mrb[12].mxu0 %v20879_v61  ;;  %17823 = vmatprep.subr.bf16.mxu1 %v18966_v48  ;;  %v22806_v61 = vshll.u32 %v21500_v14, 16  ;;  %v9312_v16 = vor.u32 %v9311_v60, %v9308_v21  ;;  %v9885_v14 = vor.u32 %v21638_v8, %v21636_v63  ;;  %v21715_v33 = vshrl.u32 %v21646_v25, 16 }
 0x357   : > { %v21686_v38 = vadd.f32 %v6840_v22, %v6708_v17  ;;  %17759 = vmatprep.mubr.bf16.mxu0 %v9304_v43  ;;  %17796 = vmatpush3.bf16.msra.mxu0 %v18965_v6  ;;  %v9675_v22 = vor.u32 %v21650_v3, %v21648_v31  ;;  %v9535_v6 = vrot.slane %v21688_v27, 4  ;;  %v21718_v60 = vshll.u32 %v21646_v25, 16 }
 0x358   : > { %17784 = vmatmul.mubr.bf16.gmra.mrb[12].mxu1 %v9532_v53  ;;  %17797 = vmatprep.subr.bf16.mxu0 %v18967_v12  ;;  %v9887_v36 = vrot.slane %v22806_v61, 5  ;;  %v9313_v24 = vsel %vm968_vm2, %v21674_v11, %v9312_v16  ;;  %v9697_v16 = vrot.slane %v21715_v33, 3 }
 0x359   : > { %17787 = vmatprep.mubr.bf16.mxu1 %v9534_v26  ;;  %17824 = vmatpush3.bf16.msra.mxu1 %v18966_v48  ;;  %v18971_v48 = vld [vmem:[#allocation9 + $0x28] sm:$0xff]   ;;  %v9684_v41 = vsel %vm756_vm1, %v9675_v22, %v21697_v59  ;;  %v9536_v31 = vsel %vm611_vm0, %v9533_v9, %v9535_v6  ;;  %v18974_v9 = vld [vmem:[#allocation9 + $0xb0] sm:$0xff]   ;;  %v18975_v26 = vld [vmem:[#allocation9 + $0x38] sm:$0xff]  }
 0x35a   : > { %17825 = vmatprep.subr.bf16.mxu1 %v18968_v45  ;;  %v21703_v54 = vor.u32 %v9887_v36, %v21640_v10  ;;  %v18973_v10 = vld [vmem:[#allocation9 + $0x30] sm:$0xff]   ;;  %v18976_v36 = vld [vmem:[#allocation9 + $0xb8] sm:$0xff]  }
 0x35b   : > { %17798 = vmatpush3.bf16.msra.mxu0 %v18967_v12 }
 0x35c   : > { %17799 = vmatprep.subr.bf16.mxu0 %v18969_v15  ;;  %v9889_v63 = vsel %vm968_vm2, %v9885_v14, %v21703_v54 }
 0x35d   : > { %17826 = vmatpush3.bf16.msra.mxu1 %v18968_v45 }
 0x35e   : > { %17760 = vmatmul.mubr.bf16.gmra.mrb[16].mxu0 %v9313_v24  ;;  %17827 = vmatprep.subr.bf16.mxu1 %v18970_v13  ;;  %v9894_v24 = vrot.slane %v21715_v33, 4 }
 0x35f   : > { %17800 = vmatpush3.bf16.msra.mxu0 %v18969_v15  ;;  %17807 = vmatprep.mubr.bf16.mxu0 %v9684_v41  ;;  %v9895_v41 = vrot.slane %v21718_v60, 5 }
 0x360   : > { %17788 = vmatmul.mubr.bf16.gmra.mrb[16].mxu1 %v9536_v31  ;;  %17801 = vmatprep.subr.bf16.mxu0 %v18971_v48 }
 0x361   : > { %v17417_v3 = vpop.f32.mrb[192].mxu0  ;;  %17828 = vmatpush3.bf16.msra.mxu1 %v18970_v13  ;;  %17835 = vmatprep.mubr.bf16.mxu1 %v9889_v63  ;;  %v9700_v13 = vrot.slane %v21718_v60, 4  ;;  %v21737_v63 = vshll.u32 %v21669_v23, 16 }
 0x362   : > { %v7022_v8 = vpop.f32.mrb[193].mxu0  ;;  %17829 = vmatprep.subr.bf16.mxu1 %v18972_v50  ;;  %v21734_v3 = vshrl.u32 %v21669_v23, 16 }
 0x363   : > { %v7065_v17 = vadd.f32 %v7022_v8, %v21634_v35  ;;  %v17418_v47 = vpop.f32.mrb[194].mxu0  ;;  %v17445_v43 = vpop.f32.mrb[192].mxu1  ;;  %17802 = vmatpush3.bf16.msra.mxu0 %v18971_v48  ;;  %v18977_v48 = vld [vmem:[#allocation9 + $0xc0] sm:$0xff]  }
 0x364   : > { %v7067_v21 = vadd.f32 %v17418_v47, %v21642_v1  ;;  %v7025_v12 = vpop.f32.mrb[195].mxu0  ;;  %v7246_v53 = vpop.f32.mrb[193].mxu1  ;;  %17803 = vmatprep.subr.bf16.mxu0 %v18973_v10  ;;  %v18978_v8 = vld [vmem:[#allocation9 + $0x100] sm:$0xff]   ;;  %v21743_v47 = vshrl.u32 %v21666_v52, 16  ;;  %v21750_v43 = vor.u32 %v9895_v41, %v9894_v24  ;;  %v9898_v24 = vrot.slane %v21734_v3, 4 }
 0x365   : > { %v7066_v45 = vadd.f32 %v7025_v12, %v21644_v34  ;;  %v21721_v35 = vadd.f32 %v7246_v53, %v7065_v17  ;;  %v17446_v15 = vpop.f32.mrb[194].mxu1  ;;  %17830 = vmatpush3.bf16.msra.mxu1 %v18972_v50  ;;  %v9899_v41 = vrot.slane %v21737_v63, 5 }
 0x366   : > { %v21723_v1 = vadd.f32 %v17446_v15, %v7067_v21  ;;  %v7249_v61 = vpop.f32.mrb[195].mxu1  ;;  %17831 = vmatprep.subr.bf16.mxu1 %v18974_v9  ;;  %v21746_v21 = vshll.u32 %v21666_v52, 16 }
 0x367   : > { %v21727_v22 = vadd.f32 %v7249_v61, %v7066_v45  ;;  %17804 = vmatpush3.bf16.msra.mxu0 %v18973_v10  ;;  %v21740_v10 = vor.u32 %v9700_v13, %v9697_v16  ;;  %v18979_v45 = vld [vmem:[#allocation9 + $0xc8] sm:$0xff]   ;;  %v9706_v61 = vrot.slane %v21734_v3, 3  ;;  %v9709_v16 = vrot.slane %v21737_v63, 4 }
 0x368   : > { %17805 = vmatprep.subr.bf16.mxu0 %v18975_v26 }
 0x369   : > { %v17421_v34 = vpop.f32.mrb[196].mxu0  ;;  %17832 = vmatpush3.bf16.msra.mxu1 %v18974_v9  ;;  %v9702_v13 = vsel %vm756_vm1, %v21559_v2, %v21740_v10 }
 0x36a   : > { %v7069_v6 = vadd.f32 %v17421_v34, %v21657_v49  ;;  %v7037_v14 = vpop.f32.mrb[197].mxu0  ;;  %17833 = vmatprep.subr.bf16.mxu1 %v18976_v36 }
 0x36b   : > { %v7068_v50 = vadd.f32 %v7037_v14, %v21659_v4  ;;  %v17422_v31 = vpop.f32.mrb[198].mxu0  ;;  %v17449_v4 = vpop.f32.mrb[196].mxu1  ;;  %17806 = vmatpush3.bf16.msra.mxu0 %v18975_v26  ;;  %v9893_v14 = vsel %vm968_vm2, %v21703_v54, %v21674_v11  ;;  %v9902_v54 = vrot.slane %v21743_v47, 4 }
 0x36c   : > { %v7070_v49 = vadd.f32 %v17422_v31, %v21662_v19  ;;  %v7040_v17 = vpop.f32.mrb[199].mxu0  ;;  %v21748_v12 = vadd.f32 %v17449_v4, %v7069_v6  ;;  %v7261_v9 = vpop.f32.mrb[197].mxu1  ;;  %17847 = vmatprep.subr.bf16.mxu0 %v18977_v48  ;;  %v9693_v19 = vsel %vm756_vm1, %v21697_v59, %v21559_v2  ;;  %v18980_v6 = vld [vmem:[#allocation9 + $0x108] sm:$0xff]   ;;  %v9715_v59 = vrot.slane %v21743_v47, 3  ;;  %v9861_v4 = vld [vmem:[#allocation3 + $0x60] sm:$0x1f] }
 0x36d   : > { %17834 = vmatpush3.bf16.msra.mxu1 %v18976_v36  ;;  %v21755_v53 = vadd.f32 %v7261_v9, %v7068_v50  ;;  %v17450_v15 = vpop.f32.mrb[198].mxu1  ;;  %v9718_v36 = vrot.slane %v21746_v21, 4  ;;  %v9897_v2 = vsel %vm968_vm2, %v21674_v11, %v21750_v43  ;;  %v18981_v17 = vld [vmem:[#allocation9 + $0xd0] sm:$0xff]   ;;  %v9903_v9 = vrot.slane %v21746_v21, 5 }
 0x36e   : > { %v21759_v26 = vadd.f32 %v17450_v15, %v7070_v49  ;;  %17808 = vmatmul.mubr.bf16.vlgmr.msra.gmra.mrb[20].mxu0 %v9693_v19  ;;  %17875 = vmatprep.subr.bf16.mxu1 %v18978_v8  ;;  %v7264_v34 = vpop.f32.mrb[199].mxu1  ;;  %v21777_v19 = vor.u32 %v9709_v16, %v9706_v61  ;;  %v9722_v15 = vshrl.u32 %v21688_v27, 16  ;;  %v9907_v61 = vshrl.u32 %v9861_v4, 16 }
 0x36f   : > { %17811 = vmatprep.mubr.bf16.mxu0 %v9702_v13  ;;  %17848 = vmatpush3.bf16.msra.mxu0 %v18977_v48  ;;  %v9725_v13 = vshll.u32 %v21688_v27, 16  ;;  %v21781_v34 = vor.u32 %v9718_v36, %v9715_v59  ;;  %v9910_v16 = vshll.u32 %v9861_v4, 16  ;;  %v21788_v37 = vor.u32 %v9903_v9, %v9902_v54  ;;  %v18983_v27 = vld [vmem:[#allocation9 + $0xd8] sm:$0xff]  }
 0x370   : > { %17836 = vmatmul.mubr.bf16.vlgmr.msra.gmra.mrb[20].mxu1 %v9893_v14  ;;  %17849 = vmatprep.subr.bf16.mxu0 %v18979_v45  ;;  %v21783_v14 = vor.u32 %v9899_v41, %v9898_v24  ;;  %v9711_v59 = vsel %vm756_vm1, %v21740_v10, %v21777_v19  ;;  %v9724_v24 = vrot.slane %v9722_v15, 3  ;;  %v9909_v10 = vrot.slane %v9907_v61, 4  ;;  %v18987_v61 = vld [vmem:[#allocation9 + $0xe8] sm:$0xff]  }
 0x371   : > { %v17425_v50 = vpop.f32.mrb[200].mxu0  ;;  %17839 = vmatprep.mubr.bf16.mxu1 %v9897_v2  ;;  %17876 = vmatpush3.bf16.msra.mxu1 %v18978_v8  ;;  %v10054_v2 = vld [vmem:[#allocation3 + $0x38] sm:$0x80] }
 0x372   : > { %v7072_v31 = vadd.f32 %v17425_v50, %v21678_v46  ;;  %v7052_v49 = vpop.f32.mrb[201].mxu0  ;;  %17877 = vmatprep.subr.bf16.mxu1 %v18980_v6  ;;  %v18982_v46 = vld [vmem:[#allocation9 + $0x110] sm:$0xff]   ;;  %v10078_v4 = vshrl.u32 %v10054_v2, 16  ;;  %v9901_v54 = vsel %vm968_vm2, %v21750_v43, %v21783_v14  ;;  %v21807_v15 = vsel %vm968_vm2, %v21783_v14, %v21788_v37  ;;  %v18986_v43 = vld [vmem:[#allocation9 + $0x120] sm:$0xff]   ;;  %v18988_v2 = vld [vmem:[#allocation9 + $0x128] sm:$0xff]  }
 0x373   : > { %v17426_v48 = vpop.f32.mrb[202].mxu0  ;;  %v17453_v50 = vpop.f32.mrb[200].mxu1  ;;  %17850 = vmatpush3.bf16.msra.mxu0 %v18979_v45  ;;  %v9727_v45 = vrot.slane %v9725_v13, 4  ;;  %v18985_v13 = vld [vmem:[#allocation9 + $0xe0] sm:$0xff]  }
 0x374   : > { %v7054_v11 = vpop.f32.mrb[203].mxu0  ;;  %v21786_v8 = vadd.f32 %v17453_v50, %v7072_v31  ;;  %v7276_v48 = vpop.f32.mrb[201].mxu1  ;;  %17851 = vmatprep.subr.bf16.mxu0 %v18981_v17  ;;  %v18984_v31 = vld [vmem:[#allocation9 + $0x118] sm:$0xff]   ;;  %v10080_v50 = vrot.slane %v10078_v4, 7 }
 0x375   : > { %v7071_v49 = vadd.f32 %v7054_v11, %v21686_v38  ;;  %17878 = vmatpush3.bf16.msra.mxu1 %v18980_v6  ;;  %v17454_v36 = vpop.f32.mrb[202].mxu1  ;;  %v21796_v38 = vsel %vm756_vm1, %v21777_v19, %v21781_v34  ;;  %v9912_v6 = vrot.slane %v9910_v16, 5  ;;  %v9728_v11 = vor.u32 %v9727_v45, %v9724_v24 }
 0x376   : > { %v7278_v41 = vpop.f32.mrb[203].mxu1  ;;  %17812 = vmatmul.mubr.bf16.gmra.mrb[24].mxu0 %v9711_v59  ;;  %17879 = vmatprep.subr.bf16.mxu1 %v18982_v46  ;;  %v10088_v16 = vsel %vm1169_vm3, %v10080_v50, %v21099_v44  ;;  %v18989_v59 = vld [vmem:[#allocation9 + $0xf0] sm:$0xff]   ;;  %v21825_v50 = vld [vmem:[%s22781_s4] ss:$0 sm:$0xff] }
 0x377   : > { %v21801_v9 = vadd.f32 %v7278_v41, %v7071_v49  ;;  %17815 = vmatprep.mubr.bf16.mxu0 %v21796_v38  ;;  %17852 = vmatpush3.bf16.msra.mxu0 %v18981_v17  ;;  %v9913_v49 = vor.u32 %v9912_v6, %v9909_v10  ;;  %v9729_v17 = vsel %vm756_vm1, %v21781_v34, %v9728_v11  ;;  %v18990_v41 = vld [vmem:[#allocation9 + $0x130] sm:$0xff]   ;;  %v18991_v6 = vld [vmem:[#allocation9 + $0xf8] sm:$0xff]  }
 0x378   : > { %17840 = vmatmul.mubr.bf16.gmra.mrb[24].mxu1 %v9901_v54  ;;  %17853 = vmatprep.subr.bf16.mxu0 %v18983_v27  ;;  %v10092_v54 = vrot.slane %v21715_v33, 7 }
 0x379   : > { %17843 = vmatprep.mubr.bf16.mxu1 %v21807_v15  ;;  %17880 = vmatpush3.bf16.msra.mxu1 %v18982_v46  ;;  %v9914_v46 = vsel %vm968_vm2, %v21788_v37, %v9913_v49 }
 0x37a   : > { %17881 = vmatprep.subr.bf16.mxu1 %v18984_v31 }
 0x37b   : > { %17854 = vmatpush3.bf16.msra.mxu0 %v18983_v27 }
 0x37c   : > { %17855 = vmatprep.subr.bf16.mxu0 %v18985_v13 }
 0x37d   : > { %17882 = vmatpush3.bf16.msra.mxu1 %v18984_v31 }
 0x37e   : > { %17816 = vmatmul.mubr.bf16.gmra.mrb[28].mxu0 %v9729_v17  ;;  %17883 = vmatprep.subr.bf16.mxu1 %v18986_v43  ;;  %v21828_v17 = vld [vmem:[#allocation3 + $0x60] sm:$0xff] }
 0x37f   : > { %17856 = vmatpush3.bf16.msra.mxu0 %v18985_v13  ;;  %17863 = vmatprep.mubr.bf16.mxu0 %v10088_v16  ;;  %v10095_v16 = vor.u32 %v10092_v54, %v21718_v60 }
 0x380   : > { %17844 = vmatmul.mubr.bf16.gmra.mrb[28].mxu1 %v9914_v46  ;;  %17857 = vmatprep.subr.bf16.mxu0 %v18987_v61 }
 0x381   : > { %v17473_v48 = vpop.f32.mrb[204].mxu0  ;;  %17884 = vmatpush3.bf16.msra.mxu1 %v18986_v43  ;;  %17891 = vmatprep.mubr.bf16.mxu1 %v21565_v39  ;;  %v18992_v43 = vld [vmem:[#allocation9 + $0x138] sm:$0xff]  }
 0x382   : > { %v7422_v27 = vpop.f32.mrb[205].mxu0  ;;  %17885 = vmatprep.subr.bf16.mxu1 %v18988_v2  ;;  %v18993_v48 = vld [vmem:[#allocation9 + $0x140] sm:$0xff]  }
 0x383   : > { %v7465_v36 = vadd.f32 %v7422_v27, %v21721_v35  ;;  %v17474_v24 = vpop.f32.mrb[206].mxu0  ;;  %v17501_v31 = vpop.f32.mrb[204].mxu1  ;;  %17858 = vmatpush3.bf16.msra.mxu0 %v18987_v61 }
 0x384   : > { %v7467_v44 = vadd.f32 %v17474_v24, %v21723_v1  ;;  %v7425_v45 = vpop.f32.mrb[207].mxu0  ;;  %v7615_v10 = vpop.f32.mrb[205].mxu1  ;;  %17859 = vmatprep.subr.bf16.mxu0 %v18989_v59  ;;  %v10100_v1 = vrot.slane %v21734_v3, 7 }
 0x385   : > { %v7466_v4 = vadd.f32 %v7425_v45, %v21727_v22  ;;  %v7658_v13 = vadd.f32 %v7615_v10, %v7465_v36  ;;  %v17502_v11 = vpop.f32.mrb[206].mxu1  ;;  %17886 = vmatpush3.bf16.msra.mxu1 %v18988_v2 }
 0x386   : > { %v7660_v39 = vadd.f32 %v17502_v11, %v7467_v44  ;;  %v7618_v35 = vpop.f32.mrb[207].mxu1  ;;  %17887 = vmatprep.subr.bf16.mxu1 %v18990_v41  ;;  %v10103_v45 = vor.u32 %v10100_v1, %v21737_v63 }
 0x387   : > { %v7666_v22 = vadd.f32 %v21825_v50, %v7658_v13  ;;  %v7659_v49 = vadd.f32 %v7618_v35, %v7466_v4  ;;  %17860 = vmatpush3.bf16.msra.mxu0 %v18989_v59  ;;  %v18994_v59 = vld [vmem:[#allocation9 + $0x180] sm:$0xff]  }
 0x388   : > { %17861 = vmatprep.subr.bf16.mxu0 %v18991_v6 }
 0x389   : > { %v17477_v61 = vpop.f32.mrb[208].mxu0  ;;  %v7667_v27 = vadd.f32 %v21825_v50, %v7659_v49  ;;  %17888 = vmatpush3.bf16.msra.mxu1 %v18990_v41  ;;  %v7674_v4 = vmax.f32 %v7666_v22, 0.0  ;;  %v22807_v41 = vrot.slane %v21078_v28, 7  ;;  %v7668_v49 = vadd.f32 %v21825_v50, %v7660_v39 }
 0x38a   : > { %v7469_v2 = vadd.f32 %v17477_v61, %v21748_v12  ;;  %v7437_v46 = vpop.f32.mrb[209].mxu0  ;;  %17889 = vmatprep.subr.bf16.mxu1 %v18992_v43  ;;  %v21839_v12 = vshrl.u32 %v21828_v17, 16  ;;  %v10104_v28 = vsel %vm1169_vm3, %v10092_v54, %v10103_v45  ;;  %v21854_v54 = vshll.u32 %v21828_v17, 16  ;;  %v21856_v45 = vld [vmem:[#allocation3 + $0x40] sm:$0xff] }
 0x38b   : > { %v7468_v36 = vadd.f32 %v7437_v46, %v21755_v53  ;;  %v17478_v24 = vpop.f32.mrb[210].mxu0  ;;  %v7675_v10 = vmax.f32 %v7667_v27, 0.0  ;;  %v17505_v13 = vpop.f32.mrb[208].mxu1  ;;  %17862 = vmatpush3.bf16.msra.mxu0 %v18991_v6  ;;  %v10096_v53 = vsel %vm1169_vm3, %v22807_v41, %v10095_v16  ;;  %v18996_v16 = vld [vmem:[#allocation9 + $0x188] sm:$0xff]  }
 0x38c   : > { %v7470_v44 = vadd.f32 %v17478_v24, %v21759_v26  ;;  %v7440_v31 = vpop.f32.mrb[211].mxu0  ;;  %v7662_v11 = vadd.f32 %v17505_v13, %v7469_v2  ;;  %v7630_v35 = vpop.f32.mrb[209].mxu1  ;;  %17903 = vmatprep.subr.bf16.mxu0 %v18993_v48  ;;  %v18995_v26 = vld [vmem:[#allocation9 + $0x148] sm:$0xff]   ;;  %v10116_v2 = vrot.slane %v21839_v12, 7 }
 0x38d   : > { %v7682_v61 = vpack.c.bf16 %v7675_v10, %v7674_v4  ;;  %17890 = vmatpush3.bf16.msra.mxu1 %v18992_v43  ;;  %v7661_v46 = vadd.f32 %v7630_v35, %v7468_v36  ;;  %v17506_v24 = vpop.f32.mrb[210].mxu1  ;;  %v10108_v31 = vrot.slane %v21743_v47, 7  ;;  %v18997_v4 = vld [vmem:[#allocation9 + $0x150] sm:$0xff]   ;;  %v7676_v10 = vmax.f32 %v7668_v49, 0.0 }
 0x38e   : > { %v7670_v22 = vadd.f32 %v21825_v50, %v7662_v11  ;;  %v7663_v27 = vadd.f32 %v17506_v24, %v7470_v44  ;;  %17864 = vmatmul.mubr.bf16.vlgmr.msra.gmra.mrb[32].mxu0 %v10096_v53  ;;  %17931 = vmatprep.subr.bf16.mxu1 %v18994_v59  ;;  %v7633_v6 = vpop.f32.mrb[211].mxu1  ;;  %v10631_v53 = vld [vmem:[#allocation3 + $0x48] sm:$0xf8]  ;;  %v18998_v35 = vld [vmem:[#allocation9 + $0x190] sm:$0xff]  }
 0x38f   : > { %7683 = vst [vmem:[#allocation3 + $0xa0] sm:$0xff] %v7682_v61  ;;  %v7669_v39 = vadd.f32 %v21825_v50, %v7661_v46  ;;  %17867 = vmatprep.mubr.bf16.mxu0 %v10104_v28  ;;  %17904 = vmatpush3.bf16.msra.mxu0 %v18993_v48  ;;  %v10111_v41 = vor.u32 %v10108_v31, %v21746_v21  ;;  %v10655_v28 = vshrl.u32 %v10631_v53, 16  ;;  %v10658_v6 = vshll.u32 %v10631_v53, 16 }
 0x390   : > { %v7671_v36 = vadd.f32 %v21825_v50, %v7663_v27  ;;  %17892 = vmatmul.mubr.bf16.vlgmr.msra.gmra.mrb[32].mxu1 %v21646_v25  ;;  %17905 = vmatprep.subr.bf16.mxu0 %v18995_v26  ;;  %v7678_v25 = vmax.f32 %v7670_v22, 0.0  ;;  %v10119_v61 = vor.u32 %v21854_v54, %v10116_v2  ;;  %v18999_v22 = vld [vmem:[#allocation9 + $0x158] sm:$0xff]  }
 0x391   : > { %v17481_v43 = vpop.f32.mrb[212].mxu0  ;;  %v7677_v13 = vmax.f32 %v7669_v39, 0.0  ;;  %17895 = vmatprep.mubr.bf16.mxu1 %v21669_v23  ;;  %17932 = vmatpush3.bf16.msra.mxu1 %v18994_v59  ;;  %v10443_v23 = vshll.u32 %v21856_v45, 16 }
 0x392   : > { %v7472_v47 = vadd.f32 %v17481_v43, %v21786_v8  ;;  %v7452_v44 = vpop.f32.mrb[213].mxu0  ;;  %v7679_v11 = vmax.f32 %v7671_v36, 0.0  ;;  %17933 = vmatprep.subr.bf16.mxu1 %v18996_v16  ;;  %v10112_v36 = vsel %vm1169_vm3, %v10100_v1, %v10111_v41  ;;  %v10660_v41 = vrot.slane %v10658_v6, 4 }
 0x393   : > { %v17482_v48 = vpop.f32.mrb[214].mxu0  ;;  %v7684_v46 = vpack.c.bf16 %v7677_v13, %v7676_v10  ;;  %v17509_v24 = vpop.f32.mrb[212].mxu1  ;;  %17906 = vmatpush3.bf16.msra.mxu0 %v18995_v26  ;;  %v10124_v26 = vrot.slane %v21167_v55, 7  ;;  %v19000_v44 = vld [vmem:[#allocation9 + $0x198] sm:$0xff]   ;;  %v10445_v1 = vrot.slane %v10443_v23, 1 }
 0x394   : > { %v7454_v8 = vpop.f32.mrb[215].mxu0  ;;  %v7690_v59 = vpack.c.bf16 %v7679_v11, %v7678_v25  ;;  %v7665_v27 = vadd.f32 %v17509_v24, %v7472_v47  ;;  %v7645_v21 = vpop.f32.mrb[213].mxu1  ;;  %17907 = vmatprep.subr.bf16.mxu0 %v18997_v4  ;;  %v10120_v47 = vsel %vm1169_vm3, %v10108_v31, %v10119_v61  ;;  %v10657_v48 = vrot.slane %v10655_v28, 3  ;;  %v19002_v11 = vld [vmem:[#allocation9 + $0x1a0] sm:$0xff]  }
 0x395   : > { %v7471_v49 = vadd.f32 %v7454_v8, %v21801_v9  ;;  %v7686_v39 = vrot.slane %v7684_v46, 4  ;;  %17934 = vmatpush3.bf16.msra.mxu1 %v18996_v16  ;;  %v17510_v43 = vpop.f32.mrb[214].mxu1  ;;  %v19001_v16 = vld [vmem:[#allocation9 + $0x160] sm:$0xff]   ;;  %v10127_v31 = vor.u32 %v21170_v62, %v10124_v26  ;;  %v10441_v8 = vshrl.u32 %v21856_v45, 16  ;;  %v19006_v26 = vld [vmem:[#allocation9 + $0x1b0] sm:$0xff]  }
 0x396   : > { %7691 = vst [vmem:[#allocation3 + $0xb8] sm:$0xff] %v7690_v59  ;;  %v7647_v9 = vpop.f32.mrb[215].mxu1  ;;  %17868 = vmatmul.mubr.bf16.gmra.mrb[36].mxu0 %v10112_v36  ;;  %17935 = vmatprep.subr.bf16.mxu1 %v18998_v35  ;;  %v7673_v10 = vadd.f32 %v21825_v50, %v7665_v27  ;;  %v12407_v53 = vld [vmem:[#allocation3 + $0xa0] sm:$0xff] }
 0x397   : > { %7688 = vst [vmem:[#allocation3 + $0xb0] ss:$-4 sps:$4 sm:$0xff] %v7686_v39   ;;  %v7664_v13 = vadd.f32 %v7647_v9, %v7471_v49  ;;  %17871 = vmatprep.mubr.bf16.mxu0 %v10120_v47  ;;  %17908 = vmatpush3.bf16.msra.mxu0 %v18997_v4  ;;  %v10450_v4 = vrot.slane %v21718_v60, 1  ;;  %v21877_v46 = vshrl.u32 %v12407_v53, 16  ;;  %v10446_v24 = vor.u32 %v10445_v1, %v10441_v8  ;;  %v19004_v60 = vld [vmem:[#allocation9 + $0x1a8] sm:$0xff]   ;;  %v19009_v8 = vld [vmem:[#allocation9 + $0x1c0] sm:$0xff]  }
 0x398   : > { %17896 = vmatmul.mubr.bf16.gmra.mrb[36].mxu1 %v21666_v52  ;;  %17909 = vmatprep.subr.bf16.mxu0 %v18999_v22  ;;  %v7681_v52 = vmax.f32 %v7673_v10, 0.0  ;;  %v10661_v49 = vor.u32 %v10660_v41, %v10657_v48  ;;  %v21889_v43 = vshll.u32 %v12407_v53, 16  ;;  %v10458_v1 = vrot.slane %v21737_v63, 1  ;;  %v19008_v53 = vld [vmem:[#allocation9 + $0x1b8] sm:$0xff]  }
 0x399   : > { %v7672_v25 = vadd.f32 %v21825_v50, %v7664_v13  ;;  %17899 = vmatprep.mubr.bf16.mxu1 %v21828_v17  ;;  %17936 = vmatpush3.bf16.msra.mxu1 %v18998_v35  ;;  %v19003_v50 = vld [vmem:[#allocation9 + $0x168] sm:$0xff]   ;;  %v10128_v35 = vsel %vm1169_vm3, %v10116_v2, %v10127_v31  ;;  %v10451_v45 = vsel %vm1535_vm4, %v10446_v24, %v10450_v4  ;;  %v13626_v21 = vrot.slane %v21877_v46, 7  ;;  %v19005_v2 = vld [vmem:[#allocation9 + $0x170] sm:$0xff]  }
 0x39a   : > { %17937 = vmatprep.subr.bf16.mxu1 %v19000_v44  ;;  %v10670_v28 = vsel %vm756_vm1, %v10661_v49, %v21777_v19  ;;  %v10686_v24 = vrot.slane %v21854_v54, 4  ;;  %v10454_v49 = vor.u32 %v10450_v4, %v21715_v33 }
 0x39b   : > { %v7680_v61 = vmax.f32 %v7672_v25, 0.0  ;;  %17910 = vmatpush3.bf16.msra.mxu0 %v18999_v22  ;;  %v21884_v22 = vld [vmem:[#allocation3 + $0x68] sm:$0xff]  ;;  %v21894_v47 = vor.u32 %v13626_v21, %v21889_v43 }
 0x39c   : > { %17911 = vmatprep.subr.bf16.mxu0 %v19001_v16 }
 0x39d   : > { %v7692_v23 = vpack.c.bf16 %v7681_v52, %v7680_v61  ;;  %17938 = vmatpush3.bf16.msra.mxu1 %v19000_v44  ;;  %v19007_v44 = vld [vmem:[#allocation9 + $0x178] sm:$0xff]   ;;  %v10683_v61 = vrot.slane %v21839_v12, 3 }
 0x39e   : > { %17872 = vmatmul.mubr.bf16.gmra.mrb[40].mxu0 %v10128_v35  ;;  %17939 = vmatprep.subr.bf16.mxu1 %v19002_v11  ;;  %v10462_v35 = vor.u32 %v10458_v1, %v21734_v3 }
 0x39f   : > { %v7694_v59 = vrot.slane %v7692_v23, 4  ;;  %17912 = vmatpush3.bf16.msra.mxu0 %v19001_v16  ;;  %17919 = vmatprep.mubr.bf16.mxu0 %v10451_v45  ;;  %v10420_v16 = vld [vmem:[#allocation3 + $0x58] sm:$0xff]  ;;  %v19010_v23 = vld [vmem:[#allocation9 + $0x200] sm:$0xff]  }
 0x3a0   : > { %17900 = vmatmul.mubr.bf16.gmra.mrb[40].mxu1 %v21884_v22  ;;  %17913 = vmatprep.subr.bf16.mxu0 %v19003_v50  ;;  %v10464_v52 = vshll.u32 %v10420_v16, 16 }
 0x3a1   : > { %v17529_v27 = vpop.f32.mrb[216].mxu0  ;;  %7696 = vst [vmem:[#allocation3 + $0xc8] ss:$-4 sps:$4 sm:$0xff] %v7694_v59   ;;  %17940 = vmatpush3.bf16.msra.mxu1 %v19002_v11  ;;  %17947 = vmatprep.mubr.bf16.mxu1 %v10670_v28  ;;  %v10687_v28 = vor.u32 %v10686_v24, %v10683_v61 }
 0x3a2   : > { %v7847_v6 = vpop.f32.mrb[217].mxu0  ;;  %17941 = vmatprep.subr.bf16.mxu1 %v19004_v60  ;;  %v10466_v27 = vrot.slane %v10464_v52, 1  ;;  %v10855_v52 = vld [vmem:[#allocation3 + $0x48] sm:$0xf0] }
 0x3a3   : > { %v17530_v39 = vpop.f32.mrb[218].mxu0  ;;  %v17557_v9 = vpop.f32.mrb[216].mxu1  ;;  %17914 = vmatpush3.bf16.msra.mxu0 %v19003_v50 }
 0x3a4   : > { %v7850_v36 = vpop.f32.mrb[219].mxu0  ;;  %v8040_v19 = vpop.f32.mrb[217].mxu1  ;;  %17915 = vmatprep.subr.bf16.mxu0 %v19005_v2  ;;  %v10467_v3 = vsel %vm1535_vm4, %v10462_v35, %v10466_v27  ;;  %v10474_v9 = vrot.slane %v21854_v54, 1 }
 0x3a5   : > { %v21896_v10 = vadd.f32 %v8040_v19, %v7847_v6  ;;  %v17558_v13 = vpop.f32.mrb[218].mxu1  ;;  %17942 = vmatpush3.bf16.msra.mxu1 %v19004_v60  ;;  %v19011_v6 = vld [vmem:[#allocation9 + $0x1c8] sm:$0xff]   ;;  %v10468_v19 = vshrl.u32 %v10420_v16, 16 }
 0x3a6   : > { %v21899_v48 = vadd.f32 %v17558_v13, %v17530_v39  ;;  %v8043_v41 = vpop.f32.mrb[219].mxu1  ;;  %17943 = vmatprep.subr.bf16.mxu1 %v19006_v26  ;;  %v10688_v13 = vsel %vm756_vm1, %v21781_v34, %v10687_v28  ;;  %v10478_v24 = vor.u32 %v10474_v9, %v21839_v12  ;;  %v10423_v34 = vld [vmem:[#allocation3 + $0x70] sm:$0x1] }
 0x3a7   : > { %v21901_v25 = vadd.f32 %v8043_v41, %v7850_v36  ;;  %17916 = vmatpush3.bf16.msra.mxu0 %v19005_v2  ;;  %v10459_v2 = vsel %vm1535_vm4, %v10454_v49, %v10458_v1  ;;  %v19013_v41 = vld [vmem:[#allocation9 + $0x1d0] sm:$0xff]  }
 0x3a8   : > { %17917 = vmatprep.subr.bf16.mxu0 %v19007_v44 }
 0x3a9   : > { %v17533_v31 = vpop.f32.mrb[220].mxu0  ;;  %17944 = vmatpush3.bf16.msra.mxu1 %v19006_v26  ;;  %v19012_v26 = vld [vmem:[#allocation9 + $0x208] sm:$0xff]  }
 0x3aa   : > { %v7862_v11 = vpop.f32.mrb[221].mxu0  ;;  %17945 = vmatprep.subr.bf16.mxu1 %v19008_v53 }
 0x3ab   : > { %v17534_v63 = vpop.f32.mrb[222].mxu0  ;;  %v17561_v45 = vpop.f32.mrb[220].mxu1  ;;  %17918 = vmatpush3.bf16.msra.mxu0 %v19007_v44 }
 0x3ac   : > { %v7865_v50 = vpop.f32.mrb[223].mxu0  ;;  %v21907_v60 = vadd.f32 %v17561_v45, %v17533_v31  ;;  %v8055_v59 = vpop.f32.mrb[221].mxu1  ;;  %17959 = vmatprep.subr.bf16.mxu0 %v19009_v8  ;;  %v10701_v31 = vrot.slane %v21496_v18, 3 }
 0x3ad   : > { %v21910_v39 = vadd.f32 %v8055_v59, %v7862_v11  ;;  %v17562_v33 = vpop.f32.mrb[222].mxu1  ;;  %17946 = vmatpush3.bf16.msra.mxu1 %v19008_v53  ;;  %v21919_v53 = vld [vmem:[#allocation3 + $0x78] sm:$0xf]  ;;  %v10704_v11 = vrot.slane %v21509_v30, 4 }
 0x3ae   : > { %v21912_v4 = vadd.f32 %v17562_v33, %v17534_v63  ;;  %v8058_v36 = vpop.f32.mrb[223].mxu1  ;;  %17920 = vmatmul.mubr.bf16.vlgmr.msra.gmra.mrb[44].mxu0 %v10459_v2  ;;  %17987 = vmatprep.subr.bf16.mxu1 %v19010_v23  ;;  %v10482_v63 = vrot.slane %v21170_v62, 1  ;;  %v10708_v50 = vshrl.u32 %v21919_v53, 16  ;;  %v10711_v35 = vshll.u32 %v21919_v53, 16 }
 0x3af   : > { %17923 = vmatprep.mubr.bf16.mxu0 %v10467_v3  ;;  %17960 = vmatpush3.bf16.msra.mxu0 %v19009_v8  ;;  %v10470_v8 = vor.u32 %v10468_v19, %v10466_v27  ;;  %v21929_v59 = vor.u32 %v10704_v11, %v10701_v31  ;;  %v19015_v27 = vld [vmem:[#allocation9 + $0x1d8] sm:$0xff]   ;;  %v11049_v2 = vshrl.u32 %v10855_v52, 16  ;;  %v11052_v33 = vshll.u32 %v10855_v52, 16 }
 0x3b0   : > { %17948 = vmatmul.mubr.bf16.vlgmr.msra.gmra.mrb[44].mxu1 %v21796_v38  ;;  %17961 = vmatprep.subr.bf16.mxu0 %v19011_v6  ;;  %v19014_v38 = vld [vmem:[#allocation9 + $0x210] sm:$0xff]   ;;  %v10483_v62 = vsel %vm1535_vm4, %v10478_v24, %v10482_v63  ;;  %v10710_v31 = vrot.slane %v10708_v50, 3  ;;  %v10713_v11 = vrot.slane %v10711_v35, 4  ;;  %v10879_v24 = vrot.slane %v10855_v52, 4 }
 0x3b1   : > { %v17537_v44 = vpop.f32.mrb[224].mxu0  ;;  %17951 = vmatprep.mubr.bf16.mxu1 %v10688_v13  ;;  %17988 = vmatpush3.bf16.msra.mxu1 %v19010_v23  ;;  %v10475_v3 = vsel %vm1535_vm4, %v10470_v8, %v10474_v9  ;;  %v19016_v13 = vld [vmem:[#allocation9 + $0x218] sm:$0xff]   ;;  %v19017_v9 = vld [vmem:[#allocation9 + $0x1e0] sm:$0xff]   ;;  %v11054_v8 = vrot.slane %v11052_v33, 5 }
 0x3b2   : > { %v7877_v1 = vpop.f32.mrb[225].mxu0  ;;  %17989 = vmatprep.subr.bf16.mxu1 %v19012_v26  ;;  %v10714_v50 = vor.u32 %v10713_v11, %v10710_v31 }
 0x3b3   : > { %v17538_v16 = vpop.f32.mrb[226].mxu0  ;;  %v17565_v49 = vpop.f32.mrb[224].mxu1  ;;  %17962 = vmatpush3.bf16.msra.mxu0 %v19011_v6  ;;  %v10488_v6 = vshll.u32 %v10423_v34, 16  ;;  %v21943_v34 = vld [vmem:[#allocation3 + $0x50] sm:$0xff] }
 0x3b4   : > { %v7879_v61 = vpop.f32.mrb[227].mxu0  ;;  %v21927_v45 = vadd.f32 %v17565_v49, %v17537_v44  ;;  %v8070_v23 = vpop.f32.mrb[225].mxu1  ;;  %17963 = vmatprep.subr.bf16.mxu0 %v19013_v41  ;;  %v10697_v44 = vsel %vm756_vm1, %v10687_v28, %v21186_v57  ;;  %v11051_v16 = vrot.slane %v11049_v2, 4  ;;  %v10486_v49 = vor.u32 %v10482_v63, %v21167_v55 }
 0x3b5   : > { %v17566_v36 = vpop.f32.mrb[226].mxu1  ;;  %17990 = vmatpush3.bf16.msra.mxu1 %v19012_v26  ;;  %v21940_v26 = vsel %vm756_vm1, %v21186_v57, %v21929_v59  ;;  %v10490_v28 = vrot.slane %v10488_v6, 1  ;;  %v19019_v23 = vld [vmem:[#allocation9 + $0x1e8] sm:$0xff]   ;;  %v10715_v33 = vsel %vm756_vm1, %v21929_v59, %v10714_v50  ;;  %v19197_v50 = vld [vmem:[#allocation3 + $0x58] sm:$0xff] }
 0x3b6   : > { %v8072_v19 = vpop.f32.mrb[227].mxu1  ;;  %17924 = vmatmul.mubr.bf16.gmra.mrb[48].mxu0 %v10475_v3  ;;  %17991 = vmatprep.subr.bf16.mxu1 %v19014_v38  ;;  %v11055_v35 = vor.u32 %v11054_v8, %v11051_v16 }
 0x3b7   : > { %v21935_v1 = vadd.f32 %v8072_v19, %v7879_v61  ;;  %17927 = vmatprep.mubr.bf16.mxu0 %v10483_v62  ;;  %17964 = vmatpush3.bf16.msra.mxu0 %v19013_v41  ;;  %v19018_v61 = vld [vmem:[#allocation9 + $0x220] sm:$0xff]   ;;  %v10880_v41 = vrot.slane %v21943_v34, 4  ;;  %v10491_v2 = vsel %vm1535_vm4, %v10486_v49, %v10490_v28  ;;  %v19022_v19 = vld [vmem:[#allocation9 + $0x230] sm:$0xff]   ;;  %v19024_v28 = vld [vmem:[#allocation9 + $0x238] sm:$0xff]   ;;  %v11064_v49 = vrot.slane %v21839_v12, 4 }
 0x3b8   : > { %17952 = vmatmul.mubr.bf16.gmra.mrb[48].mxu1 %v10697_v44  ;;  %17965 = vmatprep.subr.bf16.mxu0 %v19015_v27  ;;  %v11059_v55 = vsel %vm968_vm2, %v11055_v35, %v21783_v14  ;;  %v19023_v14 = vld [vmem:[#allocation9 + $0x1f8] sm:$0xff]   ;;  %v10882_v35 = vrot.slane %v19197_v50, 4 }
 0x3b9   : > { %17955 = vmatprep.mubr.bf16.mxu1 %v21940_v26  ;;  %17992 = vmatpush3.bf16.msra.mxu1 %v19014_v38  ;;  %v10881_v52 = vsel %vm611_vm0, %v10879_v24, %v10880_v41  ;;  %v19020_v38 = vld [vmem:[#allocation9 + $0x228] sm:$0xff]   ;;  %v19025_v24 = vld [vmem:[#allocation9 + $0x40] sm:$0xff]  }
 0x3ba   : > { %17993 = vmatprep.subr.bf16.mxu1 %v19016_v13 }
 0x3bb   : > { %17966 = vmatpush3.bf16.msra.mxu0 %v19015_v27  ;;  %v19021_v27 = vld [vmem:[#allocation9 + $0x1f0] sm:$0xff]  }
 0x3bc   : > { %17967 = vmatprep.subr.bf16.mxu0 %v19017_v9 }
 0x3bd   : > { %17994 = vmatpush3.bf16.msra.mxu1 %v19016_v13 }
 0x3be   : > { %17928 = vmatmul.mubr.bf16.gmra.mrb[52].mxu0 %v10491_v2  ;;  %17995 = vmatprep.subr.bf16.mxu1 %v19018_v61 }
 0x3bf   : > { %17968 = vmatpush3.bf16.msra.mxu0 %v19017_v9  ;;  %17975 = vmatprep.mubr.bf16.mxu0 %v10881_v52 }
 0x3c0   : > { %17956 = vmatmul.mubr.bf16.gmra.mrb[52].mxu1 %v10715_v33  ;;  %17969 = vmatprep.subr.bf16.mxu0 %v19019_v23  ;;  %v19026_v33 = vld [vmem:[#allocation9] sm:$0xff]  }
 0x3c1   : > { %v17585_v63 = vpop.f32.mrb[228].mxu0  ;;  %17996 = vmatpush3.bf16.msra.mxu1 %v19018_v61  ;;  %18003 = vmatprep.mubr.bf16.mxu1 %v11059_v55  ;;  %v10884_v55 = vrot.slane %v21828_v17, 4 }
 0x3c2   : > { %v8226_v36 = vpop.f32.mrb[229].mxu0  ;;  %17997 = vmatprep.subr.bf16.mxu1 %v19020_v38 }
 0x3c3   : > { %v8269_v3 = vadd.f32 %v8226_v36, %v21896_v10  ;;  %v17586_v6 = vpop.f32.mrb[230].mxu0  ;;  %v17613_v62 = vpop.f32.mrb[228].mxu1  ;;  %17970 = vmatpush3.bf16.msra.mxu0 %v19019_v23 }
 0x3c4   : > { %v8271_v13 = vadd.f32 %v17586_v6, %v21899_v48  ;;  %v8229_v44 = vpop.f32.mrb[231].mxu0  ;;  %v8441_v31 = vpop.f32.mrb[229].mxu1  ;;  %17971 = vmatprep.subr.bf16.mxu0 %v19021_v27  ;;  %v19027_v6 = vld [vmem:[#allocation9 + $0x48] sm:$0xff]  }
 0x3c5   : > { %v8270_v11 = vadd.f32 %v8229_v44, %v21901_v25  ;;  %v21958_v9 = vadd.f32 %v8441_v31, %v8269_v3  ;;  %v17614_v16 = vpop.f32.mrb[230].mxu1  ;;  %17998 = vmatpush3.bf16.msra.mxu1 %v19020_v38  ;;  %v11065_v25 = vrot.slane %v21854_v54, 5  ;;  %v11248_v44 = vld [vmem:[#allocation3 + $0x60] sm:$0xf8]  ;;  %v19029_v31 = vld [vmem:[#allocation9 + $0x50] sm:$0xff]  }
 0x3c6   : > { %v21960_v8 = vadd.f32 %v17614_v16, %v8271_v13  ;;  %v8444_v10 = vpop.f32.mrb[231].mxu1  ;;  %17999 = vmatprep.subr.bf16.mxu1 %v19022_v19  ;;  %v19028_v13 = vld [vmem:[#allocation9 + $0x8] sm:$0xff]   ;;  %v11073_v16 = vrot.slane %v21509_v30, 5 }
 0x3c7   : > { %v21962_v61 = vadd.f32 %v8444_v10, %v8270_v11  ;;  %17972 = vmatpush3.bf16.msra.mxu0 %v19021_v27  ;;  %v11066_v3 = vor.u32 %v11065_v25, %v11064_v49  ;;  %v11031_v11 = vld [vmem:[#allocation3 + $0x78] sm:$0x1f]  ;;  %v10886_v10 = vrot.slane %v21884_v22, 4  ;;  %v21987_v49 = vld [vmem:[#allocation3 + $0x70] sm:$0xff] }
 0x3c8   : > { %17973 = vmatprep.subr.bf16.mxu0 %v19023_v14  ;;  %v11080_v30 = vshll.u32 %v11031_v11, 16 }
 0x3c9   : > { %v17589_v48 = vpop.f32.mrb[232].mxu0  ;;  %18000 = vmatpush3.bf16.msra.mxu1 %v19022_v19  ;;  %v11067_v34 = vsel %vm968_vm2, %v21788_v37, %v11066_v3  ;;  %v21990_v37 = vrot.slane %v21987_v49, 4 }
 0x3ca   : > { %v8273_v23 = vadd.f32 %v17589_v48, %v21907_v60  ;;  %v8241_v2 = vpop.f32.mrb[233].mxu0  ;;  %18001 = vmatprep.subr.bf16.mxu1 %v19024_v28  ;;  %v10883_v60 = vsel %vm611_vm0, %v10880_v41, %v10882_v35 }
 0x3cb   : > { %v8272_v52 = vadd.f32 %v8241_v2, %v21910_v39  ;;  %v17590_v38 = vpop.f32.mrb[234].mxu0  ;;  %v17617_v63 = vpop.f32.mrb[232].mxu1  ;;  %17974 = vmatpush3.bf16.msra.mxu0 %v19023_v14  ;;  %v11072_v14 = vrot.slane %v21496_v18, 4 }
 0x3cc   : > { %v8274_v27 = vadd.f32 %v17590_v38, %v21912_v4  ;;  %v8244_v12 = vpop.f32.mrb[235].mxu0  ;;  %v21970_v36 = vadd.f32 %v17617_v63, %v8273_v23  ;;  %v8456_v54 = vpop.f32.mrb[233].mxu1  ;;  %18015 = vmatprep.subr.bf16.mxu0 %v19025_v24  ;;  %v10885_v4 = vsel %vm611_vm0, %v10882_v35, %v10884_v55  ;;  %v11077_v35 = vshrl.u32 %v11031_v11, 16  ;;  %v19031_v38 = vld [vmem:[#allocation9 + $0x58] sm:$0xff]  }
 0x3cd   : > { %v21975_v39 = vadd.f32 %v8456_v54, %v8272_v52  ;;  %v17618_v19 = vpop.f32.mrb[234].mxu1  ;;  %18002 = vmatpush3.bf16.msra.mxu1 %v19024_v28  ;;  %v11440_v23 = vshrl.u32 %v11248_v44, 16  ;;  %v21995_v52 = vor.u32 %v11073_v16, %v11072_v14  ;;  %v10887_v63 = vsel %vm611_vm0, %v10884_v55, %v10886_v10  ;;  %v22007_v55 = vld [vmem:[#allocation3 + $0x60] sm:$0xf0]  ;;  %v19035_v16 = vld [vmem:[#allocation9 + $0x68] sm:$0xff]  }
 0x3ce   : > { %v21977_v17 = vadd.f32 %v17618_v19, %v8274_v27  ;;  %v8459_v62 = vpop.f32.mrb[235].mxu1  ;;  %17976 = vmatmul.mubr.bf16.vlgmr.msra.gmra.mrb[56].mxu0 %v10883_v60  ;;  %18043 = vmatprep.subr.bf16.mxu1 %v19026_v33  ;;  %v22000_v54 = vsel %vm611_vm0, %v10886_v10, %v21990_v37  ;;  %v11079_v19 = vrot.slane %v11077_v35, 4  ;;  %v22024_v35 = vld [vmem:[#allocation3 + $0x78] sm:$0xff] }
 0x3cf   : > { %17979 = vmatprep.mubr.bf16.mxu0 %v10885_v4  ;;  %18016 = vmatpush3.bf16.msra.mxu0 %v19025_v24  ;;  %v19030_v24 = vld [vmem:[#allocation9 + $0x10] sm:$0xff]   ;;  %v11082_v62 = vrot.slane %v11080_v30, 5  ;;  %v22012_v4 = vsel %vm968_vm2, %v21197_v58, %v21995_v52 }
 0x3d0   : > { %18004 = vmatmul.mubr.bf16.vlgmr.msra.gmra.mrb[56].mxu1 %v21807_v15  ;;  %18017 = vmatprep.subr.bf16.mxu0 %v19027_v6 }
 0x3d1   : > { %v17593_v41 = vpop.f32.mrb[236].mxu0  ;;  %18007 = vmatprep.mubr.bf16.mxu1 %v11067_v34  ;;  %18044 = vmatpush3.bf16.msra.mxu1 %v19026_v33  ;;  %v11443_v33 = vshll.u32 %v11248_v44, 16  ;;  %v11442_v44 = vrot.slane %v11440_v23, 3  ;;  %v11083_v11 = vor.u32 %v11082_v62, %v11079_v19 }
 0x3d2   : > { %v8276_v28 = vadd.f32 %v17593_v41, %v21927_v45  ;;  %v8256_v48 = vpop.f32.mrb[237].mxu0  ;;  %18045 = vmatprep.subr.bf16.mxu1 %v19028_v13  ;;  %v19034_v41 = vld [vmem:[#allocation9 + $0x20] sm:$0xff]  }
 0x3d3   : > { %v17594_v15 = vpop.f32.mrb[238].mxu0  ;;  %v17621_v25 = vpop.f32.mrb[236].mxu1  ;;  %18018 = vmatpush3.bf16.msra.mxu0 %v19027_v6  ;;  %v19032_v6 = vld [vmem:[#allocation9 + $0x18] sm:$0xff]   ;;  %v11445_v34 = vrot.slane %v11443_v33, 4  ;;  %v19036_v48 = vld [vmem:[#allocation9 + $0x28] sm:$0xff]  }
 0x3d4   : > { %v8258_v50 = vpop.f32.mrb[239].mxu0  ;;  %v21992_v22 = vadd.f32 %v17621_v25, %v8276_v28  ;;  %v8471_v2 = vpop.f32.mrb[237].mxu1  ;;  %18019 = vmatprep.subr.bf16.mxu0 %v19029_v31  ;;  %v11084_v15 = vsel %vm968_vm2, %v21995_v52, %v11083_v11  ;;  %v19037_v25 = vld [vmem:[#allocation9 + $0x70] sm:$0xff]  }
 0x3d5   : > { %v8275_v45 = vadd.f32 %v8258_v50, %v21935_v1  ;;  %v17622_v27 = vpop.f32.mrb[238].mxu1  ;;  %18046 = vmatpush3.bf16.msra.mxu1 %v19028_v13  ;;  %v11071_v1 = vsel %vm968_vm2, %v11066_v3, %v21197_v58  ;;  %v19033_v13 = vld [vmem:[#allocation9 + $0x60] sm:$0xff]   ;;  %v10890_v3 = vrot.slane %v21919_v53, 4  ;;  %v11446_v14 = vor.u32 %v11445_v34, %v11442_v44 }
 0x3d6   : > { %v8473_v12 = vpop.f32.mrb[239].mxu1  ;;  %17980 = vmatmul.mubr.bf16.gmra.mrb[60].mxu0 %v10887_v63  ;;  %18047 = vmatprep.subr.bf16.mxu1 %v19030_v24  ;;  %v22029_v27 = vshrl.u32 %v22024_v35, 16  ;;  %v19041_v44 = vld [vmem:[#allocation9 + $0x80] sm:$0xff]  }
 0x3d7   : > { %v22004_v60 = vadd.f32 %v8473_v12, %v8275_v45  ;;  %17983 = vmatprep.mubr.bf16.mxu0 %v22000_v54  ;;  %18020 = vmatpush3.bf16.msra.mxu0 %v19029_v31  ;;  %v11295_v31 = vrot.slane %v22007_v55, 4  ;;  %v10891_v28 = vsel %vm611_vm0, %v21990_v37, %v10890_v3  ;;  %v22032_v12 = vshll.u32 %v22024_v35, 16  ;;  %v22041_v34 = vld [vmem:[#allocation3 + $0x80] sm:$0xff] }
 0x3d8   : > { %18008 = vmatmul.mubr.bf16.gmra.mrb[60].mxu1 %v11071_v1  ;;  %18021 = vmatprep.subr.bf16.mxu0 %v19031_v38  ;;  %v11468_v3 = vrot.slane %v22029_v27, 3 }
 0x3d9   : > { %18011 = vmatprep.mubr.bf16.mxu1 %v22012_v4  ;;  %18048 = vmatpush3.bf16.msra.mxu1 %v19030_v24  ;;  %v11297_v53 = vsel %vm611_vm0, %v11295_v31, %v10886_v10  ;;  %v11455_v24 = vsel %vm756_vm1, %v11446_v14, %v21186_v57  ;;  %v19038_v10 = vld [vmem:[#allocation9 + $0x30] sm:$0xff]   ;;  %v19039_v57 = vld [vmem:[#allocation9 + $0x78] sm:$0xff]   ;;  %v19042_v14 = vld [vmem:[#allocation9 + $0xc0] sm:$0xff]  }
 0x3da   : > { %18049 = vmatprep.subr.bf16.mxu1 %v19032_v6 }
 0x3db   : > { %18022 = vmatpush3.bf16.msra.mxu0 %v19031_v38 }
 0x3dc   : > { %18023 = vmatprep.subr.bf16.mxu0 %v19033_v13 }
 0x3dd   : > { %18050 = vmatpush3.bf16.msra.mxu1 %v19032_v6 }
 0x3de   : > { %17984 = vmatmul.mubr.bf16.gmra.mrb[64].mxu0 %v10891_v28  ;;  %18051 = vmatprep.subr.bf16.mxu1 %v19034_v41 }
 0x3df   : > { %18024 = vmatpush3.bf16.msra.mxu0 %v19033_v13  ;;  %18031 = vmatprep.mubr.bf16.mxu0 %v11297_v53 }
 0x3e0   : > { %18012 = vmatmul.mubr.bf16.gmra.mrb[64].mxu1 %v11084_v15  ;;  %18025 = vmatprep.subr.bf16.mxu0 %v19035_v16  ;;  %v22049_v15 = vshrl.u32 %v22041_v34, 16 }
 0x3e1   : > { %18052 = vmatpush3.bf16.msra.mxu1 %v19034_v41  ;;  %18059 = vmatprep.mubr.bf16.mxu1 %v11455_v24  ;;  %v17641_v50 = vpop.f32.mrb[240].mxu0  ;;  %v11471_v41 = vrot.slane %v22032_v12, 4  ;;  %v22052_v24 = vshll.u32 %v22041_v34, 16 }
 0x3e2   : > { %v8591_v30 = vpop.f32.mrb[241].mxu0  ;;  %18053 = vmatprep.subr.bf16.mxu1 %v19036_v48 }
 0x3e3   : > { %v17669_v23 = vpop.f32.mrb[240].mxu1  ;;  %v8634_v2 = vadd.f32 %v8591_v30, %v21958_v9  ;;  %v17642_v45 = vpop.f32.mrb[242].mxu0  ;;  %18026 = vmatpush3.bf16.msra.mxu0 %v19035_v16  ;;  %v11300_v16 = vrot.slane %v22024_v35, 4 }
 0x3e4   : > { %v8806_v38 = vpop.f32.mrb[241].mxu1  ;;  %v8636_v33 = vadd.f32 %v17642_v45, %v21960_v8  ;;  %v8594_v63 = vpop.f32.mrb[243].mxu0  ;;  %18027 = vmatprep.subr.bf16.mxu0 %v19037_v25  ;;  %v19040_v8 = vld [vmem:[#allocation9 + $0x38] sm:$0xff]   ;;  %v19043_v23 = vld [vmem:[#allocation9 + $0x88] sm:$0xff]  }
 0x3e5   : > { %v22034_v6 = vadd.f32 %v8806_v38, %v8634_v2  ;;  %v17670_v1 = vpop.f32.mrb[242].mxu1  ;;  %18054 = vmatpush3.bf16.msra.mxu1 %v19036_v48  ;;  %v8635_v9 = vadd.f32 %v8594_v63, %v21962_v61  ;;  %v19044_v63 = vld [vmem:[#allocation9 + $0xc8] sm:$0xff]  }
 0x3e6   : > { %v22037_v19 = vadd.f32 %v17670_v1, %v8636_v33  ;;  %v8809_v62 = vpop.f32.mrb[243].mxu1  ;;  %18055 = vmatprep.subr.bf16.mxu1 %v19038_v10  ;;  %v11301_v33 = vsel %vm611_vm0, %v21990_v37, %v11300_v16  ;;  %v11489_v37 = vrot.slane %v21572_v40, 4 }
 0x3e7   : > { %v22039_v13 = vadd.f32 %v8809_v62, %v8635_v9  ;;  %18028 = vmatpush3.bf16.msra.mxu0 %v19037_v25  ;;  %v19045_v9 = vld [vmem:[#allocation9 + $0x90] sm:$0xff]  }
 0x3e8   : > { %18029 = vmatprep.subr.bf16.mxu0 %v19039_v57  ;;  %v22069_v62 = vld [vmem:[#allocation3 + $0x90] sm:$0xf] }
 0x3e9   : > { %18056 = vmatpush3.bf16.msra.mxu1 %v19038_v10  ;;  %v17645_v31 = vpop.f32.mrb[244].mxu0  ;;  %v11472_v10 = vor.u32 %v11471_v41, %v11468_v3  ;;  %v19046_v41 = vld [vmem:[#allocation9 + $0xd0] sm:$0xff]  }
 0x3ea   : > { %v8638_v61 = vadd.f32 %v17645_v31, %v21970_v36  ;;  %v8606_v11 = vpop.f32.mrb[245].mxu0  ;;  %18057 = vmatprep.subr.bf16.mxu1 %v19040_v8 }
 0x3eb   : > { %v17673_v28 = vpop.f32.mrb[244].mxu1  ;;  %v8637_v53 = vadd.f32 %v8606_v11, %v21975_v39  ;;  %v17646_v48 = vpop.f32.mrb[246].mxu0  ;;  %18030 = vmatpush3.bf16.msra.mxu0 %v19039_v57  ;;  %v11480_v57 = vrot.slane %v22052_v24, 4  ;;  %v11473_v1 = vsel %vm756_vm1, %v21929_v59, %v11472_v10  ;;  %v22077_v59 = vld [vmem:[#allocation3 + $0x88] sm:$0xff]  ;;  %v11653_v11 = vshll.u32 %v22007_v55, 16 }
 0x3ec   : > { %v22054_v25 = vadd.f32 %v17673_v28, %v8638_v61  ;;  %v8821_v50 = vpop.f32.mrb[245].mxu1  ;;  %v8639_v36 = vadd.f32 %v17646_v48, %v21977_v17  ;;  %v8609_v30 = vpop.f32.mrb[247].mxu0  ;;  %18071 = vmatprep.subr.bf16.mxu0 %v19041_v44  ;;  %v11477_v17 = vrot.slane %v22049_v15, 3  ;;  %v22080_v31 = vrot.slane %v22077_v59, 4 }
 0x3ed   : > { %v22057_v2 = vadd.f32 %v8821_v50, %v8637_v53  ;;  %v17674_v39 = vpop.f32.mrb[246].mxu1  ;;  %18058 = vmatpush3.bf16.msra.mxu1 %v19040_v8  ;;  %v22074_v8 = vrot.slane %v22041_v34, 4  ;;  %v11650_v61 = vshrl.u32 %v22007_v55, 16 }
 0x3ee   : > { %v22059_v45 = vadd.f32 %v17674_v39, %v8639_v36  ;;  %v8824_v38 = vpop.f32.mrb[247].mxu1  ;;  %18032 = vmatmul.mubr.bf16.vlgmr.msra.gmra.mrb[68].mxu0 %v22000_v54  ;;  %18099 = vmatprep.subr.bf16.mxu1 %v19042_v14  ;;  %v11486_v54 = vrot.slane %v21570_v42, 3  ;;  %v22084_v28 = vor.u32 %v11480_v57, %v11477_v17 }
 0x3ef   : > { %18035 = vmatprep.mubr.bf16.mxu0 %v11301_v33  ;;  %18072 = vmatpush3.bf16.msra.mxu0 %v19041_v44  ;;  %v19047_v38 = vld [vmem:[#allocation9 + $0x98] sm:$0xff]   ;;  %v11303_v55 = vsel %vm611_vm0, %v11300_v16, %v22074_v8 }
 0x3f0   : > { %18060 = vmatmul.mubr.bf16.vlgmr.msra.gmra.mrb[68].mxu1 %v21940_v26  ;;  %18073 = vmatprep.subr.bf16.mxu0 %v19043_v23  ;;  %v22090_v39 = vor.u32 %v11489_v37, %v11486_v54  ;;  %v11652_v54 = vrot.slane %v11650_v61, 4  ;;  %v11655_v37 = vrot.slane %v11653_v11, 5  ;;  %v11306_v11 = vrot.slane %v22069_v62, 4 }
 0x3f1   : > { %18063 = vmatprep.mubr.bf16.mxu1 %v11473_v1  ;;  %18100 = vmatpush3.bf16.msra.mxu1 %v19042_v14  ;;  %v17649_v3 = vpop.f32.mrb[248].mxu0  ;;  %v11493_v14 = vshrl.u32 %v22069_v62, 16  ;;  %v22098_v1 = vsel %vm611_vm0, %v22074_v8, %v22080_v31 }
 0x3f2   : > { %v8641_v44 = vadd.f32 %v17649_v3, %v21992_v22  ;;  %v8621_v26 = vpop.f32.mrb[249].mxu0  ;;  %18101 = vmatprep.subr.bf16.mxu1 %v19044_v63  ;;  %v11496_v22 = vshll.u32 %v22069_v62, 16  ;;  %v19048_v3 = vld [vmem:[#allocation9 + $0xd8] sm:$0xff]  }
 0x3f3   : > { %v17677_v53 = vpop.f32.mrb[248].mxu1  ;;  %v17650_v48 = vpop.f32.mrb[250].mxu0  ;;  %18074 = vmatpush3.bf16.msra.mxu0 %v19043_v23  ;;  %v11825_v23 = vld [vmem:[#allocation3 + $0x68] sm:$0x80]  ;;  %v22108_v26 = vsel %vm756_vm1, %v22084_v28, %v22090_v39 }
 0x3f4   : > { %v22088_v50 = vadd.f32 %v17677_v53, %v8641_v44  ;;  %v8836_v36 = vpop.f32.mrb[249].mxu1  ;;  %v8623_v30 = vpop.f32.mrb[251].mxu0  ;;  %18075 = vmatprep.subr.bf16.mxu0 %v19045_v9  ;;  %v11482_v44 = vsel %vm756_vm1, %v11472_v10, %v22084_v28  ;;  %v19049_v53 = vld [vmem:[#allocation9 + $0xa0] sm:$0xff]   ;;  %v11849_v61 = vshrl.u32 %v11825_v23, 16  ;;  %v11656_v48 = vor.u32 %v11655_v37, %v11652_v54  ;;  %v19054_v23 = vld [vmem:[#allocation9 + $0xf0] sm:$0xff]  }
 0x3f5   : > { %v17678_v33 = vpop.f32.mrb[250].mxu1  ;;  %18102 = vmatpush3.bf16.msra.mxu1 %v19044_v63  ;;  %v8640_v17 = vadd.f32 %v8623_v30, %v22004_v60  ;;  %v11495_v60 = vrot.slane %v11493_v14, 3  ;;  %v11498_v63 = vrot.slane %v11496_v22, 4  ;;  %v19050_v10 = vld [vmem:[#allocation9 + $0xe0] sm:$0xff]   ;;  %v19051_v22 = vld [vmem:[#allocation9 + $0xa8] sm:$0xff]   ;;  %v11307_v36 = vsel %vm611_vm0, %v22080_v31, %v11306_v11 }
 0x3f6   : > { %v8838_v57 = vpop.f32.mrb[251].mxu1  ;;  %18036 = vmatmul.mubr.bf16.gmra.mrb[72].mxu0 %v11303_v55  ;;  %18103 = vmatprep.subr.bf16.mxu1 %v19046_v41  ;;  %v11660_v62 = vsel %vm968_vm2, %v11656_v48, %v21197_v58  ;;  %v19052_v30 = vld [vmem:[#allocation9 + $0xe8] sm:$0xff]   ;;  %v19053_v55 = vld [vmem:[#allocation9 + $0xb0] sm:$0xff]   ;;  %v11666_v48 = vrot.slane %v22032_v12, 5 }
 0x3f7   : > { %v22102_v16 = vadd.f32 %v8838_v57, %v8640_v17  ;;  %18039 = vmatprep.mubr.bf16.mxu0 %v22098_v1  ;;  %18076 = vmatpush3.bf16.msra.mxu0 %v19045_v9  ;;  %v11499_v14 = vor.u32 %v11498_v63, %v11495_v60  ;;  %v11851_v9 = vrot.slane %v11849_v61, 7  ;;  %v19055_v60 = vld [vmem:[#allocation9 + $0xb8] sm:$0xff]  }
 0x3f8   : > { %18064 = vmatmul.mubr.bf16.gmra.mrb[72].mxu1 %v11482_v44  ;;  %18077 = vmatprep.subr.bf16.mxu0 %v19047_v38 }
 0x3f9   : > { %18067 = vmatprep.mubr.bf16.mxu1 %v22108_v26  ;;  %18104 = vmatpush3.bf16.msra.mxu1 %v19046_v41  ;;  %v11500_v41 = vsel %vm756_vm1, %v22090_v39, %v11499_v14 }
 0x3fa   : > { %18105 = vmatprep.subr.bf16.mxu1 %v19048_v3 }
 0x3fb   : > { %18078 = vmatpush3.bf16.msra.mxu0 %v19047_v38  ;;  %v11859_v38 = vsel %vm1169_vm3, %v11851_v9, %v21516_v20  ;;  %v19057_v9 = vld [vmem:[#allocation9 + $0x100] sm:$0xff]  }
 0x3fc   : > { %18079 = vmatprep.subr.bf16.mxu0 %v19049_v53 }
 0x3fd   : > { %18106 = vmatpush3.bf16.msra.mxu1 %v19048_v3 }
 0x3fe   : > { %18040 = vmatmul.mubr.bf16.gmra.mrb[76].mxu0 %v11307_v36  ;;  %18107 = vmatprep.subr.bf16.mxu1 %v19050_v10 }
 0x3ff   : > { %18080 = vmatpush3.bf16.msra.mxu0 %v19049_v53  ;;  %18087 = vmatprep.mubr.bf16.mxu0 %v11660_v62 }
 0x400   : > { %18068 = vmatmul.mubr.bf16.gmra.mrb[76].mxu1 %v11500_v41  ;;  %18081 = vmatprep.subr.bf16.mxu0 %v19051_v22 }
 0x401   : > { %18108 = vmatpush3.bf16.msra.mxu1 %v19050_v10  ;;  %18115 = vmatprep.mubr.bf16.mxu1 %v11859_v38  ;;  %v17697_v33 = vpop.f32.mrb[252].mxu0  ;;  %v19056_v10 = vld [vmem:[#allocation9 + $0xf8] sm:$0xff]  }
 0x402   : > { %v9031_v17 = vpop.f32.mrb[253].mxu0  ;;  %18109 = vmatprep.subr.bf16.mxu1 %v19052_v30 }
 0x403   : > { %v17725_v57 = vpop.f32.mrb[252].mxu1  ;;  %v9074_v58 = vadd.f32 %v9031_v17, %v22034_v6  ;;  %v17698_v3 = vpop.f32.mrb[254].mxu0  ;;  %18082 = vmatpush3.bf16.msra.mxu0 %v19051_v22  ;;  %v11665_v6 = vrot.slane %v22029_v27, 4  ;;  %v11871_v22 = vrot.slane %v22049_v15, 7 }
 0x404   : > { %v9208_v54 = vpop.f32.mrb[253].mxu1  ;;  %v9076_v37 = vadd.f32 %v17698_v3, %v22037_v19  ;;  %v9034_v44 = vpop.f32.mrb[255].mxu0  ;;  %18083 = vmatprep.subr.bf16.mxu0 %v19053_v55  ;;  %v11863_v19 = vrot.slane %v22029_v27, 7 }
 0x405   : > { %v22122_v20 = vadd.f32 %v9208_v54, %v9074_v58  ;;  %v17726_v63 = vpop.f32.mrb[254].mxu1  ;;  %18110 = vmatpush3.bf16.msra.mxu1 %v19052_v30  ;;  %v9075_v53 = vadd.f32 %v9034_v44, %v22039_v13  ;;  %v19058_v30 = vld [vmem:[#allocation9 + $0x140] sm:$0xff]   ;;  %v11667_v41 = vor.u32 %v11666_v48, %v11665_v6  ;;  %v19059_v54 = vld [vmem:[#allocation9 + $0x108] sm:$0xff]   ;;  %v11632_v6 = vld [vmem:[#allocation3 + $0x90] sm:$0x1f]  ;;  %v22808_v48 = vrot.slane %v21496_v18, 7 }
 0x406   : > { %v22125_v61 = vadd.f32 %v17726_v63, %v9076_v37  ;;  %v9211_v11 = vpop.f32.mrb[255].mxu1  ;;  %18111 = vmatprep.subr.bf16.mxu1 %v19054_v23  ;;  %v11866_v38 = vor.u32 %v11863_v19, %v22032_v12  ;;  %v11681_v18 = vshll.u32 %v11632_v6, 16 }
 0x407   : > { %v22130_v14 = vadd.f32 %v9211_v11, %v9075_v53  ;;  %18084 = vmatpush3.bf16.msra.mxu0 %v19053_v55  ;;  %v19060_v11 = vld [vmem:[#allocation9 + $0x148] sm:$0xff]  }
 0x408   : > { %18085 = vmatprep.subr.bf16.mxu0 %v19055_v60 }
 0x409   : > { %18112 = vmatpush3.bf16.msra.mxu1 %v19054_v23  ;;  %v17701_v13 = vpop.f32.mrb[0].mxu0 }
 0x40a   : > { %v9078_v36 = vadd.f32 %v17701_v13, %v22054_v25  ;;  %v9046_v62 = vpop.f32.mrb[1].mxu0  ;;  %18113 = vmatprep.subr.bf16.mxu1 %v19056_v10  ;;  %v11874_v25 = vor.u32 %v11871_v22, %v22052_v24  ;;  %v11867_v13 = vsel %vm1169_vm3, %v22808_v48, %v11866_v38 }
 0x40b   : > { %v17729_v33 = vpop.f32.mrb[0].mxu1  ;;  %v9077_v17 = vadd.f32 %v9046_v62, %v22057_v2  ;;  %v17702_v57 = vpop.f32.mrb[2].mxu0  ;;  %18086 = vmatpush3.bf16.msra.mxu0 %v19055_v60  ;;  %v11669_v2 = vrot.slane %v22049_v15, 4  ;;  %v11670_v60 = vrot.slane %v22052_v24, 5  ;;  %v19061_v62 = vld [vmem:[#allocation9 + $0x110] sm:$0xff]  }
 0x40c   : > { %v22136_v55 = vadd.f32 %v17729_v33, %v9078_v36  ;;  %v9223_v58 = vpop.f32.mrb[1].mxu1  ;;  %v9079_v3 = vadd.f32 %v17702_v57, %v22059_v45  ;;  %v9049_v23 = vpop.f32.mrb[3].mxu0  ;;  %18127 = vmatprep.subr.bf16.mxu0 %v19057_v9  ;;  %v11668_v45 = vsel %vm968_vm2, %v21995_v52, %v11667_v41  ;;  %v11875_v36 = vsel %vm1169_vm3, %v11863_v19, %v11874_v25 }
 0x40d   : > { %v22142_v37 = vadd.f32 %v9223_v58, %v9077_v17  ;;  %v17730_v44 = vpop.f32.mrb[2].mxu1  ;;  %18114 = vmatpush3.bf16.msra.mxu1 %v19056_v10  ;;  %v11879_v10 = vrot.slane %v21570_v42, 7  ;;  %v22157_v33 = vor.u32 %v11670_v60, %v11669_v2  ;;  %v11678_v17 = vshrl.u32 %v11632_v6, 16  ;;  %v12188_v23 = vld [vmem:[#allocation3 + $0x70] sm:$0xff]  ;;  %v19063_v60 = vld [vmem:[#allocation9 + $0x118] sm:$0xff]  }
 0x40e   : > { %v22146_v63 = vadd.f32 %v17730_v44, %v9079_v3  ;;  %v9226_v53 = vpop.f32.mrb[3].mxu1  ;;  %18088 = vmatmul.mubr.bf16.vlgmr.msra.gmra.mrb[80].mxu0 %v22012_v4  ;;  %18155 = vmatprep.subr.bf16.mxu1 %v19058_v30  ;;  %v11887_v4 = vrot.slane %v21576_v29, 7 }
 0x40f   : > { %18091 = vmatprep.mubr.bf16.mxu0 %v11668_v45  ;;  %18128 = vmatpush3.bf16.msra.mxu0 %v19057_v9  ;;  %v19062_v9 = vld [vmem:[#allocation9 + $0x150] sm:$0xff]   ;;  %v11882_v19 = vor.u32 %v11879_v10, %v21572_v40  ;;  %v11680_v6 = vrot.slane %v11678_v17, 4  ;;  %v19065_v17 = vld [vmem:[#allocation9 + $0x120] sm:$0xff]  }
 0x410   : > { %18116 = vmatmul.mubr.bf16.vlgmr.msra.gmra.mrb[80].mxu1 %v11867_v13  ;;  %18129 = vmatprep.subr.bf16.mxu0 %v19059_v54  ;;  %v22170_v13 = vsel %vm968_vm2, %v22157_v33, %v21607_v5 }
 0x411   : > { %18119 = vmatprep.mubr.bf16.mxu1 %v11875_v36  ;;  %18156 = vmatpush3.bf16.msra.mxu1 %v19058_v30  ;;  %v17705_v52 = vpop.f32.mrb[4].mxu0  ;;  %v11890_v30 = vor.u32 %v21584_v51, %v11887_v4  ;;  %v19064_v36 = vld [vmem:[#allocation9 + $0x158] sm:$0xff]  }
 0x412   : > { %v9081_v38 = vadd.f32 %v17705_v52, %v22088_v50  ;;  %v9061_v57 = vpop.f32.mrb[5].mxu0  ;;  %18157 = vmatprep.subr.bf16.mxu1 %v19060_v11  ;;  %v11672_v50 = vsel %vm968_vm2, %v11667_v41, %v22157_v33  ;;  %v12214_v52 = vshll.u32 %v12188_v23, 16  ;;  %v11883_v41 = vsel %vm1169_vm3, %v11871_v22, %v11882_v19  ;;  %v19067_v19 = vld [vmem:[#allocation9 + $0x128] sm:$0xff]  }
 0x413   : > { %v17733_v58 = vpop.f32.mrb[4].mxu1  ;;  %v17706_v3 = vpop.f32.mrb[6].mxu0  ;;  %18130 = vmatpush3.bf16.msra.mxu0 %v19059_v54  ;;  %v11683_v54 = vrot.slane %v11681_v18, 5  ;;  %v19066_v57 = vld [vmem:[#allocation9 + $0x160] sm:$0xff]   ;;  %v12212_v22 = vshrl.u32 %v12188_v23, 16 }
 0x414   : > { %v22161_v25 = vadd.f32 %v17733_v58, %v9081_v38  ;;  %v9238_v44 = vpop.f32.mrb[5].mxu1  ;;  %v9063_v2 = vpop.f32.mrb[7].mxu0  ;;  %18131 = vmatprep.subr.bf16.mxu0 %v19061_v62  ;;  %v12216_v58 = vrot.slane %v12214_v52, 1  ;;  %v19071_v52 = vld [vmem:[#allocation9 + $0x138] sm:$0xff]  }
 0x415   : > { %v17734_v53 = vpop.f32.mrb[6].mxu1  ;;  %18158 = vmatpush3.bf16.msra.mxu1 %v19060_v11  ;;  %v9080_v45 = vadd.f32 %v9063_v2, %v22102_v16  ;;  %v11895_v16 = vrot.slane %v21586_v32, 7  ;;  %v11891_v11 = vsel %vm1169_vm3, %v11879_v10, %v11890_v30  ;;  %v11684_v18 = vor.u32 %v11683_v54, %v11680_v6  ;;  %v9459_v6 = vld [vmem:[%s19588_s12 + $0x10] sm:$0xff] }
 0x416   : > { %v9240_v48 = vpop.f32.mrb[7].mxu1  ;;  %18092 = vmatmul.mubr.bf16.gmra.mrb[84].mxu0 %v11672_v50  ;;  %18159 = vmatprep.subr.bf16.mxu1 %v19062_v9  ;;  %v12217_v10 = vor.u32 %v12216_v58, %v12212_v22  ;;  %v19070_v50 = vld [vmem:[#allocation9 + $0x170] sm:$0xff]  }
 0x417   : > { %v22172_v38 = vadd.f32 %v9240_v48, %v9080_v45  ;;  %18095 = vmatprep.mubr.bf16.mxu0 %v22170_v13  ;;  %18132 = vmatpush3.bf16.msra.mxu0 %v19061_v62  ;;  %v11898_v3 = vor.u32 %v21594_v0, %v11895_v16  ;;  %v12221_v62 = vrot.slane %v22032_v12, 1  ;;  %v11685_v44 = vsel %vm968_vm2, %v21607_v5, %v11684_v18  ;;  %v19069_v12 = vld [vmem:[#allocation9 + $0x130] sm:$0xff]   ;;  %v19072_v18 = vld [vmem:[#allocation9 + $0x178] sm:$0xff]  }
 0x418   : > { %18120 = vmatmul.mubr.bf16.gmra.mrb[84].mxu1 %v11883_v41  ;;  %18133 = vmatprep.subr.bf16.mxu0 %v19063_v60 }
 0x419   : > { %18123 = vmatprep.mubr.bf16.mxu1 %v11891_v11  ;;  %18160 = vmatpush3.bf16.msra.mxu1 %v19062_v9  ;;  %v19068_v9 = vld [vmem:[#allocation9 + $0x168] sm:$0xff]   ;;  %v11899_v2 = vsel %vm1169_vm3, %v11887_v4, %v11898_v3  ;;  %v12222_v23 = vsel %vm1535_vm4, %v12217_v10, %v12221_v62  ;;  %v9465_v3 = vld [vmem:[%s19588_s12 + $0x20] sm:$0xff] }
 0x41a   : > { %18161 = vmatprep.subr.bf16.mxu1 %v19064_v36  ;;  %v19074_v10 = vld [vmem:[#allocation9 + $0x1c0] sm:$0xff]  }
 0x41b   : > { %18134 = vmatpush3.bf16.msra.mxu0 %v19063_v60  ;;  %v9453_v60 = vld [vmem:[%s19588_s12] sm:$0xff] }
 0x41c   : > { %18135 = vmatprep.subr.bf16.mxu0 %v19065_v17 }
 0x41d   : > { %18162 = vmatpush3.bf16.msra.mxu1 %v19064_v36  ;;  %v9454_v36 = vld [vmem:[%s19588_s12 + $0x8] sm:$0xff] }
 0x41e   : > { %18096 = vmatmul.mubr.bf16.gmra.mrb[88].mxu0 %v11685_v44  ;;  %18163 = vmatprep.subr.bf16.mxu1 %v19066_v57  ;;  %v9460_v44 = vld [vmem:[%s19588_s12 + $0x18] sm:$0xff] }
 0x41f   : > { %18136 = vmatpush3.bf16.msra.mxu0 %v19065_v17  ;;  %18143 = vmatprep.mubr.bf16.mxu0 %v21987_v49 }
 0x420   : > { %18124 = vmatmul.mubr.bf16.gmra.mrb[88].mxu1 %v11899_v2  ;;  %18137 = vmatprep.subr.bf16.mxu0 %v19067_v19 }
 0x421   : > { %18164 = vmatpush3.bf16.msra.mxu1 %v19066_v57  ;;  %18171 = vmatprep.mubr.bf16.mxu1 %v12222_v23  ;;  %v17753_v5 = vpop.f32.mrb[8].mxu0  ;;  %v12229_v57 = vrot.slane %v22052_v24, 1 }
 0x422   : > { %v9402_v30 = vpop.f32.mrb[9].mxu0  ;;  %18165 = vmatprep.subr.bf16.mxu1 %v19068_v9 }
 0x423   : > { %v17781_v53 = vpop.f32.mrb[8].mxu1  ;;  %v9445_v4 = vadd.f32 %v9402_v30, %v22122_v20  ;;  %v17754_v45 = vpop.f32.mrb[10].mxu0  ;;  %18138 = vmatpush3.bf16.msra.mxu0 %v19067_v19 }
 0x424   : > { %v22190_v49 = vpop.f32.mrb[9].mxu1  ;;  %v9447_v54 = vadd.f32 %v17754_v45, %v22125_v61  ;;  %v9405_v48 = vpop.f32.mrb[11].mxu0  ;;  %18139 = vmatprep.subr.bf16.mxu0 %v19069_v12  ;;  %v19075_v53 = vld [vmem:[#allocation9 + $0x188] sm:$0xff]   ;;  %v12237_v45 = vrot.slane %v21572_v40, 1 }
 0x425   : > { %v9455_v41 = vadd.f32 %v9453_v60, %v9445_v4  ;;  %v22194_v16 = vpop.f32.mrb[10].mxu1  ;;  %18166 = vmatpush3.bf16.msra.mxu1 %v19068_v9  ;;  %v9446_v11 = vadd.f32 %v9405_v48, %v22130_v14  ;;  %v19073_v14 = vld [vmem:[#allocation9 + $0x180] sm:$0xff]   ;;  %v12225_v9 = vor.u32 %v12221_v62, %v22029_v27  ;;  %v12245_v48 = vrot.slane %v21584_v51, 1 }
 0x426   : > { %v9461_v20 = vadd.f32 %v9459_v6, %v9447_v54  ;;  %v22197_v17 = vpop.f32.mrb[11].mxu1  ;;  %18167 = vmatprep.subr.bf16.mxu1 %v19070_v50 }
 0x427   : > { %9457 = vst [vmem:[%s22201_s27] sm:$0xff] %v9455_v41  ;;  %v9456_v61 = vadd.f32 %v9454_v36, %v9446_v11  ;;  %18140 = vmatpush3.bf16.msra.mxu0 %v19069_v12  ;;  %v9466_v12 = vld [vmem:[%s19588_s12 + $0x28] sm:$0xff]  ;;  %v12230_v6 = vsel %vm1535_vm4, %v12225_v9, %v12229_v57  ;;  %v9472_v36 = vld [vmem:[%s19588_s12 + $0x38] sm:$0xff] }
 0x428   : > { %9463 = vst [vmem:[%s22201_s27 + $0x10] sm:$0xff] %v9461_v20  ;;  %18141 = vmatprep.subr.bf16.mxu0 %v19071_v52 }
 0x429   : > { %9458 = vst [vmem:[%s22201_s27 + $0x8] sm:$0xff] %v9456_v61  ;;  %18168 = vmatpush3.bf16.msra.mxu1 %v19070_v50  ;;  %v17757_v58 = vpop.f32.mrb[12].mxu0  ;;  %v12233_v50 = vor.u32 %v12229_v57, %v22049_v15  ;;  %v12402_v15 = vld [vmem:[#allocation3 + $0x78] sm:$0xf8] }
 0x42a   : > { %v9449_v22 = vadd.f32 %v17757_v58, %v22136_v55  ;;  %v9417_v19 = vpop.f32.mrb[13].mxu0  ;;  %18169 = vmatprep.subr.bf16.mxu1 %v19072_v18  ;;  %v12426_v11 = vshrl.u32 %v12402_v15, 16  ;;  %v12429_v20 = vshll.u32 %v12402_v15, 16 }
 0x42b   : > { %v22211_v2 = vpop.f32.mrb[12].mxu1  ;;  %v9448_v24 = vadd.f32 %v9417_v19, %v22142_v37  ;;  %v17758_v23 = vpop.f32.mrb[14].mxu0  ;;  %18142 = vmatpush3.bf16.msra.mxu0 %v19071_v52  ;;  %v12238_v54 = vsel %vm1535_vm4, %v12233_v50, %v12237_v45  ;;  %v19079_v19 = vld [vmem:[#allocation9 + $0x198] sm:$0xff]  }
 0x42c   : > { %v9467_v5 = vadd.f32 %v9465_v3, %v9449_v22  ;;  %v22215_v30 = vpop.f32.mrb[13].mxu1  ;;  %v9450_v60 = vadd.f32 %v17758_v23, %v22146_v63  ;;  %v9420_v55 = vpop.f32.mrb[15].mxu0  ;;  %18183 = vmatprep.subr.bf16.mxu0 %v19073_v14  ;;  %v19076_v63 = vld [vmem:[#allocation9 + $0x1c8] sm:$0xff]   ;;  %v9471_v3 = vld [vmem:[%s19588_s12 + $0x30] sm:$0xff]  ;;  %v12249_v22 = vor.u32 %v12245_v48, %v21576_v29  ;;  %v12253_v23 = vrot.slane %v21594_v0, 1 }
 0x42d   : > { %v9462_v27 = vadd.f32 %v9460_v44, %v9448_v24  ;;  %v22219_v62 = vpop.f32.mrb[14].mxu1  ;;  %18170 = vmatpush3.bf16.msra.mxu1 %v19072_v18  ;;  %v12194_v44 = vld [vmem:[#allocation3 + $0xa0] sm:$0x1] }
 0x42e   : > { %9469 = vst [vmem:[%s22201_s27 + $0x20] sm:$0xff] %v9467_v5  ;;  %v9468_v37 = vadd.f32 %v9466_v12, %v9450_v60  ;;  %v9643_v4 = vpop.f32.mrb[15].mxu1  ;;  %18144 = vmatmul.mubr.bf16.vlgmr.msra.gmra.mrb[92].mxu0 %v22024_v35  ;;  %18211 = vmatprep.subr.bf16.mxu1 %v19074_v10  ;;  %v19077_v35 = vld [vmem:[#allocation9 + $0x190] sm:$0xff]   ;;  %v19080_v12 = vld [vmem:[#allocation9 + $0x1d8] sm:$0xff]   ;;  %v12428_v5 = vrot.slane %v12426_v11, 3  ;;  %v12431_v60 = vrot.slane %v12429_v20, 4  ;;  %v12257_v15 = vor.u32 %v12253_v23, %v21586_v32 }
 0x42f   : > { %9464 = vst [vmem:[%s22201_s27 + $0x18] sm:$0xff] %v9462_v27  ;;  %18147 = vmatprep.mubr.bf16.mxu0 %v22041_v34  ;;  %18184 = vmatpush3.bf16.msra.mxu0 %v19073_v14  ;;  %v19078_v34 = vld [vmem:[#allocation9 + $0x1d0] sm:$0xff]   ;;  %v22249_v27 = vld [vmem:[#allocation3 + $0x78] sm:$0xf0] }
 0x430   : > { %9470 = vst [vmem:[%s22201_s27 + $0x28] sm:$0xff] %v9468_v37  ;;  %18172 = vmatmul.mubr.bf16.vlgmr.msra.gmra.mrb[92].mxu1 %v12230_v6  ;;  %18185 = vmatprep.subr.bf16.mxu0 %v19075_v53  ;;  %v19082_v37 = vld [vmem:[#allocation9 + $0x1e0] sm:$0xff]   ;;  %v12432_v4 = vor.u32 %v12431_v60, %v12428_v5  ;;  %v19083_v6 = vld [vmem:[#allocation9 + $0x1a8] sm:$0xff]   ;;  %v19086_v11 = vld [vmem:[#allocation9 + $0x1f0] sm:$0xff]  }
 0x431   : > { %18175 = vmatprep.mubr.bf16.mxu1 %v12238_v54  ;;  %18212 = vmatpush3.bf16.msra.mxu1 %v19074_v10  ;;  %v17761_v40 = vpop.f32.mrb[16].mxu0  ;;  %v22253_v54 = vld [vmem:[#allocation3 + $0x98] sm:$0xff] }
 0x432   : > { %v9452_v52 = vadd.f32 %v17761_v40, %v22161_v25  ;;  %v9432_v41 = vpop.f32.mrb[17].mxu0  ;;  %18213 = vmatprep.subr.bf16.mxu1 %v19076_v63  ;;  %v12241_v25 = vor.u32 %v12237_v45, %v21570_v42  ;;  %v22244_v42 = vld [vmem:[#allocation3 + $0x90] sm:$0xff] }
 0x433   : > { %v22232_v18 = vpop.f32.mrb[16].mxu1  ;;  %v17762_v61 = vpop.f32.mrb[18].mxu0  ;;  %18186 = vmatpush3.bf16.msra.mxu0 %v19075_v53  ;;  %v12254_v53 = vsel %vm1535_vm4, %v12249_v22, %v12253_v23 }
 0x434   : > { %v9474_v57 = vadd.f32 %v9472_v36, %v9452_v52  ;;  %v9655_v14 = vpop.f32.mrb[17].mxu1  ;;  %v9434_v58 = vpop.f32.mrb[19].mxu0  ;;  %18187 = vmatprep.subr.bf16.mxu0 %v19077_v35  ;;  %v12246_v50 = vsel %vm1535_vm4, %v12241_v25, %v12245_v48  ;;  %v12441_v48 = vsel %vm756_vm1, %v12432_v4, %v22084_v28  ;;  %v19085_v52 = vld [vmem:[#allocation9 + $0x1b0] sm:$0xff]   ;;  %v12655_v4 = vrot.slane %v22244_v42, 4 }
 0x435   : > { %v17790_v10 = vpop.f32.mrb[18].mxu1  ;;  %18214 = vmatpush3.bf16.msra.mxu1 %v19076_v63  ;;  %v9451_v9 = vadd.f32 %v9434_v58, %v22172_v38  ;;  %v12259_v38 = vshll.u32 %v12194_v44, 16  ;;  %v12650_v63 = vrot.slane %v22249_v27, 4 }
 0x436   : > { %9476 = vst [vmem:[%s22201_s27 + $0x38] sm:$0xff] %v9474_v57  ;;  %v22239_v24 = vpop.f32.mrb[19].mxu1  ;;  %18148 = vmatmul.mubr.bf16.gmra.mrb[96].mxu0 %v22077_v59  ;;  %18215 = vmatprep.subr.bf16.mxu1 %v19078_v34  ;;  %v19081_v59 = vld [vmem:[#allocation9 + $0x1a0] sm:$0xff]   ;;  %v19088_v10 = vld [vmem:[#allocation9 + $0x1f8] sm:$0xff]  }
 0x437   : > { %v9473_v55 = vadd.f32 %v9471_v3, %v9451_v9  ;;  %18151 = vmatprep.mubr.bf16.mxu0 %v22244_v42  ;;  %18188 = vmatpush3.bf16.msra.mxu0 %v19077_v35  ;;  %v12261_v45 = vrot.slane %v12259_v38, 1  ;;  %v19084_v35 = vld [vmem:[#allocation9 + $0x1e8] sm:$0xff]   ;;  %v12652_v36 = vsel %vm611_vm0, %v12650_v63, %v22074_v8  ;;  %v19087_v3 = vld [vmem:[#allocation9 + $0x1b8] sm:$0xff]   ;;  %v12457_v9 = vrot.slane %v21584_v51, 4 }
 0x438   : > { %18176 = vmatmul.mubr.bf16.gmra.mrb[96].mxu1 %v12246_v50  ;;  %18189 = vmatprep.subr.bf16.mxu0 %v19079_v19  ;;  %v22287_v42 = vld [vmem:[#allocation3 + $0xa8] sm:$0xf] }
 0x439   : > { %9475 = vst [vmem:[%s22201_s27 + $0x30] sm:$0xff] %v9473_v55  ;;  %18179 = vmatprep.mubr.bf16.mxu1 %v12254_v53  ;;  %18216 = vmatpush3.bf16.msra.mxu1 %v19078_v34  ;;  %v12262_v40 = vsel %vm1535_vm4, %v12257_v15, %v12261_v45  ;;  %v19091_v45 = vld [vmem:[#allocation9 + $0x208] sm:$0xff]  }
 0x43a   : > { %18217 = vmatprep.subr.bf16.mxu1 %v19080_v12 }
 0x43b   : > { %18190 = vmatpush3.bf16.msra.mxu0 %v19079_v19 }
 0x43c   : > { %18191 = vmatprep.subr.bf16.mxu0 %v19081_v59 }
 0x43d   : > { %18218 = vmatpush3.bf16.msra.mxu1 %v19080_v12 }
 0x43e   : > { %18152 = vmatmul.mubr.bf16.gmra.mrb[100].mxu0 %v22253_v54  ;;  %18219 = vmatprep.subr.bf16.mxu1 %v19082_v37 }
 0x43f   : > { %18192 = vmatpush3.bf16.msra.mxu0 %v19081_v59  ;;  %18199 = vmatprep.mubr.bf16.mxu0 %v12441_v48 }
 0x440   : > { %18180 = vmatmul.mubr.bf16.gmra.mrb[100].mxu1 %v12262_v40  ;;  %18193 = vmatprep.subr.bf16.mxu0 %v19083_v6  ;;  %v12472_v40 = vrot.slane %v21877_v46, 3 }
 0x441   : > { %18220 = vmatpush3.bf16.msra.mxu1 %v19082_v37  ;;  %18227 = vmatprep.mubr.bf16.mxu1 %v12652_v36  ;;  %v17809_v41 = vpop.f32.mrb[20].mxu0  ;;  %v12475_v36 = vrot.slane %v21889_v43, 4 }
 0x442   : > { %v9818_v34 = vpop.f32.mrb[21].mxu0  ;;  %18221 = vmatprep.subr.bf16.mxu1 %v19084_v35  ;;  %v12482_v41 = vshll.u32 %v22287_v42, 16 }
 0x443   : > { %v17837_v20 = vpop.f32.mrb[20].mxu1  ;;  %v9819_v28 = vadd.f32 %v9818_v34, %v22190_v49  ;;  %v17810_v61 = vpop.f32.mrb[22].mxu0  ;;  %18194 = vmatpush3.bf16.msra.mxu0 %v19083_v6  ;;  %v12454_v49 = vrot.slane %v21576_v29, 3  ;;  %v12463_v6 = vrot.slane %v21586_v32, 3  ;;  %v12656_v32 = vsel %vm611_vm0, %v22080_v31, %v12655_v4 }
 0x444   : > { %v10003_v57 = vpop.f32.mrb[21].mxu1  ;;  %v9829_v14 = vadd.f32 %v17810_v61, %v22194_v16  ;;  %v9821_v58 = vpop.f32.mrb[23].mxu0  ;;  %18195 = vmatprep.subr.bf16.mxu0 %v19085_v52  ;;  %v19089_v16 = vld [vmem:[#allocation9 + $0x200] sm:$0xff]   ;;  %v19094_v20 = vld [vmem:[#allocation9 + $0x50] sm:$0xff]   ;;  %v12823_v31 = vshll.u32 %v22249_v27, 16  ;;  %v12657_v61 = vrot.slane %v22253_v54, 4 }
 0x445   : > { %v22263_v8 = vadd.f32 %v10003_v57, %v9819_v28  ;;  %v17838_v22 = vpop.f32.mrb[22].mxu1  ;;  %18222 = vmatpush3.bf16.msra.mxu1 %v19084_v35  ;;  %v9822_v19 = vadd.f32 %v9821_v58, %v22197_v17  ;;  %v19090_v17 = vld [vmem:[#allocation9 + $0x40] sm:$0xff]   ;;  %v12458_v55 = vor.u32 %v12457_v9, %v12454_v49  ;;  %v19092_v35 = vld [vmem:[#allocation9 + $0x48] sm:$0xff]   ;;  %v22297_v28 = vor.u32 %v12475_v36, %v12472_v40  ;;  %v19101_v40 = vld [vmem:[#allocation9 + $0x230] sm:$0xff]  }
 0x446   : > { %v22266_v44 = vadd.f32 %v17838_v22, %v9829_v14  ;;  %v10006_v25 = vpop.f32.mrb[23].mxu1  ;;  %18223 = vmatprep.subr.bf16.mxu1 %v19086_v11 }
 0x447   : > { %v22270_v23 = vadd.f32 %v10006_v25, %v9822_v19  ;;  %18196 = vmatpush3.bf16.msra.mxu0 %v19085_v52  ;;  %v12479_v52 = vshrl.u32 %v22287_v42, 16  ;;  %v19095_v25 = vld [vmem:[#allocation9 + $0x218] sm:$0xff]  }
 0x448   : > { %18197 = vmatprep.subr.bf16.mxu0 %v19087_v3 }
 0x449   : > { %18224 = vmatpush3.bf16.msra.mxu1 %v19086_v11  ;;  %v17813_v12 = vpop.f32.mrb[24].mxu0  ;;  %v12481_v9 = vrot.slane %v12479_v52, 3 }
 0x44a   : > { %v9841_v5 = vadd.f32 %v17813_v12, %v22211_v2  ;;  %v9833_v60 = vpop.f32.mrb[25].mxu0  ;;  %18225 = vmatprep.subr.bf16.mxu1 %v19088_v10 }
 0x44b   : > { %v17841_v50 = vpop.f32.mrb[24].mxu1  ;;  %v9834_v38 = vadd.f32 %v9833_v60, %v22215_v30  ;;  %v17814_v53 = vpop.f32.mrb[26].mxu0  ;;  %18198 = vmatpush3.bf16.msra.mxu0 %v19087_v3  ;;  %v12466_v30 = vrot.slane %v21594_v0, 4  ;;  %v19093_v0 = vld [vmem:[#allocation9 + $0x210] sm:$0xff]   ;;  %v19096_v60 = vld [vmem:[#allocation9 + $0x58] sm:$0xff]  }
 0x44c   : > { %v22274_v29 = vadd.f32 %v17841_v50, %v9841_v5  ;;  %v10018_v51 = vpop.f32.mrb[25].mxu1  ;;  %v9844_v59 = vadd.f32 %v17814_v53, %v22219_v62  ;;  %v9836_v37 = vpop.f32.mrb[27].mxu0  ;;  %18239 = vmatprep.subr.bf16.mxu0 %v19089_v16  ;;  %v12459_v62 = vsel %vm756_vm1, %v22090_v39, %v12458_v55  ;;  %v12825_v50 = vrot.slane %v12823_v31, 5 }
 0x44d   : > { %v22278_v2 = vadd.f32 %v10018_v51, %v9834_v38  ;;  %v17842_v63 = vpop.f32.mrb[26].mxu1  ;;  %18226 = vmatpush3.bf16.msra.mxu1 %v19088_v10  ;;  %v12658_v38 = vsel %vm611_vm0, %v12655_v4, %v12657_v61  ;;  %v19098_v37 = vld [vmem:[#allocation9 + $0x60] sm:$0xff]  }
 0x44e   : > { %v22282_v15 = vadd.f32 %v17842_v63, %v9844_v59  ;;  %v10021_v48 = vpop.f32.mrb[27].mxu1  ;;  %18200 = vmatmul.mubr.bf16.vlgmr.msra.gmra.mrb[104].mxu0 %v22108_v26  ;;  %18267 = vmatprep.subr.bf16.mxu1 %v19090_v17  ;;  %v12467_v26 = vor.u32 %v12466_v30, %v12463_v6  ;;  %v22321_v59 = vld [vmem:[#allocation3 + $0x90] sm:$0xf0]  ;;  %v19099_v6 = vld [vmem:[#allocation9 + $0x228] sm:$0xff]  }
 0x44f   : > { %18203 = vmatprep.mubr.bf16.mxu0 %v12459_v62  ;;  %18240 = vmatpush3.bf16.msra.mxu0 %v19089_v16  ;;  %v12484_v16 = vrot.slane %v12482_v41, 4  ;;  %v13066_v63 = vrot.slane %v22321_v59, 4  ;;  %v19100_v62 = vld [vmem:[#allocation9 + $0x68] sm:$0xff]  }
 0x450   : > { %18228 = vmatmul.mubr.bf16.vlgmr.msra.gmra.mrb[104].mxu1 %v22098_v1  ;;  %18241 = vmatprep.subr.bf16.mxu0 %v19091_v45  ;;  %v12820_v1 = vshrl.u32 %v22249_v27, 16  ;;  %v12468_v10 = vsel %vm756_vm1, %v12458_v55, %v12467_v26  ;;  %v12477_v5 = vsel %vm756_vm1, %v12467_v26, %v22297_v28  ;;  %v19097_v55 = vld [vmem:[#allocation9 + $0x220] sm:$0xff]  }
 0x451   : > { %18231 = vmatprep.mubr.bf16.mxu1 %v12656_v32  ;;  %18268 = vmatpush3.bf16.msra.mxu1 %v19090_v17  ;;  %v17817_v39 = vpop.f32.mrb[28].mxu0  ;;  %v12485_v51 = vor.u32 %v12484_v16, %v12481_v9 }
 0x452   : > { %v9856_v34 = vadd.f32 %v17817_v39, %v22232_v18  ;;  %v9848_v11 = vpop.f32.mrb[29].mxu0  ;;  %18269 = vmatprep.subr.bf16.mxu1 %v19092_v35  ;;  %v22304_v18 = vld [vmem:[#allocation3 + $0xa0] sm:$0xff]  ;;  %v12822_v17 = vrot.slane %v12820_v1, 4 }
 0x453   : > { %v17845_v57 = vpop.f32.mrb[28].mxu1  ;;  %v17818_v14 = vpop.f32.mrb[30].mxu0  ;;  %18242 = vmatpush3.bf16.msra.mxu0 %v19091_v45  ;;  %v22307_v19 = vrot.slane %v22304_v18, 4  ;;  %v12661_v45 = vrot.slane %v22287_v42, 4  ;;  %v12486_v30 = vsel %vm756_vm1, %v22297_v28, %v12485_v51  ;;  %v13068_v42 = vsel %vm611_vm0, %v13066_v63, %v12657_v61  ;;  %v19103_v11 = vld [vmem:[#allocation9 + $0x238] sm:$0xff]   ;;  %v22358_v63 = vld [vmem:[#allocation3 + $0xb0] sm:$0xff] }
 0x454   : > { %v22302_v58 = vadd.f32 %v17845_v57, %v9856_v34  ;;  %v10033_v3 = vpop.f32.mrb[29].mxu1  ;;  %v9850_v22 = vpop.f32.mrb[31].mxu0  ;;  %18243 = vmatprep.subr.bf16.mxu0 %v19093_v0  ;;  %v12826_v4 = vor.u32 %v12825_v50, %v12822_v17  ;;  %v19104_v14 = vld [vmem:[#allocation9 + $0x78] sm:$0xff]   ;;  %v19107_v50 = vld [vmem:[#allocation9 + $0x8] sm:$0xff]  }
 0x455   : > { %v17846_v49 = vpop.f32.mrb[30].mxu1  ;;  %18270 = vmatpush3.bf16.msra.mxu1 %v19092_v35  ;;  %v9851_v27 = vadd.f32 %v9850_v22, %v22239_v24  ;;  %v22318_v24 = vsel %vm611_vm0, %v12657_v61, %v22307_v19  ;;  %v12662_v35 = vsel %vm611_vm0, %v22307_v19, %v12661_v45  ;;  %v19105_v3 = vld [vmem:[#allocation9] sm:$0xff]   ;;  %v22341_v22 = vld [vmem:[#allocation3 + $0xa8] sm:$0xff]  ;;  %v12844_v45 = vrot.slane %v21889_v43, 5  ;;  %v22364_v43 = vld [vmem:[#allocation3 + $0xb8] sm:$0xff] }
 0x456   : > { %v10035_v12 = vpop.f32.mrb[31].mxu1  ;;  %18204 = vmatmul.mubr.bf16.gmra.mrb[108].mxu0 %v12468_v10  ;;  %18271 = vmatprep.subr.bf16.mxu1 %v19094_v20  ;;  %v12830_v48 = vsel %vm968_vm2, %v12826_v4, %v22157_v33  ;;  %v19106_v49 = vld [vmem:[#allocation9 + $0x80] sm:$0xff]   ;;  %v13071_v17 = vrot.slane %v22341_v22, 4  ;;  %v12802_v4 = vld [vmem:[#allocation3 + $0xa8] sm:$0x1f] }
 0x457   : > { %v22314_v53 = vadd.f32 %v10035_v12, %v9851_v27  ;;  %18207 = vmatprep.mubr.bf16.mxu0 %v12477_v5  ;;  %18244 = vmatpush3.bf16.msra.mxu0 %v19093_v0  ;;  %v19102_v0 = vld [vmem:[#allocation9 + $0x70] sm:$0xff]  }
 0x458   : > { %18232 = vmatmul.mubr.bf16.gmra.mrb[108].mxu1 %v12658_v38  ;;  %18245 = vmatprep.subr.bf16.mxu0 %v19095_v25 }
 0x459   : > { %18235 = vmatprep.mubr.bf16.mxu1 %v22318_v24  ;;  %18272 = vmatpush3.bf16.msra.mxu1 %v19094_v20 }
 0x45a   : > { %18273 = vmatprep.subr.bf16.mxu1 %v19096_v60 }
 0x45b   : > { %18246 = vmatpush3.bf16.msra.mxu0 %v19095_v25 }
 0x45c   : > { %18247 = vmatprep.subr.bf16.mxu0 %v19097_v55 }
 0x45d   : > { %18274 = vmatpush3.bf16.msra.mxu1 %v19096_v60 }
 0x45e   : > { %18208 = vmatmul.mubr.bf16.gmra.mrb[112].mxu0 %v12486_v30  ;;  %18275 = vmatprep.subr.bf16.mxu1 %v19098_v37 }
 0x45f   : > { %18248 = vmatpush3.bf16.msra.mxu0 %v19097_v55  ;;  %18255 = vmatprep.mubr.bf16.mxu0 %v12830_v48  ;;  %v13019_v55 = vld [vmem:[#allocation3 + $0x90] sm:$0xf8]  ;;  %v12848_v48 = vshrl.u32 %v12802_v4, 16 }
 0x460   : > { %18236 = vmatmul.mubr.bf16.gmra.mrb[112].mxu1 %v12662_v35  ;;  %18249 = vmatprep.subr.bf16.mxu0 %v19099_v6  ;;  %v13214_v35 = vshll.u32 %v13019_v55, 16 }
 0x461   : > { %18276 = vmatpush3.bf16.msra.mxu1 %v19098_v37  ;;  %18283 = vmatprep.mubr.bf16.mxu1 %v13068_v42  ;;  %v17865_v36 = vpop.f32.mrb[32].mxu0  ;;  %v19108_v37 = vld [vmem:[#allocation9 + $0x88] sm:$0xff]  }
 0x462   : > { %v10217_v32 = vpop.f32.mrb[33].mxu0  ;;  %18277 = vmatprep.subr.bf16.mxu1 %v19100_v62 }
 0x463   : > { %v17893_v26 = vpop.f32.mrb[32].mxu1  ;;  %v10260_v33 = vadd.f32 %v10217_v32, %v22263_v8  ;;  %v17866_v39 = vpop.f32.mrb[34].mxu0  ;;  %18250 = vmatpush3.bf16.msra.mxu0 %v19099_v6  ;;  %v13072_v6 = vsel %vm611_vm0, %v22307_v19, %v13071_v17  ;;  %v13219_v19 = vshrl.u32 %v22253_v54, 16  ;;  %v13222_v32 = vshll.u32 %v22253_v54, 16 }
 0x464   : > { %v10366_v52 = vpop.f32.mrb[33].mxu1  ;;  %v10262_v41 = vadd.f32 %v17866_v39, %v22266_v44  ;;  %v10220_v34 = vpop.f32.mrb[35].mxu0  ;;  %18251 = vmatprep.subr.bf16.mxu0 %v19101_v40  ;;  %v13421_v39 = vshrl.u32 %v22321_v59, 16 }
 0x465   : > { %v22334_v20 = vadd.f32 %v10366_v52, %v10260_v33  ;;  %v17894_v1 = vpop.f32.mrb[34].mxu1  ;;  %18278 = vmatpush3.bf16.msra.mxu1 %v19100_v62  ;;  %v10261_v31 = vadd.f32 %v10220_v34, %v22270_v23  ;;  %v12851_v62 = vshll.u32 %v12802_v4, 16  ;;  %v13075_v34 = vrot.slane %v22364_v43, 4 }
 0x466   : > { %v22337_v61 = vadd.f32 %v17894_v1, %v10262_v41  ;;  %v10369_v57 = vpop.f32.mrb[35].mxu1  ;;  %18279 = vmatprep.subr.bf16.mxu1 %v19102_v0  ;;  %v13424_v1 = vshll.u32 %v22321_v59, 16 }
 0x467   : > { %v22339_v8 = vadd.f32 %v10369_v57, %v10261_v31  ;;  %18252 = vmatpush3.bf16.msra.mxu0 %v19101_v40  ;;  %v19110_v40 = vld [vmem:[#allocation9 + $0x90] sm:$0xff]   ;;  %v12850_v57 = vrot.slane %v12848_v48, 4 }
 0x468   : > { %18253 = vmatprep.subr.bf16.mxu0 %v19103_v11 }
 0x469   : > { %18280 = vmatpush3.bf16.msra.mxu1 %v19102_v0  ;;  %v17869_v44 = vpop.f32.mrb[36].mxu0  ;;  %v13073_v0 = vrot.slane %v22358_v63, 4 }
 0x46a   : > { %v10264_v25 = vadd.f32 %v17869_v44, %v22274_v29  ;;  %v10232_v10 = vpop.f32.mrb[37].mxu0  ;;  %18281 = vmatprep.subr.bf16.mxu1 %v19104_v14 }
 0x46b   : > { %v17897_v23 = vpop.f32.mrb[36].mxu1  ;;  %v10263_v27 = vadd.f32 %v10232_v10, %v22278_v2  ;;  %v17870_v9 = vpop.f32.mrb[38].mxu0  ;;  %18254 = vmatpush3.bf16.msra.mxu0 %v19103_v11  ;;  %v19111_v11 = vld [vmem:[#allocation9 + $0x18] sm:$0xff]   ;;  %v13074_v59 = vsel %vm611_vm0, %v13071_v17, %v13073_v0  ;;  %v19114_v17 = vld [vmem:[#allocation9 + $0xa0] sm:$0xff]  }
 0x46c   : > { %v22345_v16 = vadd.f32 %v17897_v23, %v10264_v25  ;;  %v10381_v12 = vpop.f32.mrb[37].mxu1  ;;  %v10265_v5 = vadd.f32 %v17870_v9, %v22282_v15  ;;  %v10235_v60 = vpop.f32.mrb[39].mxu0  ;;  %18295 = vmatprep.subr.bf16.mxu0 %v19105_v3  ;;  %v12843_v15 = vrot.slane %v21877_v46, 4  ;;  %v22809_v25 = vld [vmem:[#allocation14_spill] sm:$0xff]  ;;  %v13216_v23 = vrot.slane %v13214_v35, 4 }
 0x46d   : > { %v22349_v38 = vadd.f32 %v10381_v12, %v10263_v27  ;;  %v17898_v29 = vpop.f32.mrb[38].mxu1  ;;  %18282 = vmatpush3.bf16.msra.mxu1 %v19104_v14  ;;  %v12853_v14 = vrot.slane %v12851_v62, 5  ;;  %v13221_v27 = vrot.slane %v13219_v19, 3  ;;  %v13224_v9 = vrot.slane %v13222_v32, 4  ;;  %v19113_v60 = vld [vmem:[#allocation9 + $0x20] sm:$0xff]   ;;  %v19116_v62 = vld [vmem:[#allocation9 + $0xa8] sm:$0xff]  }
 0x46e   : > { %v22351_v51 = vadd.f32 %v17898_v29, %v10265_v5  ;;  %v10384_v2 = vpop.f32.mrb[39].mxu1  ;;  %18256 = vmatmul.mubr.bf16.vlgmr.msra.gmra.mrb[116].mxu0 %v22170_v13  ;;  %18323 = vmatprep.subr.bf16.mxu1 %v19106_v49  ;;  %v19109_v13 = vld [vmem:[#allocation9 + $0x10] sm:$0xff]   ;;  %v22367_v36 = vor.u32 %v12844_v45, %v12843_v15  ;;  %v13423_v12 = vrot.slane %v13421_v39, 4  ;;  %v13076_v5 = vsel %vm611_vm0, %v13073_v0, %v13075_v34 }
 0x46f   : > { %18259 = vmatprep.mubr.bf16.mxu0 %v21623_v7  ;;  %18296 = vmatpush3.bf16.msra.mxu0 %v19105_v3  ;;  %v13211_v7 = vshrl.u32 %v13019_v55, 16  ;;  %v13428_v29 = vrot.slane %v13219_v19, 4  ;;  %v13429_v55 = vrot.slane %v13222_v32, 5  ;;  %v12854_v2 = vor.u32 %v12853_v14, %v12850_v57  ;;  %v19118_v19 = vld [vmem:[#allocation9 + $0xb0] sm:$0xff]  }
 0x470   : > { %18284 = vmatmul.mubr.bf16.vlgmr.msra.gmra.mrb[116].mxu1 %v22318_v24  ;;  %18297 = vmatprep.subr.bf16.mxu0 %v19107_v50  ;;  %v12846_v10 = vsel %vm968_vm2, %v22809_v25, %v22367_v36  ;;  %v22390_v4 = vor.u32 %v13224_v9, %v13221_v27  ;;  %v22403_v32 = vshrl.u32 %v22341_v22, 16  ;;  %v22406_v0 = vshll.u32 %v22341_v22, 16 }
 0x471   : > { %18287 = vmatprep.mubr.bf16.mxu1 %v13072_v6  ;;  %18324 = vmatpush3.bf16.msra.mxu1 %v19106_v49  ;;  %v17873_v30 = vpop.f32.mrb[40].mxu0  ;;  %v13213_v3 = vrot.slane %v13211_v7, 3  ;;  %v19112_v49 = vld [vmem:[#allocation9 + $0x98] sm:$0xff]   ;;  %v22393_v6 = vor.u32 %v13429_v55, %v13428_v29  ;;  %v22425_v27 = vshll.u32 %v22358_v63, 16 }
 0x472   : > { %v10267_v24 = vadd.f32 %v17873_v30, %v22302_v58  ;;  %v10247_v42 = vpop.f32.mrb[41].mxu0  ;;  %18325 = vmatprep.subr.bf16.mxu1 %v19108_v37  ;;  %v12855_v30 = vsel %vm968_vm2, %v22367_v36, %v12854_v2 }
 0x473   : > { %v17901_v26 = vpop.f32.mrb[40].mxu1  ;;  %v17874_v33 = vpop.f32.mrb[42].mxu0  ;;  %18298 = vmatpush3.bf16.msra.mxu0 %v19107_v50  ;;  %v13426_v50 = vrot.slane %v13424_v1, 5 }
 0x474   : > { %v22373_v52 = vadd.f32 %v17901_v26, %v10267_v24  ;;  %v10396_v41 = vpop.f32.mrb[41].mxu1  ;;  %v10249_v58 = vpop.f32.mrb[43].mxu0  ;;  %18299 = vmatprep.subr.bf16.mxu0 %v19109_v13  ;;  %v19117_v24 = vld [vmem:[#allocation9 + $0x30] sm:$0xff]  }
 0x475   : > { %v17902_v31 = vpop.f32.mrb[42].mxu1  ;;  %18326 = vmatpush3.bf16.msra.mxu1 %v19108_v37  ;;  %v10266_v54 = vadd.f32 %v10249_v58, %v22314_v53  ;;  %v13217_v37 = vor.u32 %v13216_v23, %v13213_v3  ;;  %v13427_v45 = vor.u32 %v13426_v50, %v13423_v12  ;;  %v19120_v3 = vld [vmem:[#allocation9 + $0xb8] sm:$0xff]   ;;  %v22422_v23 = vshrl.u32 %v22358_v63, 16  ;;  %v19122_v12 = vld [vmem:[#allocation9 + $0x100] sm:$0xff]  }
 0x476   : > { %v10398_v44 = vpop.f32.mrb[43].mxu1  ;;  %18260 = vmatmul.mubr.bf16.gmra.mrb[120].mxu0 %v21629_v56  ;;  %18327 = vmatprep.subr.bf16.mxu1 %v19110_v40  ;;  %v22387_v56 = vld [vmem:[#allocation3 + $0xc0] sm:$0xf]  ;;  %v22434_v50 = vshll.u32 %v22364_v43, 16 }
 0x477   : > { %v22385_v53 = vadd.f32 %v10398_v44, %v10266_v54  ;;  %18263 = vmatprep.mubr.bf16.mxu0 %v12846_v10  ;;  %18300 = vmatpush3.bf16.msra.mxu0 %v19109_v13  ;;  %v13077_v15 = vrot.slane %v22387_v56, 4  ;;  %v19115_v13 = vld [vmem:[#allocation9 + $0x28] sm:$0xff]   ;;  %v13226_v48 = vsel %vm756_vm1, %v13217_v37, %v22390_v4  ;;  %v13431_v35 = vsel %vm968_vm2, %v13427_v45, %v22393_v6 }
 0x478   : > { %18288 = vmatmul.mubr.bf16.gmra.mrb[120].mxu1 %v13074_v59  ;;  %18301 = vmatprep.subr.bf16.mxu0 %v19111_v11  ;;  %v13242_v44 = vrot.slane %v22406_v0, 4  ;;  %v13436_v10 = vrot.slane %v22403_v32, 4 }
 0x479   : > { %18291 = vmatprep.mubr.bf16.mxu1 %v13076_v5  ;;  %18328 = vmatpush3.bf16.msra.mxu1 %v19110_v40  ;;  %v13078_v7 = vsel %vm611_vm0, %v13075_v34, %v13077_v15 }
 0x47a   : > { %18329 = vmatprep.subr.bf16.mxu1 %v19112_v49 }
 0x47b   : > { %18302 = vmatpush3.bf16.msra.mxu0 %v19111_v11  ;;  %v19119_v11 = vld [vmem:[#allocation9 + $0x38] sm:$0xff]  }
 0x47c   : > { %18303 = vmatprep.subr.bf16.mxu0 %v19113_v60 }
 0x47d   : > { %18330 = vmatpush3.bf16.msra.mxu1 %v19112_v49  ;;  %v13437_v49 = vrot.slane %v22406_v0, 5 }
 0x47e   : > { %18264 = vmatmul.mubr.bf16.gmra.mrb[124].mxu0 %v12855_v30  ;;  %18331 = vmatprep.subr.bf16.mxu1 %v19114_v17  ;;  %v13235_v30 = vsel %vm756_vm1, %v22390_v4, %v22297_v28 }
 0x47f   : > { %18304 = vmatpush3.bf16.msra.mxu0 %v19113_v60  ;;  %18311 = vmatprep.mubr.bf16.mxu0 %v13226_v48  ;;  %v22431_v60 = vshrl.u32 %v22364_v43, 16  ;;  %v22440_v45 = vor.u32 %v13437_v49, %v13436_v10 }
 0x480   : > { %18292 = vmatmul.mubr.bf16.gmra.mrb[124].mxu1 %v13078_v7  ;;  %18305 = vmatprep.subr.bf16.mxu0 %v19115_v13  ;;  %v13251_v7 = vrot.slane %v22425_v27, 4 }
 0x481   : > { %18332 = vmatpush3.bf16.msra.mxu1 %v19114_v17  ;;  %18339 = vmatprep.mubr.bf16.mxu1 %v13431_v35  ;;  %v17921_v42 = vpop.f32.mrb[44].mxu0  ;;  %v13257_v4 = vrot.slane %v22431_v60, 3 }
 0x482   : > { %v10580_v40 = vpop.f32.mrb[45].mxu0  ;;  %18333 = vmatprep.subr.bf16.mxu1 %v19116_v62  ;;  %v19124_v42 = vld [vmem:[#allocation9 + $0x108] sm:$0xff]  }
 0x483   : > { %v17949_v26 = vpop.f32.mrb[44].mxu1  ;;  %v10623_v33 = vadd.f32 %v10580_v40, %v22334_v20  ;;  %v17922_v39 = vpop.f32.mrb[46].mxu0  ;;  %18306 = vmatpush3.bf16.msra.mxu0 %v19115_v13  ;;  %v13239_v20 = vrot.slane %v22403_v32, 3  ;;  %v19123_v13 = vld [vmem:[#allocation9 + $0xc8] sm:$0xff]   ;;  %v13260_v40 = vrot.slane %v22434_v50, 4 }
 0x484   : > { %v10804_v41 = vpop.f32.mrb[45].mxu1  ;;  %v10625_v58 = vadd.f32 %v17922_v39, %v22337_v61  ;;  %v10583_v34 = vpop.f32.mrb[47].mxu0  ;;  %18307 = vmatprep.subr.bf16.mxu0 %v19117_v24  ;;  %v19121_v61 = vld [vmem:[#allocation9 + $0xc0] sm:$0xff]   ;;  %v13440_v26 = vrot.slane %v22422_v23, 4  ;;  %v19125_v39 = vld [vmem:[#allocation9 + $0xd0] sm:$0xff]  }
 0x485   : > { %v22410_v1 = vadd.f32 %v10804_v41, %v10623_v33  ;;  %v17950_v31 = vpop.f32.mrb[46].mxu1  ;;  %18334 = vmatpush3.bf16.msra.mxu1 %v19116_v62  ;;  %v10624_v54 = vadd.f32 %v10583_v34, %v22339_v8  ;;  %v22428_v5 = vor.u32 %v13242_v44, %v13239_v20  ;;  %v13441_v33 = vrot.slane %v22425_v27, 5  ;;  %v13403_v41 = vld [vmem:[#allocation3 + $0xc0] sm:$0x1f] }
 0x486   : > { %v22413_v57 = vadd.f32 %v17950_v31, %v10625_v58  ;;  %v10807_v14 = vpop.f32.mrb[47].mxu1  ;;  %18335 = vmatprep.subr.bf16.mxu1 %v19118_v19  ;;  %v13444_v58 = vrot.slane %v22431_v60, 4  ;;  %v13445_v34 = vrot.slane %v22434_v50, 5  ;;  %v13264_v31 = vshrl.u32 %v22387_v56, 16 }
 0x487   : > { %v22417_v25 = vadd.f32 %v10807_v14, %v10624_v54  ;;  %18308 = vmatpush3.bf16.msra.mxu0 %v19117_v24  ;;  %v13244_v24 = vsel %vm756_vm1, %v22297_v28, %v22428_v5  ;;  %v13439_v28 = vsel %vm968_vm2, %v22367_v36, %v22440_v45  ;;  %v13267_v54 = vshll.u32 %v22387_v56, 16 }
 0x488   : > { %18309 = vmatprep.subr.bf16.mxu0 %v19119_v11  ;;  %v22471_v20 = vor.u32 %v13260_v40, %v13257_v4  ;;  %v22473_v44 = vor.u32 %v13441_v33, %v13440_v26  ;;  %v13449_v49 = vshrl.u32 %v13403_v41, 16  ;;  %v22477_v56 = vor.u32 %v13445_v34, %v13444_v58  ;;  %v19131_v26 = vld [vmem:[#allocation9 + $0xe8] sm:$0xff]   ;;  %v19133_v58 = vld [vmem:[#allocation9 + $0xf0] sm:$0xff]  }
 0x489   : > { %18336 = vmatpush3.bf16.msra.mxu1 %v19118_v19  ;;  %v17925_v8 = vpop.f32.mrb[48].mxu0  ;;  %v13435_v19 = vsel %vm968_vm2, %v22393_v6, %v22367_v36  ;;  %v19126_v36 = vld [vmem:[#allocation9 + $0x110] sm:$0xff]  }
 0x48a   : > { %v10627_v9 = vadd.f32 %v17925_v8, %v22345_v16  ;;  %v10595_v59 = vpop.f32.mrb[49].mxu0  ;;  %18337 = vmatprep.subr.bf16.mxu1 %v19120_v3  ;;  %v13452_v8 = vshll.u32 %v13403_v41, 16 }
 0x48b   : > { %v17953_v29 = vpop.f32.mrb[48].mxu1  ;;  %v10626_v55 = vadd.f32 %v10595_v59, %v22349_v38  ;;  %v17926_v2 = vpop.f32.mrb[50].mxu0  ;;  %18310 = vmatpush3.bf16.msra.mxu0 %v19119_v11  ;;  %v13248_v38 = vrot.slane %v22422_v23, 3 }
 0x48c   : > { %v22437_v17 = vadd.f32 %v17953_v29, %v10627_v9  ;;  %v10819_v37 = vpop.f32.mrb[49].mxu1  ;;  %v10628_v16 = vadd.f32 %v17926_v2, %v22351_v51  ;;  %v10598_v15 = vpop.f32.mrb[51].mxu0  ;;  %18351 = vmatprep.subr.bf16.mxu0 %v19121_v61  ;;  %v13596_v9 = vld [vmem:[#allocation3 + $0x98] sm:$0x80] }
 0x48d   : > { %v22445_v48 = vadd.f32 %v10819_v37, %v10626_v55  ;;  %v17954_v62 = vpop.f32.mrb[50].mxu1  ;;  %18338 = vmatpush3.bf16.msra.mxu1 %v19120_v3  ;;  %v22466_v11 = vor.u32 %v13251_v7, %v13248_v38  ;;  %v13269_v15 = vrot.slane %v13267_v54, 4  ;;  %v13620_v38 = vshrl.u32 %v13596_v9, 16 }
 0x48e   : > { %v22449_v35 = vadd.f32 %v17954_v62, %v10628_v16  ;;  %v10822_v51 = vpop.f32.mrb[51].mxu1  ;;  %18312 = vmatmul.mubr.bf16.vlgmr.msra.gmra.mrb[128].mxu0 %v13235_v30  ;;  %18379 = vmatprep.subr.bf16.mxu1 %v19122_v12  ;;  %v13266_v16 = vrot.slane %v13264_v31, 3  ;;  %v19128_v62 = vld [vmem:[#allocation9 + $0x118] sm:$0xff]   ;;  %v19134_v31 = vld [vmem:[#allocation9 + $0x130] sm:$0xff]  }
 0x48f   : > { %18315 = vmatprep.mubr.bf16.mxu0 %v13244_v24  ;;  %18352 = vmatpush3.bf16.msra.mxu0 %v19121_v61  ;;  %v13253_v55 = vsel %vm756_vm1, %v22428_v5, %v22466_v11  ;;  %v22486_v30 = vsel %vm756_vm1, %v22466_v11, %v22471_v20  ;;  %v13443_v5 = vsel %vm968_vm2, %v22440_v45, %v22473_v44  ;;  %v13454_v51 = vrot.slane %v13452_v8, 5  ;;  %v19130_v45 = vld [vmem:[#allocation9 + $0x120] sm:$0xff]  }
 0x490   : > { %18340 = vmatmul.mubr.bf16.vlgmr.msra.gmra.mrb[128].mxu1 %v13435_v19  ;;  %18353 = vmatprep.subr.bf16.mxu0 %v19123_v13  ;;  %v22497_v24 = vsel %vm968_vm2, %v22473_v44, %v22477_v56  ;;  %v13270_v4 = vor.u32 %v13269_v15, %v13266_v16  ;;  %v13622_v40 = vrot.slane %v13620_v38, 7  ;;  %v22515_v15 = vld [vmem:[#allocation3 + $0xc0] sm:$0xff] }
 0x491   : > { %18343 = vmatprep.mubr.bf16.mxu1 %v13439_v28  ;;  %18380 = vmatpush3.bf16.msra.mxu1 %v19122_v12  ;;  %v17929_v6 = vpop.f32.mrb[52].mxu0 }
 0x492   : > { %v10630_v14 = vadd.f32 %v17929_v6, %v22373_v52  ;;  %v10610_v3 = vpop.f32.mrb[53].mxu0  ;;  %18381 = vmatprep.subr.bf16.mxu1 %v19124_v42  ;;  %v19127_v52 = vld [vmem:[#allocation9 + $0xd8] sm:$0xff]   ;;  %v13271_v33 = vsel %vm756_vm1, %v22471_v20, %v13270_v4  ;;  %v13630_v28 = vsel %vm1169_vm3, %v13622_v40, %v21894_v47 }
 0x493   : > { %v17957_v61 = vpop.f32.mrb[52].mxu1  ;;  %v17930_v10 = vpop.f32.mrb[54].mxu0  ;;  %18354 = vmatpush3.bf16.msra.mxu0 %v19123_v13 }
 0x494   : > { %v22475_v59 = vadd.f32 %v17957_v61, %v10630_v14  ;;  %v10834_v12 = vpop.f32.mrb[53].mxu1  ;;  %v10612_v29 = vpop.f32.mrb[55].mxu0  ;;  %18355 = vmatprep.subr.bf16.mxu0 %v19125_v39 }
 0x495   : > { %v17958_v2 = vpop.f32.mrb[54].mxu1  ;;  %18382 = vmatpush3.bf16.msra.mxu1 %v19124_v42  ;;  %v10629_v37 = vadd.f32 %v10612_v29, %v22385_v53  ;;  %v13451_v53 = vrot.slane %v13449_v49, 4  ;;  %v19129_v42 = vld [vmem:[#allocation9 + $0xe0] sm:$0xff]   ;;  %v19135_v49 = vld [vmem:[#allocation9 + $0xf8] sm:$0xff]   ;;  %v11230_v12 = vld [vmem:[%s19588_s12 + $0x50] sm:$0xff] }
 0x496   : > { %v10836_v13 = vpop.f32.mrb[55].mxu1  ;;  %18316 = vmatmul.mubr.bf16.gmra.mrb[132].mxu0 %v13253_v55  ;;  %18383 = vmatprep.subr.bf16.mxu1 %v19126_v36  ;;  %v11225_v55 = vld [vmem:[%s19588_s12 + $0x48] sm:$0xff]  ;;  %v19136_v2 = vld [vmem:[#allocation9 + $0x138] sm:$0xff]  }
 0x497   : > { %v22491_v7 = vadd.f32 %v10836_v13, %v10629_v37  ;;  %18319 = vmatprep.mubr.bf16.mxu0 %v22486_v30  ;;  %18356 = vmatpush3.bf16.msra.mxu0 %v19125_v39  ;;  %v13455_v19 = vor.u32 %v13454_v51, %v13451_v53  ;;  %v19132_v39 = vld [vmem:[#allocation9 + $0x128] sm:$0xff]  }
 0x498   : > { %18344 = vmatmul.mubr.bf16.gmra.mrb[132].mxu1 %v13443_v5  ;;  %18357 = vmatprep.subr.bf16.mxu0 %v19127_v52 }
 0x499   : > { %18347 = vmatprep.mubr.bf16.mxu1 %v22497_v24  ;;  %18384 = vmatpush3.bf16.msra.mxu1 %v19126_v36  ;;  %v13456_v41 = vsel %vm968_vm2, %v22477_v56, %v13455_v19  ;;  %v11224_v36 = vld [vmem:[%s19588_s12 + $0x40] sm:$0xff] }
 0x49a   : > { %18385 = vmatprep.subr.bf16.mxu1 %v19128_v62  ;;  %v11236_v19 = vld [vmem:[%s19588_s12 + $0x60] sm:$0xff] }
 0x49b   : > { %18358 = vmatpush3.bf16.msra.mxu0 %v19127_v52 }
 0x49c   : > { %18359 = vmatprep.subr.bf16.mxu0 %v19129_v42 }
 0x49d   : > { %18386 = vmatpush3.bf16.msra.mxu1 %v19128_v62  ;;  %v19137_v62 = vld [vmem:[#allocation9 + $0x140] sm:$0xff]  }
 0x49e   : > { %18320 = vmatmul.mubr.bf16.gmra.mrb[136].mxu0 %v13271_v33  ;;  %18387 = vmatprep.subr.bf16.mxu1 %v19130_v45 }
 0x49f   : > { %18360 = vmatpush3.bf16.msra.mxu0 %v19129_v42  ;;  %18367 = vmatprep.mubr.bf16.mxu0 %v13630_v28  ;;  %v19138_v42 = vld [vmem:[#allocation9 + $0x180] sm:$0xff]  }
 0x4a0   : > { %18348 = vmatmul.mubr.bf16.gmra.mrb[136].mxu1 %v13456_v41  ;;  %18361 = vmatprep.subr.bf16.mxu0 %v19131_v26 }
 0x4a1   : > { %18388 = vmatpush3.bf16.msra.mxu1 %v19130_v45  ;;  %18395 = vmatprep.mubr.bf16.mxu1 %v22304_v18  ;;  %v17977_v34 = vpop.f32.mrb[56].mxu0  ;;  %v13634_v18 = vrot.slane %v22403_v32, 7  ;;  %v22525_v45 = vshrl.u32 %v22515_v15, 16 }
 0x4a2   : > { %v10980_v6 = vpop.f32.mrb[57].mxu0  ;;  %18389 = vmatprep.subr.bf16.mxu1 %v19132_v39  ;;  %v19139_v34 = vld [vmem:[#allocation9 + $0x148] sm:$0xff]  }
 0x4a3   : > { %v18005_v54 = vpop.f32.mrb[56].mxu1  ;;  %v11023_v47 = vadd.f32 %v10980_v6, %v22410_v1  ;;  %v17978_v14 = vpop.f32.mrb[58].mxu0  ;;  %18362 = vmatpush3.bf16.msra.mxu0 %v19131_v26  ;;  %v13658_v46 = vrot.slane %v22525_v45, 7 }
 0x4a4   : > { %v11173_v3 = vpop.f32.mrb[57].mxu1  ;;  %v11025_v61 = vadd.f32 %v17978_v14, %v22413_v57  ;;  %v10983_v10 = vpop.f32.mrb[59].mxu0  ;;  %18363 = vmatprep.subr.bf16.mxu0 %v19133_v58  ;;  %v13642_v57 = vrot.slane %v22422_v23, 7 }
 0x4a5   : > { %v11216_v8 = vadd.f32 %v11173_v3, %v11023_v47  ;;  %v18006_v9 = vpop.f32.mrb[58].mxu1  ;;  %18390 = vmatpush3.bf16.msra.mxu1 %v19132_v39  ;;  %v11024_v29 = vadd.f32 %v10983_v10, %v22417_v25  ;;  %v13637_v25 = vor.u32 %v13634_v18, %v22406_v0  ;;  %v11231_v39 = vld [vmem:[%s19588_s12 + $0x58] sm:$0xff]  ;;  %v11237_v47 = vld [vmem:[%s19588_s12 + $0x68] sm:$0xff] }
 0x4a6   : > { %v11218_v1 = vadd.f32 %v18006_v9, %v11025_v61  ;;  %v11176_v52 = vpop.f32.mrb[59].mxu1  ;;  %18391 = vmatprep.subr.bf16.mxu1 %v19134_v31  ;;  %v13645_v4 = vor.u32 %v13642_v57, %v22425_v27  ;;  %v19140_v61 = vld [vmem:[#allocation9 + $0x188] sm:$0xff]  }
 0x4a7   : > { %v11226_v37 = vadd.f32 %v11224_v36, %v11216_v8  ;;  %v11217_v16 = vadd.f32 %v11176_v52, %v11024_v29  ;;  %18364 = vmatpush3.bf16.msra.mxu0 %v19133_v58  ;;  %v13638_v6 = vsel %vm1169_vm3, %v13626_v21, %v13637_v25  ;;  %v22539_v10 = vld [vmem:[#allocation3 + $0xc8] sm:$0xff]  ;;  %v22544_v8 = vshll.u32 %v22515_v15, 16  ;;  %v13959_v29 = vld [vmem:[#allocation3 + $0xa0] sm:$0xff]  ;;  %v19143_v25 = vld [vmem:[#allocation9 + $0x158] sm:$0xff]  }
 0x4a8   : > { %v11232_v13 = vadd.f32 %v11230_v12, %v11218_v1  ;;  %18365 = vmatprep.subr.bf16.mxu0 %v19135_v49  ;;  %v22550_v12 = vshrl.u32 %v22539_v10, 16  ;;  %v14173_v1 = vld [vmem:[#allocation3 + $0xa8] sm:$0xf8] }
 0x4a9   : > { %11228 = vst [vmem:[%s22201_s27 + $0x40] sm:$0xff] %v11226_v37  ;;  %v11227_v38 = vadd.f32 %v11225_v55, %v11217_v16  ;;  %18392 = vmatpush3.bf16.msra.mxu1 %v19134_v31  ;;  %v17981_v5 = vpop.f32.mrb[60].mxu0  ;;  %v19142_v55 = vld [vmem:[#allocation9 + $0x190] sm:$0xff]   ;;  %v11243_v37 = vld [vmem:[%s19588_s12 + $0x78] sm:$0xff] }
 0x4aa   : > { %11234 = vst [vmem:[%s22201_s27 + $0x50] sm:$0xff] %v11232_v13  ;;  %v11027_v53 = vadd.f32 %v17981_v5, %v22437_v17  ;;  %v10995_v51 = vpop.f32.mrb[61].mxu0  ;;  %18393 = vmatprep.subr.bf16.mxu1 %v19136_v2  ;;  %v14197_v5 = vshrl.u32 %v14173_v1, 16 }
 0x4ab   : > { %11229 = vst [vmem:[%s22201_s27 + $0x48] sm:$0xff] %v11227_v38  ;;  %v18009_v40 = vpop.f32.mrb[60].mxu1  ;;  %v11026_v26 = vadd.f32 %v10995_v51, %v22445_v48  ;;  %v17982_v33 = vpop.f32.mrb[62].mxu0  ;;  %18366 = vmatpush3.bf16.msra.mxu0 %v19135_v49  ;;  %v13650_v48 = vrot.slane %v22431_v60, 7  ;;  %v19141_v60 = vld [vmem:[#allocation9 + $0x150] sm:$0xff]   ;;  %v13985_v38 = vshll.u32 %v13959_v29, 16 }
 0x4ac   : > { %v11220_v28 = vadd.f32 %v18009_v40, %v11027_v53  ;;  %v11188_v17 = vpop.f32.mrb[61].mxu1  ;;  %v11028_v41 = vadd.f32 %v17982_v33, %v22449_v35  ;;  %v10998_v58 = vpop.f32.mrb[63].mxu0  ;;  %18407 = vmatprep.subr.bf16.mxu0 %v19137_v62  ;;  %v13646_v35 = vsel %vm1169_vm3, %v13634_v18, %v13645_v4  ;;  %v13666_v4 = vrot.slane %v22550_v12, 7 }
 0x4ad   : > { %v11219_v31 = vadd.f32 %v11188_v17, %v11026_v26  ;;  %v18010_v54 = vpop.f32.mrb[62].mxu1  ;;  %18394 = vmatpush3.bf16.msra.mxu1 %v19136_v2  ;;  %v13653_v9 = vor.u32 %v13650_v48, %v22434_v50  ;;  %v13661_v2 = vor.u32 %v22544_v8, %v13658_v46  ;;  %v11242_v26 = vld [vmem:[%s19588_s12 + $0x70] sm:$0xff] }
 0x4ae   : > { %v11238_v14 = vadd.f32 %v11236_v19, %v11220_v28  ;;  %v11221_v3 = vadd.f32 %v18010_v54, %v11028_v41  ;;  %v11191_v36 = vpop.f32.mrb[63].mxu1  ;;  %18368 = vmatmul.mubr.bf16.vlgmr.msra.gmra.mrb[140].mxu0 %v13638_v6  ;;  %18435 = vmatprep.subr.bf16.mxu1 %v19138_v42  ;;  %v19144_v28 = vld [vmem:[#allocation9 + $0x198] sm:$0xff]   ;;  %v14199_v41 = vrot.slane %v14197_v5, 3  ;;  %v13983_v54 = vshrl.u32 %v13959_v29, 16 }
 0x4af   : > { %v11233_v21 = vadd.f32 %v11231_v39, %v11219_v31  ;;  %18371 = vmatprep.mubr.bf16.mxu0 %v13646_v35  ;;  %18408 = vmatpush3.bf16.msra.mxu0 %v19137_v62  ;;  %v13662_v33 = vsel %vm1169_vm3, %v13650_v48, %v13661_v2  ;;  %v22566_v39 = vshll.u32 %v22539_v10, 16  ;;  %v19146_v31 = vld [vmem:[#allocation9 + $0x1a0] sm:$0xff]   ;;  %v19148_v35 = vld [vmem:[#allocation9 + $0x1a8] sm:$0xff]  }
 0x4b0   : > { %11240 = vst [vmem:[%s22201_s27 + $0x60] sm:$0xff] %v11238_v14  ;;  %v11239_v49 = vadd.f32 %v11237_v47, %v11221_v3  ;;  %18396 = vmatmul.mubr.bf16.vlgmr.msra.gmra.mrb[140].mxu1 %v22341_v22  ;;  %18409 = vmatprep.subr.bf16.mxu0 %v19139_v34  ;;  %v13992_v47 = vrot.slane %v22406_v0, 1  ;;  %v19147_v14 = vld [vmem:[#allocation9 + $0x168] sm:$0xff]  }
 0x4b1   : > { %11235 = vst [vmem:[%s22201_s27 + $0x58] sm:$0xff] %v11233_v21  ;;  %18399 = vmatprep.mubr.bf16.mxu1 %v22358_v63  ;;  %18436 = vmatpush3.bf16.msra.mxu1 %v19138_v42  ;;  %v17985_v18 = vpop.f32.mrb[64].mxu0  ;;  %v13654_v42 = vsel %vm1169_vm3, %v13642_v57, %v13653_v9  ;;  %v13987_v57 = vrot.slane %v13985_v38, 1  ;;  %v13669_v6 = vor.u32 %v22566_v39, %v13666_v4  ;;  %v22595_v4 = vld [vmem:[#allocation2] sm:$0xff] }
 0x4b2   : > { %11241 = vst [vmem:[%s22201_s27 + $0x68] sm:$0xff] %v11239_v49  ;;  %v11030_v22 = vadd.f32 %v17985_v18, %v22475_v59  ;;  %v11010_v52 = vpop.f32.mrb[65].mxu0  ;;  %18437 = vmatprep.subr.bf16.mxu1 %v19140_v61  ;;  %v14200_v59 = vshll.u32 %v14173_v1, 16  ;;  %v19151_v1 = vld [vmem:[#allocation9 + $0x178] sm:$0xff]   ;;  %v13996_v38 = vor.u32 %v13992_v47, %v22403_v32 }
 0x4b3   : > { %v18013_v63 = vpop.f32.mrb[64].mxu1  ;;  %v17986_v16 = vpop.f32.mrb[66].mxu0  ;;  %18410 = vmatpush3.bf16.msra.mxu0 %v19139_v34  ;;  %v13670_v3 = vsel %vm1169_vm3, %v13658_v46, %v13669_v6  ;;  %v19150_v46 = vld [vmem:[#allocation9 + $0x1b0] sm:$0xff]  }
 0x4b4   : > { %v11223_v50 = vadd.f32 %v18013_v63, %v11030_v22  ;;  %v11203_v13 = vpop.f32.mrb[65].mxu1  ;;  %v11012_v62 = vpop.f32.mrb[67].mxu0  ;;  %18411 = vmatprep.subr.bf16.mxu0 %v19141_v60  ;;  %v14202_v58 = vrot.slane %v14200_v59, 4  ;;  %v19154_v59 = vld [vmem:[#allocation9 + $0x200] sm:$0xff]  }
 0x4b5   : > { %v18014_v53 = vpop.f32.mrb[66].mxu1  ;;  %18438 = vmatpush3.bf16.msra.mxu1 %v19140_v61  ;;  %v11029_v51 = vadd.f32 %v11012_v62, %v22491_v7  ;;  %v19145_v7 = vld [vmem:[#allocation9 + $0x160] sm:$0xff]   ;;  %v19149_v61 = vld [vmem:[#allocation9 + $0x170] sm:$0xff]   ;;  %v14225_v62 = vrot.slane %v22525_v45, 3 }
 0x4b6   : > { %v11245_v40 = vadd.f32 %v11243_v37, %v11223_v50  ;;  %v11205_v19 = vpop.f32.mrb[67].mxu1  ;;  %18372 = vmatmul.mubr.bf16.gmra.mrb[144].mxu0 %v13654_v42  ;;  %18439 = vmatprep.subr.bf16.mxu1 %v19142_v55  ;;  %v14203_v48 = vor.u32 %v14202_v58, %v14199_v41  ;;  %v19152_v37 = vld [vmem:[#allocation9 + $0x1b8] sm:$0xff]   ;;  %v19153_v50 = vld [vmem:[#allocation9 + $0x1c0] sm:$0xff]  }
 0x4b7   : > { %v11222_v17 = vadd.f32 %v11205_v19, %v11029_v51  ;;  %18375 = vmatprep.mubr.bf16.mxu0 %v13662_v33  ;;  %18412 = vmatpush3.bf16.msra.mxu0 %v19141_v60  ;;  %v14244_v19 = vshll.u32 %v22595_v4, 16 }
 0x4b8   : > { %11247 = vst [vmem:[%s22201_s27 + $0x78] sm:$0xff] %v11245_v40  ;;  %18400 = vmatmul.mubr.bf16.gmra.mrb[144].mxu1 %v22364_v43  ;;  %18413 = vmatprep.subr.bf16.mxu0 %v19143_v25  ;;  %v13988_v43 = vor.u32 %v13987_v57, %v13983_v54  ;;  %v14212_v0 = vsel %vm756_vm1, %v14203_v48, %v22466_v11  ;;  %v22583_v11 = vld [vmem:[#allocation3 + $0xb8] sm:$0xff]  ;;  %v14241_v40 = vshrl.u32 %v22595_v4, 16  ;;  %v14016_v54 = vrot.slane %v22544_v8, 1 }
 0x4b9   : > { %v11244_v34 = vadd.f32 %v11242_v26, %v11222_v17  ;;  %18403 = vmatprep.mubr.bf16.mxu1 %v22515_v15  ;;  %18440 = vmatpush3.bf16.msra.mxu1 %v19142_v55  ;;  %v14000_v55 = vrot.slane %v22425_v27, 1  ;;  %v14006_v13 = vshll.u32 %v22583_v11, 16  ;;  %v14237_v48 = vrot.slane %v22566_v39, 4 }
 0x4ba   : > { %18441 = vmatprep.subr.bf16.mxu1 %v19144_v28  ;;  %v13993_v36 = vsel %vm1535_vm4, %v13988_v43, %v13992_v47  ;;  %v22608_v47 = vld [vmem:[#allocation3 + $0xd8] sm:$0xf]  ;;  %v14234_v43 = vrot.slane %v22550_v12, 3 }
 0x4bb   : > { %11246 = vst [vmem:[%s22201_s27 + $0x70] sm:$0xff] %v11244_v34  ;;  %18414 = vmatpush3.bf16.msra.mxu0 %v19143_v25  ;;  %v14228_v25 = vrot.slane %v22544_v8, 4  ;;  %v14004_v53 = vor.u32 %v14000_v55, %v22422_v23  ;;  %v14001_v57 = vsel %vm1535_vm4, %v13996_v38, %v14000_v55 }
 0x4bc   : > { %18415 = vmatprep.subr.bf16.mxu0 %v19145_v7 }
 0x4bd   : > { %18442 = vmatpush3.bf16.msra.mxu1 %v19144_v28  ;;  %v14008_v28 = vrot.slane %v14006_v13, 1  ;;  %v14229_v17 = vor.u32 %v14228_v25, %v14225_v62  ;;  %v19159_v13 = vld [vmem:[#allocation9 + $0x1d8] sm:$0xff]  }
 0x4be   : > { %18376 = vmatmul.mubr.bf16.gmra.mrb[148].mxu0 %v13670_v3  ;;  %18443 = vmatprep.subr.bf16.mxu1 %v19146_v31  ;;  %v14246_v3 = vrot.slane %v14244_v19, 4 }
 0x4bf   : > { %18416 = vmatpush3.bf16.msra.mxu0 %v19145_v7  ;;  %18423 = vmatprep.mubr.bf16.mxu0 %v13993_v36  ;;  %v19155_v7 = vld [vmem:[#allocation9 + $0x1c8] sm:$0xff]   ;;  %v14009_v6 = vsel %vm1535_vm4, %v14004_v53, %v14008_v28  ;;  %v14230_v36 = vsel %vm756_vm1, %v22471_v20, %v14229_v17  ;;  %v14238_v20 = vor.u32 %v14237_v48, %v14234_v43  ;;  %v19162_v43 = vld [vmem:[#allocation9 + $0x220] sm:$0xff]   ;;  %v22633_v48 = vld [vmem:[#allocation3 + $0xb0] sm:$0xff] }
 0x4c0   : > { %18404 = vmatmul.mubr.bf16.gmra.mrb[148].mxu1 %v22539_v10  ;;  %18417 = vmatprep.subr.bf16.mxu0 %v19147_v14 }
 0x4c1   : > { %18444 = vmatpush3.bf16.msra.mxu1 %v19146_v31  ;;  %18451 = vmatprep.mubr.bf16.mxu1 %v14212_v0  ;;  %v18033_v21 = vpop.f32.mrb[68].mxu0  ;;  %v19156_v31 = vld [vmem:[#allocation9 + $0x208] sm:$0xff]   ;;  %v14010_v0 = vshrl.u32 %v22583_v11, 16 }
 0x4c2   : > { %v11396_v49 = vpop.f32.mrb[69].mxu0  ;;  %18445 = vmatprep.subr.bf16.mxu1 %v19148_v35  ;;  %v14250_v21 = vshrl.u32 %v22608_v47, 16 }
 0x4c3   : > { %v18061_v60 = vpop.f32.mrb[68].mxu1  ;;  %v18034_v18 = vpop.f32.mrb[70].mxu0  ;;  %18418 = vmatpush3.bf16.msra.mxu0 %v19147_v14  ;;  %v14243_v14 = vrot.slane %v14241_v40, 3 }
 0x4c4   : > { %v11589_v9 = vpop.f32.mrb[69].mxu1  ;;  %v11399_v29 = vpop.f32.mrb[71].mxu0  ;;  %18419 = vmatprep.subr.bf16.mxu0 %v19149_v61 }
 0x4c5   : > { %v22581_v22 = vadd.f32 %v11589_v9, %v11396_v49  ;;  %v18062_v52 = vpop.f32.mrb[70].mxu1  ;;  %18446 = vmatpush3.bf16.msra.mxu1 %v19148_v35  ;;  %v19157_v35 = vld [vmem:[#allocation9 + $0x1d0] sm:$0xff]   ;;  %v14253_v49 = vshll.u32 %v22608_v47, 16  ;;  %v14247_v11 = vor.u32 %v14246_v3, %v14243_v14  ;;  %v14422_v14 = vrot.slane %v22633_v48, 4 }
 0x4c6   : > { %v22586_v2 = vadd.f32 %v18062_v52, %v18034_v18  ;;  %v11592_v63 = vpop.f32.mrb[71].mxu1  ;;  %18447 = vmatprep.subr.bf16.mxu1 %v19150_v46  ;;  %v19158_v18 = vld [vmem:[#allocation9 + $0x210] sm:$0xff]   ;;  %v14614_v48 = vrot.slane %v14241_v40, 4 }
 0x4c7   : > { %v22588_v16 = vadd.f32 %v11592_v63, %v11399_v29  ;;  %18420 = vmatpush3.bf16.msra.mxu0 %v19149_v61  ;;  %v13965_v9 = vld [vmem:[#allocation3 + $0xd0] sm:$0x1]  ;;  %v14012_v29 = vor.u32 %v14010_v0, %v14008_v28 }
 0x4c8   : > { %18421 = vmatprep.subr.bf16.mxu0 %v19151_v1  ;;  %v14030_v53 = vshll.u32 %v13965_v9, 16 }
 0x4c9   : > { %18448 = vmatpush3.bf16.msra.mxu1 %v19150_v46  ;;  %v18037_v27 = vpop.f32.mrb[72].mxu0  ;;  %v14397_v46 = vld [vmem:[#allocation3 + $0xa8] sm:$0xf0] }
 0x4ca   : > { %v11411_v5 = vpop.f32.mrb[73].mxu0  ;;  %18449 = vmatprep.subr.bf16.mxu1 %v19152_v37  ;;  %v14591_v62 = vshrl.u32 %v14397_v46, 16  ;;  %v14594_v25 = vshll.u32 %v14397_v46, 16 }
 0x4cb   : > { %v18065_v51 = vpop.f32.mrb[72].mxu1  ;;  %v18038_v42 = vpop.f32.mrb[74].mxu0  ;;  %18422 = vmatpush3.bf16.msra.mxu0 %v19151_v1 }
 0x4cc   : > { %v22599_v26 = vadd.f32 %v18065_v51, %v18037_v27  ;;  %v11604_v33 = vpop.f32.mrb[73].mxu1  ;;  %v11414_v32 = vpop.f32.mrb[75].mxu0  ;;  %18463 = vmatprep.subr.bf16.mxu0 %v19153_v50  ;;  %v14017_v27 = vsel %vm1535_vm4, %v14012_v29, %v14016_v54 }
 0x4cd   : > { %v22602_v23 = vadd.f32 %v11604_v33, %v11411_v5  ;;  %v18066_v41 = vpop.f32.mrb[74].mxu1  ;;  %18450 = vmatpush3.bf16.msra.mxu1 %v19152_v37  ;;  %v14252_v5 = vrot.slane %v14250_v21, 3  ;;  %v19160_v33 = vld [vmem:[#allocation9 + $0x218] sm:$0xff]   ;;  %v14239_v32 = vsel %vm756_vm1, %v14229_v17, %v14238_v20  ;;  %v14421_v17 = vrot.slane %v14397_v46, 4  ;;  %v19164_v21 = vld [vmem:[#allocation9 + $0x228] sm:$0xff]   ;;  %v19165_v46 = vld [vmem:[#allocation9 + $0x1f0] sm:$0xff]  }
 0x4ce   : > { %v22604_v58 = vadd.f32 %v18066_v41, %v18038_v42  ;;  %v11607_v34 = vpop.f32.mrb[75].mxu1  ;;  %18424 = vmatmul.mubr.bf16.vlgmr.msra.gmra.mrb[152].mxu0 %v14001_v57  ;;  %18491 = vmatprep.subr.bf16.mxu1 %v19154_v59  ;;  %v19161_v57 = vld [vmem:[#allocation9 + $0x1e0] sm:$0xff]   ;;  %v14593_v41 = vrot.slane %v14591_v62, 4 }
 0x4cf   : > { %18427 = vmatprep.mubr.bf16.mxu0 %v14009_v6  ;;  %18464 = vmatpush3.bf16.msra.mxu0 %v19153_v50  ;;  %v14024_v50 = vrot.slane %v22566_v39, 1  ;;  %v14596_v34 = vrot.slane %v14594_v25, 5  ;;  %v19168_v25 = vld [vmem:[#allocation9 + $0x238] sm:$0xff]  }
 0x4d0   : > { %18452 = vmatmul.mubr.bf16.vlgmr.msra.gmra.mrb[152].mxu1 %v22486_v30  ;;  %18465 = vmatprep.subr.bf16.mxu0 %v19155_v7  ;;  %v14020_v30 = vor.u32 %v14016_v54, %v22525_v45  ;;  %v14032_v54 = vrot.slane %v14030_v53, 1 }
 0x4d1   : > { %18455 = vmatprep.mubr.bf16.mxu1 %v14230_v36  ;;  %18492 = vmatpush3.bf16.msra.mxu1 %v19154_v59  ;;  %v18041_v61 = vpop.f32.mrb[76].mxu0  ;;  %v14255_v59 = vrot.slane %v14253_v49, 4  ;;  %v14028_v6 = vor.u32 %v14024_v50, %v22550_v12  ;;  %v14597_v3 = vor.u32 %v14596_v34, %v14593_v41  ;;  %v19163_v36 = vld [vmem:[#allocation9 + $0x1e8] sm:$0xff]  }
 0x4d2   : > { %v11426_v60 = vpop.f32.mrb[77].mxu0  ;;  %18493 = vmatprep.subr.bf16.mxu1 %v19156_v31  ;;  %v14025_v42 = vsel %vm1535_vm4, %v14020_v30, %v14024_v50  ;;  %v19166_v30 = vld [vmem:[#allocation9 + $0x230] sm:$0xff]  }
 0x4d3   : > { %v18069_v1 = vpop.f32.mrb[76].mxu1  ;;  %v18042_v52 = vpop.f32.mrb[78].mxu0  ;;  %18466 = vmatpush3.bf16.msra.mxu0 %v19155_v7  ;;  %v14248_v7 = vsel %vm756_vm1, %v14238_v20, %v14247_v11  ;;  %v14033_v0 = vsel %vm1535_vm4, %v14028_v6, %v14032_v54  ;;  %v14601_v49 = vsel %vm968_vm2, %v14597_v3, %v22473_v44  ;;  %v14573_v54 = vld [vmem:[#allocation3 + $0xd8] sm:$0x1f]  ;;  %v14428_v3 = vrot.slane %v22539_v10, 4 }
 0x4d4   : > { %v22623_v55 = vadd.f32 %v18069_v1, %v18041_v61  ;;  %v11619_v63 = vpop.f32.mrb[77].mxu1  ;;  %v11428_v37 = vpop.f32.mrb[79].mxu0  ;;  %18467 = vmatprep.subr.bf16.mxu0 %v19157_v35  ;;  %v14423_v61 = vsel %vm611_vm0, %v14421_v17, %v14422_v14 }
 0x4d5   : > { %v18070_v38 = vpop.f32.mrb[78].mxu1  ;;  %18494 = vmatpush3.bf16.msra.mxu1 %v19156_v31  ;;  %v14256_v31 = vor.u32 %v14255_v59, %v14252_v5  ;;  %v19167_v63 = vld [vmem:[#allocation9 + $0x1f8] sm:$0xff]  }
 0x4d6   : > { %v11621_v51 = vpop.f32.mrb[79].mxu1  ;;  %18428 = vmatmul.mubr.bf16.gmra.mrb[156].mxu0 %v14017_v27  ;;  %18495 = vmatprep.subr.bf16.mxu1 %v19158_v18  ;;  %v14607_v38 = vrot.slane %v22544_v8, 5  ;;  %v19205_v27 = vld [vmem:[#allocation3 + $0xb8] sm:$0xff] }
 0x4d7   : > { %v22629_v28 = vadd.f32 %v11621_v51, %v11428_v37  ;;  %18431 = vmatprep.mubr.bf16.mxu0 %v14025_v42  ;;  %18468 = vmatpush3.bf16.msra.mxu0 %v19157_v35  ;;  %v14257_v35 = vsel %vm756_vm1, %v14247_v11, %v14256_v31  ;;  %v14424_v5 = vrot.slane %v19205_v27, 4  ;;  %v14426_v51 = vrot.slane %v22515_v15, 4 }
 0x4d8   : > { %18456 = vmatmul.mubr.bf16.gmra.mrb[156].mxu1 %v14239_v32  ;;  %18469 = vmatprep.subr.bf16.mxu0 %v19159_v13 }
 0x4d9   : > { %18459 = vmatprep.mubr.bf16.mxu1 %v14248_v7  ;;  %18496 = vmatpush3.bf16.msra.mxu1 %v19158_v18  ;;  %v14427_v31 = vsel %vm611_vm0, %v14424_v5, %v14426_v51 }
 0x4da   : > { %18497 = vmatprep.subr.bf16.mxu1 %v19160_v33 }
 0x4db   : > { %18470 = vmatpush3.bf16.msra.mxu0 %v19159_v13 }
 0x4dc   : > { %18471 = vmatprep.subr.bf16.mxu0 %v19161_v57 }
 0x4dd   : > { %18498 = vmatpush3.bf16.msra.mxu1 %v19160_v33 }
 0x4de   : > { %18432 = vmatmul.mubr.bf16.gmra.mrb[160].mxu0 %v14033_v0  ;;  %18499 = vmatprep.subr.bf16.mxu1 %v19162_v43  ;;  %v14622_v0 = vshll.u32 %v14573_v54, 16 }
 0x4df   : > { %18472 = vmatpush3.bf16.msra.mxu0 %v19161_v57  ;;  %18479 = vmatprep.mubr.bf16.mxu0 %v14423_v61 }
 0x4e0   : > { %18460 = vmatmul.mubr.bf16.gmra.mrb[160].mxu1 %v14257_v35  ;;  %18473 = vmatprep.subr.bf16.mxu0 %v19163_v36  ;;  %v14619_v35 = vshrl.u32 %v14573_v54, 16 }
 0x4e1   : > { %18500 = vmatpush3.bf16.msra.mxu1 %v19162_v43  ;;  %18507 = vmatprep.mubr.bf16.mxu1 %v14601_v49  ;;  %v18089_v60 = vpop.f32.mrb[80].mxu0  ;;  %v14611_v43 = vrot.slane %v22566_v39, 5 }
 0x4e2   : > { %v11774_v18 = vpop.f32.mrb[81].mxu0  ;;  %18501 = vmatprep.subr.bf16.mxu1 %v19164_v21 }
 0x4e3   : > { %v18117_v9 = vpop.f32.mrb[80].mxu1  ;;  %v11817_v29 = vadd.f32 %v11774_v18, %v22581_v22  ;;  %v18090_v20 = vpop.f32.mrb[82].mxu0  ;;  %18474 = vmatpush3.bf16.msra.mxu0 %v19163_v36 }
 0x4e4   : > { %v11988_v1 = vpop.f32.mrb[81].mxu1  ;;  %v11819_v52 = vadd.f32 %v18090_v20, %v22586_v2  ;;  %v11777_v11 = vpop.f32.mrb[83].mxu0  ;;  %18475 = vmatprep.subr.bf16.mxu0 %v19165_v46  ;;  %v14606_v2 = vrot.slane %v22525_v45, 4  ;;  %v14624_v9 = vrot.slane %v14622_v0, 5 }
 0x4e5   : > { %v22645_v44 = vadd.f32 %v11988_v1, %v11817_v29  ;;  %v18118_v37 = vpop.f32.mrb[82].mxu1  ;;  %18502 = vmatpush3.bf16.msra.mxu1 %v19164_v21  ;;  %v11818_v50 = vadd.f32 %v11777_v11, %v22588_v16  ;;  %v14432_v1 = vrot.slane %v22608_v47, 4 }
 0x4e6   : > { %v22648_v13 = vadd.f32 %v18118_v37, %v11819_v52  ;;  %v11991_v62 = vpop.f32.mrb[83].mxu1  ;;  %18503 = vmatprep.subr.bf16.mxu1 %v19166_v30  ;;  %v14608_v41 = vor.u32 %v14607_v38, %v14606_v2 }
 0x4e7   : > { %v22650_v22 = vadd.f32 %v11991_v62, %v11818_v50  ;;  %18476 = vmatpush3.bf16.msra.mxu0 %v19165_v46 }
 0x4e8   : > { %18477 = vmatprep.subr.bf16.mxu0 %v19167_v63  ;;  %v14609_v17 = vsel %vm968_vm2, %v22477_v56, %v14608_v41 }
 0x4e9   : > { %18504 = vmatpush3.bf16.msra.mxu1 %v19166_v30  ;;  %v18093_v59 = vpop.f32.mrb[84].mxu0  ;;  %v14621_v30 = vrot.slane %v14619_v35, 4 }
 0x4ea   : > { %v11821_v53 = vadd.f32 %v18093_v59, %v22599_v26  ;;  %v11789_v16 = vpop.f32.mrb[85].mxu0  ;;  %18505 = vmatprep.subr.bf16.mxu1 %v19168_v25  ;;  %v14425_v26 = vsel %vm611_vm0, %v14422_v14, %v14424_v5  ;;  %v14615_v14 = vrot.slane %v14244_v19, 5  ;;  %v14429_v19 = vsel %vm611_vm0, %v14426_v51, %v14428_v3 }
 0x4eb   : > { %v18121_v42 = vpop.f32.mrb[84].mxu1  ;;  %v11820_v33 = vadd.f32 %v11789_v16, %v22602_v23  ;;  %v18094_v32 = vpop.f32.mrb[86].mxu0  ;;  %18478 = vmatpush3.bf16.msra.mxu0 %v19167_v63  ;;  %v14625_v11 = vor.u32 %v14624_v9, %v14621_v30 }
 0x4ec   : > { %v22657_v7 = vadd.f32 %v18121_v42, %v11821_v53  ;;  %v12003_v45 = vpop.f32.mrb[85].mxu1  ;;  %v11822_v8 = vadd.f32 %v18094_v32, %v22604_v58  ;;  %v11792_v57 = vpop.f32.mrb[87].mxu0  ;;  %v14610_v58 = vrot.slane %v22550_v12, 4  ;;  %v14616_v60 = vor.u32 %v14615_v14, %v14614_v48 }
 0x4ed   : > { %v22663_v34 = vadd.f32 %v12003_v45, %v11820_v33  ;;  %v18122_v6 = vpop.f32.mrb[86].mxu1  ;;  %18506 = vmatpush3.bf16.msra.mxu1 %v19168_v25 }
 0x4ee   : > { %v22665_v15 = vadd.f32 %v18122_v6, %v11822_v8  ;;  %v12006_v23 = vpop.f32.mrb[87].mxu1  ;;  %18480 = vmatmul.mubr.bf16.vlgmr.msra.gmra.mrb[164].mxu0 %v14425_v26  ;;  %v14612_v61 = vor.u32 %v14611_v43, %v14610_v58 }
 0x4ef   : > { %18483 = vmatprep.mubr.bf16.mxu0 %v14427_v31 }
 0x4f0   : > { %18508 = vmatmul.mubr.bf16.vlgmr.msra.gmra.mrb[164].mxu1 %v22497_v24  ;;  %v14430_v24 = vrot.slane %v22595_v4, 4  ;;  %v14613_v4 = vsel %vm968_vm2, %v14608_v41, %v14612_v61  ;;  %v14617_v52 = vsel %vm968_vm2, %v14612_v61, %v14616_v60 }
 0x4f1   : > { %18511 = vmatprep.mubr.bf16.mxu1 %v14609_v17  ;;  %v18097_v36 = vpop.f32.mrb[88].mxu0 }
 0x4f2   : > { %v11824_v12 = vadd.f32 %v18097_v36, %v22623_v55  ;;  %v11804_v39 = vpop.f32.mrb[89].mxu0  ;;  %v14431_v55 = vsel %vm611_vm0, %v14428_v3, %v14430_v24  ;;  %v14433_v63 = vsel %vm611_vm0, %v14430_v24, %v14432_v1 }
 0x4f3   : > { %v18125_v21 = vpop.f32.mrb[88].mxu1  ;;  %v18098_v56 = vpop.f32.mrb[90].mxu0 }
 0x4f4   : > { %v12038_v49 = vadd.f32 %v18125_v21, %v11824_v12  ;;  %v12018_v46 = vpop.f32.mrb[89].mxu1  ;;  %v11806_v40 = vpop.f32.mrb[91].mxu0 }
 0x4f5   : > { %v18126_v18 = vpop.f32.mrb[90].mxu1  ;;  %v11823_v10 = vadd.f32 %v11806_v40, %v22629_v28  ;;  %v14626_v28 = vsel %vm968_vm2, %v14616_v60, %v14625_v11 }
 0x4f6   : > { %v12020_v29 = vpop.f32.mrb[91].mxu1  ;;  %18484 = vmatmul.mubr.bf16.gmra.mrb[168].mxu0 %v14429_v19 }
 0x4f7   : > { %v12037_v20 = vadd.f32 %v12020_v29, %v11823_v10  ;;  %18487 = vmatprep.mubr.bf16.mxu0 %v14431_v55 }
 0x4f8   : > { %18512 = vmatmul.mubr.bf16.gmra.mrb[168].mxu1 %v14613_v4 }
 0x4f9   : > { %18515 = vmatprep.mubr.bf16.mxu1 %v14617_v52 }
 0x4fe   : > { %18488 = vmatmul.mubr.bf16.gmra.mrb[172].mxu0 %v14433_v63 }
 0x500   : > { %18516 = vmatmul.mubr.bf16.gmra.mrb[172].mxu1 %v14626_v28 }
 0x501   : > { %v18145_v37 = vpop.f32.mrb[92].mxu0 }
 0x502   : > { %v12137_v50 = vpop.f32.mrb[93].mxu0 }
 0x503   : > { %v18173_v62 = vpop.f32.mrb[92].mxu1  ;;  %v12180_v25 = vadd.f32 %v12137_v50, %v22645_v44  ;;  %v18146_v2 = vpop.f32.mrb[94].mxu0 }
 0x504   : > { %v12351_v38 = vpop.f32.mrb[93].mxu1  ;;  %v12182_v47 = vadd.f32 %v18146_v2, %v22648_v13  ;;  %v12140_v27 = vpop.f32.mrb[95].mxu0 }
 0x505   : > { %v12394_v5 = vadd.f32 %v12351_v38, %v12180_v25  ;;  %v18174_v59 = vpop.f32.mrb[94].mxu1  ;;  %v12181_v53 = vadd.f32 %v12140_v27, %v22650_v22 }
 0x506   : > { %v12396_v16 = vadd.f32 %v18174_v59, %v12182_v47  ;;  %v12354_v51 = vpop.f32.mrb[95].mxu1 }
 0x507   : > { %v12395_v42 = vadd.f32 %v12354_v51, %v12181_v53 }
 0x509   : > { %v18149_v33 = vpop.f32.mrb[96].mxu0 }
 0x50a   : > { %v12184_v32 = vadd.f32 %v18149_v33, %v22657_v7  ;;  %v12152_v45 = vpop.f32.mrb[97].mxu0 }
 0x50b   : > { %v18177_v8 = vpop.f32.mrb[96].mxu1  ;;  %v12183_v57 = vadd.f32 %v12152_v45, %v22663_v34  ;;  %v18150_v44 = vpop.f32.mrb[98].mxu0 }
 0x50c   : > { %v12398_v41 = vadd.f32 %v18177_v8, %v12184_v32  ;;  %v12366_v26 = vpop.f32.mrb[97].mxu1  ;;  %v12185_v13 = vadd.f32 %v18150_v44, %v22665_v15  ;;  %v12155_v6 = vpop.f32.mrb[99].mxu0 }
 0x50d   : > { %v12397_v23 = vadd.f32 %v12366_v26, %v12183_v57  ;;  %v18178_v31 = vpop.f32.mrb[98].mxu1  ;;  %v12995_v57 = vld [vmem:[%s19588_s12 + $0x80] sm:$0xff] }
 0x50e   : > { %v12399_v54 = vadd.f32 %v18178_v31, %v12185_v13  ;;  %v12369_v22 = vpop.f32.mrb[99].mxu1  ;;  %v13001_v13 = vld [vmem:[%s19588_s12 + $0x90] sm:$0xff] }
 0x511   : > { %v18153_v58 = vpop.f32.mrb[100].mxu0 }
 0x512   : > { %v12187_v43 = vadd.f32 %v18153_v58, %v12038_v49  ;;  %v12167_v17 = vpop.f32.mrb[101].mxu0 }
 0x513   : > { %v18181_v48 = vpop.f32.mrb[100].mxu1  ;;  %v18154_v14 = vpop.f32.mrb[102].mxu0 }
 0x514   : > { %v12401_v7 = vadd.f32 %v18181_v48, %v12187_v43  ;;  %v12381_v3 = vpop.f32.mrb[101].mxu1  ;;  %v12169_v36 = vpop.f32.mrb[103].mxu0 }
 0x515   : > { %v18182_v35 = vpop.f32.mrb[102].mxu1  ;;  %v12186_v34 = vadd.f32 %v12169_v36, %v12037_v20  ;;  %v13007_v3 = vld [vmem:[%s19588_s12 + $0xa0] sm:$0xff] }
 0x516   : > { %v12383_v0 = vpop.f32.mrb[103].mxu1 }
 0x517   : > { %v12400_v12 = vadd.f32 %v12383_v0, %v12186_v34  ;;  %v13002_v34 = vld [vmem:[%s19588_s12 + $0x98] sm:$0xff] }
 0x521   : > { %v18201_v39 = vpop.f32.mrb[104].mxu0 }
 0x522   : > { %v12575_v24 = vpop.f32.mrb[105].mxu0 }
 0x523   : > { %v18229_v15 = vpop.f32.mrb[104].mxu1  ;;  %v12618_v61 = vadd.f32 %v12575_v24, %v12394_v5  ;;  %v18202_v21 = vpop.f32.mrb[106].mxu0  ;;  %v13008_v24 = vld [vmem:[%s19588_s12 + $0xa8] sm:$0xff] }
 0x524   : > { %v12751_v56 = vpop.f32.mrb[105].mxu1  ;;  %v12620_v46 = vadd.f32 %v18202_v21, %v12396_v16  ;;  %v12578_v40 = vpop.f32.mrb[107].mxu0 }
 0x525   : > { %v12794_v60 = vadd.f32 %v12751_v56, %v12618_v61  ;;  %v18230_v49 = vpop.f32.mrb[106].mxu1  ;;  %v12619_v19 = vadd.f32 %v12578_v40, %v12395_v42 }
 0x526   : > { %v12796_v18 = vadd.f32 %v18230_v49, %v12620_v46  ;;  %v12754_v10 = vpop.f32.mrb[107].mxu1 }
 0x527   : > { %v12795_v30 = vadd.f32 %v12754_v10, %v12619_v19 }
 0x529   : > { %v18205_v9 = vpop.f32.mrb[108].mxu0 }
 0x52a   : > { %v12622_v29 = vadd.f32 %v18205_v9, %v12398_v41  ;;  %v12590_v55 = vpop.f32.mrb[109].mxu0 }
 0x52b   : > { %v18233_v4 = vpop.f32.mrb[108].mxu1  ;;  %v12621_v20 = vadd.f32 %v12590_v55, %v12397_v23  ;;  %v18206_v1 = vpop.f32.mrb[110].mxu0 }
 0x52c   : > { %v12798_v52 = vadd.f32 %v18233_v4, %v12622_v29  ;;  %v12766_v11 = vpop.f32.mrb[109].mxu1  ;;  %v12623_v63 = vadd.f32 %v18206_v1, %v12399_v54  ;;  %v12593_v28 = vpop.f32.mrb[111].mxu0  ;;  %v12996_v54 = vld [vmem:[%s19588_s12 + $0x88] sm:$0xff]  ;;  %v13013_v1 = vld [vmem:[%s19588_s12 + $0xb0] sm:$0xff] }
 0x52d   : > { %v12797_v37 = vadd.f32 %v12766_v11, %v12621_v20  ;;  %v18234_v50 = vpop.f32.mrb[110].mxu1 }
 0x52e   : > { %v12799_v62 = vadd.f32 %v18234_v50, %v12623_v63  ;;  %v12769_v25 = vpop.f32.mrb[111].mxu1 }
 0x531   : > { %v18209_v2 = vpop.f32.mrb[112].mxu0 }
 0x532   : > { %v12625_v38 = vadd.f32 %v18209_v2, %v12401_v7  ;;  %v12605_v47 = vpop.f32.mrb[113].mxu0 }
 0x533   : > { %v18237_v27 = vpop.f32.mrb[112].mxu1  ;;  %v18210_v5 = vpop.f32.mrb[114].mxu0 }
 0x534   : > { %v12801_v59 = vadd.f32 %v18237_v27, %v12625_v38  ;;  %v12781_v53 = vpop.f32.mrb[113].mxu1  ;;  %v12607_v16 = vpop.f32.mrb[115].mxu0 }
 0x535   : > { %v18238_v51 = vpop.f32.mrb[114].mxu1  ;;  %v12624_v42 = vadd.f32 %v12607_v16, %v12400_v12 }
 0x536   : > { %v12783_v33 = vpop.f32.mrb[115].mxu1 }
 0x537   : > { %v12800_v32 = vadd.f32 %v12783_v33, %v12624_v42 }
 0x541   : > { %v18257_v45 = vpop.f32.mrb[116].mxu0 }
 0x542   : > { %v12944_v8 = vpop.f32.mrb[117].mxu0 }
 0x543   : > { %v18285_v44 = vpop.f32.mrb[116].mxu1  ;;  %v12987_v41 = vadd.f32 %v12944_v8, %v12794_v60  ;;  %v18258_v26 = vpop.f32.mrb[118].mxu0 }
 0x544   : > { %v13167_v6 = vpop.f32.mrb[117].mxu1  ;;  %v12989_v23 = vadd.f32 %v18258_v26, %v12796_v18  ;;  %v12947_v31 = vpop.f32.mrb[119].mxu0  ;;  %v13014_v18 = vld [vmem:[%s19588_s12 + $0xb8] sm:$0xff] }
 0x545   : > { %v12997_v22 = vadd.f32 %v12995_v57, %v12987_v41  ;;  %v18286_v58 = vpop.f32.mrb[118].mxu1  ;;  %v12988_v43 = vadd.f32 %v12947_v31, %v12795_v30 }
 0x546   : > { %v13003_v17 = vadd.f32 %v13001_v13, %v12989_v23  ;;  %v13170_v48 = vpop.f32.mrb[119].mxu1 }
 0x547   : > { %12999 = vst [vmem:[%s22201_s27 + $0x80] sm:$0xff] %v12997_v22  ;;  %v12998_v14 = vadd.f32 %v12996_v54, %v12988_v43 }
 0x548   : > { %13005 = vst [vmem:[%s22201_s27 + $0x90] sm:$0xff] %v13003_v17 }
 0x549   : > { %13000 = vst [vmem:[%s22201_s27 + $0x88] sm:$0xff] %v12998_v14  ;;  %v18261_v7 = vpop.f32.mrb[120].mxu0 }
 0x54a   : > { %v12991_v36 = vadd.f32 %v18261_v7, %v12798_v52  ;;  %v12959_v35 = vpop.f32.mrb[121].mxu0 }
 0x54b   : > { %v18289_v0 = vpop.f32.mrb[120].mxu1  ;;  %v12990_v12 = vadd.f32 %v12959_v35, %v12797_v37  ;;  %v18262_v39 = vpop.f32.mrb[122].mxu0 }
 0x54c   : > { %v13009_v15 = vadd.f32 %v13007_v3, %v12991_v36  ;;  %v13182_v61 = vpop.f32.mrb[121].mxu1  ;;  %v12992_v21 = vadd.f32 %v18262_v39, %v12799_v62  ;;  %v12962_v56 = vpop.f32.mrb[123].mxu0 }
 0x54d   : > { %v13004_v46 = vadd.f32 %v13002_v34, %v12990_v12  ;;  %v18290_v40 = vpop.f32.mrb[122].mxu1 }
 0x54e   : > { %13011 = vst [vmem:[%s22201_s27 + $0xa0] sm:$0xff] %v13009_v15  ;;  %v13010_v60 = vadd.f32 %v13008_v24, %v12992_v21  ;;  %v13185_v49 = vpop.f32.mrb[123].mxu1 }
 0x54f   : > { %13006 = vst [vmem:[%s22201_s27 + $0x98] sm:$0xff] %v13004_v46 }
 0x550   : > { %13012 = vst [vmem:[%s22201_s27 + $0xa8] sm:$0xff] %v13010_v60 }
 0x551   : > { %v18265_v19 = vpop.f32.mrb[124].mxu0 }
 0x552   : > { %v12994_v10 = vadd.f32 %v18265_v19, %v12801_v59  ;;  %v12974_v30 = vpop.f32.mrb[125].mxu0 }
 0x553   : > { %v18293_v9 = vpop.f32.mrb[124].mxu1  ;;  %v18266_v29 = vpop.f32.mrb[126].mxu0 }
 0x554   : > { %v13016_v55 = vadd.f32 %v13014_v18, %v12994_v10  ;;  %v13197_v4 = vpop.f32.mrb[125].mxu1  ;;  %v12976_v20 = vpop.f32.mrb[127].mxu0 }
 0x555   : > { %v18294_v52 = vpop.f32.mrb[126].mxu1  ;;  %v12993_v11 = vadd.f32 %v12976_v20, %v12800_v32 }
 0x556   : > { %13018 = vst [vmem:[%s22201_s27 + $0xb8] sm:$0xff] %v13016_v55  ;;  %v13199_v63 = vpop.f32.mrb[127].mxu1 }
 0x557   : > { %v13015_v28 = vadd.f32 %v13013_v1, %v12993_v11 }
 0x559   : > { %13017 = vst [vmem:[%s22201_s27 + $0xb0] sm:$0xff] %v13015_v28 }
 0x561   : > { %v18313_v37 = vpop.f32.mrb[128].mxu0 }
 0x562   : > { %v13360_v50 = vpop.f32.mrb[129].mxu0 }
 0x563   : > { %v18341_v62 = vpop.f32.mrb[128].mxu1  ;;  %v13361_v25 = vadd.f32 %v13360_v50, %v13167_v6  ;;  %v18314_v2 = vpop.f32.mrb[130].mxu0 }
 0x564   : > { %v13545_v38 = vpop.f32.mrb[129].mxu1  ;;  %v13371_v47 = vadd.f32 %v18314_v2, %v18286_v58  ;;  %v13363_v27 = vpop.f32.mrb[131].mxu0 }
 0x565   : > { %v13588_v5 = vadd.f32 %v13545_v38, %v13361_v25  ;;  %v18342_v59 = vpop.f32.mrb[130].mxu1  ;;  %v13364_v53 = vadd.f32 %v13363_v27, %v13170_v48 }
 0x566   : > { %v13590_v16 = vadd.f32 %v18342_v59, %v13371_v47  ;;  %v13548_v51 = vpop.f32.mrb[131].mxu1 }
 0x567   : > { %v13589_v42 = vadd.f32 %v13548_v51, %v13364_v53 }
 0x569   : > { %v18317_v33 = vpop.f32.mrb[132].mxu0 }
 0x56a   : > { %v13383_v32 = vadd.f32 %v18317_v33, %v18289_v0  ;;  %v13375_v45 = vpop.f32.mrb[133].mxu0 }
 0x56b   : > { %v18345_v8 = vpop.f32.mrb[132].mxu1  ;;  %v13376_v57 = vadd.f32 %v13375_v45, %v13182_v61  ;;  %v18318_v44 = vpop.f32.mrb[134].mxu0 }
 0x56c   : > { %v13592_v41 = vadd.f32 %v18345_v8, %v13383_v32  ;;  %v13560_v26 = vpop.f32.mrb[133].mxu1  ;;  %v13386_v13 = vadd.f32 %v18318_v44, %v18290_v40  ;;  %v13378_v6 = vpop.f32.mrb[135].mxu0 }
 0x56d   : > { %v13591_v23 = vadd.f32 %v13560_v26, %v13376_v57  ;;  %v18346_v31 = vpop.f32.mrb[134].mxu1 }
 0x56e   : > { %v13593_v54 = vadd.f32 %v18346_v31, %v13386_v13  ;;  %v13563_v22 = vpop.f32.mrb[135].mxu1 }
 0x571   : > { %v18321_v58 = vpop.f32.mrb[136].mxu0 }
 0x572   : > { %v13398_v43 = vadd.f32 %v18321_v58, %v18293_v9  ;;  %v13390_v17 = vpop.f32.mrb[137].mxu0 }
 0x573   : > { %v18349_v48 = vpop.f32.mrb[136].mxu1  ;;  %v18322_v14 = vpop.f32.mrb[138].mxu0 }
 0x574   : > { %v13595_v7 = vadd.f32 %v18349_v48, %v13398_v43  ;;  %v13575_v3 = vpop.f32.mrb[137].mxu1  ;;  %v13392_v36 = vpop.f32.mrb[139].mxu0 }
 0x575   : > { %v18350_v35 = vpop.f32.mrb[138].mxu1  ;;  %v13393_v34 = vadd.f32 %v13392_v36, %v13199_v63 }
 0x576   : > { %v13577_v0 = vpop.f32.mrb[139].mxu1 }
 0x577   : > { %v13594_v12 = vadd.f32 %v13577_v0, %v13393_v34 }
 0x581   : > { %v18369_v39 = vpop.f32.mrb[140].mxu0 }
 0x582   : > { %v13759_v24 = vpop.f32.mrb[141].mxu0 }
 0x583   : > { %v18397_v15 = vpop.f32.mrb[140].mxu1  ;;  %v13802_v61 = vadd.f32 %v13759_v24, %v13588_v5  ;;  %v18370_v21 = vpop.f32.mrb[142].mxu0 }
 0x584   : > { %v13908_v56 = vpop.f32.mrb[141].mxu1  ;;  %v13804_v46 = vadd.f32 %v18370_v21, %v13590_v16  ;;  %v13762_v40 = vpop.f32.mrb[143].mxu0 }
 0x585   : > { %v13951_v60 = vadd.f32 %v13908_v56, %v13802_v61  ;;  %v18398_v49 = vpop.f32.mrb[142].mxu1  ;;  %v13803_v19 = vadd.f32 %v13762_v40, %v13589_v42 }
 0x586   : > { %v13953_v18 = vadd.f32 %v18398_v49, %v13804_v46  ;;  %v13911_v10 = vpop.f32.mrb[143].mxu1 }
 0x587   : > { %v13952_v30 = vadd.f32 %v13911_v10, %v13803_v19 }
 0x589   : > { %v18373_v9 = vpop.f32.mrb[144].mxu0 }
 0x58a   : > { %v13806_v29 = vadd.f32 %v18373_v9, %v13592_v41  ;;  %v13774_v55 = vpop.f32.mrb[145].mxu0 }
 0x58b   : > { %v18401_v4 = vpop.f32.mrb[144].mxu1  ;;  %v13805_v20 = vadd.f32 %v13774_v55, %v13591_v23  ;;  %v18374_v1 = vpop.f32.mrb[146].mxu0 }
 0x58c   : > { %v13955_v52 = vadd.f32 %v18401_v4, %v13806_v29  ;;  %v13923_v11 = vpop.f32.mrb[145].mxu1  ;;  %v13807_v63 = vadd.f32 %v18374_v1, %v13593_v54  ;;  %v13777_v28 = vpop.f32.mrb[147].mxu0 }
 0x58d   : > { %v13954_v37 = vadd.f32 %v13923_v11, %v13805_v20  ;;  %v18402_v50 = vpop.f32.mrb[146].mxu1 }
 0x58e   : > { %v13956_v62 = vadd.f32 %v18402_v50, %v13807_v63  ;;  %v13926_v25 = vpop.f32.mrb[147].mxu1  ;;  %v14766_v63 = vld [vmem:[%s19588_s12 + $0xc0] sm:$0xff] }
 0x58f   : > { %v14772_v25 = vld [vmem:[%s19588_s12 + $0xd0] sm:$0xff] }
 0x591   : > { %v18377_v2 = vpop.f32.mrb[148].mxu0 }
 0x592   : > { %v13809_v38 = vadd.f32 %v18377_v2, %v13595_v7  ;;  %v13789_v47 = vpop.f32.mrb[149].mxu0 }
 0x593   : > { %v18405_v27 = vpop.f32.mrb[148].mxu1  ;;  %v18378_v5 = vpop.f32.mrb[150].mxu0 }
 0x594   : > { %v13958_v59 = vadd.f32 %v18405_v27, %v13809_v38  ;;  %v13938_v53 = vpop.f32.mrb[149].mxu1  ;;  %v13791_v16 = vpop.f32.mrb[151].mxu0  ;;  %v14767_v27 = vld [vmem:[%s19588_s12 + $0xc8] sm:$0xff] }
 0x595   : > { %v18406_v51 = vpop.f32.mrb[150].mxu1  ;;  %v13808_v42 = vadd.f32 %v13791_v16, %v13594_v12 }
 0x596   : > { %v13940_v33 = vpop.f32.mrb[151].mxu1 }
 0x597   : > { %v13957_v32 = vadd.f32 %v13940_v33, %v13808_v42 }
 0x5a1   : > { %v18425_v45 = vpop.f32.mrb[152].mxu0 }
 0x5a2   : > { %v14122_v8 = vpop.f32.mrb[153].mxu0  ;;  %v14778_v45 = vld [vmem:[%s19588_s12 + $0xe0] sm:$0xff] }
 0x5a3   : > { %v18453_v57 = vpop.f32.mrb[152].mxu1  ;;  %v14165_v44 = vadd.f32 %v14122_v8, %v13951_v60  ;;  %v18426_v41 = vpop.f32.mrb[154].mxu0 }
 0x5a4   : > { %v14346_v26 = vpop.f32.mrb[153].mxu1  ;;  %v14167_v13 = vadd.f32 %v18426_v41, %v13953_v18  ;;  %v14125_v6 = vpop.f32.mrb[155].mxu0 }
 0x5a5   : > { %v14389_v23 = vadd.f32 %v14346_v26, %v14165_v44  ;;  %v18454_v31 = vpop.f32.mrb[154].mxu1  ;;  %v14166_v54 = vadd.f32 %v14125_v6, %v13952_v30  ;;  %v14773_v26 = vld [vmem:[%s19588_s12 + $0xd8] sm:$0xff] }
 0x5a6   : > { %v14391_v22 = vadd.f32 %v18454_v31, %v14167_v13  ;;  %v14349_v58 = vpop.f32.mrb[155].mxu1 }
 0x5a7   : > { %v14390_v43 = vadd.f32 %v14349_v58, %v14166_v54  ;;  %v14779_v54 = vld [vmem:[%s19588_s12 + $0xe8] sm:$0xff] }
 0x5a9   : > { %v18429_v17 = vpop.f32.mrb[156].mxu0 }
 0x5aa   : > { %v14169_v48 = vadd.f32 %v18429_v17, %v13955_v52  ;;  %v14137_v14 = vpop.f32.mrb[157].mxu0 }
 0x5ab   : > { %v18457_v7 = vpop.f32.mrb[156].mxu1  ;;  %v14168_v3 = vadd.f32 %v14137_v14, %v13954_v37  ;;  %v18430_v36 = vpop.f32.mrb[158].mxu0 }
 0x5ac   : > { %v14393_v35 = vadd.f32 %v18457_v7, %v14169_v48  ;;  %v14361_v34 = vpop.f32.mrb[157].mxu1  ;;  %v14170_v0 = vadd.f32 %v18430_v36, %v13956_v62  ;;  %v14140_v12 = vpop.f32.mrb[159].mxu0 }
 0x5ad   : > { %v14392_v39 = vadd.f32 %v14361_v34, %v14168_v3  ;;  %v18458_v24 = vpop.f32.mrb[158].mxu1 }
 0x5ae   : > { %v14394_v15 = vadd.f32 %v18458_v24, %v14170_v0  ;;  %v14364_v61 = vpop.f32.mrb[159].mxu1 }
 0x5b1   : > { %v18433_v21 = vpop.f32.mrb[160].mxu0 }
 0x5b2   : > { %v14172_v56 = vadd.f32 %v18433_v21, %v13958_v59  ;;  %v14152_v46 = vpop.f32.mrb[161].mxu0 }
 0x5b3   : > { %v18434_v40 = vpop.f32.mrb[162].mxu0  ;;  %v18461_v60 = vpop.f32.mrb[160].mxu1 }
 0x5b4   : > { %v14396_v49 = vadd.f32 %v18461_v60, %v14172_v56  ;;  %v14154_v19 = vpop.f32.mrb[163].mxu0  ;;  %v14376_v18 = vpop.f32.mrb[161].mxu1  ;;  %v14784_v56 = vld [vmem:[%s19588_s12 + $0xf0] sm:$0xff] }
 0x5b5   : > { %v14171_v10 = vadd.f32 %v14154_v19, %v13957_v32  ;;  %v18462_v30 = vpop.f32.mrb[162].mxu1 }
 0x5b6   : > { %v14378_v9 = vpop.f32.mrb[163].mxu1 }
 0x5b7   : > { %v14395_v29 = vadd.f32 %v14378_v9, %v14171_v10 }
 0x5c1   : > { %v18481_v55 = vpop.f32.mrb[164].mxu0 }
 0x5c2   : > { %v14522_v4 = vpop.f32.mrb[165].mxu0 }
 0x5c3   : > { %v18509_v20 = vpop.f32.mrb[164].mxu1  ;;  %v14565_v1 = vadd.f32 %v14522_v4, %v14389_v23  ;;  %v18482_v52 = vpop.f32.mrb[166].mxu0 }
 0x5c4   : > { %v14715_v11 = vpop.f32.mrb[165].mxu1  ;;  %v14567_v28 = vadd.f32 %v18482_v52, %v14391_v22  ;;  %v14525_v37 = vpop.f32.mrb[167].mxu0 }
 0x5c5   : > { %v14758_v50 = vadd.f32 %v14715_v11, %v14565_v1  ;;  %v18510_v62 = vpop.f32.mrb[166].mxu1  ;;  %v14566_v2 = vadd.f32 %v14525_v37, %v14390_v43 }
 0x5c6   : > { %v14760_v38 = vadd.f32 %v18510_v62, %v14567_v28  ;;  %v14718_v47 = vpop.f32.mrb[167].mxu1 }
 0x5c7   : > { %v14768_v5 = vadd.f32 %v14766_v63, %v14758_v50  ;;  %v14759_v59 = vadd.f32 %v14718_v47, %v14566_v2 }
 0x5c8   : > { %v14774_v53 = vadd.f32 %v14772_v25, %v14760_v38 }
 0x5c9   : > { %14770 = vst [vmem:[%s22201_s27 + $0xc0] sm:$0xff] %v14768_v5  ;;  %v14769_v16 = vadd.f32 %v14767_v27, %v14759_v59  ;;  %v18485_v51 = vpop.f32.mrb[168].mxu0 }
 0x5ca   : > { %14776 = vst [vmem:[%s22201_s27 + $0xd0] sm:$0xff] %v14774_v53  ;;  %v14569_v42 = vadd.f32 %v18485_v51, %v14393_v35  ;;  %v14537_v33 = vpop.f32.mrb[169].mxu0  ;;  %v14785_v35 = vld [vmem:[%s19588_s12 + $0xf8] sm:$0xff]  ;;  %s19372_s12 = smov [#allocation10]  }
 0x5cb   : > { %14771 = vst [vmem:[%s22201_s27 + $0xc8] sm:$0xff] %v14769_v16  ;;  %v18513_v32 = vpop.f32.mrb[168].mxu1  ;;  %v14568_v8 = vadd.f32 %v14537_v33, %v14392_v39  ;;  %v18486_v57 = vpop.f32.mrb[170].mxu0  ;;  %s19296_s20 = sshll.u32 %s19372_s12, 4  ;;  %s19297_s20 = int_to_ptr.vmem [resolvable:$false] %s19296_s20 }
 0x5cc   : > { %v14762_v44 = vadd.f32 %v18513_v32, %v14569_v42  ;;  %v14730_v41 = vpop.f32.mrb[169].mxu1  ;;  %v14570_v13 = vadd.f32 %v18486_v57, %v14394_v15  ;;  %v14540_v6 = vpop.f32.mrb[171].mxu0  ;;  %s19298_s15 = scalar_lea.vmem %s19297_s20, 8192  ;;  %p19299_p7 = scmp.lt.s32.totalorder %s22732_s29, %s19297_s20 }
 0x5cd   : > { %v14761_v23 = vadd.f32 %v14730_v41, %v14568_v8  ;;  %v18514_v31 = vpop.f32.mrb[170].mxu1  ;;  %p19300_p9 = scmp.lt.s32.totalorder %s19298_s15, %s19292_s25 }
 0x5ce   : > { %v14780_v22 = vadd.f32 %v14778_v45, %v14762_v44  ;;  %v14763_v58 = vadd.f32 %v18514_v31, %v14570_v13  ;;  %v14733_v43 = vpop.f32.mrb[171].mxu1 }
 0x5cf   : > { %v14775_v17 = vadd.f32 %v14773_v26, %v14761_v23  ;;  %p19301_p12 = por %p19300_p9, %p19299_p7 }
 0x5d0   : > { %14782 = vst [vmem:[%s22201_s27 + $0xe0] sm:$0xff] %v14780_v22  ;;  %v14781_v48 = vadd.f32 %v14779_v54, %v14763_v58 }
 0x5d1   : > { %14777 = vst [vmem:[%s22201_s27 + $0xd8] sm:$0xff] %v14775_v17  ;;  %v18489_v14 = vpop.f32.mrb[172].mxu0  ;;  %p19302_p2 = pnand %p19301_p12, %p19295_p3 }
 0x5d2   : > { %14783 = vst [vmem:[%s22201_s27 + $0xe8] sm:$0xff] %v14781_v48  ;;  %v14572_v7 = vadd.f32 %v18489_v14, %v14396_v49  ;;  %v14552_v3 = vpop.f32.mrb[173].mxu0 }
 0x5d3   : > { %v18517_v36 = vpop.f32.mrb[172].mxu1  ;;  %v18490_v34 = vpop.f32.mrb[174].mxu0 }
 0x5d4   : > { %v14765_v0 = vadd.f32 %v18517_v36, %v14572_v7  ;;  %v14745_v12 = vpop.f32.mrb[173].mxu1  ;;  %v14554_v39 = vpop.f32.mrb[175].mxu0 }
 0x5d5   : > { %v18518_v24 = vpop.f32.mrb[174].mxu1  ;;  %v14571_v15 = vadd.f32 %v14554_v39, %v14395_v29 }
 0x5d6   : > { %v14787_v61 = vadd.f32 %v14785_v35, %v14765_v0  ;;  %v14747_v21 = vpop.f32.mrb[175].mxu1 }
 0x5d7   : > { %v14764_v46 = vadd.f32 %v14747_v21, %v14571_v15 }
 0x5d8   : > { %14789 = vst [vmem:[%s22201_s27 + $0xf8] sm:$0xff] %v14787_v61 }
 0x5d9   : > { %v14786_v40 = vadd.f32 %v14784_v56, %v14764_v46 }
 0x5db   : > { %14788 = vst [vmem:[%s22201_s27 + $0xf0] sm:$0xff] %v14786_v40 }
 0x5dc   : > { %19305 = shalt.err (!%p19302_p2)
}
 0x5dd   : > { %s19306_s8 = scalar_lea.hbm %s22730_s7, 4096  ;;  %s19310_s19 = scalar_lea.hbm %s22783_s6, 8192 }
 0x5de   : > { %p19307_p13 = scmp.ne.s32.totalorder %s22730_s7, %s19306_s8  ;;  %p19311_p4 = scmp.lt.u32.totalorder %s22730_s7, %s22783_s6 }
 0x5df   : > { %p19312_p5 = scmp.lt.u32.totalorder %s19310_s19, %s19306_s8  ;;  %p19314_p11 = scmp.lt.u32.totalorder %s19306_s8, %s22730_s7 }
 0x5e0   : > { %p19308_p6 = pnand %p19307_p13, %p22810_p0 }
 0x5e1   : > { %p19313_p8 = por %p19312_p5, %p19311_p4 }
 0x5e2   : > { %p19309_p10 = pneg %p19308_p6 }
 0x5e3   : > { %p19315_p1 = por %p19314_p11, %p19313_p8 }
 0x5e5   : > { %p19316_p3 = pnand %p19315_p1, %p19309_p10 }
 0x5e7   : > { %19319 = shalt.err (!%p19316_p3)
}
 0x5e8   : > { %s19373_s14 = smov 128   ;;  %s19374_s16 = smov 8  }
 0x5e9   : > { %18529 = dma.vmem_to_hbm [thread:$0]  (%p22810_p0), %s22732_s29, 4096, %s22730_s7, %s14791_s17, %s19373_s14, %s19373_s14, %s19374_s16  }
 0x5ea PF: > { %s14819_s25 = sand.u32 1, %s19350_s21   ;;  %p22811_p7 = scmp.ne.s32.totalorder %s22792_s28, 0 }
 0x5eb   : > { %p22812_p9 = scmp.ge.s32.totalorder %s19362_s24, 2  ;;  %s14820_s12 = scalar_lea.sflag [#allocation6], %s14819_s25 }
 0x5ed   : > { %p18543_p12 = pnand %p22812_p9, %p22811_p7 }
 0x5ef   : > { %19345 = dma.done.wait (!%p18543_p12), %s14820_s12, 4096  }
 0x5f0   : > { %19347 = vsyncadd (!%p18543_p12), %s14820_s12, 4294963200  ;;  %p20_p2 = scmp.ge.s32.totalorder %s19520_s26, 4   ;;  %s22813_s21 = smov %s19354_s22 }
 0x5f1   : > { %s22814_s22 = smov %s19358_s23  ;;  %s22815_s23 = smov %s19536_s11 }
 0x5f2   : > { %s22816_s24 = smov %s19520_s26  ;;  %22 = sbr.rel (!%p20_p2) target bundleno = 6 (0x6), region = 113 }
 0x5f9   :  { %14825 = vsyncpa [#allocation5], 1 }
 0x5fa   :  { %14827 = vsyncpa [#allocation5 + $0x1], 1 }
 0x5fb   :  { %14828 = vsyncpa [#allocation8], 1 }
 0x5fc   :  { %14829 = vsyncpa [#allocation6], 1 }
 0x5fd   :  { %14831 = vsyncpa [#allocation6 + $0x1], 1 }

</bundles_post_ra>
